<compile_context>
chip_gen: v7x
topology: tpu7x:2x2x1
jax: 0.10.0
libtpu: 0.0.40
codegen_flags: <defaults>
</compile_context>

<pallas_src>
import jax
import jax.numpy as jnp
import numpy as np
from jax.experimental import pallas as pl
from jax.experimental.pallas import tpu as pltpu


def basic_block_kernel(x_ref, w1_ref, s1_ref, b1_ref, w2_ref, s2_ref, b2_ref,
                       o_ref, pad_sc):
    # x_ref:   (B, H, W, C) f32       raw input block (also the residual)
    # w*_ref:  (9, C, C)    bf16      conv weights, tap t = ky*3 + kx on the first axis
    # s*/b*:   (1, C)       f32       folded BatchNorm scale / bias
    # o_ref:   (B, H, W, C)
    # pad_sc:  (B, H+2, W+2, C) bf16  padded activation scratch (halo built in-kernel)
    B, H, W, C = x_ref.shape
    M = B * H * W

    # Zero only the 1-pixel halo border (cheap); the interior is overwritten below.
    # Not guarded by pl.when(program_id == 0): with a "parallel" grid axis each
    # TensorCore owns a private scratch and may never execute program_id 0.
    zrow = jnp.zeros((B, 1, W + 2, C), jnp.bfloat16)
    zcol = jnp.zeros((B, H, 1, C), jnp.bfloat16)
    pad_sc[:, 0:1, :, :] = zrow
    pad_sc[:, H + 1:H + 2, :, :] = zrow
    pad_sc[:, 1:H + 1, 0:1, :] = zcol
    pad_sc[:, 1:H + 1, W + 1:W + 2, :] = zcol

    def conv3x3_bn(w_ref, s_ref, b_ref):
        # 9 accumulating bf16 K=C matmuls fed straight from pad_sc (no im2col buffer),
        # f32 accumulation on the MXU output path.
        acc = None
        for ky in range(3):
            for kx in range(3):
                patch = pad_sc[:, ky:ky + H, kx:kx + W, :].reshape(M, C)
                part = jnp.dot(patch, w_ref[ky * 3 + kx],
                               preferred_element_type=jnp.float32)
                acc = part if acc is None else acc + part
        return acc * s_ref[...] + b_ref[...]

    # ---- conv1 + BN1 + ReLU ----  (single f32->bf16 cast of the whole interior)
    pad_sc[:, 1:H + 1, 1:W + 1, :] = x_ref[...].astype(jnp.bfloat16)
    out1 = jnp.maximum(conv3x3_bn(w1_ref, s1_ref, b1_ref), 0.0)

    # ---- conv2 + BN2 ----  (reuse pad_sc; border is still zero)
    pad_sc[:, 1:H + 1, 1:W + 1, :] = out1.reshape(B, H, W, C).astype(jnp.bfloat16)
    out2 = conv3x3_bn(w2_ref, s2_ref, b2_ref).reshape(B, H, W, C)

    # ---- residual add (f32, re-read x_ref only here) + ReLU ----
    o_ref[...] = jnp.maximum(out2 + x_ref[...], 0.0).astype(o_ref.dtype)


def _vmem_capacity_bytes():
    try:
        return int(pltpu.get_tpu_info().vmem_capacity_bytes)
    except Exception:
        return 64 * 1024 * 1024          # conservative: v7x per-TensorCore VMEM


def _vmem_estimate_bytes(b, H, W, C):
    m = b * H * W
    io = 2 * 2 * m * C * 4               # input + output blocks, f32, double-buffered
    pad = b * (H + 2) * (W + 2) * C * 2  # bf16 halo scratch
    wts = 2 * 2 * 9 * C * C * 2          # two conv weights, bf16, double-buffered
    tmp = 3 * m * C * 4                  # f32 accumulator / per-stage temporaries
    return io + pad + wts + tmp


def _pick_batch_block(N, H, W, C, budget_bytes):
    # Biggest divisor of N that fits the VMEM budget, capped at N//2 so the
    # "parallel" grid axis has >= 2 steps (keeps both v7x TensorCores busy).
    max_b = max(1, N // 2)
    best = 1
    for b in range(1, max_b + 1):
        if N % b == 0 and _vmem_estimate_bytes(b, H, W, C) <= budget_bytes:
            best = b
    return best


def basic_block_pallas(x_nchw, w1, w2, scale1, bias1, scale2, bias2,
                       batch_block=None):
    """x_nchw: (N, C, H, W) f32.  w*: (3, 3, Cin, Cout).  scale/bias: (C,)."""
    N, C, H, W = x_nchw.shape
    capacity = _vmem_capacity_bytes()
    if batch_block is None:
        batch_block = _pick_batch_block(N, H, W, C,
                                        budget_bytes=int(0.45 * capacity))
    assert N % batch_block == 0

    est = _vmem_estimate_bytes(batch_block, H, W, C)
    vmem_limit = int(min(capacity - (4 << 20), max(32 << 20, 2 * est + (8 << 20))))
    vmem_limit = max(vmem_limit, 16 << 20)

    # NCHW -> NHWC at the boundary (the module API is NCHW).
    x_nhwc = jnp.transpose(x_nchw, (0, 2, 3, 1))

    # (3,3,Cin,Cout) -> (9,Cin,Cout), tap-major (ky,kx) to match the kernel's loop
    # order; bf16 for the MXU (accumulation stays f32).
    w1_t = jnp.reshape(w1, (9, C, C)).astype(jnp.bfloat16)
    w2_t = jnp.reshape(w2, (9, C, C)).astype(jnp.bfloat16)
    s1 = scale1.reshape(1, C).astype(jnp.float32)
    b1 = bias1.reshape(1, C).astype(jnp.float32)
    s2 = scale2.reshape(1, C).astype(jnp.float32)
    b2 = bias2.reshape(1, C).astype(jnp.float32)

    weight_spec = pl.BlockSpec((9, C, C), lambda n: (0, 0, 0))
    vec_spec = pl.BlockSpec((1, C), lambda n: (0, 0))
    img_spec = pl.BlockSpec((batch_block, H, W, C), lambda n: (n, 0, 0, 0))

    out_nhwc = pl.pallas_call(
        basic_block_kernel,
        out_shape=jax.ShapeDtypeStruct((N, H, W, C), x_nchw.dtype),
        grid_spec=pltpu.PrefetchScalarGridSpec(
            num_scalar_prefetch=0,
            grid=(N // batch_block,),
            in_specs=[
                img_spec,
                weight_spec, vec_spec, vec_spec,
                weight_spec, vec_spec, vec_spec,
            ],
            out_specs=img_spec,
            scratch_shapes=[
                pltpu.VMEM((batch_block, H + 2, W + 2, C), jnp.bfloat16),
            ],
        ),
        compiler_params=pltpu.CompilerParams(
            dimension_semantics=("parallel",),
            vmem_limit_bytes=vmem_limit),
    )(x_nhwc, w1_t, s1, b1, w2_t, s2, b2)

    return jnp.transpose(out_nhwc, (0, 3, 1, 2))                   # NHWC -> NCHW


# ----------------------- pure-JAX reference (for verification) -----------------------
def _round_bf16(x):
    return x.astype(jnp.bfloat16).astype(jnp.float32)


def conv3x3_ref(x_nhwc, w):
    # Matches the kernel numerics: bf16-rounded conv inputs/weights, f32 accumulation.
    N, H, W, C = x_nhwc.shape
    xp = jnp.pad(x_nhwc, ((0, 0), (1, 1), (1, 1), (0, 0)))
    wb = _round_bf16(w)
    out = jnp.zeros((N, H, W, w.shape[-1]), jnp.float32)
    for ky in range(3):
        for kx in range(3):
            out = out + jnp.einsum('nhwc,cd->nhwd',
                                   _round_bf16(xp[:, ky:ky + H, kx:kx + W, :]),
                                   wb[ky, kx])
    return out


def basic_block_ref(x_nchw, w1, w2, s1, b1, s2, b2):
    x = jnp.transpose(x_nchw, (0, 2, 3, 1))
    out = conv3x3_ref(x, w1) * s1 + b1
    out = jnp.maximum(out, 0.0)
    out = conv3x3_ref(out, w2) * s2 + b2
    out = jnp.maximum(out + x, 0.0)
    return jnp.transpose(out, (0, 3, 1, 2))


if __name__ == "__main__":
    N, C, H, W = 2, 4, 16, 16   # inplanes == planes, stride=1, downsample=None
    key = jax.random.PRNGKey(0)
    kx, kw1, kw2, kg1, kb1, km1, kv1, kg2, kb2, km2, kv2 = jax.random.split(key, 11)

    x = jax.random.normal(kx, (N, C, H, W), jnp.float32)

    # Conv weights (PyTorch layout (Cout, Cin, 3, 3)) -> kernel layout (3, 3, Cin, Cout)
    fan_in = C * 3 * 3
    w1_torch = jax.random.normal(kw1, (C, C, 3, 3), jnp.float32) * np.sqrt(2.0 / fan_in)
    w2_torch = jax.random.normal(kw2, (C, C, 3, 3), jnp.float32) * np.sqrt(2.0 / fan_in)
    w1 = jnp.transpose(w1_torch, (2, 3, 1, 0))
    w2 = jnp.transpose(w2_torch, (2, 3, 1, 0))

    # BatchNorm (eval) parameters, folded to per-channel scale / bias.
    eps = 1e-5
    gamma1 = jax.random.uniform(kg1, (C,), jnp.float32, 0.5, 1.5)
    beta1 = jax.random.normal(kb1, (C,), jnp.float32) * 0.1
    rmean1 = jax.random.normal(km1, (C,), jnp.float32) * 0.1
    rvar1 = jax.random.uniform(kv1, (C,), jnp.float32, 0.5, 1.5)
    gamma2 = jax.random.uniform(kg2, (C,), jnp.float32, 0.5, 1.5)
    beta2 = jax.random.normal(kb2, (C,), jnp.float32) * 0.1
    rmean2 = jax.random.normal(km2, (C,), jnp.float32) * 0.1
    rvar2 = jax.random.uniform(kv2, (C,), jnp.float32, 0.5, 1.5)

    scale1 = gamma1 / jnp.sqrt(rvar1 + eps)
    bias1 = beta1 - rmean1 * scale1
    scale2 = gamma2 / jnp.sqrt(rvar2 + eps)
    bias2 = beta2 - rmean2 * scale2

    out = basic_block_pallas(x, w1, w2, scale1, bias1, scale2, bias2)
    out = jax.block_until_ready(out)

    ref = basic_block_ref(x, w1, w2, scale1, bias1, scale2, bias2)
    np.testing.assert_allclose(np.asarray(out), np.asarray(ref), rtol=1e-4, atol=1e-4)

    print("KERNEL_OK")
</pallas_src>

<mosaic_0001>
module attributes {stable_mosaic.version = 11 : i64} {
  func.func @basic_block_kernel(%arg0: i32, %arg1: memref<1x16x16x4xf32, #tpu.memory_space<vmem>>, %arg2: memref<9x4x4xbf16, #tpu.memory_space<vmem>>, %arg3: memref<1x4xf32, #tpu.memory_space<vmem>>, %arg4: memref<1x4xf32, #tpu.memory_space<vmem>>, %arg5: memref<9x4x4xbf16, #tpu.memory_space<vmem>>, %arg6: memref<1x4xf32, #tpu.memory_space<vmem>>, %arg7: memref<1x4xf32, #tpu.memory_space<vmem>>, %arg8: memref<1x16x16x4xf32, #tpu.memory_space<vmem>>, %arg9: memref<1x18x18x4xbf16, #tpu.memory_space<vmem>>) attributes {dimension_semantics = [#tpu.dimension_semantics<parallel>], iteration_bounds = array<i64: 2>, scalar_prefetch = 0 : i64, scratch_operands = 1 : i64, tpu.core_type = #tpu.core_type<tc>, window_params = [{transform_indices = @transform_0, window_bounds = array<i64: 1, 16, 16, 4>}, {pipeline_mode = #tpu.pipeline_mode<synchronous>, transform_indices = @transform_1, window_bounds = array<i64: 9, 4, 4>}, {pipeline_mode = #tpu.pipeline_mode<synchronous>, transform_indices = @transform_2, window_bounds = array<i64: 1, 4>}, {pipeline_mode = #tpu.pipeline_mode<synchronous>, transform_indices = @transform_3, window_bounds = array<i64: 1, 4>}, {pipeline_mode = #tpu.pipeline_mode<synchronous>, transform_indices = @transform_4, window_bounds = array<i64: 9, 4, 4>}, {pipeline_mode = #tpu.pipeline_mode<synchronous>, transform_indices = @transform_5, window_bounds = array<i64: 1, 4>}, {pipeline_mode = #tpu.pipeline_mode<synchronous>, transform_indices = @transform_6, window_bounds = array<i64: 1, 4>}, {transform_indices = @transform_7, window_bounds = array<i64: 1, 16, 16, 4>}]} {
    %cst = arith.constant 0.000000e+00 : bf16
    %0 = vector.broadcast %cst : bf16 to vector<1x1x18x4xbf16>
    %cst_0 = arith.constant 0.000000e+00 : bf16
    %1 = vector.broadcast %cst_0 : bf16 to vector<1x16x1x4xbf16>
    %c0 = arith.constant 0 : index
    %c0_1 = arith.constant 0 : index
    %c0_2 = arith.constant 0 : index
    %c0_3 = arith.constant 0 : index
    %2 = vector.load %arg9[%c0, %c0_1, %c0_2, %c0_3] : memref<1x18x18x4xbf16, #tpu.memory_space<vmem>>, vector<1x1x18x4xbf16>
    tpu.vector_store %arg9[%c0, %c0_1, %c0_2, %c0_3], %0 {strides = array<i32>} : memref<1x18x18x4xbf16, #tpu.memory_space<vmem>>, vector<1x1x18x4xbf16>,
    %c0_4 = arith.constant 0 : index
    %c17 = arith.constant 17 : index
    %c0_5 = arith.constant 0 : index
    %c0_6 = arith.constant 0 : index
    %3 = vector.load %arg9[%c0_4, %c17, %c0_5, %c0_6] : memref<1x18x18x4xbf16, #tpu.memory_space<vmem>>, vector<1x1x18x4xbf16>
    tpu.vector_store %arg9[%c0_4, %c17, %c0_5, %c0_6], %0 {strides = array<i32>} : memref<1x18x18x4xbf16, #tpu.memory_space<vmem>>, vector<1x1x18x4xbf16>,
    %c0_7 = arith.constant 0 : index
    %c1 = arith.constant 1 : index
    %c0_8 = arith.constant 0 : index
    %c0_9 = arith.constant 0 : index
    %4 = vector.load %arg9[%c0_7, %c1, %c0_8, %c0_9] : memref<1x18x18x4xbf16, #tpu.memory_space<vmem>>, vector<1x16x1x4xbf16>
    tpu.vector_store %arg9[%c0_7, %c1, %c0_8, %c0_9], %1 {strides = array<i32>} : memref<1x18x18x4xbf16, #tpu.memory_space<vmem>>, vector<1x16x1x4xbf16>,
    %c0_10 = arith.constant 0 : index
    %c1_11 = arith.constant 1 : index
    %c17_12 = arith.constant 17 : index
    %c0_13 = arith.constant 0 : index
    %5 = vector.load %arg9[%c0_10, %c1_11, %c17_12, %c0_13] : memref<1x18x18x4xbf16, #tpu.memory_space<vmem>>, vector<1x16x1x4xbf16>
    tpu.vector_store %arg9[%c0_10, %c1_11, %c17_12, %c0_13], %1 {strides = array<i32>} : memref<1x18x18x4xbf16, #tpu.memory_space<vmem>>, vector<1x16x1x4xbf16>,
    %c0_14 = arith.constant 0 : index
    %c0_15 = arith.constant 0 : index
    %c0_16 = arith.constant 0 : index
    %c0_17 = arith.constant 0 : index
    %6 = vector.load %arg1[%c0_14, %c0_15, %c0_16, %c0_17] : memref<1x16x16x4xf32, #tpu.memory_space<vmem>>, vector<1x16x16x4xf32>
    %7 = arith.truncf %6 : vector<1x16x16x4xf32> to vector<1x16x16x4xbf16>
    %c0_18 = arith.constant 0 : index
    %c1_19 = arith.constant 1 : index
    %c1_20 = arith.constant 1 : index
    %c0_21 = arith.constant 0 : index
    %8 = vector.load %arg9[%c0_18, %c1_19, %c1_20, %c0_21] : memref<1x18x18x4xbf16, #tpu.memory_space<vmem>>, vector<1x16x16x4xbf16>
    tpu.vector_store %arg9[%c0_18, %c1_19, %c1_20, %c0_21], %7 {strides = array<i32>} : memref<1x18x18x4xbf16, #tpu.memory_space<vmem>>, vector<1x16x16x4xbf16>,
    %c0_22 = arith.constant 0 : index
    %c0_23 = arith.constant 0 : index
    %c0_24 = arith.constant 0 : index
    %c0_25 = arith.constant 0 : index
    %9 = vector.load %arg9[%c0_22, %c0_23, %c0_24, %c0_25] : memref<1x18x18x4xbf16, #tpu.memory_space<vmem>>, vector<1x16x16x4xbf16>
    %10 = vector.shape_cast %9 : vector<1x16x16x4xbf16> to vector<256x4xbf16>
    %c0_26 = arith.constant 0 : index
    %c0_27 = arith.constant 0 : index
    %c0_28 = arith.constant 0 : index
    %11 = vector.load %arg2[%c0_26, %c0_27, %c0_28] : memref<9x4x4xbf16, #tpu.memory_space<vmem>>, vector<1x4x4xbf16>
    %12 = vector.shape_cast %11 : vector<1x4x4xbf16> to vector<4x4xbf16>
    %cst_29 = arith.constant dense<0.000000e+00> : vector<256x4xf32>
    %13 = tpu.matmul %10, %12, %cst_29 {dimension_numbers = #tpu.dot_dimension_numbers<[1], [0], [0], [1], [0, 0, 1, 1], [], []>} : vector<256x4xbf16>, vector<4x4xbf16>, vector<256x4xf32> -> vector<256x4xf32>
    %c0_30 = arith.constant 0 : index
    %c0_31 = arith.constant 0 : index
    %c1_32 = arith.constant 1 : index
    %c0_33 = arith.constant 0 : index
    %14 = vector.load %arg9[%c0_30, %c0_31, %c1_32, %c0_33] : memref<1x18x18x4xbf16, #tpu.memory_space<vmem>>, vector<1x16x16x4xbf16>
    %15 = vector.shape_cast %14 : vector<1x16x16x4xbf16> to vector<256x4xbf16>
    %c1_34 = arith.constant 1 : index
    %c0_35 = arith.constant 0 : index
    %c0_36 = arith.constant 0 : index
    %16 = vector.load %arg2[%c1_34, %c0_35, %c0_36] : memref<9x4x4xbf16, #tpu.memory_space<vmem>>, vector<1x4x4xbf16>
    %17 = vector.shape_cast %16 : vector<1x4x4xbf16> to vector<4x4xbf16>
    %cst_37 = arith.constant dense<0.000000e+00> : vector<256x4xf32>
    %18 = tpu.matmul %15, %17, %cst_37 {dimension_numbers = #tpu.dot_dimension_numbers<[1], [0], [0], [1], [0, 0, 1, 1], [], []>} : vector<256x4xbf16>, vector<4x4xbf16>, vector<256x4xf32> -> vector<256x4xf32>
    %19 = arith.addf %13, %18 : vector<256x4xf32>
    %c0_38 = arith.constant 0 : index
    %c0_39 = arith.constant 0 : index
    %c2 = arith.constant 2 : index
    %c0_40 = arith.constant 0 : index
    %20 = vector.load %arg9[%c0_38, %c0_39, %c2, %c0_40] : memref<1x18x18x4xbf16, #tpu.memory_space<vmem>>, vector<1x16x16x4xbf16>
    %21 = vector.shape_cast %20 : vector<1x16x16x4xbf16> to vector<256x4xbf16>
    %c2_41 = arith.constant 2 : index
    %c0_42 = arith.constant 0 : index
    %c0_43 = arith.constant 0 : index
    %22 = vector.load %arg2[%c2_41, %c0_42, %c0_43] : memref<9x4x4xbf16, #tpu.memory_space<vmem>>, vector<1x4x4xbf16>
    %23 = vector.shape_cast %22 : vector<1x4x4xbf16> to vector<4x4xbf16>
    %cst_44 = arith.constant dense<0.000000e+00> : vector<256x4xf32>
    %24 = tpu.matmul %21, %23, %cst_44 {dimension_numbers = #tpu.dot_dimension_numbers<[1], [0], [0], [1], [0, 0, 1, 1], [], []>} : vector<256x4xbf16>, vector<4x4xbf16>, vector<256x4xf32> -> vector<256x4xf32>
    %25 = arith.addf %19, %24 : vector<256x4xf32>
    %c0_45 = arith.constant 0 : index
    %c1_46 = arith.constant 1 : index
    %c0_47 = arith.constant 0 : index
    %c0_48 = arith.constant 0 : index
    %26 = vector.load %arg9[%c0_45, %c1_46, %c0_47, %c0_48] : memref<1x18x18x4xbf16, #tpu.memory_space<vmem>>, vector<1x16x16x4xbf16>
    %27 = vector.shape_cast %26 : vector<1x16x16x4xbf16> to vector<256x4xbf16>
    %c3 = arith.constant 3 : index
    %c0_49 = arith.constant 0 : index
    %c0_50 = arith.constant 0 : index
    %28 = vector.load %arg2[%c3, %c0_49, %c0_50] : memref<9x4x4xbf16, #tpu.memory_space<vmem>>, vector<1x4x4xbf16>
    %29 = vector.shape_cast %28 : vector<1x4x4xbf16> to vector<4x4xbf16>
    %cst_51 = arith.constant dense<0.000000e+00> : vector<256x4xf32>
    %30 = tpu.matmul %27, %29, %cst_51 {dimension_numbers = #tpu.dot_dimension_numbers<[1], [0], [0], [1], [0, 0, 1, 1], [], []>} : vector<256x4xbf16>, vector<4x4xbf16>, vector<256x4xf32> -> vector<256x4xf32>
    %31 = arith.addf %25, %30 : vector<256x4xf32>
    %c0_52 = arith.constant 0 : index
    %c1_53 = arith.constant 1 : index
    %c1_54 = arith.constant 1 : index
    %c0_55 = arith.constant 0 : index
    %32 = vector.load %arg9[%c0_52, %c1_53, %c1_54, %c0_55] : memref<1x18x18x4xbf16, #tpu.memory_space<vmem>>, vector<1x16x16x4xbf16>
    %33 = vector.shape_cast %32 : vector<1x16x16x4xbf16> to vector<256x4xbf16>
    %c4 = arith.constant 4 : index
    %c0_56 = arith.constant 0 : index
    %c0_57 = arith.constant 0 : index
    %34 = vector.load %arg2[%c4, %c0_56, %c0_57] : memref<9x4x4xbf16, #tpu.memory_space<vmem>>, vector<1x4x4xbf16>
    %35 = vector.shape_cast %34 : vector<1x4x4xbf16> to vector<4x4xbf16>
    %cst_58 = arith.constant dense<0.000000e+00> : vector<256x4xf32>
    %36 = tpu.matmul %33, %35, %cst_58 {dimension_numbers = #tpu.dot_dimension_numbers<[1], [0], [0], [1], [0, 0, 1, 1], [], []>} : vector<256x4xbf16>, vector<4x4xbf16>, vector<256x4xf32> -> vector<256x4xf32>
    %37 = arith.addf %31, %36 : vector<256x4xf32>
    %c0_59 = arith.constant 0 : index
    %c1_60 = arith.constant 1 : index
    %c2_61 = arith.constant 2 : index
    %c0_62 = arith.constant 0 : index
    %38 = vector.load %arg9[%c0_59, %c1_60, %c2_61, %c0_62] : memref<1x18x18x4xbf16, #tpu.memory_space<vmem>>, vector<1x16x16x4xbf16>
    %39 = vector.shape_cast %38 : vector<1x16x16x4xbf16> to vector<256x4xbf16>
    %c5 = arith.constant 5 : index
    %c0_63 = arith.constant 0 : index
    %c0_64 = arith.constant 0 : index
    %40 = vector.load %arg2[%c5, %c0_63, %c0_64] : memref<9x4x4xbf16, #tpu.memory_space<vmem>>, vector<1x4x4xbf16>
    %41 = vector.shape_cast %40 : vector<1x4x4xbf16> to vector<4x4xbf16>
    %cst_65 = arith.constant dense<0.000000e+00> : vector<256x4xf32>
    %42 = tpu.matmul %39, %41, %cst_65 {dimension_numbers = #tpu.dot_dimension_numbers<[1], [0], [0], [1], [0, 0, 1, 1], [], []>} : vector<256x4xbf16>, vector<4x4xbf16>, vector<256x4xf32> -> vector<256x4xf32>
    %43 = arith.addf %37, %42 : vector<256x4xf32>
    %c0_66 = arith.constant 0 : index
    %c2_67 = arith.constant 2 : index
    %c0_68 = arith.constant 0 : index
    %c0_69 = arith.constant 0 : index
    %44 = vector.load %arg9[%c0_66, %c2_67, %c0_68, %c0_69] : memref<1x18x18x4xbf16, #tpu.memory_space<vmem>>, vector<1x16x16x4xbf16>
    %45 = vector.shape_cast %44 : vector<1x16x16x4xbf16> to vector<256x4xbf16>
    %c6 = arith.constant 6 : index
    %c0_70 = arith.constant 0 : index
    %c0_71 = arith.constant 0 : index
    %46 = vector.load %arg2[%c6, %c0_70, %c0_71] : memref<9x4x4xbf16, #tpu.memory_space<vmem>>, vector<1x4x4xbf16>
    %47 = vector.shape_cast %46 : vector<1x4x4xbf16> to vector<4x4xbf16>
    %cst_72 = arith.constant dense<0.000000e+00> : vector<256x4xf32>
    %48 = tpu.matmul %45, %47, %cst_72 {dimension_numbers = #tpu.dot_dimension_numbers<[1], [0], [0], [1], [0, 0, 1, 1], [], []>} : vector<256x4xbf16>, vector<4x4xbf16>, vector<256x4xf32> -> vector<256x4xf32>
    %49 = arith.addf %43, %48 : vector<256x4xf32>
    %c0_73 = arith.constant 0 : index
    %c2_74 = arith.constant 2 : index
    %c1_75 = arith.constant 1 : index
    %c0_76 = arith.constant 0 : index
    %50 = vector.load %arg9[%c0_73, %c2_74, %c1_75, %c0_76] : memref<1x18x18x4xbf16, #tpu.memory_space<vmem>>, vector<1x16x16x4xbf16>
    %51 = vector.shape_cast %50 : vector<1x16x16x4xbf16> to vector<256x4xbf16>
    %c7 = arith.constant 7 : index
    %c0_77 = arith.constant 0 : index
    %c0_78 = arith.constant 0 : index
    %52 = vector.load %arg2[%c7, %c0_77, %c0_78] : memref<9x4x4xbf16, #tpu.memory_space<vmem>>, vector<1x4x4xbf16>
    %53 = vector.shape_cast %52 : vector<1x4x4xbf16> to vector<4x4xbf16>
    %cst_79 = arith.constant dense<0.000000e+00> : vector<256x4xf32>
    %54 = tpu.matmul %51, %53, %cst_79 {dimension_numbers = #tpu.dot_dimension_numbers<[1], [0], [0], [1], [0, 0, 1, 1], [], []>} : vector<256x4xbf16>, vector<4x4xbf16>, vector<256x4xf32> -> vector<256x4xf32>
    %55 = arith.addf %49, %54 : vector<256x4xf32>
    %c0_80 = arith.constant 0 : index
    %c2_81 = arith.constant 2 : index
    %c2_82 = arith.constant 2 : index
    %c0_83 = arith.constant 0 : index
    %56 = vector.load %arg9[%c0_80, %c2_81, %c2_82, %c0_83] : memref<1x18x18x4xbf16, #tpu.memory_space<vmem>>, vector<1x16x16x4xbf16>
    %57 = vector.shape_cast %56 : vector<1x16x16x4xbf16> to vector<256x4xbf16>
    %c8 = arith.constant 8 : index
    %c0_84 = arith.constant 0 : index
    %c0_85 = arith.constant 0 : index
    %58 = vector.load %arg2[%c8, %c0_84, %c0_85] : memref<9x4x4xbf16, #tpu.memory_space<vmem>>, vector<1x4x4xbf16>
    %59 = vector.shape_cast %58 : vector<1x4x4xbf16> to vector<4x4xbf16>
    %cst_86 = arith.constant dense<0.000000e+00> : vector<256x4xf32>
    %60 = tpu.matmul %57, %59, %cst_86 {dimension_numbers = #tpu.dot_dimension_numbers<[1], [0], [0], [1], [0, 0, 1, 1], [], []>} : vector<256x4xbf16>, vector<4x4xbf16>, vector<256x4xf32> -> vector<256x4xf32>
    %61 = arith.addf %55, %60 : vector<256x4xf32>
    %c0_87 = arith.constant 0 : index
    %c0_88 = arith.constant 0 : index
    %62 = vector.load %arg3[%c0_87, %c0_88] : memref<1x4xf32, #tpu.memory_space<vmem>>, vector<1x4xf32>
    %63 = vector.broadcast %62 : vector<1x4xf32> to vector<256x4xf32>
    %64 = arith.mulf %61, %63 : vector<256x4xf32>
    %c0_89 = arith.constant 0 : index
    %c0_90 = arith.constant 0 : index
    %65 = vector.load %arg4[%c0_89, %c0_90] : memref<1x4xf32, #tpu.memory_space<vmem>>, vector<1x4xf32>
    %66 = vector.broadcast %65 : vector<1x4xf32> to vector<256x4xf32>
    %67 = arith.addf %64, %66 : vector<256x4xf32>
    %cst_91 = arith.constant 0.000000e+00 : f32
    %68 = vector.broadcast %cst_91 : f32 to vector<256x4xf32>
    %69 = arith.maximumf %67, %68 : vector<256x4xf32>
    %70 = vector.shape_cast %69 : vector<256x4xf32> to vector<1x16x16x4xf32>
    %71 = arith.truncf %70 : vector<1x16x16x4xf32> to vector<1x16x16x4xbf16>
    %c0_92 = arith.constant 0 : index
    %c1_93 = arith.constant 1 : index
    %c1_94 = arith.constant 1 : index
    %c0_95 = arith.constant 0 : index
    %72 = vector.load %arg9[%c0_92, %c1_93, %c1_94, %c0_95] : memref<1x18x18x4xbf16, #tpu.memory_space<vmem>>, vector<1x16x16x4xbf16>
    tpu.vector_store %arg9[%c0_92, %c1_93, %c1_94, %c0_95], %71 {strides = array<i32>} : memref<1x18x18x4xbf16, #tpu.memory_space<vmem>>, vector<1x16x16x4xbf16>,
    %c0_96 = arith.constant 0 : index
    %c0_97 = arith.constant 0 : index
    %c0_98 = arith.constant 0 : index
    %c0_99 = arith.constant 0 : index
    %73 = vector.load %arg9[%c0_96, %c0_97, %c0_98, %c0_99] : memref<1x18x18x4xbf16, #tpu.memory_space<vmem>>, vector<1x16x16x4xbf16>
    %74 = vector.shape_cast %73 : vector<1x16x16x4xbf16> to vector<256x4xbf16>
    %c0_100 = arith.constant 0 : index
    %c0_101 = arith.constant 0 : index
    %c0_102 = arith.constant 0 : index
    %75 = vector.load %arg5[%c0_100, %c0_101, %c0_102] : memref<9x4x4xbf16, #tpu.memory_space<vmem>>, vector<1x4x4xbf16>
    %76 = vector.shape_cast %75 : vector<1x4x4xbf16> to vector<4x4xbf16>
    %cst_103 = arith.constant dense<0.000000e+00> : vector<256x4xf32>
    %77 = tpu.matmul %74, %76, %cst_103 {dimension_numbers = #tpu.dot_dimension_numbers<[1], [0], [0], [1], [0, 0, 1, 1], [], []>} : vector<256x4xbf16>, vector<4x4xbf16>, vector<256x4xf32> -> vector<256x4xf32>
    %c0_104 = arith.constant 0 : index
    %c0_105 = arith.constant 0 : index
    %c1_106 = arith.constant 1 : index
    %c0_107 = arith.constant 0 : index
    %78 = vector.load %arg9[%c0_104, %c0_105, %c1_106, %c0_107] : memref<1x18x18x4xbf16, #tpu.memory_space<vmem>>, vector<1x16x16x4xbf16>
    %79 = vector.shape_cast %78 : vector<1x16x16x4xbf16> to vector<256x4xbf16>
    %c1_108 = arith.constant 1 : index
    %c0_109 = arith.constant 0 : index
    %c0_110 = arith.constant 0 : index
    %80 = vector.load %arg5[%c1_108, %c0_109, %c0_110] : memref<9x4x4xbf16, #tpu.memory_space<vmem>>, vector<1x4x4xbf16>
    %81 = vector.shape_cast %80 : vector<1x4x4xbf16> to vector<4x4xbf16>
    %cst_111 = arith.constant dense<0.000000e+00> : vector<256x4xf32>
    %82 = tpu.matmul %79, %81, %cst_111 {dimension_numbers = #tpu.dot_dimension_numbers<[1], [0], [0], [1], [0, 0, 1, 1], [], []>} : vector<256x4xbf16>, vector<4x4xbf16>, vector<256x4xf32> -> vector<256x4xf32>
    %83 = arith.addf %77, %82 : vector<256x4xf32>
    %c0_112 = arith.constant 0 : index
    %c0_113 = arith.constant 0 : index
    %c2_114 = arith.constant 2 : index
    %c0_115 = arith.constant 0 : index
    %84 = vector.load %arg9[%c0_112, %c0_113, %c2_114, %c0_115] : memref<1x18x18x4xbf16, #tpu.memory_space<vmem>>, vector<1x16x16x4xbf16>
    %85 = vector.shape_cast %84 : vector<1x16x16x4xbf16> to vector<256x4xbf16>
    %c2_116 = arith.constant 2 : index
    %c0_117 = arith.constant 0 : index
    %c0_118 = arith.constant 0 : index
    %86 = vector.load %arg5[%c2_116, %c0_117, %c0_118] : memref<9x4x4xbf16, #tpu.memory_space<vmem>>, vector<1x4x4xbf16>
    %87 = vector.shape_cast %86 : vector<1x4x4xbf16> to vector<4x4xbf16>
    %cst_119 = arith.constant dense<0.000000e+00> : vector<256x4xf32>
    %88 = tpu.matmul %85, %87, %cst_119 {dimension_numbers = #tpu.dot_dimension_numbers<[1], [0], [0], [1], [0, 0, 1, 1], [], []>} : vector<256x4xbf16>, vector<4x4xbf16>, vector<256x4xf32> -> vector<256x4xf32>
    %89 = arith.addf %83, %88 : vector<256x4xf32>
    %c0_120 = arith.constant 0 : index
    %c1_121 = arith.constant 1 : index
    %c0_122 = arith.constant 0 : index
    %c0_123 = arith.constant 0 : index
    %90 = vector.load %arg9[%c0_120, %c1_121, %c0_122, %c0_123] : memref<1x18x18x4xbf16, #tpu.memory_space<vmem>>, vector<1x16x16x4xbf16>
    %91 = vector.shape_cast %90 : vector<1x16x16x4xbf16> to vector<256x4xbf16>
    %c3_124 = arith.constant 3 : index
    %c0_125 = arith.constant 0 : index
    %c0_126 = arith.constant 0 : index
    %92 = vector.load %arg5[%c3_124, %c0_125, %c0_126] : memref<9x4x4xbf16, #tpu.memory_space<vmem>>, vector<1x4x4xbf16>
    %93 = vector.shape_cast %92 : vector<1x4x4xbf16> to vector<4x4xbf16>
    %cst_127 = arith.constant dense<0.000000e+00> : vector<256x4xf32>
    %94 = tpu.matmul %91, %93, %cst_127 {dimension_numbers = #tpu.dot_dimension_numbers<[1], [0], [0], [1], [0, 0, 1, 1], [], []>} : vector<256x4xbf16>, vector<4x4xbf16>, vector<256x4xf32> -> vector<256x4xf32>
    %95 = arith.addf %89, %94 : vector<256x4xf32>
    %c0_128 = arith.constant 0 : index
    %c1_129 = arith.constant 1 : index
    %c1_130 = arith.constant 1 : index
    %c0_131 = arith.constant 0 : index
    %96 = vector.load %arg9[%c0_128, %c1_129, %c1_130, %c0_131] : memref<1x18x18x4xbf16, #tpu.memory_space<vmem>>, vector<1x16x16x4xbf16>
    %97 = vector.shape_cast %96 : vector<1x16x16x4xbf16> to vector<256x4xbf16>
    %c4_132 = arith.constant 4 : index
    %c0_133 = arith.constant 0 : index
    %c0_134 = arith.constant 0 : index
    %98 = vector.load %arg5[%c4_132, %c0_133, %c0_134] : memref<9x4x4xbf16, #tpu.memory_space<vmem>>, vector<1x4x4xbf16>
    %99 = vector.shape_cast %98 : vector<1x4x4xbf16> to vector<4x4xbf16>
    %cst_135 = arith.constant dense<0.000000e+00> : vector<256x4xf32>
    %100 = tpu.matmul %97, %99, %cst_135 {dimension_numbers = #tpu.dot_dimension_numbers<[1], [0], [0], [1], [0, 0, 1, 1], [], []>} : vector<256x4xbf16>, vector<4x4xbf16>, vector<256x4xf32> -> vector<256x4xf32>
    %101 = arith.addf %95, %100 : vector<256x4xf32>
    %c0_136 = arith.constant 0 : index
    %c1_137 = arith.constant 1 : index
    %c2_138 = arith.constant 2 : index
    %c0_139 = arith.constant 0 : index
    %102 = vector.load %arg9[%c0_136, %c1_137, %c2_138, %c0_139] : memref<1x18x18x4xbf16, #tpu.memory_space<vmem>>, vector<1x16x16x4xbf16>
    %103 = vector.shape_cast %102 : vector<1x16x16x4xbf16> to vector<256x4xbf16>
    %c5_140 = arith.constant 5 : index
    %c0_141 = arith.constant 0 : index
    %c0_142 = arith.constant 0 : index
    %104 = vector.load %arg5[%c5_140, %c0_141, %c0_142] : memref<9x4x4xbf16, #tpu.memory_space<vmem>>, vector<1x4x4xbf16>
    %105 = vector.shape_cast %104 : vector<1x4x4xbf16> to vector<4x4xbf16>
    %cst_143 = arith.constant dense<0.000000e+00> : vector<256x4xf32>
    %106 = tpu.matmul %103, %105, %cst_143 {dimension_numbers = #tpu.dot_dimension_numbers<[1], [0], [0], [1], [0, 0, 1, 1], [], []>} : vector<256x4xbf16>, vector<4x4xbf16>, vector<256x4xf32> -> vector<256x4xf32>
    %107 = arith.addf %101, %106 : vector<256x4xf32>
    %c0_144 = arith.constant 0 : index
    %c2_145 = arith.constant 2 : index
    %c0_146 = arith.constant 0 : index
    %c0_147 = arith.constant 0 : index
    %108 = vector.load %arg9[%c0_144, %c2_145, %c0_146, %c0_147] : memref<1x18x18x4xbf16, #tpu.memory_space<vmem>>, vector<1x16x16x4xbf16>
    %109 = vector.shape_cast %108 : vector<1x16x16x4xbf16> to vector<256x4xbf16>
    %c6_148 = arith.constant 6 : index
    %c0_149 = arith.constant 0 : index
    %c0_150 = arith.constant 0 : index
    %110 = vector.load %arg5[%c6_148, %c0_149, %c0_150] : memref<9x4x4xbf16, #tpu.memory_space<vmem>>, vector<1x4x4xbf16>
    %111 = vector.shape_cast %110 : vector<1x4x4xbf16> to vector<4x4xbf16>
    %cst_151 = arith.constant dense<0.000000e+00> : vector<256x4xf32>
    %112 = tpu.matmul %109, %111, %cst_151 {dimension_numbers = #tpu.dot_dimension_numbers<[1], [0], [0], [1], [0, 0, 1, 1], [], []>} : vector<256x4xbf16>, vector<4x4xbf16>, vector<256x4xf32> -> vector<256x4xf32>
    %113 = arith.addf %107, %112 : vector<256x4xf32>
    %c0_152 = arith.constant 0 : index
    %c2_153 = arith.constant 2 : index
    %c1_154 = arith.constant 1 : index
    %c0_155 = arith.constant 0 : index
    %114 = vector.load %arg9[%c0_152, %c2_153, %c1_154, %c0_155] : memref<1x18x18x4xbf16, #tpu.memory_space<vmem>>, vector<1x16x16x4xbf16>
    %115 = vector.shape_cast %114 : vector<1x16x16x4xbf16> to vector<256x4xbf16>
    %c7_156 = arith.constant 7 : index
    %c0_157 = arith.constant 0 : index
    %c0_158 = arith.constant 0 : index
    %116 = vector.load %arg5[%c7_156, %c0_157, %c0_158] : memref<9x4x4xbf16, #tpu.memory_space<vmem>>, vector<1x4x4xbf16>
    %117 = vector.shape_cast %116 : vector<1x4x4xbf16> to vector<4x4xbf16>
    %cst_159 = arith.constant dense<0.000000e+00> : vector<256x4xf32>
    %118 = tpu.matmul %115, %117, %cst_159 {dimension_numbers = #tpu.dot_dimension_numbers<[1], [0], [0], [1], [0, 0, 1, 1], [], []>} : vector<256x4xbf16>, vector<4x4xbf16>, vector<256x4xf32> -> vector<256x4xf32>
    %119 = arith.addf %113, %118 : vector<256x4xf32>
    %c0_160 = arith.constant 0 : index
    %c2_161 = arith.constant 2 : index
    %c2_162 = arith.constant 2 : index
    %c0_163 = arith.constant 0 : index
    %120 = vector.load %arg9[%c0_160, %c2_161, %c2_162, %c0_163] : memref<1x18x18x4xbf16, #tpu.memory_space<vmem>>, vector<1x16x16x4xbf16>
    %121 = vector.shape_cast %120 : vector<1x16x16x4xbf16> to vector<256x4xbf16>
    %c8_164 = arith.constant 8 : index
    %c0_165 = arith.constant 0 : index
    %c0_166 = arith.constant 0 : index
    %122 = vector.load %arg5[%c8_164, %c0_165, %c0_166] : memref<9x4x4xbf16, #tpu.memory_space<vmem>>, vector<1x4x4xbf16>
    %123 = vector.shape_cast %122 : vector<1x4x4xbf16> to vector<4x4xbf16>
    %cst_167 = arith.constant dense<0.000000e+00> : vector<256x4xf32>
    %124 = tpu.matmul %121, %123, %cst_167 {dimension_numbers = #tpu.dot_dimension_numbers<[1], [0], [0], [1], [0, 0, 1, 1], [], []>} : vector<256x4xbf16>, vector<4x4xbf16>, vector<256x4xf32> -> vector<256x4xf32>
    %125 = arith.addf %119, %124 : vector<256x4xf32>
    %c0_168 = arith.constant 0 : index
    %c0_169 = arith.constant 0 : index
    %126 = vector.load %arg6[%c0_168, %c0_169] : memref<1x4xf32, #tpu.memory_space<vmem>>, vector<1x4xf32>
    %127 = vector.broadcast %126 : vector<1x4xf32> to vector<256x4xf32>
    %128 = arith.mulf %125, %127 : vector<256x4xf32>
    %c0_170 = arith.constant 0 : index
    %c0_171 = arith.constant 0 : index
    %129 = vector.load %arg7[%c0_170, %c0_171] : memref<1x4xf32, #tpu.memory_space<vmem>>, vector<1x4xf32>
    %130 = vector.broadcast %129 : vector<1x4xf32> to vector<256x4xf32>
    %131 = arith.addf %128, %130 : vector<256x4xf32>
    %132 = vector.shape_cast %131 : vector<256x4xf32> to vector<1x16x16x4xf32>
    %c0_172 = arith.constant 0 : index
    %c0_173 = arith.constant 0 : index
    %c0_174 = arith.constant 0 : index
    %c0_175 = arith.constant 0 : index
    %133 = vector.load %arg1[%c0_172, %c0_173, %c0_174, %c0_175] : memref<1x16x16x4xf32, #tpu.memory_space<vmem>>, vector<1x16x16x4xf32>
    %134 = arith.addf %132, %133 : vector<1x16x16x4xf32>
    %cst_176 = arith.constant 0.000000e+00 : f32
    %135 = vector.broadcast %cst_176 : f32 to vector<1x16x16x4xf32>
    %136 = arith.maximumf %134, %135 : vector<1x16x16x4xf32>
    %c0_177 = arith.constant 0 : index
    %c0_178 = arith.constant 0 : index
    %c0_179 = arith.constant 0 : index
    %c0_180 = arith.constant 0 : index
    %137 = vector.load %arg8[%c0_177, %c0_178, %c0_179, %c0_180] : memref<1x16x16x4xf32, #tpu.memory_space<vmem>>, vector<1x16x16x4xf32>
    tpu.vector_store %arg8[%c0_177, %c0_178, %c0_179, %c0_180], %136 {strides = array<i32>} : memref<1x16x16x4xf32, #tpu.memory_space<vmem>>, vector<1x16x16x4xf32>,
    return
  }
  func.func @transform_0(%arg0: i32) -> (i32, i32, i32, i32) {
    %c0_i32 = arith.constant 0 : i32
    %c0_i32_0 = arith.constant 0 : i32
    %c0_i32_1 = arith.constant 0 : i32
    %c0_i32_2 = arith.constant 0 : i32
    return %arg0, %c0_i32, %c0_i32_0, %c0_i32_1 : i32, i32, i32, i32
  }
  func.func @transform_1(%arg0: i32) -> (i32, i32, i32) {
    %c0_i32 = arith.constant 0 : i32
    %c0_i32_0 = arith.constant 0 : i32
    %c0_i32_1 = arith.constant 0 : i32
    %c0_i32_2 = arith.constant 0 : i32
    return %c0_i32, %c0_i32_0, %c0_i32_1 : i32, i32, i32
  }
  func.func @transform_2(%arg0: i32) -> (i32, i32) {
    %c0_i32 = arith.constant 0 : i32
    %c0_i32_0 = arith.constant 0 : i32
    %c0_i32_1 = arith.constant 0 : i32
    return %c0_i32, %c0_i32_0 : i32, i32
  }
  func.func @transform_3(%arg0: i32) -> (i32, i32) {
    %c0_i32 = arith.constant 0 : i32
    %c0_i32_0 = arith.constant 0 : i32
    %c0_i32_1 = arith.constant 0 : i32
    return %c0_i32, %c0_i32_0 : i32, i32
  }
  func.func @transform_4(%arg0: i32) -> (i32, i32, i32) {
    %c0_i32 = arith.constant 0 : i32
    %c0_i32_0 = arith.constant 0 : i32
    %c0_i32_1 = arith.constant 0 : i32
    %c0_i32_2 = arith.constant 0 : i32
    return %c0_i32, %c0_i32_0, %c0_i32_1 : i32, i32, i32
  }
  func.func @transform_5(%arg0: i32) -> (i32, i32) {
    %c0_i32 = arith.constant 0 : i32
    %c0_i32_0 = arith.constant 0 : i32
    %c0_i32_1 = arith.constant 0 : i32
    return %c0_i32, %c0_i32_0 : i32, i32
  }
  func.func @transform_6(%arg0: i32) -> (i32, i32) {
    %c0_i32 = arith.constant 0 : i32
    %c0_i32_0 = arith.constant 0 : i32
    %c0_i32_1 = arith.constant 0 : i32
    return %c0_i32, %c0_i32_0 : i32, i32
  }
  func.func @transform_7(%arg0: i32) -> (i32, i32, i32, i32) {
    %c0_i32 = arith.constant 0 : i32
    %c0_i32_0 = arith.constant 0 : i32
    %c0_i32_1 = arith.constant 0 : i32
    %c0_i32_2 = arith.constant 0 : i32
    return %arg0, %c0_i32, %c0_i32_0, %c0_i32_1 : i32, i32, i32, i32
  }
}

</mosaic_0001>

<bundles_post_ra>
// kernel: tpu_custom_call.1
= control target key start
LH: loop header
LB: loop body
LE: loop exit
PB: predicated region body
PF: predicated region fallthrough
CT: control target
= control target key end

     0   :  { %s13416_s24 = smov 0   ;;  %s16988_s0 = inlined_call_operand.vmem [shape: f32[2,16,16,4], index: 0, kind: input, shape index: {}]   ;;  %s16989_s1 = inlined_call_operand.vmem [shape: bf16[9,4,4], index: 1, kind: input, shape index: {}]   ;;  %s16990_s2 = inlined_call_operand.vmem [shape: f32[1,4], index: 2, kind: input, shape index: {}]   ;;  %s16991_s3 = inlined_call_operand.vmem [shape: f32[1,4], index: 3, kind: input, shape index: {}]   ;;  %s16992_s4 = inlined_call_operand.vmem [shape: bf16[9,4,4], index: 4, kind: input, shape index: {}]   ;;  %s16993_s5 = inlined_call_operand.vmem [shape: f32[1,4], index: 5, kind: input, shape index: {}]   ;;  %s16994_s6 = inlined_call_operand.vmem [shape: f32[1,4], index: 6, kind: input, shape index: {}]   ;;  %s16995_s7 = inlined_call_operand.vmem [shape: f32[2,16,16,4], index: 7, kind: output, shape index: {}]  }
   0x1 LB: > { %s10960_s25 = sadd.s32 4294967295, %s13373_s24   ;;  %p10964_p0 = scmp.ge.s32.totalorder %s13373_s24, 1  ;;  %s13373_s24 = sphi %s13416_s24, %s17_s24  }
   0x2   : > { %p237_p1 = scmp.lt.s32.totalorder %s13373_s24, 3 }
   0x4   : > { %p238_p2 = pnand %p10964_p0, %p237_p1 }
   0x6   : > { %241 = sbr.rel (%p238_p2) target bundleno = 1738 (0x6ca), region = 48 }
   0xd   : > { %v11001_v0 = vld [vmem:[%s16989_s1 + $0x2] sm:$0x3]  ;;  %vm1490_vm0 = vcmask 1041408   ;;  %vm280_vm1 = vcmask 27648   ;;  %vm283_vm2 = vcmask 24576   ;;  %v13375_v2 = vmov 0  }
   0xe   : > { %13223 = vmatprep.subr.msk.bf16.mxu0 %vm1490_vm0, %v11001_v0  ;;  %v1492_v1 = vsel %vm1490_vm0, %v11001_v0, 0  ;;  %281 = vst.msk [vmem:[#allocation2] sm:$0xf] %vm280_vm1, %v13375_v2  ;;  %282 = vst.msk [vmem:[#allocation2 + $0x4] sm:$0xf] %vm280_vm1, %v13375_v2  ;;  %v17094_v3 = vmov 0 }
   0xf   : > { %284 = vst.msk [vmem:[#allocation2 + $0x8] sm:$0x1] %vm283_vm2, %v13375_v2  ;;  %vm291_vm3 = vsmask.f32 256  ;;  %vm341_vm4 = vsmask.f32 7938  ;;  %12100 = vmatpush3.bf16.msra.mxu0 %v1492_v1 }
  0x10   : > { %286 = vst.msk [vmem:[#allocation2 + $0xcc] sm:$0xf] %vm280_vm1, %v13375_v2  ;;  %287 = vst.msk [vmem:[#allocation2 + $0xd0] sm:$0xf] %vm280_vm1, %v13375_v2  ;;  %v987_v4 = vld [vmem:[%s16989_s1] sm:$0x3] }
  0x11   : > { %288 = vst.msk [vmem:[#allocation2 + $0xd4] sm:$0x1] %vm283_vm2, %v13375_v2  ;;  %vm13437_vm5 = vmand %vm283_vm2, %vm291_vm3  ;;  %13224 = vmatprep.subr.msk.bf16.mxu0 %vm1490_vm0, %v987_v4  ;;  %p269_p3 = scmp.lt.s32.totalorder %s10960_s25, 1  ;;  %v293_v6 = vld [vmem:[#allocation2 + $0xc] sm:$0x1]  ;;  %v13469_v18 = vsel %vm1490_vm0, %v987_v4, 0 }
  0x12   : > { %v17095_v3 = vsel %vm13437_vm5, 4294967295, %v17094_v3  ;;  %vm13446_vm6 = vmand %vm283_vm2, %vm341_vm4  ;;  %v343_v7 = vld [vmem:[#allocation2 + $0x14] sm:$0x1]  ;;  %vm1004_vm7 = vsmask.f32 3328  ;;  %v294_v8 = vsel %vm13437_vm5, 0, %v293_v6 }
  0x13   : > { %17096 = vst [vmem:[#allocation3_spill] sm:$0xff] %v17095_v3  ;;  %v344_v9 = vsel %vm13446_vm6, 0, %v343_v7  ;;  %v296_v10 = vld [vmem:[#allocation2 + $0x18] sm:$0x1]  ;;  %s17326_s25 = smov (!%p269_p3, %s10960_s25), 1  ;;  %vm1441_vm9 = vcmask 31744   ;;  %vm13489_vm11 = vmand %vm280_vm1, %vm341_vm4 }
  0x14   : > { %295 = vst [vmem:[#allocation2 + $0xc] sm:$0x1] %v294_v8  ;;  %345 = vst [vmem:[#allocation2 + $0x14] sm:$0x1] %v344_v9  ;;  %v297_v11 = vsel %vm13437_vm5, 0, %v296_v10  ;;  %s11727_s30 = sshll.u32 %s17326_s25, 8 }
  0x15   : > { %v346_v12 = vld [vmem:[#allocation2 + $0x20] sm:$0x1]  ;;  %v299_v13 = vld [vmem:[#allocation2 + $0x24] sm:$0x1]  ;;  %298 = vst [vmem:[#allocation2 + $0x18] sm:$0x1] %v297_v11  ;;  %s13480_s10 = scalar_lea.vmem %s16988_s0, %s11727_s30  ;;  %s16834_s21 = scalar_lea.vmem %s16995_s7, %s11727_s30 }
  0x16   : > { %v347_v14 = vsel %vm13446_vm6, 0, %v346_v12  ;;  %v300_v15 = vsel %vm13437_vm5, 0, %v299_v13  ;;  %v349_v16 = vld [vmem:[#allocation2 + $0x2c] sm:$0x1]  ;;  %v302_v17 = vld [vmem:[#allocation2 + $0x30] sm:$0x1] }
  0x17   : > { %vm1005_vm8 = vsmask.f32 7440  ;;  %348 = vst [vmem:[#allocation2 + $0x20] sm:$0x1] %v347_v14  ;;  %301 = vst [vmem:[#allocation2 + $0x24] sm:$0x1] %v300_v15 }
  0x18   : > { %v350_v19 = vsel %vm13446_vm6, 0, %v349_v16  ;;  %v303_v20 = vsel %vm13437_vm5, 0, %v302_v17  ;;  %v955_v21 = vld [vmem:[#allocation2] sm:$0xf]  ;;  %v956_v22 = vld [vmem:[#allocation2 + $0x4] sm:$0xf]  ;;  %vm13495_vm12 = vmor %vm1004_vm7, %vm1005_vm8 }
  0x19   : > { %v988_v23 = vld [vmem:[#allocation2 + $0x8] sm:$0x1]  ;;  %351 = vst [vmem:[#allocation2 + $0x2c] sm:$0x1] %v350_v19  ;;  %304 = vst [vmem:[#allocation2 + $0x30] sm:$0x1] %v303_v20 }
  0x1a   : > { %v1008_v24 = vshrl.u32 %v955_v21, 16  ;;  %v1011_v25 = vshll.u32 %v955_v21, 16  ;;  %v1017_v26 = vshll.u32 %v956_v22, 16  ;;  %v1021_v27 = vshrl.u32 %v956_v22, 16  ;;  %v391_v28 = vld [vmem:[%s13480_s10] sm:$0xff]  ;;  %v392_v29 = vld [vmem:[%s13480_s10 + $0x8] sm:$0xff] }
  0x1b   : > { %v1027_v30 = vshll.u32 %v988_v23, 16  ;;  %v11729_v31 = vpack.c.bf16 %v391_v28, %v391_v28  ;;  %v11730_v32 = vpack.c.bf16 %v392_v29, %v392_v29  ;;  %vm519_vm10 = vsmask.f32 4368  ;;  %v393_v33 = vld [vmem:[%s13480_s10 + $0x10] sm:$0xff]  ;;  %v394_v38 = vld [vmem:[%s13480_s10 + $0x18] sm:$0xff]  ;;  %v395_v39 = vld [vmem:[%s13480_s10 + $0x20] sm:$0xff] }
  0x1c   : > { %v1010_v34 = vrot.slane %v1008_v24, 4  ;;  %v1013_v35 = vrot.slane %v1011_v25, 5  ;;  %v1019_v36 = vrot.slane %v1017_v26, 5  ;;  %v1023_v37 = vrot.slane %v1021_v27, 4  ;;  %v843_v52 = vld [vmem:[#allocation2 + $0xc] sm:$0xf]  ;;  %vm13501_vm13 = vmor %vm291_vm3, %vm519_vm10 }
  0x1d   : > { %v1029_v40 = vrot.slane %v1027_v30, 5  ;;  %v522_v41 = vshrl.u32 %v11729_v31, 16  ;;  %v525_v42 = vshll.u32 %v11729_v31, 16  ;;  %v530_v43 = vshrl.u32 %v11730_v32, 16  ;;  %v847_v58 = vld [vmem:[#allocation2 + $0x14] sm:$0x1] }
  0x1e   : > { %v17099_v44 = vmov 0  ;;  %v1014_v45 = vor.u32 %v1013_v35, %v1010_v34  ;;  %v1024_v46 = vor.u32 %v1023_v37, %v1019_v36  ;;  %v533_v47 = vshll.u32 %v11730_v32, 16  ;;  %v396_v7 = vld [vmem:[%s13480_s10 + $0x28] sm:$0xff]  ;;  %v352_v8 = vld [vmem:[#allocation2 + $0x38] sm:$0x1]  ;;  %v397_v14 = vld [vmem:[%s13480_s10 + $0x30] sm:$0xff] }
  0x1f   : > { %v17100_v44 = vsel %vm13489_vm11, 4294967295, %v17099_v44  ;;  %v11731_v48 = vpack.c.bf16 %v393_v33, %v393_v33  ;;  %v524_v50 = vrot.slane %v522_v41, 7  ;;  %v532_v51 = vrot.slane %v530_v43, 7  ;;  %v850_v13 = vld [vmem:[#allocation2 + $0x18] sm:$0xf]  ;;  %v399_v41 = vld [vmem:[%s13480_s10 + $0x40] sm:$0xff] }
  0x20   : > { %17101 = vst [vmem:[#allocation4_spill] sm:$0xff] %v17100_v44  ;;  %v11732_v53 = vpack.c.bf16 %v394_v38, %v394_v38  ;;  %v11733_v54 = vpack.c.bf16 %v395_v39, %v395_v39  ;;  %v1015_v55 = vrot.slane %v1014_v45, 4  ;;  %v1025_v56 = vrot.slane %v1024_v46, 4  ;;  %v398_v20 = vld [vmem:[%s13480_s10 + $0x38] sm:$0xff]  ;;  %v854_v21 = vld [vmem:[#allocation2 + $0x20] sm:$0x1] }
  0x21   : > { %v17104_v57 = vmov 0  ;;  %v539_v59 = vshrl.u32 %v11731_v48, 16  ;;  %v542_v60 = vshll.u32 %v11731_v48, 16  ;;  %v527_v61 = vor.u32 %v525_v42, %v524_v50  ;;  %v305_v30 = vld [vmem:[#allocation2 + $0x3c] sm:$0x1] }
  0x22   : > { %v17105_v57 = vsel %vm13501_vm13, 4294967295, %v17104_v57  ;;  %v528_v62 = vrot.slane %v524_v50, 4  ;;  %v535_v63 = vor.u32 %v533_v47, %v532_v51  ;;  %v537_v0 = vrot.slane %v532_v51, 4  ;;  %v355_v35 = vld [vmem:[#allocation2 + $0x44] sm:$0x1] }
  0x23   : > { %17106 = vst [vmem:[#allocation5_spill] sm:$0xff] %v17105_v57  ;;  %v1020_v1 = vsel %vm13495_vm12, %v1015_v55, %v1019_v36  ;;  %v1030_v2 = vsel %vm13495_vm12, %v1025_v56, %v1029_v40  ;;  %v541_v4 = vrot.slane %v539_v59, 7  ;;  %v547_v6 = vshrl.u32 %v11732_v53, 16  ;;  %v857_v38 = vld [vmem:[#allocation2 + $0x24] sm:$0xf] }
  0x24   : > { %v11002_v9 = vcombine.low %v1020_v1, %v1030_v2  ;;  %v536_v10 = vsel %vm13501_vm13, %v528_v62, %v535_v63  ;;  %v844_v11 = vsel %vm13489_vm11, %v527_v61, %v843_v52  ;;  %v848_v12 = vsel %vm13437_vm5, %v537_v0, %v847_v58  ;;  %v400_v52 = vld [vmem:[%s13480_s10 + $0x48] sm:$0xff] }
  0x25   : > { %845 = vst [vmem:[#allocation2 + $0xc] sm:$0xf] %v844_v11  ;;  %846 = vst.msk [vmem:[#allocation2 + $0x10] sm:$0xf] %vm280_vm1, %v536_v10  ;;  %v544_v15 = vor.u32 %v542_v60, %v541_v4  ;;  %v545_v16 = vrot.slane %v541_v4, 4  ;;  %v549_v17 = vrot.slane %v547_v6, 7  ;;  %v11734_v22 = vpack.c.bf16 %v396_v7, %v396_v7 }
  0x26   : > { %849 = vst [vmem:[#allocation2 + $0x14] sm:$0x1] %v848_v12  ;;  %v550_v19 = vshll.u32 %v11732_v53, 16  ;;  %12101 = vmatprep.mubr.msk.bf16.mxu0 %vm1441_vm9, %v11002_v9  ;;  %v556_v23 = vshrl.u32 %v11733_v54, 16  ;;  %v559_v24 = vshll.u32 %v11733_v54, 16  ;;  %v353_v25 = vsel %vm13446_vm6, 0, %v352_v8 }
  0x27   : > { %v554_v27 = vrot.slane %v549_v17, 4  ;;  %v851_v28 = vsel %vm13489_vm11, %v544_v15, %v850_v13  ;;  %354 = vst [vmem:[#allocation2 + $0x38] sm:$0x1] %v353_v25  ;;  %v11735_v29 = vpack.c.bf16 %v397_v14, %v397_v14  ;;  %v564_v32 = vshrl.u32 %v11734_v22, 16  ;;  %v861_v0 = vld [vmem:[#allocation2 + $0x2c] sm:$0x1] }
  0x28   : > { %v552_v26 = vor.u32 %v550_v19, %v549_v17  ;;  %852 = vst [vmem:[#allocation2 + $0x18] sm:$0xf] %v851_v28  ;;  %v558_v31 = vrot.slane %v556_v23, 7  ;;  %v567_v33 = vshll.u32 %v11734_v22, 16  ;;  %v13524_v34 = vpack.c.bf16 %v398_v20, %v398_v20 }
  0x29   : > { %v855_v37 = vsel %vm13437_vm5, %v554_v27, %v854_v21  ;;  %v573_v39 = vshrl.u32 %v11735_v29, 16  ;;  %v576_v40 = vshll.u32 %v11735_v29, 16  ;;  %v566_v45 = vrot.slane %v564_v32, 7 }
  0x2a   : > { %v553_v36 = vsel %vm13501_vm13, %v545_v16, %v552_v26  ;;  %856 = vst [vmem:[#allocation2 + $0x20] sm:$0x1] %v855_v37  ;;  %v561_v42 = vor.u32 %v559_v24, %v558_v31  ;;  %v562_v43 = vrot.slane %v558_v31, 4  ;;  %v581_v46 = vshrl.u32 %v13524_v34, 16  ;;  %v864_v16 = vld [vmem:[#allocation2 + $0x30] sm:$0xf] }
  0x2b   : > { %853 = vst.msk [vmem:[#allocation2 + $0x1c] sm:$0xf] %vm280_vm1, %v553_v36  ;;  %v13533_v47 = vrot.slane %v573_v39, 7  ;;  %v584_v48 = vshll.u32 %v13524_v34, 16  ;;  %v306_v50 = vsel %vm13437_vm5, 0, %v305_v30  ;;  %v356_v51 = vsel %vm13446_vm6, 0, %v355_v35 }
  0x2c   : > { %v957_v53 = vld [vmem:[#allocation2 + $0xc] sm:$0xf]  ;;  %v958_v54 = vld [vmem:[#allocation2 + $0x10] sm:$0xf]  ;;  %v569_v56 = vor.u32 %v567_v33, %v566_v45  ;;  %v858_v58 = vsel %vm13489_vm11, %v561_v42, %v857_v38  ;;  %307 = vst [vmem:[#allocation2 + $0x3c] sm:$0x1] %v306_v50  ;;  %v13543_v59 = vpack.c.bf16 %v399_v41, %v399_v41  ;;  %v13547_v6 = vpack.c.bf16 %v400_v52, %v400_v52 }
  0x2d   : > { %v989_v55 = vld [vmem:[#allocation2 + $0x14] sm:$0x1]  ;;  %357 = vst [vmem:[#allocation2 + $0x44] sm:$0x1] %v356_v51  ;;  %v1032_v60 = vshrl.u32 %v957_v53, 16  ;;  %v1035_v61 = vshll.u32 %v957_v53, 16  ;;  %v578_v22 = vor.u32 %v576_v40, %v13533_v47 }
  0x2e   : > { %v1041_v62 = vshll.u32 %v958_v54, 16  ;;  %v1045_v63 = vshrl.u32 %v958_v54, 16  ;;  %859 = vst [vmem:[#allocation2 + $0x24] sm:$0xf] %v858_v58  ;;  %v1051_v1 = vshll.u32 %v989_v55, 16  ;;  %v570_v2 = vsel %vm13501_vm13, %v562_v43, %v569_v56 }
  0x2f   : > { %v571_v4 = vrot.slane %v566_v45, 4  ;;  %v1034_v7 = vrot.slane %v1032_v60, 4  ;;  %v1037_v8 = vrot.slane %v1035_v61, 5  ;;  %v959_v11 = vld [vmem:[#allocation2 + $0x18] sm:$0xf]  ;;  %v579_v23 = vrot.slane %v13533_v47, 4 }
  0x30   : > { %v1043_v9 = vrot.slane %v1041_v62, 5  ;;  %v1047_v10 = vrot.slane %v1045_v63, 4  ;;  %860 = vst.msk [vmem:[#allocation2 + $0x28] sm:$0xf] %vm280_vm1, %v570_v2  ;;  %v1053_v12 = vrot.slane %v1051_v1, 5  ;;  %v1056_v13 = vshrl.u32 %v959_v11, 16 }
  0x31   : > { %v1059_v14 = vshll.u32 %v959_v11, 16  ;;  %v862_v15 = vsel %vm13437_vm5, %v571_v4, %v861_v0  ;;  %v1038_v17 = vor.u32 %v1037_v8, %v1034_v7  ;;  %v990_v21 = vld [vmem:[#allocation2 + $0x20] sm:$0x1]  ;;  %v583_v31 = vrot.slane %v581_v46, 7  ;;  %v868_v54 = vld [vmem:[#allocation2 + $0x38] sm:$0x1] }
  0x32   : > { %v1048_v19 = vor.u32 %v1047_v10, %v1043_v9  ;;  %v960_v20 = vld [vmem:[#allocation2 + $0x1c] sm:$0xf]  ;;  %863 = vst [vmem:[#allocation2 + $0x2c] sm:$0x1] %v862_v15  ;;  %v1058_v24 = vrot.slane %v1056_v13, 4  ;;  %v1075_v30 = vshll.u32 %v990_v21, 16  ;;  %v865_v37 = vsel %vm13489_vm11, %v578_v22, %v864_v16 }
  0x33   : > { %v1061_v25 = vrot.slane %v1059_v14, 5  ;;  %v1065_v26 = vshll.u32 %v960_v20, 16  ;;  %v1069_v27 = vshrl.u32 %v960_v20, 16  ;;  %v1039_v28 = vrot.slane %v1038_v17, 4  ;;  %866 = vst [vmem:[#allocation2 + $0x30] sm:$0xf] %v865_v37 }
  0x34   : > { %v1049_v29 = vrot.slane %v1048_v19, 4  ;;  %v1077_v40 = vrot.slane %v1075_v30, 5  ;;  %v586_v53 = vor.u32 %v584_v48, %v583_v31  ;;  %v588_v61 = vrot.slane %v583_v31, 4  ;;  %v871_v11 = vld [vmem:[#allocation2 + $0x3c] sm:$0xf]  ;;  %v401_v19 = vld [vmem:[%s13480_s10 + $0x50] sm:$0xff] }
  0x35   : > { %v1062_v32 = vor.u32 %v1061_v25, %v1058_v24  ;;  %v1067_v33 = vrot.slane %v1065_v26, 5  ;;  %v1071_v35 = vrot.slane %v1069_v27, 4  ;;  %v961_v36 = vld [vmem:[#allocation2 + $0x24] sm:$0xf]  ;;  %v1044_v38 = vsel %vm13495_vm12, %v1039_v28, %v1043_v9  ;;  %v402_v20 = vld [vmem:[%s13480_s10 + $0x58] sm:$0xff] }
  0x36   : > { %v1054_v39 = vsel %vm13495_vm12, %v1049_v29, %v1053_v12  ;;  %v1080_v41 = vshrl.u32 %v961_v36, 16  ;;  %v1083_v47 = vshll.u32 %v961_v36, 16  ;;  %v587_v1 = vsel %vm13501_vm13, %v579_v23, %v586_v53  ;;  %v358_v12 = vld [vmem:[#allocation2 + $0x50] sm:$0x1]  ;;  %v311_v21 = vld [vmem:[#allocation2 + $0x54] sm:$0x1] }
  0x37   : > { %v11003_v42 = vcombine.low %v1044_v38, %v1054_v39  ;;  %v1063_v43 = vrot.slane %v1062_v32, 4  ;;  %v1072_v45 = vor.u32 %v1071_v35, %v1067_v33  ;;  %v962_v46 = vld [vmem:[#allocation2 + $0x28] sm:$0xf]  ;;  %867 = vst.msk [vmem:[#allocation2 + $0x34] sm:$0xf] %vm280_vm1, %v587_v1  ;;  %v869_v2 = vsel %vm13437_vm5, %v588_v61, %v868_v54 }
  0x38   : > { %v1082_v50 = vrot.slane %v1080_v41, 4  ;;  %v1089_v51 = vshll.u32 %v962_v46, 16  ;;  %v1093_v52 = vshrl.u32 %v962_v46, 16  ;;  %v1085_v60 = vrot.slane %v1083_v47, 5  ;;  %870 = vst [vmem:[#allocation2 + $0x38] sm:$0x1] %v869_v2 }
  0x39   : > { %12102 = vmatmul.mubr.msk.bf16.vlgmr.msra.gmra.mrb[0].mxu0 %vm1441_vm9, %v11003_v42  ;;  %v1068_v55 = vsel %vm13495_vm12, %v1063_v43, %v1067_v33  ;;  %v1073_v56 = vrot.slane %v1072_v45, 4  ;;  %v991_v58 = vld [vmem:[#allocation2 + $0x2c] sm:$0x1]  ;;  %v590_v4 = vshrl.u32 %v13543_v59, 16  ;;  %v593_v10 = vshll.u32 %v13543_v59, 16 }
  0x3a   : > { %12134 = vmatpush3.bf16.msra.mxu0 %v13469_v18  ;;  %v1091_v62 = vrot.slane %v1089_v51, 5  ;;  %v1095_v63 = vrot.slane %v1093_v52, 4  ;;  %v1099_v0 = vshll.u32 %v991_v58, 16  ;;  %v1086_v48 = vor.u32 %v1085_v60, %v1082_v50  ;;  %v308_v18 = vld [vmem:[#allocation2 + $0x48] sm:$0x1] }
  0x3b   : > { %v1078_v34 = vsel %vm13495_vm12, %v1073_v56, %v1077_v40  ;;  %v963_v14 = vld [vmem:[#allocation2 + $0x30] sm:$0xf]  ;;  %v592_v15 = vrot.slane %v590_v4, 7  ;;  %v598_v16 = vshrl.u32 %v13547_v6, 16  ;;  %v601_v17 = vshll.u32 %v13547_v6, 16  ;;  %v403_v40 = vld [vmem:[%s13480_s10 + $0x60] sm:$0xff] }
  0x3c   : > { %v11004_v7 = vcombine.low %v1068_v55, %v1078_v34  ;;  %v1096_v8 = vor.u32 %v1095_v63, %v1091_v62  ;;  %v1101_v9 = vrot.slane %v1099_v0, 5  ;;  %v1087_v13 = vrot.slane %v1086_v48, 4  ;;  %v875_v25 = vld [vmem:[#allocation2 + $0x44] sm:$0x1]  ;;  %v361_v39 = vld [vmem:[#allocation2 + $0x5c] sm:$0x1] }
  0x3d   : > { %v1104_v23 = vshrl.u32 %v963_v14, 16  ;;  %v1107_v24 = vshll.u32 %v963_v14, 16  ;;  %v309_v59 = vsel %vm13437_vm5, 0, %v308_v18  ;;  %v595_v27 = vor.u32 %v593_v10, %v592_v15  ;;  %v11082_v6 = vld [vmem:[%s16989_s1 + $0x4] sm:$0x3]  ;;  %v404_v47 = vld [vmem:[%s13480_s10 + $0x68] sm:$0xff] }
  0x3e   : > { %12105 = vmatprep.mubr.msk.bf16.mxu0 %vm1441_vm9, %v11004_v7  ;;  %v1097_v22 = vrot.slane %v1096_v8, 4  ;;  %v1092_v26 = vsel %vm13495_vm12, %v1087_v13, %v1091_v62  ;;  %v596_v28 = vrot.slane %v592_v15, 4  ;;  %v600_v29 = vrot.slane %v598_v16, 7  ;;  %310 = vst [vmem:[#allocation2 + $0x48] sm:$0x1] %v309_v59  ;;  %13225 = vmatprep.subr.msk.bf16.mxu0 %vm1490_vm0, %v11082_v6 }
  0x3f   : > { %v1106_v31 = vrot.slane %v1104_v23, 4  ;;  %v1109_v32 = vrot.slane %v1107_v24, 5  ;;  %v359_v33 = vsel %vm13446_vm6, 0, %v358_v12  ;;  %v872_v38 = vsel %vm13489_vm11, %v595_v27, %v871_v11  ;;  %v964_v41 = vld [vmem:[#allocation2 + $0x34] sm:$0xf] }
  0x40   : > { %v1102_v30 = vsel %vm13495_vm12, %v1097_v22, %v1101_v9  ;;  %v603_v36 = vor.u32 %v601_v17, %v600_v29  ;;  %v605_v37 = vrot.slane %v600_v29, 4  ;;  %360 = vst [vmem:[#allocation2 + $0x50] sm:$0x1] %v359_v33  ;;  %873 = vst [vmem:[#allocation2 + $0x3c] sm:$0xf] %v872_v38  ;;  %v11739_v43 = vpack.c.bf16 %v401_v19, %v401_v19  ;;  %v406_v38 = vld [vmem:[%s13480_s10 + $0x78] sm:$0xff] }
  0x41   : > { %v11005_v35 = vcombine.low %v1092_v26, %v1102_v30  ;;  %v1110_v42 = vor.u32 %v1109_v32, %v1106_v31  ;;  %v11740_v45 = vpack.c.bf16 %v402_v20, %v402_v20  ;;  %v312_v46 = vsel %vm13437_vm5, 0, %v311_v21  ;;  %v992_v50 = vld [vmem:[#allocation2 + $0x38] sm:$0x1]  ;;  %v314_v59 = vld [vmem:[#allocation2 + $0x60] sm:$0x1] }
  0x42   : > { %v1113_v51 = vshll.u32 %v964_v41, 16  ;;  %v1117_v52 = vshrl.u32 %v964_v41, 16  ;;  %v604_v53 = vsel %vm13501_vm13, %v596_v28, %v603_v36  ;;  %v876_v54 = vsel %vm13437_vm5, %v605_v37, %v875_v25  ;;  %313 = vst [vmem:[#allocation2 + $0x54] sm:$0x1] %v312_v46  ;;  %v364_v31 = vld [vmem:[#allocation2 + $0x68] sm:$0x1] }
  0x43   : > { %12106 = vmatmul.mubr.msk.bf16.gmra.mrb[4].mxu0 %vm1441_vm9, %v11005_v35  ;;  %v1111_v55 = vrot.slane %v1110_v42, 4  ;;  %v1123_v56 = vshll.u32 %v992_v50, 16  ;;  %874 = vst.msk [vmem:[#allocation2 + $0x40] sm:$0xf] %vm280_vm1, %v604_v53  ;;  %877 = vst [vmem:[#allocation2 + $0x44] sm:$0x1] %v876_v54  ;;  %v11741_v4 = vpack.c.bf16 %v403_v40, %v403_v40  ;;  %v11742_v9 = vpack.c.bf16 %v404_v47, %v404_v47 }
  0x44   : > { %v607_v58 = vshrl.u32 %v11739_v43, 16  ;;  %v610_v60 = vshll.u32 %v11739_v43, 16  ;;  %v1115_v61 = vrot.slane %v1113_v51, 5  ;;  %v1119_v62 = vrot.slane %v1117_v52, 4  ;;  %v405_v37 = vld [vmem:[%s13480_s10 + $0x70] sm:$0xff]  ;;  %v407_v46 = vld [vmem:[%s13480_s10 + $0x80] sm:$0xff] }
  0x45   : > { %v615_v63 = vshrl.u32 %v11740_v45, 16  ;;  %v618_v0 = vshll.u32 %v11740_v45, 16  ;;  %v1125_v1 = vrot.slane %v1123_v56, 5  ;;  %v878_v48 = vld [vmem:[#allocation2 + $0x48] sm:$0xf]  ;;  %v362_v2 = vsel %vm13446_vm6, 0, %v361_v39 }
  0x46   : > { %v609_v34 = vrot.slane %v607_v58, 7  ;;  %v1116_v18 = vsel %vm13495_vm12, %v1111_v55, %v1115_v61  ;;  %v1120_v7 = vor.u32 %v1119_v62, %v1115_v61  ;;  %363 = vst [vmem:[#allocation2 + $0x5c] sm:$0x1] %v362_v2  ;;  %v624_v13 = vshrl.u32 %v11741_v4, 16  ;;  %v317_v39 = vld [vmem:[#allocation2 + $0x6c] sm:$0x1] }
  0x47   : > { %v617_v8 = vrot.slane %v615_v63, 7  ;;  %v882_v12 = vld [vmem:[#allocation2 + $0x50] sm:$0x1]  ;;  %v627_v14 = vshll.u32 %v11741_v4, 16  ;;  %v965_v16 = vld [vmem:[#allocation2 + $0x3c] sm:$0xf]  ;;  %v11744_v2 = vpack.c.bf16 %v406_v38, %v406_v38 }
  0x48   : > { %v612_v10 = vor.u32 %v610_v60, %v609_v34  ;;  %v613_v11 = vrot.slane %v609_v34, 4  ;;  %v1121_v15 = vrot.slane %v1120_v7, 4  ;;  %v632_v20 = vshrl.u32 %v11742_v9, 16  ;;  %v367_v45 = vld [vmem:[#allocation2 + $0x74] sm:$0x1]  ;;  %v408_v54 = vld [vmem:[%s13480_s10 + $0x88] sm:$0xff] }
  0x49   : > { %v620_v17 = vor.u32 %v618_v0, %v617_v8  ;;  %v622_v19 = vrot.slane %v617_v8, 4  ;;  %v1128_v21 = vshrl.u32 %v965_v16, 16  ;;  %v1131_v22 = vshll.u32 %v965_v16, 16  ;;  %v885_v25 = vld [vmem:[#allocation2 + $0x54] sm:$0xf] }
  0x4a   : > { %v879_v23 = vsel %vm13489_vm11, %v612_v10, %v878_v48  ;;  %v626_v24 = vrot.slane %v624_v13, 7  ;;  %v1126_v26 = vsel %vm13495_vm12, %v1121_v15, %v1125_v1  ;;  %v966_v27 = vld [vmem:[#allocation2 + $0x40] sm:$0xf]  ;;  %v993_v28 = vld [vmem:[#allocation2 + $0x44] sm:$0x1]  ;;  %v634_v30 = vrot.slane %v632_v20, 7 }
  0x4b   : > { %v621_v29 = vsel %vm13501_vm13, %v613_v11, %v620_v17  ;;  %880 = vst [vmem:[#allocation2 + $0x48] sm:$0xf] %v879_v23  ;;  %v883_v6 = vsel %vm13437_vm5, %v622_v19, %v882_v12  ;;  %v11006_v32 = vcombine.low %v1116_v18, %v1126_v26  ;;  %v1130_v33 = vrot.slane %v1128_v21, 4  ;;  %v409_v61 = vld [vmem:[%s13480_s10 + $0x90] sm:$0xff] }
  0x4c   : > { %v1133_v35 = vrot.slane %v1131_v22, 5  ;;  %v1137_v36 = vshll.u32 %v966_v27, 16  ;;  %881 = vst.msk [vmem:[#allocation2 + $0x4c] sm:$0xf] %vm280_vm1, %v621_v29  ;;  %884 = vst [vmem:[#allocation2 + $0x50] sm:$0x1] %v883_v6  ;;  %v629_v42 = vor.u32 %v627_v14, %v626_v24  ;;  %v11743_v48 = vpack.c.bf16 %v405_v37, %v405_v37 }
  0x4d   : > { %v1141_v40 = vshrl.u32 %v966_v27, 16  ;;  %v1147_v41 = vshll.u32 %v993_v28, 16  ;;  %v630_v43 = vrot.slane %v626_v24, 4  ;;  %12109 = vmatprep.mubr.msk.bf16.mxu0 %vm1441_vm9, %v11006_v32  ;;  %v635_v51 = vshll.u32 %v11742_v9, 16  ;;  %v889_v53 = vld [vmem:[#allocation2 + $0x5c] sm:$0x1] }
  0x4e   : > { %v1134_v47 = vor.u32 %v1133_v35, %v1130_v33  ;;  %v1139_v50 = vrot.slane %v1137_v36, 5  ;;  %v639_v52 = vrot.slane %v634_v30, 4  ;;  %v886_v58 = vsel %vm13489_vm11, %v629_v42, %v885_v25 }
  0x4f   : > { %v1143_v55 = vrot.slane %v1141_v40, 4  ;;  %v1149_v56 = vrot.slane %v1147_v41, 5  ;;  %v315_v60 = vsel %vm13437_vm5, 0, %v314_v59  ;;  %v637_v63 = vor.u32 %v635_v51, %v634_v30  ;;  %887 = vst [vmem:[#allocation2 + $0x54] sm:$0xf] %v886_v58 }
  0x50   : > { %v1135_v62 = vrot.slane %v1134_v47, 4  ;;  %v890_v0 = vsel %vm13437_vm5, %v639_v52, %v889_v53  ;;  %316 = vst [vmem:[#allocation2 + $0x60] sm:$0x1] %v315_v60  ;;  %v365_v1 = vsel %vm13446_vm6, 0, %v364_v31  ;;  %v318_v4 = vsel %vm13437_vm5, 0, %v317_v39 }
  0x51   : > { %v1144_v34 = vor.u32 %v1143_v55, %v1139_v50  ;;  %891 = vst [vmem:[#allocation2 + $0x5c] sm:$0x1] %v890_v0  ;;  %366 = vst [vmem:[#allocation2 + $0x68] sm:$0x1] %v365_v1  ;;  %v638_v8 = vsel %vm13501_vm13, %v630_v43, %v637_v63  ;;  %v368_v9 = vsel %vm13446_vm6, 0, %v367_v45  ;;  %v13641_v10 = vpack.c.bf16 %v407_v46, %v407_v46  ;;  %v410_v1 = vld [vmem:[%s13480_s10 + $0x98] sm:$0xff] }
  0x52   : > { %v1140_v18 = vsel %vm13495_vm12, %v1135_v62, %v1139_v50  ;;  %v13635_v7 = vld [vmem:[#allocation2 + $0x48] sm:$0xf]  ;;  %319 = vst [vmem:[#allocation2 + $0x6c] sm:$0x1] %v318_v4  ;;  %888 = vst.msk [vmem:[#allocation2 + $0x58] sm:$0xf] %vm280_vm1, %v638_v8  ;;  %v13647_v15 = vpack.c.bf16 %v408_v54, %v408_v54  ;;  %v13649_v16 = vpack.c.bf16 %v409_v61, %v409_v61 }
  0x53   : > { %v1145_v11 = vrot.slane %v1144_v34, 4  ;;  %v13643_v12 = vld [vmem:[#allocation2 + $0x4c] sm:$0xf]  ;;  %v994_v13 = vld [vmem:[#allocation2 + $0x50] sm:$0x1]  ;;  %v1152_v14 = vshrl.u32 %v13635_v7, 16 }
  0x54   : > { %369 = vst [vmem:[#allocation2 + $0x74] sm:$0x1] %v368_v9  ;;  %v1155_v17 = vshll.u32 %v13635_v7, 16  ;;  %v1161_v19 = vshll.u32 %v13643_v12, 16  ;;  %v1165_v20 = vshrl.u32 %v13643_v12, 16  ;;  %v1171_v21 = vshll.u32 %v994_v13, 16 }
  0x55   : > { %v1150_v22 = vsel %vm13495_vm12, %v1145_v11, %v1149_v56  ;;  %v1154_v23 = vrot.slane %v1152_v14, 4  ;;  %v641_v24 = vshrl.u32 %v11743_v48, 16  ;;  %v644_v25 = vshll.u32 %v11743_v48, 16  ;;  %v320_v58 = vld [vmem:[#allocation2 + $0x78] sm:$0x1] }
  0x56   : > { %v11007_v59 = vcombine.low %v1140_v18, %v1150_v22  ;;  %v1157_v26 = vrot.slane %v1155_v17, 5  ;;  %v1163_v27 = vrot.slane %v1161_v19, 5  ;;  %v1167_v28 = vrot.slane %v1165_v20, 4  ;;  %v13656_v6 = vld [vmem:[#allocation2 + $0x54] sm:$0xf] }
  0x57   : > { %v1173_v29 = vrot.slane %v1171_v21, 5  ;;  %v643_v30 = vrot.slane %v641_v24, 7  ;;  %v649_v31 = vshrl.u32 %v11744_v2, 16  ;;  %v652_v32 = vshll.u32 %v11744_v2, 16  ;;  %v892_v43 = vld [vmem:[#allocation2 + $0x60] sm:$0xf] }
  0x58   : > { %12110 = vmatmul.mubr.msk.bf16.gmra.mrb[8].mxu0 %vm1441_vm9, %v11007_v59  ;;  %v1158_v33 = vor.u32 %v1157_v26, %v1154_v23  ;;  %v1168_v35 = vor.u32 %v1167_v28, %v1163_v27  ;;  %v995_v36 = vld [vmem:[#allocation2 + $0x5c] sm:$0x1]  ;;  %v1176_v37 = vshrl.u32 %v13656_v6, 16  ;;  %v1179_v38 = vshll.u32 %v13656_v6, 16  ;;  %v896_v56 = vld [vmem:[#allocation2 + $0x68] sm:$0x1] }
  0x59   : > { %v1195_v39 = vshll.u32 %v995_v36, 16  ;;  %v646_v40 = vor.u32 %v644_v25, %v643_v30  ;;  %v647_v41 = vrot.slane %v643_v30, 4  ;;  %v651_v42 = vrot.slane %v649_v31, 7  ;;  %v13661_v47 = vld [vmem:[#allocation2 + $0x58] sm:$0xf] }
  0x5a   : > { %v1159_v45 = vrot.slane %v1158_v33, 4  ;;  %v1169_v46 = vrot.slane %v1168_v35, 4  ;;  %v1178_v50 = vrot.slane %v1176_v37, 4  ;;  %v1181_v51 = vrot.slane %v1179_v38, 5  ;;  %v370_v0 = vld [vmem:[#allocation2 + $0x80] sm:$0x1] }
  0x5b   : > { %v1185_v52 = vshll.u32 %v13661_v47, 16  ;;  %v1189_v53 = vshrl.u32 %v13661_v47, 16  ;;  %v1197_v54 = vrot.slane %v1195_v39, 5  ;;  %v654_v55 = vor.u32 %v652_v32, %v651_v42  ;;  %v323_v18 = vld [vmem:[#allocation2 + $0x84] sm:$0x1]  ;;  %v412_v38 = vld [vmem:[%s13480_s10 + $0xa8] sm:$0xff] }
  0x5c   : > { %v1164_v60 = vsel %vm13495_vm12, %v1159_v45, %v1163_v27  ;;  %v1174_v61 = vsel %vm13495_vm12, %v1169_v46, %v1173_v29  ;;  %v1182_v62 = vor.u32 %v1181_v51, %v1178_v50  ;;  %v656_v63 = vrot.slane %v651_v42, 4  ;;  %v899_v21 = vld [vmem:[#allocation2 + $0x6c] sm:$0xf]  ;;  %v903_v24 = vld [vmem:[#allocation2 + $0x74] sm:$0x1]  ;;  %v411_v37 = vld [vmem:[%s13480_s10 + $0xa0] sm:$0xff] }
  0x5d   : > { %v11008_v34 = vcombine.low %v1164_v60, %v1174_v61  ;;  %v1187_v48 = vrot.slane %v1185_v52, 5  ;;  %v1191_v2 = vrot.slane %v1189_v53, 4  ;;  %v655_v4 = vsel %vm13501_vm13, %v647_v41, %v654_v55  ;;  %v373_v52 = vld [vmem:[#allocation2 + $0x8c] sm:$0x1]  ;;  %v414_v53 = vld [vmem:[%s13480_s10 + $0xb8] sm:$0xff] }
  0x5e   : > { %v1183_v8 = vrot.slane %v1182_v62, 4  ;;  %v893_v9 = vsel %vm13489_vm11, %v646_v40, %v892_v43  ;;  %895 = vst.msk [vmem:[#allocation2 + $0x64] sm:$0xf] %vm280_vm1, %v655_v4  ;;  %v897_v11 = vsel %vm13437_vm5, %v656_v63, %v896_v56  ;;  %v658_v13 = vshrl.u32 %v13641_v10, 16 }
  0x5f   : > { %12113 = vmatprep.mubr.msk.bf16.mxu0 %vm1441_vm9, %v11008_v34  ;;  %v1192_v14 = vor.u32 %v1191_v2, %v1187_v48  ;;  %894 = vst [vmem:[#allocation2 + $0x60] sm:$0xf] %v893_v9  ;;  %898 = vst [vmem:[#allocation2 + $0x68] sm:$0x1] %v897_v11  ;;  %v661_v17 = vshll.u32 %v13641_v10, 16  ;;  %v666_v19 = vshrl.u32 %v13647_v15, 16  ;;  %v11748_v27 = vpack.c.bf16 %v410_v1, %v410_v1 }
  0x60   : > { %v669_v20 = vshll.u32 %v13647_v15, 16  ;;  %v1188_v22 = vsel %vm13495_vm12, %v1183_v8, %v1187_v48  ;;  %v660_v23 = vrot.slane %v658_v13, 7  ;;  %v321_v25 = vsel %vm13437_vm5, 0, %v320_v58 }
  0x61   : > { %v371_v59 = vsel %vm13446_vm6, 0, %v370_v0  ;;  %v1193_v26 = vrot.slane %v1192_v14, 4  ;;  %v668_v10 = vrot.slane %v666_v19, 7  ;;  %322 = vst [vmem:[#allocation2 + $0x78] sm:$0x1] %v321_v25  ;;  %v675_v15 = vshrl.u32 %v13649_v16, 16 }
  0x62   : > { %372 = vst [vmem:[#allocation2 + $0x80] sm:$0x1] %v371_v59  ;;  %v663_v28 = vor.u32 %v661_v17, %v660_v23  ;;  %v664_v29 = vrot.slane %v660_v23, 4  ;;  %v678_v30 = vshll.u32 %v13649_v16, 16  ;;  %v324_v31 = vsel %vm13437_vm5, 0, %v323_v18  ;;  %v413_v16 = vld [vmem:[%s13480_s10 + $0xb0] sm:$0xff] }
  0x63   : > { %v1198_v32 = vsel %vm13495_vm12, %v1193_v26, %v1197_v54  ;;  %v671_v33 = vor.u32 %v669_v20, %v668_v10  ;;  %v673_v35 = vrot.slane %v668_v10, 4  ;;  %v677_v36 = vrot.slane %v675_v15, 7  ;;  %325 = vst [vmem:[#allocation2 + $0x84] sm:$0x1] %v324_v31  ;;  %v416_v23 = vld [vmem:[%s13480_s10 + $0xc8] sm:$0xff] }
  0x64   : > { %v11009_v39 = vcombine.low %v1188_v22, %v1198_v32  ;;  %v900_v40 = vsel %vm13489_vm11, %v663_v28, %v899_v21  ;;  %v683_v41 = vshrl.u32 %v11748_v27, 16  ;;  %v686_v42 = vshll.u32 %v11748_v27, 16  ;;  %v415_v22 = vld [vmem:[%s13480_s10 + $0xc0] sm:$0xff] }
  0x65   : > { %v13699_v43 = vld [vmem:[#allocation2 + $0x64] sm:$0xf]  ;;  %v672_v45 = vsel %vm13501_vm13, %v664_v29, %v671_v33  ;;  %901 = vst [vmem:[#allocation2 + $0x6c] sm:$0xf] %v900_v40  ;;  %v904_v46 = vsel %vm13437_vm5, %v673_v35, %v903_v24  ;;  %v680_v50 = vor.u32 %v678_v30, %v677_v36  ;;  %v681_v51 = vrot.slane %v677_v36, 4 }
  0x66   : > { %12114 = vmatmul.mubr.msk.bf16.gmra.mrb[12].mxu0 %vm1441_vm9, %v11009_v39  ;;  %v13707_v54 = vld [vmem:[#allocation2 + $0x60] sm:$0xf]  ;;  %v13709_v55 = vld [vmem:[#allocation2 + $0x68] sm:$0x1]  ;;  %v1209_v56 = vshll.u32 %v13699_v43, 16  ;;  %v1213_v58 = vshrl.u32 %v13699_v43, 16  ;;  %v11749_v60 = vpack.c.bf16 %v411_v37, %v411_v37  ;;  %v13714_v61 = vpack.c.bf16 %v412_v38, %v412_v38 }
  0x67   : > { %902 = vst.msk [vmem:[#allocation2 + $0x70] sm:$0xf] %vm280_vm1, %v672_v45  ;;  %905 = vst [vmem:[#allocation2 + $0x74] sm:$0x1] %v904_v46  ;;  %v1200_v62 = vshrl.u32 %v13707_v54, 16  ;;  %v1203_v63 = vshll.u32 %v13707_v54, 16  ;;  %v13719_v18 = vpack.c.bf16 %v413_v16, %v413_v16  ;;  %v13721_v8 = vpack.c.bf16 %v414_v53, %v414_v53 }
  0x68   : > { %v1219_v0 = vshll.u32 %v13709_v55, 16  ;;  %v685_v1 = vrot.slane %v683_v41, 7  ;;  %v1211_v34 = vrot.slane %v1209_v56, 5  ;;  %v1215_v48 = vrot.slane %v1213_v58, 4  ;;  %v906_v2 = vld [vmem:[#allocation2 + $0x78] sm:$0xf] }
  0x69   : > { %v910_v4 = vld [vmem:[#allocation2 + $0x80] sm:$0x1]  ;;  %v1202_v9 = vrot.slane %v1200_v62, 4  ;;  %v1205_v11 = vrot.slane %v1203_v63, 5  ;;  %v907_v20 = vsel %vm13489_vm11, %v680_v50, %v906_v2  ;;  %v374_v21 = vsel %vm13446_vm6, 0, %v373_v52 }
  0x6a   : > { %v1221_v13 = vrot.slane %v1219_v0, 5  ;;  %v688_v14 = vor.u32 %v686_v42, %v685_v1  ;;  %v1216_v17 = vor.u32 %v1215_v48, %v1211_v34  ;;  %v690_v19 = vrot.slane %v685_v1, 4  ;;  %908 = vst [vmem:[#allocation2 + $0x78] sm:$0xf] %v907_v20  ;;  %375 = vst [vmem:[#allocation2 + $0x8c] sm:$0x1] %v374_v21 }
  0x6b   : > { %v1206_v24 = vor.u32 %v1205_v11, %v1202_v9  ;;  %v692_v59 = vshrl.u32 %v11749_v60, 16  ;;  %v695_v26 = vshll.u32 %v11749_v60, 16  ;;  %v700_v28 = vshrl.u32 %v13714_v61, 16  ;;  %v326_v41 = vld [vmem:[#allocation2 + $0x90] sm:$0x1] }
  0x6c   : > { %v689_v25 = vsel %vm13501_vm13, %v681_v51, %v688_v14  ;;  %v1217_v10 = vrot.slane %v1216_v17, 4  ;;  %v13731_v27 = vld [vmem:[#allocation2 + $0x6c] sm:$0xf]  ;;  %v911_v15 = vsel %vm13437_vm5, %v690_v19, %v910_v4  ;;  %v703_v29 = vshll.u32 %v13714_v61, 16  ;;  %v376_v50 = vld [vmem:[#allocation2 + $0x98] sm:$0x1] }
  0x6d   : > { %909 = vst.msk [vmem:[#allocation2 + $0x7c] sm:$0xf] %vm280_vm1, %v689_v25  ;;  %v1207_v30 = vrot.slane %v1206_v24, 4  ;;  %v1224_v33 = vshrl.u32 %v13731_v27, 16  ;;  %912 = vst [vmem:[#allocation2 + $0x80] sm:$0x1] %v911_v15  ;;  %v13743_v35 = vpack.c.bf16 %v415_v22, %v415_v22  ;;  %v13745_v36 = vpack.c.bf16 %v416_v23, %v416_v23 }
  0x6e   : > { %v13738_v31 = vld [vmem:[#allocation2 + $0x70] sm:$0xf]  ;;  %v13740_v32 = vld [vmem:[#allocation2 + $0x74] sm:$0x1]  ;;  %v1222_v37 = vsel %vm13495_vm12, %v1217_v10, %v1221_v13  ;;  %v1227_v38 = vshll.u32 %v13731_v27, 16  ;;  %v694_v46 = vrot.slane %v692_v59, 7 }
  0x6f   : > { %v1233_v39 = vshll.u32 %v13738_v31, 16  ;;  %v1237_v40 = vshrl.u32 %v13738_v31, 16  ;;  %v1212_v42 = vsel %vm13495_vm12, %v1207_v30, %v1211_v34  ;;  %v1226_v16 = vrot.slane %v1224_v33, 4  ;;  %v913_v34 = vld [vmem:[#allocation2 + $0x84] sm:$0xf] }
  0x70   : > { %v1243_v45 = vshll.u32 %v13740_v32, 16  ;;  %v11010_v51 = vcombine.low %v1212_v42, %v1222_v37  ;;  %v1229_v52 = vrot.slane %v1227_v38, 5  ;;  %v697_v60 = vor.u32 %v695_v26, %v694_v46  ;;  %v329_v24 = vld [vmem:[#allocation2 + $0x9c] sm:$0x1]  ;;  %v379_v33 = vld [vmem:[#allocation2 + $0xa4] sm:$0x1] }
  0x71   : > { %v1235_v53 = vrot.slane %v1233_v39, 5  ;;  %v1239_v56 = vrot.slane %v1237_v40, 4  ;;  %v698_v61 = vrot.slane %v694_v46, 4  ;;  %v702_v62 = vrot.slane %v700_v28, 7  ;;  %v13756_v1 = vld [vmem:[#allocation2 + $0x78] sm:$0xf] }
  0x72   : > { %v1245_v58 = vrot.slane %v1243_v45, 5  ;;  %12117 = vmatprep.mubr.msk.bf16.mxu0 %vm1441_vm9, %v11010_v51  ;;  %v1230_v63 = vor.u32 %v1229_v52, %v1226_v16  ;;  %v327_v48 = vsel %vm13437_vm5, 0, %v326_v41  ;;  %v377_v2 = vsel %vm13446_vm6, 0, %v376_v50  ;;  %v917_v17 = vld [vmem:[#allocation2 + $0x8c] sm:$0x1]  ;;  %v417_v37 = vld [vmem:[%s13480_s10 + $0xd0] sm:$0xff] }
  0x73   : > { %v1240_v0 = vor.u32 %v1239_v56, %v1235_v53  ;;  %v1248_v9 = vshrl.u32 %v13756_v1, 16  ;;  %v1251_v11 = vshll.u32 %v13756_v1, 16  ;;  %v705_v13 = vor.u32 %v703_v29, %v702_v62  ;;  %328 = vst [vmem:[#allocation2 + $0x90] sm:$0x1] %v327_v48  ;;  %378 = vst [vmem:[#allocation2 + $0x98] sm:$0x1] %v377_v2 }
  0x74   : > { %v13762_v4 = vld [vmem:[#allocation2 + $0x7c] sm:$0xf]  ;;  %v707_v14 = vrot.slane %v702_v62, 4  ;;  %v1231_v19 = vrot.slane %v1230_v63, 4  ;;  %v13766_v21 = vld [vmem:[#allocation2 + $0x80] sm:$0x1]  ;;  %v914_v41 = vsel %vm13489_vm11, %v697_v60, %v913_v34  ;;  %v13791_v62 = vpack.c.bf16 %v417_v37, %v417_v37 }
  0x75   : > { %v1241_v20 = vrot.slane %v1240_v0, 4  ;;  %v1257_v22 = vshll.u32 %v13762_v4, 16  ;;  %v1261_v23 = vshrl.u32 %v13762_v4, 16  ;;  %v1250_v25 = vrot.slane %v1248_v9, 4  ;;  %v418_v42 = vld [vmem:[%s13480_s10 + $0xd8] sm:$0xff] }
  0x76   : > { %v1253_v59 = vrot.slane %v1251_v11, 5  ;;  %v1267_v26 = vshll.u32 %v13766_v21, 16  ;;  %v706_v10 = vsel %vm13501_vm13, %v698_v61, %v705_v13  ;;  %v1236_v15 = vsel %vm13495_vm12, %v1231_v19, %v1235_v53  ;;  %915 = vst [vmem:[#allocation2 + $0x84] sm:$0xf] %v914_v41 }
  0x77   : > { %v1246_v28 = vsel %vm13495_vm12, %v1241_v20, %v1245_v58  ;;  %v1259_v29 = vrot.slane %v1257_v22, 5  ;;  %v1263_v30 = vrot.slane %v1261_v23, 4  ;;  %916 = vst.msk [vmem:[#allocation2 + $0x88] sm:$0xf] %vm280_vm1, %v706_v10  ;;  %v918_v45 = vsel %vm13437_vm5, %v707_v14, %v917_v17  ;;  %v332_v23 = vld [vmem:[#allocation2 + $0xa8] sm:$0x1] }
  0x78   : > { %v11011_v38 = vcombine.low %v1236_v15, %v1246_v28  ;;  %v1254_v39 = vor.u32 %v1253_v59, %v1250_v25  ;;  %v1269_v40 = vrot.slane %v1267_v26, 5  ;;  %v709_v46 = vshrl.u32 %v13719_v18, 16  ;;  %919 = vst [vmem:[#allocation2 + $0x8c] sm:$0x1] %v918_v45  ;;  %v382_v10 = vld [vmem:[#allocation2 + $0xb0] sm:$0x1] }
  0x79   : > { %v1264_v16 = vor.u32 %v1263_v30, %v1259_v29  ;;  %v712_v50 = vshll.u32 %v13719_v18, 16  ;;  %v717_v52 = vshrl.u32 %v13721_v8, 16  ;;  %v720_v53 = vshll.u32 %v13721_v8, 16 }
  0x7a   : > { %12118 = vmatmul.mubr.msk.bf16.gmra.mrb[16].mxu0 %vm1441_vm9, %v11011_v38  ;;  %v1255_v51 = vrot.slane %v1254_v39, 4  ;;  %v330_v56 = vsel %vm13437_vm5, 0, %v329_v24  ;;  %v711_v60 = vrot.slane %v709_v46, 7  ;;  %v920_v61 = vld [vmem:[#allocation2 + $0x90] sm:$0xf]  ;;  %v13793_v63 = vpack.c.bf16 %v418_v42, %v418_v42 }
  0x7b   : > { %v1265_v58 = vrot.slane %v1264_v16, 4  ;;  %331 = vst [vmem:[#allocation2 + $0x9c] sm:$0x1] %v330_v56  ;;  %v719_v0 = vrot.slane %v717_v52, 7  ;;  %v380_v34 = vsel %vm13446_vm6, 0, %v379_v33  ;;  %v726_v8 = vshrl.u32 %v13743_v35, 16 }
  0x7c   : > { %v1260_v18 = vsel %vm13495_vm12, %v1255_v51, %v1259_v29  ;;  %v714_v2 = vor.u32 %v712_v50, %v711_v60  ;;  %v715_v9 = vrot.slane %v711_v60, 4  ;;  %v924_v11 = vld [vmem:[#allocation2 + $0x98] sm:$0x1]  ;;  %381 = vst [vmem:[#allocation2 + $0xa4] sm:$0x1] %v380_v34  ;;  %v729_v13 = vshll.u32 %v13743_v35, 16 }
  0x7d   : > { %v1270_v48 = vsel %vm13495_vm12, %v1265_v58, %v1269_v40  ;;  %v722_v19 = vor.u32 %v720_v53, %v719_v0  ;;  %v724_v20 = vrot.slane %v719_v0, 4  ;;  %v728_v22 = vrot.slane %v726_v8, 7  ;;  %v13811_v35 = vld [vmem:[#allocation2 + $0x84] sm:$0xf]  ;;  %v335_v50 = vld [vmem:[#allocation2 + $0xb4] sm:$0x1] }
  0x7e   : > { %v11012_v14 = vcombine.low %v1260_v18, %v1270_v48  ;;  %v13803_v17 = vld [vmem:[#allocation2 + $0x88] sm:$0xf]  ;;  %v921_v59 = vsel %vm13489_vm11, %v714_v2, %v920_v61  ;;  %v734_v26 = vshrl.u32 %v13745_v36, 16  ;;  %v1272_v37 = vshrl.u32 %v13811_v35, 16  ;;  %v419_v2 = vld [vmem:[%s13480_s10 + $0xe0] sm:$0xff] }
  0x7f   : > { %v1281_v24 = vshll.u32 %v13803_v17, 16  ;;  %v1285_v25 = vshrl.u32 %v13803_v17, 16  ;;  %v723_v15 = vsel %vm13501_vm13, %v715_v9, %v722_v19  ;;  %922 = vst [vmem:[#allocation2 + $0x90] sm:$0xf] %v921_v59  ;;  %v925_v28 = vsel %vm13437_vm5, %v724_v20, %v924_v11  ;;  %v13817_v33 = vld [vmem:[#allocation2 + $0x8c] sm:$0x1] }
  0x80   : > { %12121 = vmatprep.mubr.msk.bf16.mxu0 %vm1441_vm9, %v11012_v14  ;;  %v731_v29 = vor.u32 %v729_v13, %v728_v22  ;;  %v732_v30 = vrot.slane %v728_v22, 4  ;;  %v1275_v38 = vshll.u32 %v13811_v35, 16  ;;  %923 = vst.msk [vmem:[#allocation2 + $0x94] sm:$0xf] %vm280_vm1, %v723_v15  ;;  %926 = vst [vmem:[#allocation2 + $0x98] sm:$0x1] %v925_v28 }
  0x81   : > { %v1283_v39 = vrot.slane %v1281_v24, 5  ;;  %v1287_v40 = vrot.slane %v1285_v25, 4  ;;  %v1291_v41 = vshll.u32 %v13817_v33, 16  ;;  %v736_v42 = vrot.slane %v734_v26, 7 }
  0x82   : > { %v737_v16 = vshll.u32 %v13745_v36, 16  ;;  %v927_v45 = vld [vmem:[#allocation2 + $0x9c] sm:$0xf]  ;;  %v333_v46 = vsel %vm13437_vm5, 0, %v332_v23  ;;  %v1274_v51 = vrot.slane %v1272_v37, 4  ;;  %v1277_v52 = vrot.slane %v1275_v38, 5 }
  0x83   : > { %v1288_v53 = vor.u32 %v1287_v40, %v1283_v39  ;;  %v928_v56 = vsel %vm13489_vm11, %v731_v29, %v927_v45  ;;  %334 = vst [vmem:[#allocation2 + $0xa8] sm:$0x1] %v333_v46  ;;  %v1293_v58 = vrot.slane %v1291_v41, 5  ;;  %v741_v61 = vrot.slane %v736_v42, 4  ;;  %v931_v18 = vld [vmem:[#allocation2 + $0xa4] sm:$0x1] }
  0x84   : > { %v739_v60 = vor.u32 %v737_v16, %v736_v42  ;;  %929 = vst [vmem:[#allocation2 + $0x9c] sm:$0xf] %v928_v56  ;;  %v383_v36 = vsel %vm13446_vm6, 0, %v382_v10  ;;  %v1278_v0 = vor.u32 %v1277_v52, %v1274_v51  ;;  %v743_v8 = vshrl.u32 %v13791_v62, 16  ;;  %v420_v37 = vld [vmem:[%s13480_s10 + $0xe8] sm:$0xff] }
  0x85   : > { %v1289_v34 = vrot.slane %v1288_v53, 4  ;;  %384 = vst [vmem:[#allocation2 + $0xb0] sm:$0x1] %v383_v36  ;;  %v746_v48 = vshll.u32 %v13791_v62, 16  ;;  %v932_v11 = vsel %vm13437_vm5, %v741_v61, %v931_v18  ;;  %v751_v13 = vshrl.u32 %v13793_v63, 16 }
  0x86   : > { %v740_v9 = vsel %vm13501_vm13, %v732_v30, %v739_v60  ;;  %v754_v14 = vshll.u32 %v13793_v63, 16  ;;  %v1279_v19 = vrot.slane %v1278_v0, 4  ;;  %v13841_v22 = vld [vmem:[#allocation2 + $0x90] sm:$0xf]  ;;  %933 = vst [vmem:[#allocation2 + $0xa4] sm:$0x1] %v932_v11  ;;  %v13852_v26 = vpack.c.bf16 %v419_v2, %v419_v2 }
  0x87   : > { %v1294_v20 = vsel %vm13495_vm12, %v1289_v34, %v1293_v58  ;;  %930 = vst.msk [vmem:[#allocation2 + $0xa0] sm:$0xf] %vm280_vm1, %v740_v9  ;;  %v745_v62 = vrot.slane %v743_v8, 7  ;;  %v336_v23 = vsel %vm13437_vm5, 0, %v335_v50  ;;  %v13846_v24 = vld [vmem:[#allocation2 + $0x94] sm:$0xf]  ;;  %v11758_v9 = vpack.c.bf16 %v420_v37, %v420_v37 }
  0x88   : > { %v13848_v25 = vld [vmem:[#allocation2 + $0x98] sm:$0x1]  ;;  %v1296_v63 = vshrl.u32 %v13841_v22, 16  ;;  %v1299_v59 = vshll.u32 %v13841_v22, 16  ;;  %337 = vst [vmem:[#allocation2 + $0xb4] sm:$0x1] %v336_v23  ;;  %v1284_v10 = vsel %vm13495_vm12, %v1279_v19, %v1283_v39 }
  0x89   : > { %v1305_v15 = vshll.u32 %v13846_v24, 16  ;;  %v1309_v28 = vshrl.u32 %v13846_v24, 16  ;;  %v1315_v29 = vshll.u32 %v13848_v25, 16  ;;  %v385_v30 = vld [vmem:[#allocation2 + $0xbc] sm:$0x1]  ;;  %v11013_v38 = vcombine.low %v1284_v10, %v1294_v20 }
  0x8a   : > { %v1298_v40 = vrot.slane %v1296_v63, 4  ;;  %v1301_v41 = vrot.slane %v1299_v59, 5  ;;  %v748_v42 = vor.u32 %v746_v48, %v745_v62  ;;  %v934_v16 = vld [vmem:[#allocation2 + $0xa8] sm:$0xf]  ;;  %v749_v52 = vrot.slane %v745_v62, 4 }
  0x8b   : > { %v1307_v45 = vrot.slane %v1305_v15, 5  ;;  %v1311_v46 = vrot.slane %v1309_v28, 4  ;;  %v1317_v50 = vrot.slane %v1315_v29, 5  ;;  %v13860_v51 = vld [vmem:[#allocation2 + $0x9c] sm:$0xf]  ;;  %12122 = vmatmul.mubr.msk.bf16.gmra.mrb[20].mxu0 %vm1441_vm9, %v11013_v38  ;;  %v753_v58 = vrot.slane %v751_v13, 7 }
  0x8c   : > { %v1302_v39 = vor.u32 %v1301_v41, %v1298_v40  ;;  %v1320_v53 = vshrl.u32 %v13860_v51, 16  ;;  %v1323_v56 = vshll.u32 %v13860_v51, 16  ;;  %v935_v61 = vsel %vm13489_vm11, %v748_v42, %v934_v16  ;;  %v938_v62 = vld [vmem:[#allocation2 + $0xb0] sm:$0x1] }
  0x8d   : > { %v1312_v60 = vor.u32 %v1311_v46, %v1307_v45  ;;  %v386_v18 = vsel %vm13446_vm6, 0, %v385_v30  ;;  %v760_v36 = vshrl.u32 %v13852_v26, 16  ;;  %v13872_v8 = vld [vmem:[#allocation2 + $0xa4] sm:$0x1]  ;;  %v756_v2 = vor.u32 %v754_v14, %v753_v58  ;;  %936 = vst [vmem:[#allocation2 + $0xa8] sm:$0xf] %v935_v61 }
  0x8e   : > { %v1303_v0 = vrot.slane %v1302_v39, 4  ;;  %v13870_v34 = vld [vmem:[#allocation2 + $0xa0] sm:$0xf]  ;;  %v1322_v48 = vrot.slane %v1320_v53, 4  ;;  %387 = vst [vmem:[#allocation2 + $0xbc] sm:$0x1] %v386_v18 }
  0x8f   : > { %v1313_v11 = vrot.slane %v1312_v60, 4  ;;  %v1325_v13 = vrot.slane %v1323_v56, 5  ;;  %v1329_v19 = vshll.u32 %v13870_v34, 16  ;;  %v1333_v20 = vshrl.u32 %v13870_v34, 16 }
  0x90   : > { %v1308_v23 = vsel %vm13495_vm12, %v1303_v0, %v1307_v45  ;;  %v1339_v63 = vshll.u32 %v13872_v8, 16  ;;  %v757_v59 = vsel %vm13501_vm13, %v749_v52, %v756_v2  ;;  %v758_v10 = vrot.slane %v753_v58, 4  ;;  %v941_v52 = vld [vmem:[#allocation2 + $0xb4] sm:$0xf] }
  0x91   : > { %v1318_v14 = vsel %vm13495_vm12, %v1313_v11, %v1317_v50  ;;  %v1326_v15 = vor.u32 %v1325_v13, %v1322_v48  ;;  %v1331_v28 = vrot.slane %v1329_v19, 5  ;;  %v1335_v29 = vrot.slane %v1333_v20, 4  ;;  %937 = vst.msk [vmem:[#allocation2 + $0xac] sm:$0xf] %vm280_vm1, %v757_v59 }
  0x92   : > { %v11014_v30 = vcombine.low %v1308_v23, %v1318_v14  ;;  %v1341_v37 = vrot.slane %v1339_v63, 5  ;;  %v939_v38 = vsel %vm13437_vm5, %v758_v10, %v938_v62  ;;  %v762_v40 = vrot.slane %v760_v36, 7 }
  0x93   : > { %v1327_v41 = vrot.slane %v1326_v15, 4  ;;  %v1336_v42 = vor.u32 %v1335_v29, %v1331_v28  ;;  %940 = vst [vmem:[#allocation2 + $0xb0] sm:$0x1] %v939_v38  ;;  %v763_v16 = vshll.u32 %v13852_v26, 16  ;;  %v768_v45 = vshrl.u32 %v11758_v9, 16 }
  0x94   : > { %12125 = vmatprep.mubr.msk.bf16.mxu0 %vm1441_vm9, %v11014_v30  ;;  %v766_v46 = vrot.slane %v762_v40, 4  ;;  %v771_v50 = vshll.u32 %v11758_v9, 16  ;;  %v13890_v56 = vld [vmem:[#allocation2 + $0xa8] sm:$0xf]  ;;  %vm1995_vm14 = vcmask 1042432   ;;  %vm1996_vm15 = vcmask 1046532  }
  0x95   : > { %v1332_v39 = vsel %vm13495_vm12, %v1327_v41, %v1331_v28  ;;  %v1337_v53 = vrot.slane %v1336_v42, 4  ;;  %v765_v58 = vor.u32 %v763_v16, %v762_v40  ;;  %v770_v60 = vrot.slane %v768_v45, 7  ;;  %v945_v36 = vld [vmem:[#allocation2 + $0xbc] sm:$0x1]  ;;  %vm14004_vm2 = vmor %vm1995_vm14, %vm1996_vm15 }
  0x96   : > { %v1344_v61 = vshrl.u32 %v13890_v56, 16  ;;  %v1347_v18 = vshll.u32 %v13890_v56, 16 }
  0x97   : > { %v1342_v26 = vsel %vm13495_vm12, %v1337_v53, %v1341_v37  ;;  %v773_v0 = vor.u32 %v771_v50, %v770_v60  ;;  %v775_v48 = vrot.slane %v770_v60, 4  ;;  %v942_v2 = vsel %vm13489_vm11, %v765_v58, %v941_v52 }
  0x98   : > { %v11015_v9 = vcombine.low %v1332_v39, %v1342_v26  ;;  %v13898_v11 = vld [vmem:[#allocation2 + $0xac] sm:$0xf]  ;;  %v1346_v13 = vrot.slane %v1344_v61, 4  ;;  %v1349_v19 = vrot.slane %v1347_v18, 5  ;;  %943 = vst [vmem:[#allocation2 + $0xb4] sm:$0xf] %v942_v2 }
  0x99   : > { %v1353_v20 = vshll.u32 %v13898_v11, 16  ;;  %v1357_v62 = vshrl.u32 %v13898_v11, 16  ;;  %v774_v23 = vsel %vm13501_vm13, %v766_v46, %v773_v0  ;;  %v946_v63 = vsel %vm13437_vm5, %v775_v48, %v945_v36 }
  0x9a   : > { %12126 = vmatmul.mubr.msk.bf16.gmra.mrb[24].mxu0 %vm1441_vm9, %v11015_v9  ;;  %v13907_v59 = vld [vmem:[#allocation2 + $0xb0] sm:$0x1]  ;;  %v1350_v10 = vor.u32 %v1349_v19, %v1346_v13  ;;  %944 = vst.msk [vmem:[#allocation2 + $0xb8] sm:$0xf] %vm280_vm1, %v774_v23  ;;  %947 = vst [vmem:[#allocation2 + $0xbc] sm:$0x1] %v946_v63 }
  0x9b   : > { %v1355_v14 = vrot.slane %v1353_v20, 5  ;;  %v1359_v15 = vrot.slane %v1357_v62, 4  ;;  %v1363_v28 = vshll.u32 %v13907_v59, 16  ;;  %v13324_v20 = vld [vmem:[#allocation2] sm:$0xf] }
  0x9c   : > { %v1351_v29 = vrot.slane %v1350_v10, 4  ;;  %v13931_v62 = vld [vmem:[#allocation2 + $0x4] sm:$0xf]  ;;  %v13326_v10 = vld [vmem:[#allocation2 + $0xc] sm:$0xf] }
  0x9d   : > { %v1360_v30 = vor.u32 %v1359_v15, %v1355_v14  ;;  %v1365_v37 = vrot.slane %v1363_v28, 5  ;;  %v11034_v23 = vcombine.low %v13324_v20, %v13931_v62  ;;  %v13328_v28 = vld [vmem:[#allocation2 + $0x18] sm:$0xf]  ;;  %v14374_v57 = vld [vmem:[#allocation2 + $0xb0] sm:$0x1] }
  0x9e   : > { %v1356_v38 = vsel %vm13495_vm12, %v1351_v29, %v1355_v14  ;;  %v13936_v14 = vld [vmem:[#allocation2 + $0x10] sm:$0xf]  ;;  %v13939_v29 = vld [vmem:[#allocation2 + $0x1c] sm:$0xf] }
  0x9f   : > { %v1361_v40 = vrot.slane %v1360_v30, 4  ;;  %v13913_v41 = vld [vmem:[#allocation2 + $0xb4] sm:$0xf]  ;;  %v11035_v15 = vcombine.low %v13326_v10, %v13936_v14  ;;  %v11036_v30 = vcombine.low %v13328_v28, %v13939_v29  ;;  %v1947_v10 = vld [vmem:[#allocation2] sm:$0xe] }
  0xa0   : > { %v1368_v42 = vshrl.u32 %v13913_v41, 16  ;;  %v1371_v16 = vshll.u32 %v13913_v41, 16 }
  0xa1   : > { %v1366_v45 = vsel %vm13495_vm12, %v1361_v40, %v1365_v37  ;;  %v13919_v46 = vld [vmem:[#allocation2 + $0xb8] sm:$0xf]  ;;  %v13921_v50 = vld [vmem:[#allocation2 + $0xbc] sm:$0x1]  ;;  %v13330_v37 = vld [vmem:[%s16989_s1 + $0x4] sm:$0x3] }
  0xa2   : > { %v11016_v52 = vcombine.low %v1356_v38, %v1366_v45  ;;  %v1370_v39 = vrot.slane %v1368_v42, 4  ;;  %v1373_v53 = vrot.slane %v1371_v16, 5  ;;  %v1377_v58 = vshll.u32 %v13919_v46, 16  ;;  %v13949_v40 = vld [vmem:[%s16989_s1 + $0x6] sm:$0x3] }
  0xa3   : > { %v1381_v60 = vshrl.u32 %v13919_v46, 16  ;;  %v1387_v61 = vshll.u32 %v13921_v50, 16  ;;  %v2209_v38 = vsel %vm1490_vm0, %v13330_v37, 0  ;;  %v13331_v42 = vld [vmem:[#allocation2 + $0x24] sm:$0xf] }
  0xa4   : > { %12129 = vmatprep.mubr.msk.bf16.mxu0 %vm1441_vm9, %v11016_v52  ;;  %v1374_v18 = vor.u32 %v1373_v53, %v1370_v39  ;;  %v1379_v36 = vrot.slane %v1377_v58, 5  ;;  %v13955_v16 = vld [vmem:[#allocation2 + $0x28] sm:$0xf]  ;;  %v13333_v52 = vld [vmem:[#allocation2 + $0x30] sm:$0xf] }
  0xa5   : > { %v1383_v26 = vrot.slane %v1381_v60, 4  ;;  %v1389_v2 = vrot.slane %v1387_v61, 5  ;;  %v11037_v45 = vcombine.low %v13331_v42, %v13955_v16  ;;  %v13958_v39 = vld [vmem:[#allocation2 + $0x34] sm:$0xf]  ;;  %v13335_v58 = vld [vmem:[#allocation2 + $0x3c] sm:$0xf] }
  0xa6   : > { %v1375_v0 = vrot.slane %v1374_v18, 4  ;;  %v11038_v53 = vcombine.low %v13333_v52, %v13958_v39  ;;  %v13963_v60 = vld [vmem:[#allocation2 + $0x40] sm:$0xf]  ;;  %v11040_v18 = vcombine.low %v13635_v7, %v13643_v12  ;;  %v11044_v7 = vcombine.low %v13756_v1, %v13762_v4  ;;  %v13337_v37 = vld [vmem:[#allocation2 + $0x8] sm:$0x1] }
  0xa7   : > { %v1384_v48 = vor.u32 %v1383_v26, %v1379_v36  ;;  %v11039_v61 = vcombine.low %v13335_v58, %v13963_v60  ;;  %v11042_v26 = vcombine.low %v13707_v54, %v13699_v43  ;;  %v11045_v12 = vcombine.low %v13811_v35, %v13803_v17 }
  0xa8   : > { %v1380_v9 = vsel %vm13495_vm12, %v1375_v0, %v1379_v36  ;;  %v11041_v36 = vcombine.low %v13656_v6, %v13661_v47  ;;  %v11043_v0 = vcombine.low %v13731_v27, %v13738_v31  ;;  %v338_v6 = vld [vmem:[#allocation2 + $0xc0] sm:$0x1]  ;;  %v11046_v47 = vcombine.low %v13841_v22, %v13846_v24 }
  0xa9   : > { %v1385_v13 = vrot.slane %v1384_v48, 4  ;;  %v339_v54 = vsel %vm13437_vm5, 0, %v338_v6  ;;  %v421_v48 = vld [vmem:[%s13480_s10 + $0xf0] sm:$0xff]  ;;  %v2000_v35 = vrot.slane %v13931_v62, 5  ;;  %v11048_v62 = vcombine.low %v13890_v56, %v13898_v11 }
  0xaa   : > { %340 = vst [vmem:[#allocation2 + $0xc0] sm:$0x1] %v339_v54  ;;  %v11759_v27 = vpack.c.bf16 %v421_v48, %v421_v48  ;;  %v2007_v56 = vrot.slane %v13936_v14, 5  ;;  %v11049_v6 = vcombine.low %v13913_v41, %v13919_v46 }
  0xab   : > { %v1390_v19 = vsel %vm13495_vm12, %v1385_v13, %v1389_v2  ;;  %v422_v2 = vld [vmem:[%s13480_s10 + $0xf8] sm:$0xff]  ;;  %v2002_v52 = vrot.slane %v2000_v35, 4 }
  0xac   : > { %v11017_v63 = vcombine.low %v1380_v9, %v1390_v19  ;;  %v11760_v9 = vpack.c.bf16 %v422_v2, %v422_v2  ;;  %v777_v1 = vshrl.u32 %v11759_v27, 16  ;;  %v780_v20 = vshll.u32 %v11759_v27, 16  ;;  %v13339_v27 = vld [vmem:[#allocation2 + $0x20] sm:$0x1] }
  0xad   : > { %v2009_v48 = vrot.slane %v2007_v56, 4 }
  0xae   : > { %12130 = vmatmul.mubr.msk.bf16.gmra.mrb[28].mxu0 %vm1441_vm9, %v11017_v63  ;;  %v785_v13 = vshrl.u32 %v11760_v9, 16  ;;  %v779_v19 = vrot.slane %v777_v1, 7  ;;  %v788_v22 = vshll.u32 %v11760_v9, 16  ;;  %v11047_v63 = vcombine.low %v13860_v51, %v13870_v34 }
  0xaf   : > { %12135 = vmatprep.mubr.msk.bf16.mxu0 %vm1441_vm9, %v11034_v23  ;;  %v2017_v9 = vrot.slane %v13339_v27, 5 }
  0xb0   : > { %v13993_v23 = vrot.slane %v785_v13, 7  ;;  %v783_v28 = vrot.slane %v779_v19, 4  ;;  %v2021_v13 = vrot.slane %v13955_v16, 5 }
  0xb1   : > { %v948_v42 = vld [vmem:[#allocation2 + $0xc0] sm:$0xf] }
  0xb6   : > { %12136 = vmatmul.mubr.msk.bf16.vlgmr.msra.gmra.mrb[0].mxu0 %vm1441_vm9, %v11035_v15  ;;  %v782_v15 = vor.u32 %v780_v20, %v779_v19  ;;  %v1950_v19 = vld [vmem:[#allocation2 + $0x24] sm:$0xe]  ;;  %v2028_v20 = vrot.slane %v13958_v39, 5 }
  0xb7   : > { %12168 = vmatpush3.bf16.msra.mxu0 %v2209_v38  ;;  %12139 = vmatprep.mubr.msk.bf16.mxu0 %vm1441_vm9, %v11036_v30  ;;  %v790_v30 = vor.u32 %v788_v22, %v13993_v23  ;;  %v2003_v38 = vrot.slane %v13337_v37, 5  ;;  %v1951_v22 = vld [vmem:[#allocation2 + $0x30] sm:$0xe] }
  0xb8   : > { %13226 = vmatprep.subr.msk.bf16.mxu0 %vm1490_vm0, %v13949_v40  ;;  %v949_v51 = vsel %vm13489_vm11, %v782_v15, %v948_v42  ;;  %v11069_v15 = vrot.slane %v1950_v19, 9  ;;  %v11070_v16 = vrot.slane %v1951_v22, 9  ;;  %v13341_v42 = vld [vmem:[#allocation2 + $0x38] sm:$0x1]  ;;  %v2056_v19 = vrot.slane %v13699_v43, 5 }
  0xb9   : > { %950 = vst [vmem:[#allocation2 + $0xc0] sm:$0xf] %v949_v51 }
  0xba   : > { %v2022_v39 = vsel %vm14004_vm2, %v11069_v15, %v2021_v13  ;;  %v2029_v51 = vsel %vm14004_vm2, %v11070_v16, %v2028_v20  ;;  %v2059_v16 = vrot.slane %v13709_v55, 5  ;;  %v2070_v55 = vrot.slane %v13762_v4, 5 }
  0xbe   : > { %12140 = vmatmul.mubr.msk.bf16.gmra.mrb[4].mxu0 %vm1441_vm9, %v11037_v45  ;;  %v11066_v45 = vrot.slane %v1947_v10, 9 }
  0xbf   : > { %12143 = vmatprep.mubr.msk.bf16.mxu0 %vm1441_vm9, %v11038_v53  ;;  %v791_v53 = vsel %vm13501_vm13, %v783_v28, %v790_v30  ;;  %v2023_v28 = vrot.slane %v2021_v13, 4  ;;  %v13340_v30 = vld [vmem:[#allocation2 + $0x2c] sm:$0x1] }
  0xc0   : > { %951 = vst.msk [vmem:[#allocation2 + $0xc4] sm:$0xf] %vm280_vm1, %v791_v53  ;;  %v2024_v37 = vrot.slane %v13340_v30, 5  ;;  %v2035_v53 = vrot.slane %v13963_v60, 5 }
  0xc6   : > { %12144 = vmatmul.mubr.msk.bf16.gmra.mrb[8].mxu0 %vm1441_vm9, %v11039_v61  ;;  %v2001_v61 = vsel %vm14004_vm2, %v11066_v45, %v2000_v35  ;;  %v2031_v45 = vrot.slane %v13341_v42, 5  ;;  %v2063_v42 = vrot.slane %v13738_v31, 5  ;;  %v2073_v31 = vrot.slane %v13766_v21, 5 }
  0xc7   : > { %12147 = vmatprep.mubr.msk.bf16.mxu0 %vm1441_vm9, %v11040_v18  ;;  %v2004_v18 = vsel %vm14004_vm2, %v2002_v52, %v2003_v38  ;;  %v2567_v38 = vsel %vm1490_vm0, %v13949_v40, 0  ;;  %v14036_v52 = vld [vmem:[%s16989_s1 + $0x8] sm:$0x3]  ;;  %v2025_v40 = vsel %vm14004_vm2, %v2023_v28, %v2024_v37  ;;  %v13346_v28 = vld [vmem:[#allocation2 + $0x5c] sm:$0x1]  ;;  %v2084_v21 = vrot.slane %v13846_v24, 5 }
  0xc8   : > { %v2052_v30 = vrot.slane %v13346_v28, 5  ;;  %v3293_v5 = vsel %vm1490_vm0, %v14036_v52, 0 }
  0xce   : > { %12148 = vmatmul.mubr.msk.bf16.gmra.mrb[12].mxu0 %vm1441_vm9, %v11041_v36  ;;  %v1948_v36 = vld [vmem:[#allocation2 + $0xc] sm:$0xe] }
  0xcf   : > { %12151 = vmatprep.mubr.msk.bf16.mxu0 %vm1441_vm9, %v11042_v26  ;;  %v1949_v26 = vld [vmem:[#allocation2 + $0x18] sm:$0xe]  ;;  %v11067_v54 = vrot.slane %v1948_v36, 9 }
  0xd0   : > { %v11068_v2 = vrot.slane %v1949_v26, 9  ;;  %v1953_v26 = vld [vmem:[#allocation2 + $0x48] sm:$0xe] }
  0xd1   : > { %v2008_v1 = vsel %vm14004_vm2, %v11067_v54, %v2007_v56  ;;  %v11072_v60 = vrot.slane %v1953_v26, 9 }
  0xd6   : > { %12152 = vmatmul.mubr.msk.bf16.gmra.mrb[16].mxu0 %vm1441_vm9, %v11043_v0  ;;  %v2014_v0 = vrot.slane %v13939_v29, 5 }
  0xd7   : > { %12155 = vmatprep.mubr.msk.bf16.mxu0 %vm1441_vm9, %v11044_v7  ;;  %v13338_v7 = vld [vmem:[#allocation2 + $0x14] sm:$0x1] }
  0xd8   : > { %v2016_v14 = vrot.slane %v2014_v0, 4  ;;  %v2015_v41 = vsel %vm14004_vm2, %v11068_v2, %v2014_v0  ;;  %v11086_v0 = vcombine.low %v2022_v39, %v2025_v40  ;;  %v13344_v2 = vld [vmem:[#allocation2 + $0x50] sm:$0x1]  ;;  %v1956_v40 = vld [vmem:[#allocation2 + $0x6c] sm:$0xe] }
  0xda   : > { %v2018_v35 = vsel %vm14004_vm2, %v2016_v14, %v2017_v9  ;;  %v2045_v14 = vrot.slane %v13344_v2, 5 }
  0xdb   : > { %v11085_v10 = vcombine.low %v2015_v41, %v2018_v35  ;;  %v1954_v35 = vld [vmem:[#allocation2 + $0x54] sm:$0xe] }
  0xde   : > { %12156 = vmatmul.mubr.msk.bf16.gmra.mrb[20].mxu0 %vm1441_vm9, %v11045_v12  ;;  %v2010_v12 = vrot.slane %v13338_v7, 5 }
  0xdf   : > { %12159 = vmatprep.mubr.msk.bf16.mxu0 %vm1441_vm9, %v11046_v47  ;;  %v11083_v47 = vcombine.low %v2001_v61, %v2004_v18  ;;  %v1952_v61 = vld [vmem:[#allocation2 + $0x3c] sm:$0xe]  ;;  %v13342_v18 = vld [vmem:[#allocation2 + $0x4c] sm:$0xf] }
  0xe0   : > { %v2011_v29 = vsel %vm14004_vm2, %v2009_v48, %v2010_v12  ;;  %v2042_v36 = vrot.slane %v13342_v18, 5  ;;  %v11071_v12 = vrot.slane %v1952_v61, 9  ;;  %v11075_v61 = vrot.slane %v1956_v40, 9  ;;  %v388_v40 = vld [vmem:[#allocation2 + $0xc8] sm:$0x1] }
  0xe1   : > { %v2065_v18 = vrot.slane %v2063_v42, 4 }
  0xe2   : > { %v2044_v48 = vrot.slane %v2042_v36, 4  ;;  %v2036_v27 = vsel %vm14004_vm2, %v11071_v12, %v2035_v53  ;;  %v2043_v13 = vsel %vm14004_vm2, %v11072_v60, %v2042_v36  ;;  %v2066_v36 = vrot.slane %v13740_v32, 5 }
  0xe3   : > { %v2077_v12 = vrot.slane %v13803_v17, 5  ;;  %v2087_v17 = vrot.slane %v13848_v25, 5  ;;  %v2098_v25 = vrot.slane %v13898_v11, 5 }
  0xe4   : > { %v2046_v41 = vsel %vm14004_vm2, %v2044_v48, %v2045_v14  ;;  %v2067_v4 = vsel %vm14004_vm2, %v2065_v18, %v2066_v36  ;;  %v13252_v18 = vld [vmem:[#allocation2 + $0x18] sm:$0xff]  }
  0xe5   : > { %v2079_v14 = vrot.slane %v2077_v12, 4 }
  0xe6   : > { %12160 = vmatmul.mubr.msk.bf16.gmra.mrb[24].mxu0 %vm1441_vm9, %v11047_v63  ;;  %v11084_v63 = vcombine.low %v2008_v1, %v2011_v29  ;;  %v13345_v1 = vld [vmem:[#allocation2 + $0x58] sm:$0xf] }
  0xe7   : > { %12163 = vmatprep.mubr.msk.bf16.mxu0 %vm1441_vm9, %v11048_v62  ;;  %v2030_v62 = vrot.slane %v2028_v20, 4  ;;  %v2049_v29 = vrot.slane %v13345_v1, 5  ;;  %v1955_v20 = vld [vmem:[#allocation2 + $0x60] sm:$0xe]  ;;  %v2086_v1 = vrot.slane %v2084_v21, 4 }
  0xe8   : > { %v11074_v37 = vrot.slane %v1955_v20, 9 }
  0xe9   : > { %v2032_v56 = vsel %vm14004_vm2, %v2030_v62, %v2031_v45  ;;  %v2051_v15 = vrot.slane %v2049_v29, 4 }
  0xea   : > { %v11087_v7 = vcombine.low %v2029_v51, %v2032_v56  ;;  %v2057_v45 = vsel %vm14004_vm2, %v11074_v37, %v2056_v19 }
  0xeb   : > { %v2053_v43 = vsel %vm14004_vm2, %v2051_v15, %v2052_v30  ;;  %v2094_v15 = vrot.slane %v13872_v8, 5  ;;  %v2100_v30 = vrot.slane %v2098_v25, 4 }
  0xee   : > { %12164 = vmatmul.mubr.msk.bf16.gmra.mrb[28].mxu0 %vm1441_vm9, %v11049_v6  ;;  %v2037_v6 = vrot.slane %v2035_v53, 4  ;;  %v1957_v53 = vld [vmem:[#allocation2 + $0x78] sm:$0xe] }
  0xef   : > { %12169 = vmatprep.mubr.msk.bf16.mxu0 %vm1441_vm9, %v11083_v47  ;;  %v13343_v47 = vld [vmem:[#allocation2 + $0x44] sm:$0x1]  ;;  %v11076_v26 = vrot.slane %v1957_v53, 9  ;;  %v389_v53 = vsel %vm13446_vm6, 0, %v388_v40 }
  0xf0   : > { %v2038_v54 = vrot.slane %v13343_v47, 5  ;;  %v1958_v47 = vld [vmem:[#allocation2 + $0x84] sm:$0xe]  ;;  %390 = vst [vmem:[#allocation2 + $0xc8] sm:$0x1] %v389_v53 }
  0xf1   : > { %v11077_v2 = vrot.slane %v1958_v47, 9  ;;  %v13260_v47 = vld [vmem:[#allocation2 + $0x78] sm:$0xff]  }
  0xf2   : > { %v2039_v9 = vsel %vm14004_vm2, %v2037_v6, %v2038_v54  ;;  %v2071_v6 = vsel %vm14004_vm2, %v11076_v26, %v2070_v55  ;;  %v1959_v54 = vld [vmem:[#allocation2 + $0x90] sm:$0xe]  ;;  %v13253_v26 = vld [vmem:[#allocation2 + $0x24] sm:$0xff]   ;;  %v2774_v53 = vld [vmem:[#allocation2 + $0x3c] sm:$0xf] }
  0xf3   : > { %v11088_v22 = vcombine.low %v2036_v27, %v2039_v9  ;;  %v2080_v27 = vrot.slane %v13817_v33, 5  ;;  %v11078_v9 = vrot.slane %v1959_v54, 9  ;;  %v2088_v33 = vsel %vm14004_vm2, %v2086_v1, %v2087_v17 }
  0xf5   : > { %v2081_v24 = vsel %vm14004_vm2, %v2079_v14, %v2080_v27  ;;  %v2765_v14 = vld [vmem:[#allocation2 + $0x18] sm:$0xf]  ;;  %v14151_v27 = vld [vmem:[#allocation2 + $0x1c] sm:$0xf] }
  0xf6   : > { %12170 = vmatmul.mubr.msk.bf16.vlgmr.msra.gmra.mrb[0].mxu0 %vm1441_vm9, %v11084_v63  ;;  %v11089_v63 = vcombine.low %v2043_v13, %v2046_v41  ;;  %v2091_v13 = vrot.slane %v13870_v34, 5  ;;  %v2085_v41 = vsel %vm14004_vm2, %v11078_v9, %v2084_v21  ;;  %v2101_v34 = vrot.slane %v13907_v59, 5 }
  0xf7   : > { %12202 = vmatpush3.bf16.msra.mxu0 %v2567_v38  ;;  %12173 = vmatprep.mubr.msk.bf16.mxu0 %vm1441_vm9, %v11085_v10  ;;  %v11073_v10 = vrot.slane %v1954_v35, 9  ;;  %v2058_v38 = vrot.slane %v2056_v19, 4  ;;  %v1960_v35 = vld [vmem:[#allocation2 + $0x9c] sm:$0xe]  ;;  %v1961_v19 = vld [vmem:[#allocation2 + $0xa8] sm:$0xe] }
  0xf8   : > { %13227 = vmatprep.subr.msk.bf16.mxu0 %vm1490_vm0, %v14036_v52  ;;  %v11080_v28 = vrot.slane %v1961_v19, 9  ;;  %v2102_v8 = vsel %vm14004_vm2, %v2100_v30, %v2101_v34  ;;  %v13256_v52 = vld [vmem:[#allocation2 + $0x48] sm:$0xff]   ;;  %v2835_v17 = vshrl.u32 %v2765_v14, 16  ;;  %v14165_v34 = vld [vmem:[#allocation2 + $0x20] sm:$0x1] }
  0xf9   : > { %v2050_v62 = vsel %vm14004_vm2, %v11073_v10, %v2049_v29  ;;  %v2060_v39 = vsel %vm14004_vm2, %v2058_v38, %v2059_v16  ;;  %v2078_v29 = vsel %vm14004_vm2, %v11077_v2, %v2077_v12  ;;  %v2093_v10 = vrot.slane %v2091_v13, 4  ;;  %v13259_v12 = vld [vmem:[#allocation2 + $0x6c] sm:$0xff]   ;;  %v14161_v19 = vld [vmem:[#allocation2 + $0x28] sm:$0xf] }
  0xfa   : > { %v11090_v51 = vcombine.low %v2050_v62, %v2053_v43  ;;  %v11091_v56 = vcombine.low %v2057_v45, %v2060_v39  ;;  %v11094_v20 = vcombine.low %v2078_v29, %v2081_v24  ;;  %v2105_v38 = vrot.slane %v13919_v46, 5  ;;  %v1962_v62 = vld [vmem:[#allocation2 + $0xb4] sm:$0xe]  ;;  %v14155_v24 = vld [vmem:[#allocation2 + $0x14] sm:$0x1] }
  0xfb   : > { %v2095_v11 = vsel %vm14004_vm2, %v2093_v10, %v2094_v15  ;;  %v2099_v16 = vsel %vm14004_vm2, %v11080_v28, %v2098_v25  ;;  %v2108_v39 = vrot.slane %v13921_v50, 5  ;;  %v792_v50 = vrot.slane %v13993_v23, 4  ;;  %v13254_v23 = vld [vmem:[#allocation2 + $0x30] sm:$0xff]   ;;  %v2768_v25 = vld [vmem:[#allocation2 + $0x24] sm:$0xf]  ;;  %v13263_v15 = vld [vmem:[#allocation2 + $0x9c] sm:$0xff]  }
  0xfc   : > { %v11097_v43 = vcombine.low %v2099_v16, %v2102_v8  ;;  %v2107_v45 = vrot.slane %v2105_v38, 4  ;;  %v2838_v29 = vshll.u32 %v2765_v14, 16  ;;  %v2862_v16 = vshll.u32 %v2768_v25, 16 }
  0xfd   : > { %v2868_v8 = vshll.u32 %v14161_v19, 16 }
  0xfe   : > { %12174 = vmatmul.mubr.msk.bf16.gmra.mrb[4].mxu0 %vm1441_vm9, %v11086_v0  ;;  %v2072_v0 = vrot.slane %v2070_v55, 4  ;;  %v2109_v55 = vsel %vm14004_vm2, %v2107_v45, %v2108_v39  ;;  %v2840_v10 = vrot.slane %v2838_v29, 5  ;;  %v14173_v45 = vld [vmem:[#allocation2 + $0x34] sm:$0xf] }
  0xff   : > { %12177 = vmatprep.mubr.msk.bf16.mxu0 %vm1441_vm9, %v11087_v7  ;;  %v2064_v7 = vsel %vm14004_vm2, %v11075_v61, %v2063_v42  ;;  %v11081_v42 = vrot.slane %v1962_v62, 9  ;;  %v952_v61 = vld [vmem:[#allocation2 + $0xc8] sm:$0x1]  ;;  %v2872_v62 = vshrl.u32 %v14161_v19, 16 }
 0x100   : > { %v2074_v32 = vsel %vm14004_vm2, %v2072_v0, %v2073_v31  ;;  %v11092_v60 = vcombine.low %v2064_v7, %v2067_v4  ;;  %v953_v36 = vsel %vm13437_vm5, %v792_v50, %v952_v61  ;;  %v14135_v0 = vld [vmem:[%s16989_s1 + $0xa] sm:$0x3]  ;;  %v13255_v31 = vld [vmem:[#allocation2 + $0x3c] sm:$0xff]   ;;  %v13257_v7 = vld [vmem:[#allocation2 + $0x54] sm:$0xff]   ;;  %v14177_v50 = vrot.slane %v2868_v8, 5 }
 0x101   : > { %v11093_v48 = vcombine.low %v2071_v6, %v2074_v32  ;;  %v2106_v46 = vsel %vm14004_vm2, %v11081_v42, %v2105_v38  ;;  %954 = vst [vmem:[#allocation2 + $0xc8] sm:$0x1] %v953_v36  ;;  %v13258_v4 = vld [vmem:[#allocation2 + $0x60] sm:$0xff]   ;;  %v2762_v6 = vld [vmem:[#allocation2 + $0xc] sm:$0xf]  ;;  %v2859_v38 = vshrl.u32 %v2768_v25, 16 }
 0x102   : > { %v14147_v32 = vld [vmem:[#allocation2 + $0x10] sm:$0xf]  ;;  %v2811_v21 = vshrl.u32 %v2762_v6, 16  ;;  %v2814_v54 = vshll.u32 %v2762_v6, 16  ;;  %v2874_v61 = vrot.slane %v2872_v62, 4  ;;  %v2910_v6 = vshll.u32 %v2774_v53, 16 }
 0x103   : > { %v2824_v2 = vshrl.u32 %v14147_v32, 16  ;;  %v2771_v42 = vld [vmem:[#allocation2 + $0x30] sm:$0xf]  ;;  %v14181_v36 = vld [vmem:[#allocation2 + $0x2c] sm:$0x1] }
 0x104   : > { %v2813_v9 = vrot.slane %v2811_v21, 4  ;;  %v2816_v1 = vrot.slane %v2814_v54, 5 }
 0x106   : > { %12178 = vmatmul.mubr.msk.bf16.gmra.mrb[8].mxu0 %vm1441_vm9, %v11088_v22  ;;  %v11095_v22 = vcombine.low %v2085_v41, %v2088_v33  ;;  %v2826_v41 = vrot.slane %v2824_v2, 4  ;;  %v2844_v33 = vshll.u32 %v14151_v27, 16  ;;  %v2817_v28 = vor.u32 %v2816_v1, %v2813_v9  ;;  %v2777_v2 = vld [vmem:[#allocation2 + $0x48] sm:$0xf] }
 0x107   : > { %12181 = vmatprep.mubr.msk.bf16.mxu0 %vm1441_vm9, %v11089_v63  ;;  %v11079_v63 = vrot.slane %v1960_v35, 9  ;;  %v2848_v35 = vshrl.u32 %v14151_v27, 16  ;;  %v2875_v1 = vor.u32 %v2874_v61, %v14177_v50  ;;  %v14218_v61 = vld [vmem:[#allocation2 + $0x58] sm:$0xf] }
 0x108   : > { %v2818_v39 = vrot.slane %v2817_v28, 4  ;;  %v14203_v28 = vld [vmem:[#allocation2 + $0x44] sm:$0x1] }
 0x109   : > { %v2092_v37 = vsel %vm14004_vm2, %v11079_v63, %v2091_v13  ;;  %v2837_v63 = vrot.slane %v2835_v17, 4  ;;  %v2878_v17 = vshll.u32 %v14181_v36, 16  ;;  %v2876_v8 = vrot.slane %v2875_v1, 4 }
 0x10a   : > { %v11096_v59 = vcombine.low %v2092_v37, %v2095_v11  ;;  %v14167_v37 = vrot.slane %v2844_v33, 5  ;;  %v2850_v11 = vrot.slane %v2848_v35, 4 }
 0x10b   : > { %v2880_v62 = vrot.slane %v2878_v17, 5 }
 0x10e   : > { %12182 = vmatmul.mubr.msk.bf16.gmra.mrb[12].mxu0 %vm1441_vm9, %v11090_v51  ;;  %v11098_v51 = vcombine.low %v2106_v46, %v2109_v55  ;;  %v2851_v55 = vor.u32 %v2850_v11, %v14167_v37 }
 0x10f   : > { %12185 = vmatprep.mubr.msk.bf16.mxu0 %vm1441_vm9, %v11091_v56  ;;  %v13251_v56 = vld [vmem:[#allocation2 + $0xc] sm:$0xff]  }
 0x110   : > { %v2852_v14 = vrot.slane %v2851_v55, 4 }
 0x116   : > { %12186 = vmatmul.mubr.msk.bf16.gmra.mrb[16].mxu0 %vm1441_vm9, %v11092_v60  ;;  %v13261_v60 = vld [vmem:[#allocation2 + $0x84] sm:$0xff]  }
 0x117   : > { %12189 = vmatprep.mubr.msk.bf16.mxu0 %vm1441_vm9, %v11093_v48  ;;  %v2820_v48 = vshll.u32 %v14147_v32, 16 }
 0x119   : > { %v14157_v13 = vrot.slane %v2820_v48, 5 }
 0x11b   : > { %v2827_v30 = vor.u32 %v2826_v41, %v14157_v13  ;;  %v2823_v21 = vsel %vm13495_vm12, %v2818_v39, %v14157_v13  ;;  %v14197_v13 = vld [vmem:[#allocation2 + $0x38] sm:$0x1] }
 0x11c   : > { %v2902_v39 = vshll.u32 %v14197_v13, 16 }
 0x11d   : > { %v2828_v40 = vrot.slane %v2827_v30, 4 }
 0x11e   : > { %12190 = vmatmul.mubr.msk.bf16.gmra.mrb[20].mxu0 %vm1441_vm9, %v11094_v20  ;;  %v13262_v20 = vld [vmem:[#allocation2 + $0x90] sm:$0xff]  }
 0x11f   : > { %12193 = vmatprep.mubr.msk.bf16.mxu0 %vm1441_vm9, %v11095_v22  ;;  %v2830_v22 = vshll.u32 %v14155_v24, 16 }
 0x121   : > { %v2832_v46 = vrot.slane %v2830_v22, 5  ;;  %v2931_v22 = vshrl.u32 %v2777_v2, 16 }
 0x123   : > { %v2833_v54 = vsel %vm13495_vm12, %v2828_v40, %v2832_v46  ;;  %v2780_v40 = vld [vmem:[#allocation2 + $0x54] sm:$0xf]  ;;  %v13266_v46 = vld [vmem:[#allocation2 + $0xc0] sm:$0xff]  }
 0x126   : > { %12194 = vmatmul.mubr.msk.bf16.gmra.mrb[24].mxu0 %vm1441_vm9, %v11096_v59  ;;  %v2841_v59 = vor.u32 %v2840_v10, %v2837_v63  ;;  %v2934_v63 = vshll.u32 %v2777_v2, 16  ;;  %v11149_v10 = vcombine.low %v2823_v21, %v2833_v54  ;;  %v2964_v21 = vshll.u32 %v14218_v61, 16 }
 0x127   : > { %12197 = vmatprep.mubr.msk.bf16.mxu0 %vm1441_vm9, %v11097_v43  ;;  %v2854_v43 = vshll.u32 %v14165_v34, 16  ;;  %v2968_v54 = vshrl.u32 %v14218_v61, 16 }
 0x12e   : > { %12198 = vmatmul.mubr.msk.bf16.gmra.mrb[28].mxu0 %vm1441_vm9, %v11098_v51  ;;  %v2861_v51 = vrot.slane %v2859_v38, 4 }
 0x12f   : > { %12203 = vmatprep.mubr.msk.bf16.mxu0 %vm1441_vm9, %v13251_v56  ;;  %v2864_v56 = vrot.slane %v2862_v16, 5 }
 0x131   : > { %v2865_v9 = vor.u32 %v2864_v56, %v2861_v51  ;;  %v2933_v51 = vrot.slane %v2931_v22, 4  ;;  %v2936_v56 = vrot.slane %v2934_v63, 5  ;;  %v14239_v63 = vld [vmem:[#allocation2 + $0x5c] sm:$0x1] }
 0x133   : > { %v2866_v16 = vrot.slane %v2865_v9, 4  ;;  %v14233_v9 = vld [vmem:[#allocation2 + $0x64] sm:$0xf] }
 0x136   : > { %12204 = vmatmul.mubr.msk.bf16.vlgmr.msra.gmra.mrb[0].mxu0 %vm1441_vm9, %v13252_v18  ;;  %v14179_v18 = vld [vmem:[#allocation2 + $0x40] sm:$0xf] }
 0x137   : > { %12236 = vmatpush3.bf16.msra.mxu0 %v3293_v5  ;;  %12207 = vmatprep.mubr.msk.bf16.mxu0 %vm1441_vm9, %v13253_v26  ;;  %v2883_v26 = vshrl.u32 %v2771_v42, 16  ;;  %v2886_v5 = vshll.u32 %v2771_v42, 16  ;;  %v2920_v48 = vshrl.u32 %v14179_v18, 16 }
 0x138   : > { %13228 = vmatprep.subr.msk.bf16.mxu0 %vm1490_vm0, %v14135_v0 }
 0x139   : > { %v2885_v29 = vrot.slane %v2883_v26, 4  ;;  %v2888_v41 = vrot.slane %v2886_v5, 5  ;;  %v2922_v11 = vrot.slane %v2920_v48, 4 }
 0x13b   : > { %v2889_v42 = vor.u32 %v2888_v41, %v2885_v29 }
 0x13e   : > { %12208 = vmatmul.mubr.msk.bf16.gmra.mrb[4].mxu0 %vm1441_vm9, %v13254_v23  ;;  %v2892_v23 = vshll.u32 %v14173_v45, 16 }
 0x13f   : > { %12211 = vmatprep.mubr.msk.bf16.mxu0 %vm1441_vm9, %v13255_v31  ;;  %v2896_v31 = vshrl.u32 %v14173_v45, 16 }
 0x140   : > { %v14194_v33 = vrot.slane %v2892_v23, 5 }
 0x141   : > { %v2898_v35 = vrot.slane %v2896_v31, 4  ;;  %v2871_v31 = vsel %vm13495_vm12, %v2866_v16, %v14177_v50  ;;  %v2937_v50 = vor.u32 %v2936_v56, %v2933_v51  ;;  %v2992_v16 = vshrl.u32 %v14233_v9, 16 }
 0x142   : > { %v2974_v51 = vshll.u32 %v14239_v63, 16 }
 0x146   : > { %12212 = vmatmul.mubr.msk.bf16.gmra.mrb[8].mxu0 %vm1441_vm9, %v13256_v52  ;;  %v13264_v52 = vld [vmem:[#allocation2 + $0xa8] sm:$0xff]  }
 0x147   : > { %12215 = vmatprep.mubr.msk.bf16.mxu0 %vm1441_vm9, %v13257_v7  ;;  %v2842_v7 = vrot.slane %v2841_v59, 4  ;;  %v14209_v59 = vld [vmem:[#allocation2 + $0x4c] sm:$0xf] }
 0x148   : > { %v2944_v23 = vshrl.u32 %v14209_v59, 16 }
 0x14a   : > { %v2946_v29 = vrot.slane %v2944_v23, 4 }
 0x14e   : > { %12216 = vmatmul.mubr.msk.bf16.gmra.mrb[12].mxu0 %vm1441_vm9, %v13258_v4  ;;  %v2856_v4 = vrot.slane %v2854_v43, 5  ;;  %v14213_v43 = vsel %vm1490_vm0, %v14135_v0, 0  ;;  %v2940_v0 = vshll.u32 %v14209_v59, 16 }
 0x14f   : > { %12219 = vmatprep.mubr.msk.bf16.mxu0 %vm1441_vm9, %v13259_v12  ;;  %v2907_v12 = vshrl.u32 %v2774_v53, 16  ;;  %v2926_v53 = vshll.u32 %v14203_v28, 16 }
 0x150   : > { %v2857_v38 = vsel %vm13495_vm12, %v2852_v14, %v2856_v4  ;;  %v2955_v4 = vshrl.u32 %v2780_v40, 16  ;;  %v14236_v17 = vrot.slane %v2940_v0, 5  ;;  %v2789_v0 = vld [vmem:[#allocation2 + $0x78] sm:$0xf] }
 0x151   : > { %v2909_v25 = vrot.slane %v2907_v12, 4  ;;  %v2958_v12 = vshll.u32 %v2780_v40, 16  ;;  %v2928_v14 = vrot.slane %v2926_v53, 5  ;;  %v14260_v53 = vld [vmem:[#allocation2 + $0x70] sm:$0xf] }
 0x152   : > { %v2947_v40 = vor.u32 %v2946_v29, %v14236_v17  ;;  %v2976_v29 = vrot.slane %v2974_v51, 5 }
 0x156   : > { %12220 = vmatmul.mubr.msk.bf16.gmra.mrb[16].mxu0 %vm1441_vm9, %v13260_v47  ;;  %v13265_v47 = vld [vmem:[#allocation2 + $0xb4] sm:$0xff]  }
 0x157   : > { %12223 = vmatprep.mubr.msk.bf16.mxu0 %vm1441_vm9, %v13261_v60  ;;  %v2916_v60 = vshll.u32 %v14179_v18, 16 }
 0x159   : > { %v14205_v30 = vrot.slane %v2916_v60, 5  ;;  %v2783_v60 = vld [vmem:[#allocation2 + $0x60] sm:$0xf] }
 0x15a   : > { %v2982_v22 = vshll.u32 %v2783_v60, 16 }
 0x15b   : > { %v2923_v5 = vor.u32 %v2922_v11, %v14205_v30  ;;  %v2970_v11 = vrot.slane %v2968_v54, 4  ;;  %v3012_v54 = vshll.u32 %v14260_v53, 16 }
 0x15d   : > { %v2924_v1 = vrot.slane %v2923_v5, 4  ;;  %v2984_v5 = vrot.slane %v2982_v22, 5  ;;  %v2792_v22 = vld [vmem:[#allocation2 + $0x84] sm:$0xf] }
 0x15e   : > { %12224 = vmatmul.mubr.msk.bf16.gmra.mrb[20].mxu0 %vm1441_vm9, %v13262_v20  ;;  %v2912_v20 = vrot.slane %v2910_v6, 5  ;;  %v2890_v6 = vrot.slane %v2889_v42, 4 }
 0x15f   : > { %12227 = vmatprep.mubr.msk.bf16.mxu0 %vm1441_vm9, %v13263_v15  ;;  %v2847_v15 = vsel %vm13495_vm12, %v2842_v7, %v14167_v37  ;;  %v2899_v37 = vor.u32 %v2898_v35, %v14194_v33  ;;  %v14228_v7 = vld [vmem:[#allocation2 + $0x50] sm:$0x1]  ;;  %v2957_v35 = vrot.slane %v2955_v4, 4  ;;  %v14266_v4 = vld [vmem:[#allocation2 + $0x7c] sm:$0xf] }
 0x160   : > { %v2913_v55 = vor.u32 %v2912_v20, %v2909_v25  ;;  %v11150_v26 = vcombine.low %v2847_v15, %v2857_v38  ;;  %v2950_v41 = vshll.u32 %v14228_v7, 16  ;;  %v2960_v25 = vrot.slane %v2958_v12, 5  ;;  %v14271_v12 = vld [vmem:[%s16989_s1 + $0xc] sm:$0x3] }
 0x161   : > { %v2900_v48 = vrot.slane %v2899_v37, 4  ;;  %v2979_v20 = vshrl.u32 %v2783_v60, 16  ;;  %v14241_v15 = vrot.slane %v2964_v21, 5  ;;  %v2988_v38 = vshll.u32 %v14233_v9, 16 }
 0x162   : > { %v2914_v2 = vrot.slane %v2913_v55, 4  ;;  %v2929_v37 = vsel %vm13495_vm12, %v2924_v1, %v2928_v14  ;;  %v2786_v55 = vld [vmem:[#allocation2 + $0x6c] sm:$0xf]  ;;  %v3016_v60 = vshrl.u32 %v14260_v53, 16  ;;  %v3027_v14 = vshrl.u32 %v2789_v0, 16 }
 0x163   : > { %v2981_v56 = vrot.slane %v2979_v20, 4  ;;  %v3006_v21 = vshll.u32 %v2786_v55, 16 }
 0x164   : > { %v2919_v42 = vsel %vm13495_vm12, %v2914_v2, %v14205_v30  ;;  %v2971_v30 = vor.u32 %v2970_v11, %v14241_v15  ;;  %v2948_v2 = vrot.slane %v2947_v40, 4  ;;  %v14286_v11 = vld [vmem:[#allocation2 + $0x74] sm:$0x1]  ;;  %v3029_v40 = vrot.slane %v3027_v14, 4 }
 0x166   : > { %12228 = vmatmul.mubr.msk.bf16.gmra.mrb[24].mxu0 %vm1441_vm9, %v13264_v52  ;;  %v2881_v52 = vsel %vm13495_vm12, %v2876_v8, %v2880_v62  ;;  %v2895_v8 = vsel %vm13495_vm12, %v2890_v6, %v14194_v33  ;;  %v2961_v33 = vor.u32 %v2960_v25, %v2957_v35  ;;  %v14274_v6 = vld [vmem:[#allocation2 + $0x68] sm:$0x1]  ;;  %v2972_v35 = vrot.slane %v2971_v30, 4 }
 0x167   : > { %12231 = vmatprep.mubr.msk.bf16.mxu0 %vm1441_vm9, %v13265_v47  ;;  %v2904_v47 = vrot.slane %v2902_v39, 5  ;;  %v14255_v39 = vrot.slane %v2937_v50, 4  ;;  %v3030_v50 = vshll.u32 %v2789_v0, 16  ;;  %v2985_v25 = vor.u32 %v2984_v5, %v2981_v56  ;;  %v14301_v56 = vld [vmem:[#allocation2 + $0x88] sm:$0xf] }
 0x168   : > { %v2962_v1 = vrot.slane %v2961_v33, 4  ;;  %v3051_v5 = vshrl.u32 %v2792_v22, 16  ;;  %v3054_v0 = vshll.u32 %v2792_v22, 16  ;;  %v14321_v22 = vld [vmem:[#allocation2 + $0x94] sm:$0xf] }
 0x169   : > { %v2905_v62 = vsel %vm13495_vm12, %v2900_v48, %v2904_v47  ;;  %v3003_v47 = vshrl.u32 %v2786_v55, 16  ;;  %v11153_v48 = vcombine.low %v2919_v42, %v2929_v37  ;;  %v14297_v37 = vld [vmem:[#allocation2 + $0x80] sm:$0x1]  ;;  %v3032_v55 = vrot.slane %v3030_v50, 5 }
 0x16a   : > { %v11152_v23 = vcombine.low %v2895_v8, %v2905_v62  ;;  %v3018_v8 = vrot.slane %v3016_v60, 4  ;;  %v2943_v62 = vsel %vm13495_vm12, %v14255_v39, %v14236_v17  ;;  %v2967_v30 = vsel %vm13495_vm12, %v2962_v1, %v14241_v15 }
 0x16b   : > { %v2977_v17 = vsel %vm13495_vm12, %v2972_v35, %v2976_v29  ;;  %v3046_v60 = vshll.u32 %v14297_v37, 16  ;;  %v3064_v15 = vshrl.u32 %v14301_v56, 16  ;;  %v3033_v14 = vor.u32 %v3032_v55, %v3029_v40 }
 0x16c   : > { %v3053_v1 = vrot.slane %v3051_v5, 4  ;;  %v3056_v29 = vrot.slane %v3054_v0, 5  ;;  %v14327_v0 = vld [vmem:[#allocation2 + $0x8c] sm:$0x1] }
 0x16d   : > { %v3048_v5 = vrot.slane %v3046_v60, 5 }
 0x16e   : > { %12232 = vmatmul.mubr.msk.bf16.gmra.mrb[28].mxu0 %vm1441_vm9, %v13266_v46  ;;  %v14258_v46 = vrot.slane %v2950_v41, 5  ;;  %v3040_v41 = vshrl.u32 %v14266_v4, 16 }
 0x16f   : > { %12237 = vmatprep.mubr.msk.bf16.mxu0 %vm1441_vm9, %v11149_v10  ;;  %v11151_v10 = vcombine.low %v2871_v31, %v2881_v52  ;;  %v14264_v31 = vrot.slane %v2988_v38, 5  ;;  %v2994_v52 = vrot.slane %v2992_v16, 4  ;;  %v3005_v38 = vrot.slane %v3003_v47, 4 }
 0x170   : > { %v3008_v16 = vrot.slane %v3006_v21, 5  ;;  %v2953_v42 = vsel %vm13495_vm12, %v2948_v2, %v14258_v46  ;;  %v3042_v51 = vrot.slane %v3040_v41, 4  ;;  %v3022_v46 = vshll.u32 %v14286_v11, 16 }
 0x171   : > { %v2995_v20 = vor.u32 %v2994_v52, %v14264_v31  ;;  %v2986_v52 = vrot.slane %v2985_v25, 4  ;;  %v3060_v2 = vshll.u32 %v14301_v56, 16  ;;  %v11155_v41 = vcombine.low %v2967_v30, %v2977_v17 }
 0x172   : > { %v3009_v21 = vor.u32 %v3008_v16, %v3005_v38  ;;  %v3024_v35 = vrot.slane %v3022_v46, 5  ;;  %v2798_v38 = vld [vmem:[#allocation2 + $0x9c] sm:$0xf]  ;;  %v3084_v30 = vshll.u32 %v14321_v22, 16  ;;  %v3088_v17 = vshrl.u32 %v14321_v22, 16 }
 0x173   : > { %v2996_v47 = vrot.slane %v2995_v20, 4  ;;  %v2991_v25 = vsel %vm13495_vm12, %v2986_v52, %v14264_v31  ;;  %v14323_v16 = vrot.slane %v3060_v2, 5  ;;  %v3057_v31 = vor.u32 %v3056_v29, %v3053_v1  ;;  %v14347_v29 = vld [vmem:[#allocation2 + $0x98] sm:$0x1] }
 0x174   : > { %v3010_v20 = vrot.slane %v3009_v21, 4  ;;  %v3102_v46 = vshll.u32 %v2798_v38, 16  ;;  %v3070_v2 = vshll.u32 %v14327_v0, 16 }
 0x175   : > { %v3058_v1 = vrot.slane %v3057_v31, 4 }
 0x176   : > { %12238 = vmatmul.mubr.msk.bf16.vlgmr.msra.gmra.mrb[0].mxu0 %vm1441_vm9, %v11150_v26  ;;  %v3036_v26 = vshll.u32 %v14266_v4, 16 }
 0x177   : > { %12270 = vmatpush3.bf16.msra.mxu0 %v14213_v43  ;;  %12241 = vmatprep.mubr.msk.bf16.mxu0 %vm1441_vm9, %v11151_v10  ;;  %v2998_v43 = vshll.u32 %v14274_v6, 16  ;;  %v14288_v10 = vrot.slane %v3012_v54, 5 }
 0x178   : > { %13229 = vmatprep.subr.msk.bf16.mxu0 %vm1490_vm0, %v14271_v12  ;;  %v14299_v33 = vrot.slane %v3036_v26, 5  ;;  %v2795_v26 = vld [vmem:[#allocation2 + $0x90] sm:$0xf] }
 0x179   : > { %v3000_v39 = vrot.slane %v2998_v43, 5  ;;  %v3019_v54 = vor.u32 %v3018_v8, %v14288_v10  ;;  %v3066_v8 = vrot.slane %v3064_v15, 4  ;;  %v3075_v40 = vshrl.u32 %v2795_v26, 16 }
 0x17a   : > { %v3043_v50 = vor.u32 %v3042_v51, %v14299_v33  ;;  %v3078_v55 = vshll.u32 %v2795_v26, 16  ;;  %v3015_v52 = vsel %vm13495_vm12, %v3010_v20, %v14288_v10  ;;  %v14349_v26 = vrot.slane %v3084_v30, 5 }
 0x17b   : > { %v3020_v43 = vrot.slane %v3019_v54, 4  ;;  %v3067_v60 = vor.u32 %v3066_v8, %v14323_v16  ;;  %v3077_v15 = vrot.slane %v3075_v40, 4 }
 0x17c   : > { %v3044_v51 = vrot.slane %v3043_v50, 4 }
 0x17e   : > { %12242 = vmatmul.mubr.msk.bf16.gmra.mrb[4].mxu0 %vm1441_vm9, %v11152_v23  ;;  %v11154_v23 = vcombine.low %v2943_v62, %v2953_v42  ;;  %v14325_v62 = vld [vmem:[#allocation2 + $0xa0] sm:$0xf]  ;;  %v3034_v42 = vrot.slane %v3033_v14, 4  ;;  %v3080_v14 = vrot.slane %v3078_v55, 5  ;;  %v3049_v10 = vsel %vm13495_vm12, %v3044_v51, %v3048_v5  ;;  %v2801_v55 = vld [vmem:[#allocation2 + $0xa8] sm:$0xf] }
 0x17f   : > { %12245 = vmatprep.mubr.msk.bf16.mxu0 %vm1441_vm9, %v11153_v48  ;;  %v3001_v48 = vsel %vm13495_vm12, %v2996_v47, %v3000_v39  ;;  %v3099_v39 = vshrl.u32 %v2798_v38, 16  ;;  %v3025_v47 = vsel %vm13495_vm12, %v3020_v43, %v3024_v35  ;;  %v3108_v21 = vshll.u32 %v14325_v62, 16  ;;  %v14351_v38 = vld [vmem:[#allocation2 + $0xa4] sm:$0x1]  ;;  %v14356_v5 = vld [vmem:[#allocation2 + $0xac] sm:$0xf] }
 0x180   : > { %v3112_v54 = vshrl.u32 %v14325_v62, 16  ;;  %v3039_v50 = vsel %vm13495_vm12, %v3034_v42, %v14299_v33  ;;  %v3104_v35 = vrot.slane %v3102_v46, 5  ;;  %v11156_v20 = vcombine.low %v2991_v25, %v3001_v48  ;;  %17109 = vst [vmem:[#allocation6_spill] sm:$0xff] %v14351_v38  ;;  %17110 = vst [vmem:[#allocation7_spill] sm:$0xff] %v14356_v5  ;;  %v14360_v46 = vld [vmem:[#allocation2 + $0xb8] sm:$0xf] }
 0x181   : > { %v11157_v43 = vcombine.low %v3015_v52, %v3025_v47  ;;  %v14353_v8 = vrot.slane %v3108_v21, 5  ;;  %v3068_v33 = vrot.slane %v3067_v60, 4  ;;  %v3072_v42 = vrot.slane %v3070_v2, 5 }
 0x182   : > { %v3114_v40 = vrot.slane %v3112_v54, 4  ;;  %v3081_v3 = vor.u32 %v3080_v14, %v3077_v15  ;;  %v3094_v51 = vshll.u32 %v14347_v29, 16  ;;  %v11158_v31 = vcombine.low %v3039_v50, %v3049_v10 }
 0x183   : > { %v3118_v25 = vshll.u32 %v14351_v38, 16  ;;  %v3123_v48 = vshrl.u32 %v2801_v55, 16  ;;  %v3126_v47 = vshll.u32 %v2801_v55, 16  ;;  %v3132_v21 = vshll.u32 %v14356_v5, 16  ;;  %v14376_v38 = vld [vmem:[#allocation2 + $0xc4] sm:$0xf] }
 0x184   : > { %v3115_v52 = vor.u32 %v3114_v40, %v14353_v8  ;;  %v3136_v54 = vshrl.u32 %v14356_v5, 16  ;;  %v3063_v60 = vsel %vm13495_vm12, %v3058_v1, %v14323_v16  ;;  %v3073_v2 = vsel %vm13495_vm12, %v3068_v33, %v3072_v42  ;;  %v2807_v33 = vld [vmem:[#allocation2 + $0xc0] sm:$0xf] }
 0x185   : > { %v3082_v15 = vrot.slane %v3081_v3, 4  ;;  %v3096_v14 = vrot.slane %v3094_v51, 5  ;;  %v3120_v40 = vrot.slane %v3118_v25, 5  ;;  %v3125_v55 = vrot.slane %v3123_v48, 4  ;;  %v14384_v48 = vld [vmem:[#allocation2 + $0xbc] sm:$0x1] }
 0x186   : > { %12246 = vmatmul.mubr.msk.bf16.gmra.mrb[8].mxu0 %vm1441_vm9, %v11154_v23  ;;  %v3090_v23 = vrot.slane %v3088_v17, 4  ;;  %v3128_v44 = vrot.slane %v3126_v47, 5  ;;  %v3134_v16 = vrot.slane %v3132_v21, 5  ;;  %v3138_v1 = vrot.slane %v3136_v54, 4 }
 0x187   : > { %12249 = vmatprep.mubr.msk.bf16.mxu0 %vm1441_vm9, %v11155_v41  ;;  %v3101_v41 = vrot.slane %v3099_v39, 4  ;;  %v2804_v39 = vld [vmem:[#allocation2 + $0xb4] sm:$0xf]  ;;  %v11159_v5 = vcombine.low %v3063_v60, %v3073_v2  ;;  %v3142_v25 = vshll.u32 %v14374_v57, 16  ;;  %v3174_v60 = vshll.u32 %v2807_v33, 16 }
 0x188   : > { %v3091_v30 = vor.u32 %v3090_v23, %v14349_v26  ;;  %v3147_v50 = vshrl.u32 %v2804_v39, 16  ;;  %v3150_v10 = vshll.u32 %v2804_v39, 16  ;;  %v3156_v23 = vshll.u32 %v14360_v46, 16 }
 0x189   : > { %v3105_v17 = vor.u32 %v3104_v35, %v3101_v41  ;;  %v3160_v41 = vshrl.u32 %v14360_v46, 16  ;;  %v3129_v21 = vor.u32 %v3128_v44, %v3125_v55  ;;  %v3139_v54 = vor.u32 %v3138_v1, %v3134_v16 }
 0x18a   : > { %v3092_v35 = vrot.slane %v3091_v30, 4  ;;  %v3149_v3 = vrot.slane %v3147_v50, 4  ;;  %v3152_v42 = vrot.slane %v3150_v10, 5  ;;  %v3158_v51 = vrot.slane %v3156_v23, 5 }
 0x18b   : > { %v3162_v39 = vrot.slane %v3160_v41, 4  ;;  %v3087_v30 = vsel %vm13495_vm12, %v3082_v15, %v14349_v26  ;;  %v3171_v26 = vshrl.u32 %v2807_v33, 16  ;;  %v3180_v2 = vshll.u32 %v14376_v38, 16  ;;  %v14396_v33 = vld [vmem:[#allocation2 + $0xc8] sm:$0x1] }
 0x18c   : > { %v3184_v15 = vshrl.u32 %v14376_v38, 16  ;;  %v3140_v41 = vrot.slane %v3139_v54, 4  ;;  %v3176_v44 = vrot.slane %v3174_v60, 5 }
 0x18d   : > { %v3163_v50 = vor.u32 %v3162_v39, %v3158_v51 }
 0x18e   : > { %12250 = vmatmul.mubr.msk.bf16.gmra.mrb[12].mxu0 %vm1441_vm9, %v11156_v20  ;;  %v3106_v20 = vrot.slane %v3105_v17, 4  ;;  %v3097_v17 = vsel %vm13495_vm12, %v3092_v35, %v3096_v14  ;;  %v3153_v14 = vor.u32 %v3152_v42, %v3149_v3  ;;  %v3144_v35 = vrot.slane %v3142_v25, 5 }
 0x18f   : > { %12253 = vmatprep.mubr.msk.bf16.mxu0 %vm1441_vm9, %v11157_v43  ;;  %v3116_v43 = vrot.slane %v3115_v52, 4  ;;  %v11160_v10 = vcombine.low %v3087_v30, %v3097_v17  ;;  %v3186_v55 = vrot.slane %v3184_v15, 4  ;;  %v3190_v17 = vshll.u32 %v14396_v33, 16 }
 0x190   : > { %v3111_v52 = vsel %vm13495_vm12, %v3106_v20, %v14353_v8  ;;  %v3130_v8 = vrot.slane %v3129_v21, 4  ;;  %v3173_v20 = vrot.slane %v3171_v26, 4  ;;  %v3145_v42 = vsel %vm13495_vm12, %v3140_v41, %v3144_v35  ;;  %v3488_v21 = vld [vmem:[#allocation2 + $0xc] sm:$0xe]  ;;  %v3490_v41 = vld [vmem:[#allocation2 + $0x24] sm:$0xe] }
 0x191   : > { %v3121_v47 = vsel %vm13495_vm12, %v3116_v43, %v3120_v40  ;;  %v3182_v40 = vrot.slane %v3180_v2, 5  ;;  %v3164_v43 = vrot.slane %v3163_v50, 4  ;;  %v3192_v2 = vrot.slane %v3190_v17, 5 }
 0x192   : > { %v11161_v23 = vcombine.low %v3111_v52, %v3121_v47  ;;  %v3135_v3 = vsel %vm13495_vm12, %v3130_v8, %v3134_v16  ;;  %v3177_v39 = vor.u32 %v3176_v44, %v3173_v20  ;;  %v3554_v47 = vrot.slane %v14147_v32, 5  ;;  %v3489_v8 = vld [vmem:[#allocation2 + $0x18] sm:$0xe] }
 0x193   : > { %v3187_v30 = vor.u32 %v3186_v55, %v3182_v40  ;;  %v11162_v54 = vcombine.low %v3135_v3, %v3145_v42  ;;  %v11181_v15 = vrot.slane %v3488_v21, 9  ;;  %v3557_v50 = vrot.slane %v14155_v24, 5 }
 0x194   : > { %v3178_v26 = vrot.slane %v3177_v39, 4  ;;  %v3568_v24 = vrot.slane %v14161_v19, 5  ;;  %v11182_v44 = vrot.slane %v3489_v8, 9  ;;  %v3575_v3 = vrot.slane %v14173_v45, 5  ;;  %v3491_v39 = vld [vmem:[#allocation2 + $0x30] sm:$0xe] }
 0x195   : > { %v3188_v60 = vrot.slane %v3187_v30, 4  ;;  %v3492_v30 = vld [vmem:[#allocation2 + $0x3c] sm:$0xe]  ;;  %v3578_v21 = vrot.slane %v14197_v13, 5 }
 0x196   : > { %12254 = vmatmul.mubr.msk.bf16.gmra.mrb[16].mxu0 %vm1441_vm9, %v11158_v31  ;;  %v3166_v31 = vshll.u32 %v14384_v48, 16  ;;  %v11185_v45 = vrot.slane %v3492_v30, 9  ;;  %v3498_v30 = vld [vmem:[#allocation2 + $0x84] sm:$0xe] }
 0x197   : > { %12257 = vmatprep.mubr.msk.bf16.mxu0 %vm1441_vm9, %v11159_v5  ;;  %v3154_v5 = vrot.slane %v3153_v14, 4  ;;  %v3556_v14 = vrot.slane %v3554_v47, 4  ;;  %v3193_v32 = vsel %vm13495_vm12, %v3188_v60, %v3192_v2  ;;  %v14444_v60 = vld [vmem:[%s16989_s1 + $0xe] sm:$0x3] }
 0x198   : > { %v3168_v1 = vrot.slane %v3166_v31, 5  ;;  %v3561_v31 = vrot.slane %v14151_v27, 5  ;;  %v3571_v27 = vrot.slane %v14181_v36, 5  ;;  %v3582_v36 = vrot.slane %v14179_v18, 5 }
 0x199   : > { %v3159_v25 = vsel %vm13495_vm12, %v3154_v5, %v3158_v51  ;;  %v3183_v51 = vsel %vm13495_vm12, %v3178_v26, %v3182_v40  ;;  %v3564_v40 = vrot.slane %v14165_v34, 5  ;;  %v11183_v5 = vrot.slane %v3490_v41, 9 }
 0x19a   : > { %v3169_v52 = vsel %vm13495_vm12, %v3164_v43, %v3168_v1  ;;  %v11164_v35 = vcombine.low %v3183_v51, %v3193_v32  ;;  %v3563_v55 = vrot.slane %v3561_v31, 4  ;;  %v3570_v43 = vrot.slane %v3568_v24, 4 }
 0x19b   : > { %v11163_v16 = vcombine.low %v3159_v25, %v3169_v52  ;;  %v3562_v1 = vsel %vm14004_vm2, %v11182_v44, %v3561_v31  ;;  %v3569_v42 = vsel %vm14004_vm2, %v11183_v5, %v3568_v24  ;;  %v11184_v52 = vrot.slane %v3491_v39, 9  ;;  %v3495_v44 = vld [vmem:[#allocation2 + $0x60] sm:$0xe] }
 0x19c   : > { %v3565_v19 = vsel %vm14004_vm2, %v3563_v55, %v3564_v40  ;;  %v3572_v34 = vsel %vm14004_vm2, %v3570_v43, %v3571_v27  ;;  %v3585_v26 = vrot.slane %v14203_v28, 5  ;;  %v3583_v28 = vsel %vm14004_vm2, %v11185_v45, %v3582_v36  ;;  %v3496_v55 = vld [vmem:[#allocation2 + $0x6c] sm:$0xe] }
 0x19d   : > { %v11199_v17 = vcombine.low %v3562_v1, %v3565_v19  ;;  %v11200_v25 = vcombine.low %v3569_v42, %v3572_v34  ;;  %v3576_v18 = vsel %vm14004_vm2, %v11184_v52, %v3575_v3  ;;  %v3599_v24 = vrot.slane %v14239_v63, 5 }
 0x19e   : > { %12258 = vmatmul.mubr.msk.bf16.gmra.mrb[20].mxu0 %vm1441_vm9, %v11160_v10  ;;  %v3555_v10 = vsel %vm14004_vm2, %v11181_v15, %v3554_v47  ;;  %v3577_v47 = vrot.slane %v3575_v3, 4  ;;  %v3493_v15 = vld [vmem:[#allocation2 + $0x48] sm:$0xe]  ;;  %v3610_v63 = vrot.slane %v14260_v53, 5  ;;  %v11188_v43 = vrot.slane %v3495_v44, 9 }
 0x19f   : > { %12261 = vmatprep.mubr.msk.bf16.mxu0 %vm1441_vm9, %v11161_v23  ;;  %v3558_v23 = vsel %vm14004_vm2, %v3556_v14, %v3557_v50  ;;  %v3596_v14 = vrot.slane %v14218_v61, 5  ;;  %v3494_v50 = vld [vmem:[#allocation2 + $0x54] sm:$0xe]  ;;  %v11186_v31 = vrot.slane %v3493_v15, 9  ;;  %v3606_v1 = vrot.slane %v14274_v6, 5 }
 0x1a0   : > { %v11198_v20 = vcombine.low %v3555_v10, %v3558_v23  ;;  %v3579_v13 = vsel %vm14004_vm2, %v3577_v47, %v3578_v21  ;;  %v3592_v23 = vrot.slane %v14228_v7, 5  ;;  %v11189_v19 = vrot.slane %v3496_v55, 9 }
 0x1a1   : > { %v11201_v51 = vcombine.low %v3576_v18, %v3579_v13  ;;  %v3598_v8 = vrot.slane %v3596_v14, 4  ;;  %v3612_v3 = vrot.slane %v3610_v63, 4  ;;  %v3617_v34 = vrot.slane %v14266_v4, 5  ;;  %v3499_v13 = vld [vmem:[#allocation2 + $0x90] sm:$0xe] }
 0x1a2   : > { %v3611_v39 = vsel %vm14004_vm2, %v11189_v19, %v3610_v63  ;;  %v3620_v21 = vrot.slane %v14297_v37, 5  ;;  %v3627_v4 = vrot.slane %v14327_v0, 5  ;;  %v3638_v0 = vrot.slane %v14325_v62, 5  ;;  %v3503_v19 = vld [vmem:[#allocation2 + $0xc0] sm:$0xe] }
 0x1a3   : > { %v3600_v7 = vsel %vm14004_vm2, %v3598_v8, %v3599_v24  ;;  %v3619_v47 = vrot.slane %v3617_v34, 4  ;;  %v11192_v15 = vrot.slane %v3499_v13, 9  ;;  %v3501_v24 = vld [vmem:[#allocation2 + $0xa8] sm:$0xe]  ;;  %v3648_v63 = vrot.slane %v14374_v57, 5 }
 0x1a4   : > { %v13276_v13 = vld [vmem:[#allocation2 + $0x84] sm:$0xff]  }
 0x1a6   : > { %12262 = vmatmul.mubr.msk.bf16.gmra.mrb[24].mxu0 %vm1441_vm9, %v11162_v54  ;;  %v4122_v54 = vsel %vm1490_vm0, %v14271_v12, 0  ;;  %v3589_v12 = vrot.slane %v14209_v59, 5  ;;  %v11187_v59 = vrot.slane %v3494_v50, 9  ;;  %v3634_v50 = vrot.slane %v14347_v29, 5 }
 0x1a7   : > { %12265 = vmatprep.mubr.msk.bf16.mxu0 %vm1441_vm9, %v11163_v16  ;;  %v3584_v16 = vrot.slane %v3582_v36, 4  ;;  %v3497_v36 = vld [vmem:[#allocation2 + $0x78] sm:$0xe] }
 0x1a8   : > { %v3591_v10 = vrot.slane %v3589_v12, 4  ;;  %v3590_v61 = vsel %vm14004_vm2, %v11186_v31, %v3589_v12  ;;  %v11190_v52 = vrot.slane %v3497_v36, 9  ;;  %v3500_v12 = vld [vmem:[#allocation2 + $0x9c] sm:$0xe]  ;;  %v17111_v31 = vld [vmem:[#allocation6_spill] sm:$0xff]  ;;  %v13268_v36 = vld [vmem:[#allocation2 + $0x24] sm:$0xff]  }
 0x1a9   : > { %v3586_v2 = vsel %vm14004_vm2, %v3584_v16, %v3585_v26  ;;  %v3631_v26 = vrot.slane %v14321_v22, 5  ;;  %v3641_v22 = vrot.slane %v17111_v31, 5  ;;  %v14565_v31 = vld [vmem:[#allocation2 + $0x20] sm:$0x1] }
 0x1aa   : > { %v11202_v32 = vcombine.low %v3583_v28, %v3586_v2  ;;  %v3593_v41 = vsel %vm14004_vm2, %v3591_v10, %v3592_v23  ;;  %v3618_v16 = vsel %vm14004_vm2, %v11190_v52, %v3617_v34  ;;  %v17112_v23 = vld [vmem:[#allocation7_spill] sm:$0xff]  ;;  %v13273_v52 = vld [vmem:[#allocation2 + $0x60] sm:$0xff]  }
 0x1ab   : > { %v11203_v40 = vcombine.low %v3590_v61, %v3593_v41  ;;  %v3632_v10 = vsel %vm14004_vm2, %v11192_v15, %v3631_v26  ;;  %v3652_v61 = vrot.slane %v14360_v46, 5  ;;  %v3502_v41 = vld [vmem:[#allocation2 + $0xb4] sm:$0xe] }
 0x1ac   : > { %v11195_v55 = vrot.slane %v3502_v41, 9 }
 0x1ae   : > { %12266 = vmatmul.mubr.msk.bf16.gmra.mrb[28].mxu0 %vm1441_vm9, %v11164_v35  ;;  %v3603_v35 = vrot.slane %v14233_v9, 5  ;;  %v3613_v9 = vrot.slane %v14286_v11, 5  ;;  %v3624_v11 = vrot.slane %v14301_v56, 5  ;;  %v3621_v56 = vsel %vm14004_vm2, %v3619_v47, %v3620_v21  ;;  %v13274_v47 = vld [vmem:[#allocation2 + $0x6c] sm:$0xff]   ;;  %v13275_v21 = vld [vmem:[#allocation2 + $0x78] sm:$0xff]  }
 0x1af   : > { %12271 = vmatprep.mubr.msk.bf16.mxu0 %vm1441_vm9, %v11198_v20  ;;  %v3597_v20 = vsel %vm14004_vm2, %v11187_v59, %v3596_v14  ;;  %v11207_v28 = vcombine.low %v3618_v16, %v3621_v56  ;;  %v3633_v14 = vrot.slane %v3631_v26, 4  ;;  %v3645_v59 = vrot.slane %v17112_v23, 5 }
 0x1b0   : > { %v11204_v5 = vcombine.low %v3597_v20, %v3600_v7  ;;  %v3605_v27 = vrot.slane %v3603_v35, 4  ;;  %v3604_v42 = vsel %vm14004_vm2, %v11188_v43, %v3603_v35  ;;  %v3614_v6 = vsel %vm14004_vm2, %v3612_v3, %v3613_v9 }
 0x1b1   : > { %v3626_v45 = vrot.slane %v3624_v11, 4  ;;  %v3635_v62 = vsel %vm14004_vm2, %v3633_v14, %v3634_v50  ;;  %v11194_v7 = vrot.slane %v3501_v24, 9  ;;  %v3647_v44 = vrot.slane %v3645_v59, 4  ;;  %v14573_v24 = vld [vmem:[#allocation2 + $0x2c] sm:$0x1] }
 0x1b2   : > { %v3607_v53 = vsel %vm14004_vm2, %v3605_v27, %v3606_v1  ;;  %v11209_v35 = vcombine.low %v3632_v10, %v3635_v62  ;;  %v3659_v27 = vrot.slane %v14376_v38, 5  ;;  %v3653_v1 = vsel %vm14004_vm2, %v11195_v55, %v3652_v61  ;;  %v4326_v55 = vld [vmem:[#allocation2 + $0x3c] sm:$0xf] }
 0x1b3   : > { %v3628_v37 = vsel %vm14004_vm2, %v3626_v45, %v3627_v4  ;;  %v3646_v43 = vsel %vm14004_vm2, %v11194_v7, %v3645_v59  ;;  %v3649_v46 = vsel %vm14004_vm2, %v3647_v44, %v3648_v63  ;;  %v11196_v9 = vrot.slane %v3503_v19, 9  ;;  %v14553_v45 = vld [vmem:[#allocation2 + $0x1c] sm:$0xf]  ;;  %v14569_v59 = vld [vmem:[#allocation2 + $0x34] sm:$0xf] }
 0x1b4   : > { %v4375_v56 = vshll.u32 %v14553_v45, 16  ;;  %v4379_v26 = vshrl.u32 %v14553_v45, 16  ;;  %v13278_v7 = vld [vmem:[#allocation2 + $0x9c] sm:$0xff]   ;;  %v4423_v44 = vshll.u32 %v14569_v59, 16  ;;  %v4427_v63 = vshrl.u32 %v14569_v59, 16 }
 0x1b5   : > { %v3660_v38 = vsel %vm14004_vm2, %v11196_v9, %v3659_v27  ;;  %v4438_v9 = vshrl.u32 %v4326_v55, 16 }
 0x1b6   : > { %12272 = vmatmul.mubr.msk.bf16.vlgmr.msra.gmra.mrb[0].mxu0 %vm1441_vm9, %v11199_v17  ;;  %v11205_v17 = vcombine.low %v3604_v42, %v3607_v53  ;;  %v3661_v42 = vrot.slane %v3659_v27, 4  ;;  %v3662_v53 = vrot.slane %v14396_v33, 5  ;;  %v4848_v33 = vsel %vm1490_vm0, %v14444_v60, 0 }
 0x1b7   : > { %12304 = vmatpush3.bf16.msra.mxu0 %v4122_v54  ;;  %12275 = vmatprep.mubr.msk.bf16.mxu0 %vm1441_vm9, %v11200_v25  ;;  %v11206_v25 = vcombine.low %v3611_v39, %v3614_v6  ;;  %v11191_v54 = vrot.slane %v3498_v30, 9  ;;  %v13267_v6 = vld [vmem:[#allocation2 + $0x18] sm:$0xff]   ;;  %v14543_v30 = vld [vmem:[%s16989_s1 + $0x10] sm:$0x3]  ;;  %v14561_v14 = vrot.slane %v4375_v56, 5  ;;  %v4381_v50 = vrot.slane %v4379_v26, 4 }
 0x1b8   : > { %13230 = vmatprep.subr.msk.bf16.mxu0 %vm1490_vm0, %v14444_v60  ;;  %v3663_v34 = vsel %vm14004_vm2, %v3661_v42, %v3662_v53  ;;  %v13272_v60 = vld [vmem:[#allocation2 + $0x54] sm:$0xff]   ;;  %v4441_v42 = vshll.u32 %v4326_v55, 16  ;;  %v14604_v26 = vld [vmem:[#allocation2 + $0x44] sm:$0x1] }
 0x1b9   : > { %v3625_v18 = vsel %vm14004_vm2, %v11191_v54, %v3624_v11  ;;  %v11213_v39 = vcombine.low %v3660_v38, %v3663_v34  ;;  %v13269_v11 = vld [vmem:[#allocation2 + $0x30] sm:$0xff]   ;;  %v4317_v54 = vld [vmem:[#allocation2 + $0x18] sm:$0xf]  ;;  %v14586_v38 = vrot.slane %v4423_v44, 5  ;;  %v4429_v34 = vrot.slane %v4427_v63, 4 }
 0x1ba   : > { %v11208_v2 = vcombine.low %v3625_v18, %v3628_v37  ;;  %v4366_v4 = vshrl.u32 %v4317_v54, 16  ;;  %v4369_v16 = vshll.u32 %v4317_v54, 16  ;;  %v4320_v18 = vld [vmem:[#allocation2 + $0x24] sm:$0xf]  ;;  %v14559_v37 = vld [vmem:[#allocation2 + $0x28] sm:$0xf] }
 0x1bb   : > { %v4393_v15 = vshll.u32 %v4320_v18, 16  ;;  %v14584_v53 = vld [vmem:[#allocation2 + $0x38] sm:$0x1]  ;;  %v14601_v54 = vld [vmem:[#allocation2 + $0x4c] sm:$0xf]  ;;  %v4430_v56 = vor.u32 %v4429_v34, %v14586_v38 }
 0x1bc   : > { %v5058_v63 = vld [vmem:[#allocation2 + $0xcc] sm:$0xe] }
 0x1bd   : > { %v4395_v23 = vrot.slane %v4393_v15, 5 }
 0x1be   : > { %12276 = vmatmul.mubr.msk.bf16.gmra.mrb[4].mxu0 %vm1441_vm9, %v11201_v51  ;;  %v11193_v51 = vrot.slane %v3500_v12, 9  ;;  %v4368_v12 = vrot.slane %v4366_v4, 4  ;;  %v13280_v4 = vld [vmem:[#allocation2 + $0xb4] sm:$0xff]  }
 0x1bf   : > { %12279 = vmatprep.mubr.msk.bf16.mxu0 %vm1441_vm9, %v11202_v32  ;;  %v3640_v32 = vrot.slane %v3638_v0, 4 }
 0x1c0   : > { %v3639_v8 = vsel %vm14004_vm2, %v11193_v51, %v3638_v0  ;;  %v13277_v0 = vld [vmem:[#allocation2 + $0x90] sm:$0xff]   ;;  %v4399_v51 = vshll.u32 %v14559_v37, 16 }
 0x1c1   : > { %v3642_v29 = vsel %vm14004_vm2, %v3640_v32, %v3641_v22  ;;  %v4403_v32 = vshrl.u32 %v14559_v37, 16  ;;  %v4323_v22 = vld [vmem:[#allocation2 + $0x30] sm:$0xf] }
 0x1c2   : > { %v11210_v20 = vcombine.low %v3639_v8, %v3642_v29  ;;  %v4382_v8 = vor.u32 %v4381_v50, %v14561_v14  ;;  %v4385_v29 = vshll.u32 %v14565_v31, 16  ;;  %v4471_v50 = vshll.u32 %v14601_v54, 16 }
 0x1c3   : > { %v4405_v41 = vrot.slane %v4403_v32, 4 }
 0x1c6   : > { %12280 = vmatmul.mubr.msk.bf16.gmra.mrb[8].mxu0 %vm1441_vm9, %v11203_v40  ;;  %v3654_v40 = vrot.slane %v3652_v61, 4  ;;  %v14575_v61 = vrot.slane %v4399_v51, 5  ;;  %v4475_v51 = vshrl.u32 %v14601_v54, 16 }
 0x1c7   : > { %12283 = vmatprep.mubr.msk.bf16.mxu0 %vm1441_vm9, %v11204_v5  ;;  %v3655_v5 = vrot.slane %v14384_v48, 5  ;;  %v11211_v48 = vcombine.low %v3646_v43, %v3649_v46  ;;  %v4409_v43 = vshll.u32 %v14573_v24, 16  ;;  %v14580_v46 = vld [vmem:[#allocation2 + $0x40] sm:$0xf] }
 0x1c8   : > { %v4406_v19 = vor.u32 %v4405_v41, %v14575_v61 }
 0x1c9   : > { %v3656_v57 = vsel %vm14004_vm2, %v3654_v40, %v3655_v5  ;;  %v13279_v40 = vld [vmem:[#allocation2 + $0xa8] sm:$0xff]  }
 0x1ca   : > { %v11212_v3 = vcombine.low %v3653_v1, %v3656_v57  ;;  %v4383_v1 = vrot.slane %v4382_v8, 4  ;;  %v4387_v57 = vrot.slane %v4385_v29, 5  ;;  %v4431_v29 = vrot.slane %v4430_v56, 4 }
 0x1ce   : > { %12284 = vmatmul.mubr.msk.bf16.gmra.mrb[12].mxu0 %vm1441_vm9, %v11205_v17  ;;  %v13270_v17 = vld [vmem:[#allocation2 + $0x3c] sm:$0xff]  }
 0x1cf   : > { %12287 = vmatprep.mubr.msk.bf16.mxu0 %vm1441_vm9, %v11206_v25  ;;  %v13271_v25 = vld [vmem:[#allocation2 + $0x48] sm:$0xff]  }
 0x1d6   : > { %12288 = vmatmul.mubr.msk.bf16.gmra.mrb[16].mxu0 %vm1441_vm9, %v11207_v28  ;;  %v4371_v28 = vrot.slane %v4369_v16, 5  ;;  %v4407_v16 = vrot.slane %v4406_v19, 4  ;;  %v13282_v19 = vld [vmem:[#allocation2 + $0xcc] sm:$0xff]  }
 0x1d7   : > { %12291 = vmatprep.mubr.msk.bf16.mxu0 %vm1441_vm9, %v11208_v2  ;;  %v4390_v2 = vshrl.u32 %v4320_v18, 16 }
 0x1d8   : > { %v4372_v10 = vor.u32 %v4371_v28, %v4368_v12 }
 0x1d9   : > { %v4392_v62 = vrot.slane %v4390_v2, 4  ;;  %v4332_v2 = vld [vmem:[#allocation2 + $0x54] sm:$0xf] }
 0x1da   : > { %v4373_v27 = vrot.slane %v4372_v10, 4  ;;  %v4486_v41 = vshrl.u32 %v4332_v2, 16 }
 0x1db   : > { %v4396_v5 = vor.u32 %v4395_v23, %v4392_v62  ;;  %v4457_v62 = vshll.u32 %v14604_v26, 16  ;;  %v14615_v23 = vld [vmem:[#allocation2 + $0x58] sm:$0xf] }
 0x1de   : > { %12292 = vmatmul.mubr.msk.bf16.gmra.mrb[20].mxu0 %vm1441_vm9, %v11209_v35  ;;  %v4414_v35 = vshrl.u32 %v4323_v22, 16 }
 0x1df   : > { %12295 = vmatprep.mubr.msk.bf16.mxu0 %vm1441_vm9, %v11210_v20  ;;  %v4417_v20 = vshll.u32 %v4323_v22, 16 }
 0x1e6   : > { %12296 = vmatmul.mubr.msk.bf16.gmra.mrb[24].mxu0 %vm1441_vm9, %v11211_v48  ;;  %v4416_v48 = vrot.slane %v4414_v35, 4  ;;  %v14622_v35 = vld [vmem:[#allocation2 + $0xd0] sm:$0xf] }
 0x1e7   : > { %12299 = vmatprep.mubr.msk.bf16.mxu0 %vm1441_vm9, %v11212_v3  ;;  %v4419_v3 = vrot.slane %v4417_v20, 5  ;;  %v14624_v20 = vld [vmem:[#allocation2 + $0xd4] sm:$0x1]  ;;  %v5214_v55 = vrot.slane %v14622_v35, 5 }
 0x1ee   : > { %12300 = vmatmul.mubr.msk.bf16.gmra.mrb[28].mxu0 %vm1441_vm9, %v11213_v39  ;;  %v4447_v39 = vshll.u32 %v14580_v46, 16 }
 0x1ef   : > { %12305 = vmatprep.mubr.msk.bf16.mxu0 %vm1441_vm9, %v13267_v6  ;;  %v4451_v6 = vshrl.u32 %v14580_v46, 16 }
 0x1f0   : > { %v14606_v18 = vrot.slane %v4447_v39, 5  ;;  %v4495_v39 = vshll.u32 %v14615_v23, 16 }
 0x1f6   : > { %12306 = vmatmul.mubr.msk.bf16.vlgmr.msra.gmra.mrb[0].mxu0 %vm1441_vm9, %v13268_v36  ;;  %v4378_v36 = vsel %vm13495_vm12, %v4373_v27, %v14561_v14  ;;  %v4477_v27 = vrot.slane %v4475_v51, 4 }
 0x1f7   : > { %12338 = vmatpush3.bf16.msra.mxu0 %v4848_v33  ;;  %12309 = vmatprep.mubr.msk.bf16.mxu0 %vm1441_vm9, %v13269_v11  ;;  %v4388_v11 = vsel %vm13495_vm12, %v4383_v1, %v4387_v57  ;;  %v14596_v33 = vrot.slane %v4396_v5, 4  ;;  %v14629_v5 = vld [vmem:[#allocation2 + $0x50] sm:$0x1]  ;;  %v4489_v1 = vshll.u32 %v4332_v2, 16  ;;  %v11311_v57 = vrot.slane %v5058_v63, 9 }
 0x1f8   : > { %13231 = vmatprep.subr.msk.bf16.mxu0 %vm1490_vm0, %v14543_v30  ;;  %v11264_v15 = vcombine.low %v4378_v36, %v4388_v11  ;;  %v4335_v36 = vld [vmem:[#allocation2 + $0x60] sm:$0xf]  ;;  %v14644_v11 = vld [vmem:[#allocation2 + $0x64] sm:$0xf]  ;;  %v5318_v2 = vsel %vm1490_vm0, %v14543_v30, 0 }
 0x1f9   : > { %v4402_v14 = vsel %vm13495_vm12, %v14596_v33, %v14575_v61  ;;  %v14648_v33 = vsel %vm14004_vm2, %v11311_v57, %v5214_v55  ;;  %v4510_v56 = vshrl.u32 %v4335_v36, 16 }
 0x1fa   : > { %17113 = vst [vmem:[#allocation6_spill] sm:$0xff] %v14648_v33 }
 0x1fe   : > { %12310 = vmatmul.mubr.msk.bf16.gmra.mrb[4].mxu0 %vm1441_vm9, %v13270_v17  ;;  %v14598_v17 = vrot.slane %v4409_v43, 5  ;;  %v14631_v43 = vrot.slane %v4471_v50, 5  ;;  %v14667_v50 = vrot.slane %v4495_v39, 5 }
 0x1ff   : > { %12313 = vmatprep.mubr.msk.bf16.mxu0 %vm1441_vm9, %v13271_v25  ;;  %v4329_v25 = vld [vmem:[#allocation2 + $0x48] sm:$0xf] }
 0x200   : > { %v4462_v12 = vshrl.u32 %v4329_v25, 16  ;;  %v4465_v28 = vshll.u32 %v4329_v25, 16  ;;  %v4412_v8 = vsel %vm13495_vm12, %v4407_v16, %v14598_v17  ;;  %v4481_v25 = vshll.u32 %v14629_v5, 16  ;;  %v14660_v16 = vld [vmem:[#allocation2 + $0x5c] sm:$0x1] }
 0x202   : > { %v4467_v44 = vrot.slane %v4465_v28, 5  ;;  %v11265_v28 = vcombine.low %v4402_v14, %v4412_v8 }
 0x206   : > { %12314 = vmatmul.mubr.msk.bf16.gmra.mrb[8].mxu0 %vm1441_vm9, %v13272_v60  ;;  %v4420_v60 = vor.u32 %v4419_v3, %v4416_v48 }
 0x207   : > { %12317 = vmatprep.mubr.msk.bf16.mxu0 %vm1441_vm9, %v13273_v52  ;;  %v4433_v52 = vshll.u32 %v14584_v53, 16 }
 0x208   : > { %v4421_v32 = vrot.slane %v4420_v60, 4 }
 0x209   : > { %v4435_v22 = vrot.slane %v4433_v52, 5  ;;  %v4478_v52 = vor.u32 %v4477_v27, %v14631_v43 }
 0x20a   : > { %v4426_v48 = vsel %vm13495_vm12, %v4421_v32, %v14586_v38 }
 0x20b   : > { %v4436_v34 = vsel %vm13495_vm12, %v4431_v29, %v4435_v22  ;;  %v14674_v29 = vld [vmem:[#allocation2 + $0x68] sm:$0x1]  ;;  %v4479_v14 = vrot.slane %v4478_v52, 4 }
 0x20c   : > { %v11266_v32 = vcombine.low %v4426_v48, %v4436_v34 }
 0x20e   : > { %12318 = vmatmul.mubr.msk.bf16.gmra.mrb[12].mxu0 %vm1441_vm9, %v13274_v47  ;;  %v4440_v47 = vrot.slane %v4438_v9, 4  ;;  %v14638_v9 = vrot.slane %v4457_v62, 5  ;;  %v4483_v62 = vrot.slane %v4481_v25, 5 }
 0x20f   : > { %12321 = vmatprep.mubr.msk.bf16.mxu0 %vm1441_vm9, %v13275_v21  ;;  %v4443_v21 = vrot.slane %v4441_v42, 5  ;;  %v5216_v42 = vrot.slane %v5214_v55, 4 }
 0x210   : > { %v4484_v39 = vsel %vm13495_vm12, %v4479_v14, %v4483_v62  ;;  %v14707_v14 = vld [vmem:[#allocation2 + $0x80] sm:$0x1] }
 0x211   : > { %v4444_v10 = vor.u32 %v4443_v21, %v4440_v47  ;;  %v4488_v47 = vrot.slane %v4486_v41, 4  ;;  %v4491_v21 = vrot.slane %v4489_v1, 5  ;;  %v14681_v41 = vld [vmem:[#allocation2 + $0x70] sm:$0xf]  ;;  %v4529_v1 = vshll.u32 %v14674_v29, 16 }
 0x212   : > { %v4543_v48 = vshll.u32 %v14681_v41, 16 }
 0x213   : > { %v14636_v3 = vrot.slane %v4444_v10, 4  ;;  %v4492_v8 = vor.u32 %v4491_v21, %v4488_v47  ;;  %v4344_v47 = vld [vmem:[#allocation2 + $0x84] sm:$0xf] }
 0x215   : > { %v4450_v22 = vsel %vm13495_vm12, %v14636_v3, %v14606_v18  ;;  %v4547_v3 = vshrl.u32 %v14681_v41, 16 }
 0x216   : > { %12322 = vmatmul.mubr.msk.bf16.gmra.mrb[16].mxu0 %vm1441_vm9, %v13276_v13  ;;  %v4453_v13 = vrot.slane %v4451_v6, 4  ;;  %v4499_v6 = vshrl.u32 %v14615_v23, 16 }
 0x217   : > { %12325 = vmatprep.mubr.msk.bf16.mxu0 %vm1441_vm9, %v13277_v0  ;;  %v13281_v0 = vld [vmem:[#allocation2 + $0xc0] sm:$0xff]  }
 0x218   : > { %v4454_v61 = vor.u32 %v4453_v13, %v14606_v18  ;;  %v4513_v13 = vshll.u32 %v4335_v36, 16  ;;  %v4501_v51 = vrot.slane %v4499_v6, 4 }
 0x21a   : > { %v14650_v38 = vrot.slane %v4454_v61, 4  ;;  %v4338_v61 = vld [vmem:[#allocation2 + $0x6c] sm:$0xf]  ;;  %v4515_v63 = vrot.slane %v4513_v13, 5  ;;  %v4502_v27 = vor.u32 %v4501_v51, %v14667_v50  ;;  %v14705_v51 = vrot.slane %v4543_v48, 5 }
 0x21b   : > { %v4534_v57 = vshrl.u32 %v4338_v61, 16 }
 0x21c   : > { %v4460_v30 = vsel %vm13495_vm12, %v14650_v38, %v14638_v9  ;;  %v4493_v38 = vrot.slane %v4492_v8, 4  ;;  %v4503_v21 = vrot.slane %v4502_v27, 4 }
 0x21d   : > { %v4536_v13 = vrot.slane %v4534_v57, 4 }
 0x21e   : > { %12326 = vmatmul.mubr.msk.bf16.gmra.mrb[20].mxu0 %vm1441_vm9, %v13278_v7  ;;  %v4464_v7 = vrot.slane %v4462_v12, 4  ;;  %v4523_v12 = vshrl.u32 %v14644_v11, 16 }
 0x21f   : > { %12329 = vmatprep.mubr.msk.bf16.mxu0 %vm1441_vm9, %v13279_v40  ;;  %v5217_v40 = vrot.slane %v14624_v20, 5 }
 0x220   : > { %v4468_v17 = vor.u32 %v4467_v44, %v4464_v7  ;;  %v4341_v7 = vld [vmem:[#allocation2 + $0x78] sm:$0xf]  ;;  %v4512_v44 = vrot.slane %v4510_v56, 4  ;;  %v4525_v55 = vrot.slane %v4523_v12, 4  ;;  %v4531_v56 = vrot.slane %v4529_v1, 5 }
 0x221   : > { %v14655_v60 = vsel %vm14004_vm2, %v5216_v42, %v5217_v40  ;;  %v14685_v40 = vld [vmem:[#allocation2 + $0x7c] sm:$0xf]  ;;  %v4558_v9 = vshrl.u32 %v4341_v7, 16  ;;  %v4561_v42 = vshll.u32 %v4341_v7, 16  ;;  %v14703_v12 = vld [vmem:[#allocation2 + $0x74] sm:$0x1]  ;;  %v4498_v1 = vsel %vm13495_vm12, %v4493_v38, %v14667_v50 }
 0x222   : > { %17114 = vst [vmem:[#allocation7_spill] sm:$0xff] %v14655_v60  ;;  %v4469_v10 = vrot.slane %v4468_v17, 4  ;;  %v4567_v6 = vshll.u32 %v14685_v40, 16  ;;  %v4571_v36 = vshrl.u32 %v14685_v40, 16  ;;  %v4516_v25 = vor.u32 %v4515_v63, %v4512_v44  ;;  %v14729_v38 = vld [vmem:[#allocation2 + $0x8c] sm:$0x1] }
 0x223   : > { %v4560_v62 = vrot.slane %v4558_v9, 4  ;;  %v4585_v7 = vshll.u32 %v4344_v47, 16  ;;  %v4577_v9 = vshll.u32 %v14707_v14, 16 }
 0x224   : > { %v4474_v34 = vsel %vm13495_vm12, %v4469_v10, %v14631_v43  ;;  %v14700_v43 = vld [vmem:[#allocation2 + $0x88] sm:$0xf]  ;;  %v4549_v10 = vrot.slane %v4547_v3, 4  ;;  %v14709_v8 = vrot.slane %v4567_v6, 5  ;;  %v4517_v44 = vrot.slane %v4516_v25, 4 }
 0x225   : > { %v11268_v27 = vcombine.low %v4474_v34, %v4484_v39  ;;  %v4553_v3 = vshll.u32 %v14703_v12, 16  ;;  %v14721_v6 = vld [vmem:[#allocation2 + $0x94] sm:$0xf]  ;;  %v4587_v34 = vrot.slane %v4585_v7, 5  ;;  %v4350_v7 = vld [vmem:[#allocation2 + $0x9c] sm:$0xf] }
 0x226   : > { %12330 = vmatmul.mubr.msk.bf16.gmra.mrb[24].mxu0 %vm1441_vm9, %v13280_v4  ;;  %v4550_v48 = vor.u32 %v4549_v10, %v14705_v51 }
 0x227   : > { %12333 = vmatprep.mubr.msk.bf16.mxu0 %vm1441_vm9, %v13281_v0  ;;  %v4519_v0 = vshll.u32 %v14644_v11, 16  ;;  %v4555_v10 = vrot.slane %v4553_v3, 5 }
 0x229   : > { %v14683_v18 = vrot.slane %v4519_v0, 5 }
 0x22b   : > { %v4526_v52 = vor.u32 %v4525_v55, %v14683_v18  ;;  %v11267_v55 = vcombine.low %v4450_v22, %v4460_v30  ;;  %v4522_v50 = vsel %vm13495_vm12, %v4517_v44, %v14683_v18  ;;  %v4551_v18 = vrot.slane %v4550_v48, 4 }
 0x22d   : > { %v4527_v63 = vrot.slane %v4526_v52, 4 }
 0x22e   : > { %12334 = vmatmul.mubr.msk.bf16.gmra.mrb[28].mxu0 %vm1441_vm9, %v13282_v19  ;;  %v4537_v19 = vshll.u32 %v4338_v61, 16  ;;  %v4563_v61 = vrot.slane %v4561_v42, 5  ;;  %v4347_v42 = vld [vmem:[#allocation2 + $0x90] sm:$0xf] }
 0x22f   : > { %12339 = vmatprep.mubr.msk.bf16.mxu0 %vm1441_vm9, %v11264_v15  ;;  %v4505_v15 = vshll.u32 %v14660_v16, 16  ;;  %v4532_v39 = vsel %vm13495_vm12, %v4527_v63, %v4531_v56  ;;  %v4606_v52 = vshrl.u32 %v4347_v42, 16 }
 0x230   : > { %v4539_v0 = vrot.slane %v4537_v19, 5  ;;  %v11270_v63 = vcombine.low %v4522_v50, %v4532_v39 }
 0x231   : > { %v4507_v17 = vrot.slane %v4505_v15, 5  ;;  %v4582_v15 = vshrl.u32 %v4344_v47, 16  ;;  %v4609_v47 = vshll.u32 %v4347_v42, 16  ;;  %v4608_v42 = vrot.slane %v4606_v52, 4 }
 0x232   : > { %v4540_v19 = vor.u32 %v4539_v0, %v4536_v13  ;;  %v4619_v13 = vshrl.u32 %v14721_v6, 16 }
 0x233   : > { %v4508_v57 = vsel %vm13495_vm12, %v4503_v21, %v4507_v17  ;;  %v4584_v30 = vrot.slane %v4582_v15, 4  ;;  %v4615_v21 = vshll.u32 %v14721_v6, 16  ;;  %v4601_v15 = vshll.u32 %v14729_v38, 16 }
 0x234   : > { %v4541_v0 = vrot.slane %v4540_v19, 4  ;;  %v11269_v44 = vcombine.low %v4498_v1, %v4508_v57  ;;  %v4621_v48 = vrot.slane %v4619_v13, 4  ;;  %v4630_v1 = vshrl.u32 %v4350_v7, 16 }
 0x235   : > { %v14743_v19 = vrot.slane %v4615_v21, 5  ;;  %v4633_v57 = vshll.u32 %v4350_v7, 16  ;;  %v4603_v39 = vrot.slane %v4601_v15, 5  ;;  %v14768_v7 = vld [vmem:[#allocation2 + $0xa4] sm:$0x1] }
 0x236   : > { %12340 = vmatmul.mubr.msk.bf16.vlgmr.msra.gmra.mrb[0].mxu0 %vm1441_vm9, %v11265_v28  ;;  %v4573_v28 = vrot.slane %v4571_v36, 4  ;;  %v4564_v36 = vor.u32 %v4563_v61, %v4560_v62  ;;  %v4579_v62 = vrot.slane %v4577_v9, 5  ;;  %v4546_v3 = vsel %vm13495_vm12, %v4541_v0, %v14705_v51 }
 0x237   : > { %12372 = vmatpush3.bf16.msra.mxu0 %v5318_v2  ;;  %12343 = vmatprep.mubr.msk.bf16.mxu0 %vm1441_vm9, %v11266_v32  ;;  %v4591_v2 = vshll.u32 %v14700_v43, 16  ;;  %v4595_v32 = vshrl.u32 %v14700_v43, 16  ;;  %v4556_v9 = vsel %vm13495_vm12, %v4551_v18, %v4555_v10  ;;  %v4622_v10 = vor.u32 %v4621_v48, %v14743_v19 }
 0x238   : > { %v4574_v22 = vor.u32 %v4573_v28, %v14709_v8  ;;  %v4565_v56 = vrot.slane %v4564_v36, 4  ;;  %v4588_v28 = vor.u32 %v4587_v34, %v4584_v30  ;;  %v4353_v36 = vld [vmem:[#allocation2 + $0xa8] sm:$0xf] }
 0x239   : > { %v14731_v17 = vrot.slane %v4591_v2, 5  ;;  %v4597_v25 = vrot.slane %v4595_v32, 4  ;;  %v14739_v32 = vld [vmem:[#allocation2 + $0xa0] sm:$0xf]  ;;  %v4654_v21 = vshrl.u32 %v4353_v36, 16  ;;  %v4657_v13 = vshll.u32 %v4353_v36, 16 }
 0x23a   : > { %v4575_v61 = vrot.slane %v4574_v22, 4  ;;  %v14750_v22 = vld [vmem:[#allocation2 + $0xac] sm:$0xf]  ;;  %v4570_v30 = vsel %vm13495_vm12, %v4565_v56, %v14709_v8  ;;  %v4589_v50 = vrot.slane %v4588_v28, 4  ;;  %v4639_v52 = vshll.u32 %v14739_v32, 16 }
 0x23b   : > { %v4598_v2 = vor.u32 %v4597_v25, %v14731_v17  ;;  %v4663_v0 = vshll.u32 %v14750_v22, 16  ;;  %v4667_v8 = vshrl.u32 %v14750_v22, 16  ;;  %v4635_v56 = vrot.slane %v4633_v57, 5 }
 0x23c   : > { %v4580_v34 = vsel %vm13495_vm12, %v4575_v61, %v4579_v62  ;;  %v4632_v62 = vrot.slane %v4630_v1, 4  ;;  %v11271_v61 = vcombine.low %v4546_v3, %v4556_v9  ;;  %v4594_v15 = vsel %vm13495_vm12, %v4589_v50, %v14731_v17  ;;  %v4356_v9 = vld [vmem:[#allocation2 + $0xb4] sm:$0xf]  ;;  %v14779_v50 = vld [vmem:[#allocation2 + $0xb8] sm:$0xf] }
 0x23d   : > { %v4599_v25 = vrot.slane %v4598_v2, 4  ;;  %v11272_v28 = vcombine.low %v4570_v30, %v4580_v34  ;;  %v14772_v36 = vrot.slane %v4639_v52, 5  ;;  %v4659_v48 = vrot.slane %v4657_v13, 5  ;;  %17116 = vst [vmem:[#allocation9_spill] sm:$0xff] %v14779_v50  ;;  %v14783_v13 = vld [vmem:[#allocation2 + $0xc4] sm:$0xf] }
 0x23e   : > { %12344 = vmatmul.mubr.msk.bf16.gmra.mrb[4].mxu0 %vm1441_vm9, %v11267_v55  ;;  %v14741_v55 = vld [vmem:[#allocation2 + $0x98] sm:$0x1]  ;;  %v14776_v1 = vrot.slane %v4663_v0, 5  ;;  %v4669_v3 = vrot.slane %v4667_v8, 4  ;;  %v4623_v30 = vrot.slane %v4622_v10, 4  ;;  %v4636_v17 = vor.u32 %v4635_v56, %v4632_v62  ;;  %17117 = vst [vmem:[#allocation10_spill] sm:$0xff] %v14783_v13 }
 0x23f   : > { %12347 = vmatprep.mubr.msk.bf16.mxu0 %vm1441_vm9, %v11268_v27  ;;  %v4611_v27 = vrot.slane %v4609_v47, 5  ;;  %v4625_v51 = vshll.u32 %v14741_v55, 16  ;;  %v4643_v47 = vshrl.u32 %v14739_v32, 16  ;;  %v4649_v34 = vshll.u32 %v14768_v7, 16 }
 0x240   : > { %v4678_v52 = vshrl.u32 %v4356_v9, 16  ;;  %v4670_v8 = vor.u32 %v4669_v3, %v14776_v1  ;;  %v4691_v10 = vshrl.u32 %v14779_v50, 16 }
 0x241   : > { %v4612_v18 = vor.u32 %v4611_v27, %v4608_v42  ;;  %v4627_v2 = vrot.slane %v4625_v51, 5  ;;  %v14774_v42 = vld [vmem:[#allocation2 + $0xb0] sm:$0x1]  ;;  %v4656_v27 = vrot.slane %v4654_v21, 4  ;;  %v4359_v21 = vld [vmem:[#allocation2 + $0xc0] sm:$0xf] }
 0x242   : > { %17115 = vst [vmem:[#allocation8_spill] sm:$0xff] %v14774_v42  ;;  %v4680_v4 = vrot.slane %v4678_v52, 4  ;;  %v4671_v33 = vrot.slane %v4670_v8, 4  ;;  %v14804_v52 = vld [vmem:[#allocation2 + $0xc8] sm:$0x1] }
 0x243   : > { %v4613_v57 = vrot.slane %v4612_v18, 4  ;;  %v4660_v0 = vor.u32 %v4659_v48, %v4656_v27  ;;  %v4687_v18 = vshll.u32 %v14779_v50, 16  ;;  %v4628_v56 = vsel %vm13495_vm12, %v4623_v30, %v4627_v2 }
 0x244   : > { %v4711_v27 = vshll.u32 %v14783_v13, 16  ;;  %v4715_v48 = vshrl.u32 %v14783_v13, 16 }
 0x245   : > { %v4618_v62 = vsel %vm13495_vm12, %v4613_v57, %v14743_v19  ;;  %v4689_v50 = vrot.slane %v4687_v18, 5  ;;  %v14797_v57 = vld [vmem:[#allocation2 + $0xbc] sm:$0x1] }
 0x246   : > { %12348 = vmatmul.mubr.msk.bf16.gmra.mrb[8].mxu0 %vm1441_vm9, %v11269_v44  ;;  %v4604_v44 = vsel %vm13495_vm12, %v4599_v25, %v4603_v39  ;;  %v4673_v39 = vshll.u32 %v14774_v42, 16  ;;  %v4693_v42 = vrot.slane %v4691_v10, 4  ;;  %v11274_v19 = vcombine.low %v4618_v62, %v4628_v56 }
 0x247   : > { %12351 = vmatprep.mubr.msk.bf16.mxu0 %vm1441_vm9, %v11270_v63  ;;  %v4645_v63 = vrot.slane %v4643_v47, 4  ;;  %v11273_v25 = vcombine.low %v4594_v15, %v4604_v44  ;;  %v4681_v47 = vshll.u32 %v4356_v9, 16  ;;  %v4637_v15 = vrot.slane %v4636_v17, 4 }
 0x248   : > { %v4651_v44 = vrot.slane %v4649_v34, 5  ;;  %v4675_v9 = vrot.slane %v4673_v39, 5  ;;  %v4713_v17 = vrot.slane %v4711_v27, 5  ;;  %v4717_v34 = vrot.slane %v4715_v48, 4 }
 0x249   : > { %v4646_v51 = vor.u32 %v4645_v63, %v14772_v36  ;;  %v4702_v63 = vshrl.u32 %v4359_v21, 16  ;;  %v4683_v60 = vrot.slane %v4681_v47, 5  ;;  %v4642_v13 = vsel %vm13495_vm12, %v4637_v15, %v14772_v36 }
 0x24a   : > { %v4694_v8 = vor.u32 %v4693_v42, %v4689_v50  ;;  %v4697_v18 = vshll.u32 %v14797_v57, 16  ;;  %v4721_v56 = vshll.u32 %v14804_v52, 16 }
 0x24b   : > { %v4647_v3 = vrot.slane %v4646_v51, 4  ;;  %v4704_v2 = vrot.slane %v4702_v63, 4  ;;  %v4684_v51 = vor.u32 %v4683_v60, %v4680_v4  ;;  %v4735_v60 = vshll.u32 %v14622_v35, 16 }
 0x24c   : > { %v4739_v4 = vshrl.u32 %v14622_v35, 16  ;;  %v4695_v63 = vrot.slane %v4694_v8, 4 }
 0x24d   : > { %v4652_v39 = vsel %vm13495_vm12, %v4647_v3, %v4651_v44  ;;  %v4685_v44 = vrot.slane %v4684_v51, 4  ;;  %v4737_v27 = vrot.slane %v4735_v60, 5  ;;  %v5043_v51 = vld [vmem:[#allocation2 + $0x18] sm:$0xe]  ;;  %v5112_v60 = vrot.slane %v14565_v31, 5 }
 0x24e   : > { %12352 = vmatmul.mubr.msk.bf16.gmra.mrb[12].mxu0 %vm1441_vm9, %v11271_v61  ;;  %v4705_v61 = vshll.u32 %v4359_v21, 16  ;;  %v4362_v21 = vld [vmem:[#allocation2 + $0xcc] sm:$0xf]  ;;  %v11275_v15 = vcombine.low %v4642_v13, %v4652_v39  ;;  %v4741_v48 = vrot.slane %v4739_v4, 4  ;;  %v5109_v39 = vrot.slane %v14553_v45, 5 }
 0x24f   : > { %12355 = vmatprep.mubr.msk.bf16.mxu0 %vm1441_vm9, %v11272_v28  ;;  %v4661_v28 = vrot.slane %v4660_v0, 4  ;;  %v4676_v0 = vsel %vm13495_vm12, %v4671_v33, %v4675_v9  ;;  %v4726_v36 = vshrl.u32 %v4362_v21, 16  ;;  %v4729_v10 = vshll.u32 %v4362_v21, 16 }
 0x250   : > { %v4707_v30 = vrot.slane %v4705_v61, 5  ;;  %v4699_v33 = vrot.slane %v4697_v18, 5  ;;  %v4690_v35 = vsel %vm13495_vm12, %v4685_v44, %v4689_v50  ;;  %v5123_v31 = vrot.slane %v14569_v59, 5 }
 0x251   : > { %v4666_v47 = vsel %vm13495_vm12, %v4661_v28, %v14776_v1  ;;  %v4728_v42 = vrot.slane %v4726_v36, 4  ;;  %v4731_v61 = vrot.slane %v4729_v10, 5  ;;  %v4723_v28 = vrot.slane %v4721_v56, 5  ;;  %v5045_v56 = vld [vmem:[#allocation2 + $0x30] sm:$0xe] }
 0x252   : > { %v4708_v62 = vor.u32 %v4707_v30, %v4704_v2  ;;  %v11276_v1 = vcombine.low %v4666_v47, %v4676_v0  ;;  %v4700_v13 = vsel %vm13495_vm12, %v4695_v63, %v4699_v33  ;;  %v4742_v2 = vor.u32 %v4741_v48, %v4737_v27 }
 0x253   : > { %v4745_v30 = vshll.u32 %v14624_v20, 16  ;;  %v11277_v47 = vcombine.low %v4690_v35, %v4700_v13  ;;  %v11296_v36 = vrot.slane %v5043_v51, 9  ;;  %v5111_v10 = vrot.slane %v5109_v39, 4 }
 0x254   : > { %v4709_v3 = vrot.slane %v4708_v62, 4  ;;  %v4743_v8 = vrot.slane %v4742_v2, 4  ;;  %v5119_v33 = vrot.slane %v14573_v24, 5  ;;  %v5130_v48 = vrot.slane %v14580_v46, 5 }
 0x255   : > { %v4747_v18 = vrot.slane %v4745_v30, 5  ;;  %v5110_v4 = vsel %vm14004_vm2, %v11296_v36, %v5109_v39  ;;  %v5113_v62 = vsel %vm14004_vm2, %v5111_v10, %v5112_v60  ;;  %v5133_v30 = vrot.slane %v14604_v26, 5 }
 0x256   : > { %12356 = vmatmul.mubr.msk.bf16.gmra.mrb[16].mxu0 %vm1441_vm9, %v11273_v25  ;;  %v4718_v25 = vor.u32 %v4717_v34, %v4713_v17  ;;  %v4714_v34 = vsel %vm13495_vm12, %v4709_v3, %v4713_v17  ;;  %v5116_v17 = vrot.slane %v14559_v37, 5  ;;  %v5126_v37 = vrot.slane %v14584_v53, 5 }
 0x257   : > { %12359 = vmatprep.mubr.msk.bf16.mxu0 %vm1441_vm9, %v11274_v19  ;;  %v4732_v19 = vor.u32 %v4731_v61, %v4728_v42  ;;  %v4748_v45 = vsel %vm13495_vm12, %v4743_v8, %v4747_v18  ;;  %v11298_v42 = vrot.slane %v5045_v56, 9  ;;  %v5125_v61 = vrot.slane %v5123_v31, 4 }
 0x258   : > { %v4719_v9 = vrot.slane %v4718_v25, 4  ;;  %v5044_v25 = vld [vmem:[#allocation2 + $0x24] sm:$0xe]  ;;  %v5118_v63 = vrot.slane %v5116_v17, 4  ;;  %v5137_v53 = vrot.slane %v14601_v54, 5  ;;  %v5132_v2 = vrot.slane %v5130_v48, 4 }
 0x259   : > { %v4733_v0 = vrot.slane %v4732_v19, 4  ;;  %v11297_v44 = vrot.slane %v5044_v25, 9  ;;  %v5124_v3 = vsel %vm14004_vm2, %v11298_v42, %v5123_v31  ;;  %v5127_v24 = vsel %vm14004_vm2, %v5125_v61, %v5126_v37  ;;  %v5050_v25 = vld [vmem:[#allocation2 + $0x6c] sm:$0xe]  ;;  %v5051_v31 = vld [vmem:[#allocation2 + $0x78] sm:$0xe] }
 0x25a   : > { %v4724_v21 = vsel %vm13495_vm12, %v4719_v9, %v4723_v28  ;;  %v5120_v59 = vsel %vm14004_vm2, %v5118_v63, %v5119_v33  ;;  %v5046_v9 = vld [vmem:[#allocation2 + $0x3c] sm:$0xe]  ;;  %v5047_v28 = vld [vmem:[#allocation2 + $0x48] sm:$0xe]  ;;  %v11315_v13 = vcombine.low %v5124_v3, %v5127_v24  ;;  %v5140_v46 = vrot.slane %v14629_v5, 5 }
 0x25b   : > { %v11278_v50 = vcombine.low %v4714_v34, %v4724_v21  ;;  %v4738_v20 = vsel %vm13495_vm12, %v4733_v0, %v4737_v27  ;;  %v5117_v27 = vsel %vm14004_vm2, %v11297_v44, %v5116_v17  ;;  %v11299_v19 = vrot.slane %v5046_v9, 9  ;;  %v5049_v0 = vld [vmem:[#allocation2 + $0x60] sm:$0xe] }
 0x25c   : > { %v11314_v35 = vcombine.low %v5117_v27, %v5120_v59  ;;  %v11300_v34 = vrot.slane %v5047_v28, 9  ;;  %v5139_v21 = vrot.slane %v5137_v53, 4  ;;  %v5134_v54 = vsel %vm14004_vm2, %v5132_v2, %v5133_v30  ;;  %v5052_v59 = vld [vmem:[#allocation2 + $0x84] sm:$0xe] }
 0x25d   : > { %v5131_v39 = vsel %vm14004_vm2, %v11299_v19, %v5130_v48  ;;  %v5144_v51 = vrot.slane %v14615_v23, 5  ;;  %v5151_v5 = vrot.slane %v14644_v11, 5  ;;  %v5147_v60 = vrot.slane %v14660_v16, 5  ;;  %v5053_v48 = vld [vmem:[#allocation2 + $0x90] sm:$0xe] }
 0x25e   : > { %12360 = vmatmul.mubr.msk.bf16.gmra.mrb[20].mxu0 %vm1441_vm9, %v11275_v15  ;;  %v11279_v15 = vcombine.low %v4738_v20, %v4748_v45  ;;  %v5141_v26 = vsel %vm14004_vm2, %v5139_v21, %v5140_v46  ;;  %v11316_v8 = vcombine.low %v5131_v39, %v5134_v54  ;;  %v11302_v20 = vrot.slane %v5049_v0, 9  ;;  %v5055_v21 = vld [vmem:[#allocation2 + $0xa8] sm:$0xe] }
 0x25f   : > { %12363 = vmatprep.mubr.msk.bf16.mxu0 %vm1441_vm9, %v11276_v1  ;;  %v11313_v1 = vcombine.low %v5110_v4, %v5113_v62  ;;  %v5146_v10 = vrot.slane %v5144_v51, 4  ;;  %v5153_v45 = vrot.slane %v5151_v5, 4  ;;  %v5154_v23 = vrot.slane %v14674_v29, 5 }
 0x260   : > { %v5158_v4 = vrot.slane %v14681_v41, 5  ;;  %v5152_v62 = vsel %vm14004_vm2, %v11302_v20, %v5151_v5  ;;  %v5165_v29 = vrot.slane %v14685_v40, 5  ;;  %v5161_v63 = vrot.slane %v14703_v12, 5  ;;  %v17118_v5 = vld [vmem:[#allocation8_spill] sm:$0xff] }
 0x261   : > { %v5148_v11 = vsel %vm14004_vm2, %v5146_v10, %v5147_v60  ;;  %v5155_v16 = vsel %vm14004_vm2, %v5153_v45, %v5154_v23  ;;  %v11304_v33 = vrot.slane %v5051_v31, 9  ;;  %v5168_v41 = vrot.slane %v14707_v14, 5  ;;  %v5056_v10 = vld [vmem:[#allocation2 + $0xb4] sm:$0xe]  ;;  %v5057_v45 = vld [vmem:[#allocation2 + $0xc0] sm:$0xe] }
 0x262   : > { %v5160_v44 = vrot.slane %v5158_v4, 4  ;;  %v5167_v42 = vrot.slane %v5165_v29, 4  ;;  %v5172_v37 = vrot.slane %v14700_v43, 5  ;;  %v5179_v14 = vrot.slane %v14721_v6, 5  ;;  %v17120_v60 = vld [vmem:[#allocation10_spill] sm:$0xff] }
 0x263   : > { %v5166_v27 = vsel %vm14004_vm2, %v11304_v33, %v5165_v29  ;;  %v11305_v9 = vrot.slane %v5052_v59, 9  ;;  %v5175_v28 = vrot.slane %v14729_v38, 5  ;;  %v5182_v43 = vrot.slane %v14741_v55, 5 }
 0x264   : > { %v5162_v40 = vsel %vm14004_vm2, %v5160_v44, %v5161_v63  ;;  %v5169_v12 = vsel %vm14004_vm2, %v5167_v42, %v5168_v41  ;;  %v5186_v2 = vrot.slane %v14739_v32, 5  ;;  %v5193_v55 = vrot.slane %v14750_v22, 5  ;;  %v17122_v63 = vld [vmem:[#allocation7_spill] sm:$0xff]  ;;  %v6150_v42 = vld [vmem:[#allocation2] sm:$0xf] }
 0x265   : > { %v11321_v24 = vcombine.low %v5166_v27, %v5169_v12  ;;  %v5173_v19 = vsel %vm14004_vm2, %v11305_v9, %v5172_v37  ;;  %v5196_v32 = vrot.slane %v17118_v5, 5  ;;  %v5207_v20 = vrot.slane %v17120_v60, 5  ;;  %v6151_v41 = vld [vmem:[#allocation2 + $0x4] sm:$0xf] }
 0x266   : > { %12364 = vmatmul.mubr.msk.bf16.gmra.mrb[24].mxu0 %vm1441_vm9, %v11277_v47  ;;  %v5138_v47 = vsel %vm14004_vm2, %v11300_v34, %v5137_v53  ;;  %v5174_v53 = vrot.slane %v5172_v37, 4  ;;  %v5054_v34 = vld [vmem:[#allocation2 + $0x9c] sm:$0xe]  ;;  %v5210_v29 = vrot.slane %v14804_v52, 5  ;;  %v17121_v52 = vld [vmem:[#allocation6_spill] sm:$0xff]  ;;  %v6209_v37 = vshll.u32 %v6151_v41, 16 }
 0x267   : > { %12367 = vmatprep.mubr.msk.bf16.mxu0 %vm1441_vm9, %v11278_v50  ;;  %v5048_v50 = vld [vmem:[#allocation2 + $0x54] sm:$0xe]  ;;  %v11317_v18 = vcombine.low %v5138_v47, %v5141_v26  ;;  %v11307_v54 = vrot.slane %v5054_v34, 9  ;;  %v5189_v47 = vrot.slane %v14768_v7, 5  ;;  %v11308_v26 = vrot.slane %v5055_v21, 9 }
 0x268   : > { %v11301_v36 = vrot.slane %v5048_v50, 9  ;;  %v5176_v6 = vsel %vm14004_vm2, %v5174_v53, %v5175_v28  ;;  %v5195_v50 = vrot.slane %v5193_v55, 4  ;;  %v17123_v33 = vcombine.low %v17121_v52, %v17122_v63  ;;  %v14964_v34 = vld [vmem:[%s16990_s2] ss:$0 sm:$0xff]  ;;  %v6045_v52 = vld [vmem:[#allocation2 + $0x18] sm:$0xf] }
 0x269   : > { %v11322_v46 = vcombine.low %v5173_v19, %v5176_v6  ;;  %v5187_v0 = vsel %vm14004_vm2, %v11307_v54, %v5186_v2  ;;  %v6213_v27 = vshrl.u32 %v6151_v41, 16  ;;  %v14969_v21 = vld [vmem:[%s16991_s3] ss:$0 sm:$0xff] }
 0x26a   : > { %v5145_v17 = vsel %vm14004_vm2, %v11301_v36, %v5144_v51  ;;  %v5188_v51 = vrot.slane %v5186_v2, 4  ;;  %v5194_v36 = vsel %vm14004_vm2, %v11308_v26, %v5193_v55  ;;  %v5197_v7 = vsel %vm14004_vm2, %v5195_v50, %v5196_v32 }
 0x26b   : > { %v11318_v56 = vcombine.low %v5145_v17, %v5148_v11  ;;  %v11325_v17 = vcombine.low %v5194_v36, %v5197_v7  ;;  %v11309_v11 = vrot.slane %v5056_v10, 9 }
 0x26c   : > { %v5190_v22 = vsel %vm14004_vm2, %v5188_v51, %v5189_v47 }
 0x26d   : > { %v11324_v23 = vcombine.low %v5187_v0, %v5190_v22 }
 0x26e   : > { %12368 = vmatmul.mubr.msk.bf16.gmra.mrb[28].mxu0 %vm1441_vm9, %v11279_v15  ;;  %v11319_v15 = vcombine.low %v5152_v62, %v5155_v16  ;;  %v5203_v62 = vrot.slane %v14797_v57, 5  ;;  %v11310_v16 = vrot.slane %v5057_v45, 9 }
 0x26f   : > { %12373 = vmatprep.mubr.msk.bf16.mxu0 %vm1441_vm9, %v11313_v1  ;;  %v11303_v1 = vrot.slane %v5050_v25, 9  ;;  %v5209_v25 = vrot.slane %v5207_v20, 4 }
 0x271   : > { %v5159_v61 = vsel %vm14004_vm2, %v11303_v1, %v5158_v4  ;;  %v5211_v57 = vsel %vm14004_vm2, %v5209_v25, %v5210_v29 }
 0x272   : > { %v11320_v3 = vcombine.low %v5159_v61, %v5162_v40  ;;  %v6200_v61 = vshrl.u32 %v6150_v42, 16  ;;  %v6203_v40 = vshll.u32 %v6150_v42, 16 }
 0x274   : > { %v6202_v12 = vrot.slane %v6200_v61, 4  ;;  %v6205_v59 = vrot.slane %v6203_v40, 5 }
 0x276   : > { %12374 = vmatmul.mubr.msk.bf16.vlgmr.msra.gmra.mrb[0].mxu0 %vm1441_vm9, %v11314_v35  ;;  %v11306_v35 = vrot.slane %v5053_v48, 9  ;;  %v6215_v48 = vrot.slane %v6213_v27, 4  ;;  %v6206_v9 = vor.u32 %v6205_v59, %v6202_v12 }
 0x277   : > { %12377 = vmatprep.mubr.msk.bf16.mxu0 %vm1441_vm9, %v11315_v13  ;;  %v5181_v13 = vrot.slane %v5179_v14, 4 }
 0x278   : > { %v5180_v30 = vsel %vm14004_vm2, %v11306_v35, %v5179_v14  ;;  %v6211_v14 = vrot.slane %v6209_v37, 5  ;;  %v6207_v35 = vrot.slane %v6206_v9, 4 }
 0x279   : > { %v5183_v38 = vsel %vm14004_vm2, %v5181_v13, %v5182_v43 }
 0x27a   : > { %v11323_v39 = vcombine.low %v5180_v30, %v5183_v38  ;;  %v6216_v53 = vor.u32 %v6215_v48, %v6211_v14  ;;  %v6212_v6 = vsel %vm13495_vm12, %v6207_v35, %v6211_v14  ;;  %v14957_v38 = vld [vmem:[%s16992_s4] sm:$0x3]  ;;  %v6042_v35 = vld [vmem:[#allocation2 + $0x14] sm:$0x1] }
 0x27b   : > { %v6049_v14 = vld [vmem:[#allocation2 + $0x20] sm:$0x1] }
 0x27c   : > { %v6217_v13 = vrot.slane %v6216_v53, 4 }
 0x27e   : > { %12378 = vmatmul.mubr.msk.bf16.gmra.mrb[4].mxu0 %vm1441_vm9, %v11316_v8  ;;  %v17119_v8 = vld [vmem:[#allocation9_spill] sm:$0xff] }
 0x27f   : > { %12381 = vmatprep.mubr.msk.bf16.mxu0 %vm1441_vm9, %v11317_v18  ;;  %v5200_v18 = vrot.slane %v17119_v8, 5 }
 0x281   : > { %v5202_v4 = vrot.slane %v5200_v18, 4  ;;  %v5201_v31 = vsel %vm14004_vm2, %v11309_v11, %v5200_v18 }
 0x286   : > { %12382 = vmatmul.mubr.msk.bf16.gmra.mrb[8].mxu0 %vm1441_vm9, %v11318_v56  ;;  %v5204_v56 = vsel %vm14004_vm2, %v5202_v4, %v5203_v62 }
 0x287   : > { %12385 = vmatprep.mubr.msk.bf16.mxu0 %vm1441_vm9, %v11319_v15  ;;  %v5208_v15 = vsel %vm14004_vm2, %v11310_v16, %v5207_v20  ;;  %v11326_v1 = vcombine.low %v5201_v31, %v5204_v56 }
 0x288   : > { %v11327_v44 = vcombine.low %v5208_v15, %v5211_v57 }
 0x28e   : > { %12386 = vmatmul.mubr.msk.bf16.gmra.mrb[12].mxu0 %vm1441_vm9, %v11320_v3  ;;  %v6183_v3 = vld [vmem:[#allocation2 + $0x8] sm:$0x1] }
 0x28f   : > { %12389 = vmatprep.mubr.msk.bf16.mxu0 %vm1441_vm9, %v11321_v24  ;;  %v11379_v24 = vld [vmem:[%s16992_s4 + $0x2] sm:$0x3]  ;;  %v6219_v28 = vshll.u32 %v6183_v3, 16 }
 0x290   : > { %13232 = vmatprep.subr.msk.bf16.mxu1 %vm1490_vm0, %v11379_v24  ;;  %v6682_v19 = vsel %vm1490_vm0, %v11379_v24, 0 }
 0x291   : > { %v6221_v43 = vrot.slane %v6219_v28, 5  ;;  %12406 = vmatpush3.bf16.msra.mxu1 %v6682_v19 }
 0x292   : > { %13233 = vmatprep.subr.msk.bf16.mxu1 %vm1490_vm0, %v14957_v38 }
 0x293   : > { %v6222_v2 = vsel %vm13495_vm12, %v6217_v13, %v6221_v43  ;;  %v13347_v43 = vld [vmem:[#allocation2 + $0xc] sm:$0xf] }
 0x294   : > { %v11380_v30 = vcombine.low %v6212_v6, %v6222_v2 }
 0x296   : > { %12390 = vmatmul.mubr.msk.bf16.gmra.mrb[16].mxu0 %vm1441_vm9, %v11322_v46  ;;  %12407 = vmatprep.mubr.msk.bf16.mxu1 %vm1441_vm9, %v11380_v30 }
 0x297   : > { %12393 = vmatprep.mubr.msk.bf16.mxu0 %vm1441_vm9, %v11323_v39 }
 0x29e   : > { %12394 = vmatmul.mubr.msk.bf16.gmra.mrb[20].mxu0 %vm1441_vm9, %v11324_v23 }
 0x29f   : > { %12397 = vmatprep.mubr.msk.bf16.mxu0 %vm1441_vm9, %v11325_v17 }
 0x2a6   : > { %12398 = vmatmul.mubr.msk.bf16.gmra.mrb[24].mxu0 %vm1441_vm9, %v11326_v1 }
 0x2a7   : > { %12401 = vmatprep.mubr.msk.bf16.mxu0 %vm1441_vm9, %v11327_v44 }
 0x2ae   : > { %12402 = vmatmul.mubr.msk.bf16.gmra.mrb[28].mxu0 %vm1441_vm9, %v17123_v33 }
 0x349   : > { %v12375_v55 = vpop.f32.mrb[0].mxu0 }
 0x34a   : > { %v5522_v46 = vmul.f32 %v12375_v55, %v14964_v34  ;;  %v5354_v39 = vpop.f32.mrb[1].mxu0 }
 0x34b   : > { %v5520_v54 = vmul.f32 %v14964_v34, %v5354_v39  ;;  %v12376_v51 = vpop.f32.mrb[2].mxu0 }
 0x34c   : > { %v5561_v47 = vadd.f32 %v14969_v21, %v5522_v46  ;;  %v5523_v26 = vmul.f32 %v12376_v51, %v14964_v34  ;;  %v5357_v50 = vpop.f32.mrb[3].mxu0 }
 0x34d   : > { %v5559_v5 = vadd.f32 %v14969_v21, %v5520_v54  ;;  %v5521_v32 = vmul.f32 %v14964_v34, %v5357_v50 }
 0x34e   : > { %v5593_v0 = vmax.f32 %v5561_v47, 0.0  ;;  %v5562_v22 = vadd.f32 %v14969_v21, %v5523_v26 }
 0x34f   : > { %v5591_v8 = vmax.f32 %v5559_v5, 0.0  ;;  %v5560_v18 = vadd.f32 %v14969_v21, %v5521_v32 }
 0x350   : > { %v11763_v36 = vpack.c.bf16 %v5593_v0, %v5593_v0  ;;  %v5594_v7 = vmax.f32 %v5562_v22, 0.0 }
 0x351   : > { %v11761_v10 = vpack.c.bf16 %v5591_v8, %v5591_v8  ;;  %v5592_v60 = vmax.f32 %v5560_v18, 0.0  ;;  %v12379_v20 = vpop.f32.mrb[4].mxu0 }
 0x352   : > { %v5737_v45 = vshrl.u32 %v11763_v36, 16  ;;  %v5740_v23 = vshll.u32 %v11763_v36, 16  ;;  %v11764_v17 = vpack.c.bf16 %v5594_v7, %v5594_v7  ;;  %v5526_v11 = vmul.f32 %v12379_v20, %v14964_v34  ;;  %v5370_v4 = vpop.f32.mrb[5].mxu0  ;;  %v6059_v20 = vld [vmem:[#allocation2 + $0x30] sm:$0xf] }
 0x353   : > { %v5720_v62 = vshrl.u32 %v11761_v10, 16  ;;  %v5723_v16 = vshll.u32 %v11761_v10, 16  ;;  %v11762_v25 = vpack.c.bf16 %v5592_v60, %v5592_v60  ;;  %v5524_v29 = vmul.f32 %v14964_v34, %v5370_v4  ;;  %v12380_v31 = vpop.f32.mrb[6].mxu0 }
 0x354   : > { %v5739_v56 = vrot.slane %v5737_v45, 7  ;;  %v5745_v15 = vshrl.u32 %v11764_v17, 16  ;;  %v5748_v57 = vshll.u32 %v11764_v17, 16  ;;  %v5565_v1 = vadd.f32 %v14969_v21, %v5526_v11  ;;  %v5373_v44 = vpop.f32.mrb[7].mxu0 }
 0x355   : > { %v5722_v63 = vrot.slane %v5720_v62, 7  ;;  %v5728_v33 = vshrl.u32 %v11762_v25, 16  ;;  %v5731_v42 = vshll.u32 %v11762_v25, 16  ;;  %v5563_v41 = vadd.f32 %v14969_v21, %v5524_v29 }
 0x356   : > { %v5742_v61 = vor.u32 %v5740_v23, %v5739_v56  ;;  %v5743_v40 = vrot.slane %v5739_v56, 4  ;;  %v5747_v37 = vrot.slane %v5745_v15, 7  ;;  %v5597_v27 = vmax.f32 %v5565_v1, 0.0 }
 0x357   : > { %v5725_v12 = vor.u32 %v5723_v16, %v5722_v63  ;;  %v5726_v59 = vrot.slane %v5722_v63, 4  ;;  %v5730_v48 = vrot.slane %v5728_v33, 7  ;;  %v5595_v3 = vmax.f32 %v5563_v41, 0.0  ;;  %v6052_v16 = vld [vmem:[#allocation2 + $0x24] sm:$0xf] }
 0x358   : > { %v6046_v9 = vsel %vm13489_vm11, %v5742_v61, %v6045_v52  ;;  %v5750_v53 = vor.u32 %v5748_v57, %v5747_v37  ;;  %v5752_v28 = vrot.slane %v5747_v37, 4  ;;  %v11767_v13 = vpack.c.bf16 %v5597_v27, %v5597_v27 }
 0x359   : > { %6047 = vst [vmem:[#allocation2 + $0x18] sm:$0xf] %v6046_v9  ;;  %v6039_v19 = vsel %vm13489_vm11, %v5725_v12, %v13347_v43  ;;  %v5733_v6 = vor.u32 %v5731_v42, %v5730_v48  ;;  %v5735_v2 = vrot.slane %v5730_v48, 4  ;;  %v11765_v30 = vpack.c.bf16 %v5595_v3, %v5595_v3  ;;  %v12383_v55 = vpop.f32.mrb[8].mxu0 }
 0x35a   : > { %6040 = vst [vmem:[#allocation2 + $0xc] sm:$0xf] %v6039_v19  ;;  %v5751_v39 = vsel %vm13501_vm13, %v5743_v40, %v5750_v53  ;;  %v6050_v51 = vsel %vm13437_vm5, %v5752_v28, %v6049_v14  ;;  %v5771_v47 = vshrl.u32 %v11767_v13, 16  ;;  %v5774_v26 = vshll.u32 %v11767_v13, 16  ;;  %v5386_v50 = vpop.f32.mrb[9].mxu0 }
 0x35b   : > { %6048 = vst.msk [vmem:[#allocation2 + $0x1c] sm:$0xf] %vm280_vm1, %v5751_v39  ;;  %6051 = vst [vmem:[#allocation2 + $0x20] sm:$0x1] %v6050_v51  ;;  %v5734_v5 = vsel %vm13501_vm13, %v5726_v59, %v5733_v6  ;;  %v6043_v32 = vsel %vm13437_vm5, %v5735_v2, %v6042_v35  ;;  %v5754_v0 = vshrl.u32 %v11765_v30, 16  ;;  %v5757_v22 = vshll.u32 %v11765_v30, 16 }
 0x35c   : > { %v12384_v8 = vpop.f32.mrb[10].mxu0  ;;  %6041 = vst.msk [vmem:[#allocation2 + $0x10] sm:$0xf] %vm280_vm1, %v5734_v5  ;;  %6044 = vst [vmem:[#allocation2 + $0x14] sm:$0x1] %v6043_v32  ;;  %v14997_v18 = vrot.slane %v5771_v47, 7  ;;  %v5527_v36 = vmul.f32 %v12380_v31, %v14964_v34  ;;  %v5525_v7 = vmul.f32 %v14964_v34, %v5373_v44  ;;  %v5530_v10 = vmul.f32 %v12383_v55, %v14964_v34 }
 0x35d   : > { %v5389_v60 = vpop.f32.mrb[11].mxu0  ;;  %v15002_v45 = vrot.slane %v5754_v0, 7  ;;  %v5528_v23 = vmul.f32 %v14964_v34, %v5386_v50  ;;  %v5531_v17 = vmul.f32 %v12384_v8, %v14964_v34  ;;  %v6063_v2 = vld [vmem:[#allocation2 + $0x38] sm:$0x1]  ;;  %v6056_v30 = vld [vmem:[#allocation2 + $0x2c] sm:$0x1] }
 0x35e   : > { %v5529_v11 = vmul.f32 %v14964_v34, %v5389_v60  ;;  %v5776_v4 = vor.u32 %v5774_v26, %v14997_v18  ;;  %v5777_v62 = vrot.slane %v14997_v18, 4  ;;  %v5566_v25 = vadd.f32 %v14969_v21, %v5527_v36  ;;  %v6073_v5 = vld [vmem:[#allocation2 + $0x48] sm:$0xf] }
 0x35f   : > { %v5564_v29 = vadd.f32 %v14969_v21, %v5525_v7  ;;  %v5759_v31 = vor.u32 %v5757_v22, %v15002_v45  ;;  %v5760_v56 = vrot.slane %v15002_v45, 4  ;;  %v5569_v15 = vadd.f32 %v14969_v21, %v5530_v10  ;;  %v6066_v45 = vld [vmem:[#allocation2 + $0x3c] sm:$0xf] }
 0x360   : > { %v5567_v57 = vadd.f32 %v14969_v21, %v5528_v23  ;;  %v6060_v1 = vsel %vm13489_vm11, %v5776_v4, %v6059_v20  ;;  %v5598_v44 = vmax.f32 %v5566_v25, 0.0  ;;  %v5570_v63 = vadd.f32 %v14969_v21, %v5531_v17 }
 0x361   : > { %v5596_v52 = vmax.f32 %v5564_v29, 0.0  ;;  %6061 = vst [vmem:[#allocation2 + $0x30] sm:$0xf] %v6060_v1  ;;  %v6053_v33 = vsel %vm13489_vm11, %v5759_v31, %v6052_v16  ;;  %v5601_v42 = vmax.f32 %v5569_v15, 0.0  ;;  %v5568_v61 = vadd.f32 %v14969_v21, %v5529_v11  ;;  %v12387_v40 = vpop.f32.mrb[12].mxu0 }
 0x362   : > { %v5599_v41 = vmax.f32 %v5567_v57, 0.0  ;;  %6054 = vst [vmem:[#allocation2 + $0x24] sm:$0xf] %v6053_v33  ;;  %v11768_v37 = vpack.c.bf16 %v5598_v44, %v5598_v44  ;;  %v5602_v12 = vmax.f32 %v5570_v63, 0.0  ;;  %v5534_v59 = vmul.f32 %v12387_v40, %v14964_v34  ;;  %v5402_v14 = vpop.f32.mrb[13].mxu0 }
 0x363   : > { %v11766_v27 = vpack.c.bf16 %v5596_v52, %v5596_v52  ;;  %v11771_v48 = vpack.c.bf16 %v5601_v42, %v5601_v42  ;;  %v5600_v9 = vmax.f32 %v5568_v61, 0.0  ;;  %v5532_v53 = vmul.f32 %v14964_v34, %v5402_v14  ;;  %v12388_v28 = vpop.f32.mrb[14].mxu0 }
 0x364   : > { %v11769_v3 = vpack.c.bf16 %v5599_v41, %v5599_v41  ;;  %v5779_v35 = vshrl.u32 %v11768_v37, 16  ;;  %v5782_v13 = vshll.u32 %v11768_v37, 16  ;;  %v5405_v6 = vpop.f32.mrb[15].mxu0  ;;  %v11772_v32 = vpack.c.bf16 %v5602_v12, %v5602_v12  ;;  %v6077_v37 = vld [vmem:[#allocation2 + $0x50] sm:$0x1] }
 0x365   : > { %v5762_v43 = vshrl.u32 %v11766_v27, 16  ;;  %v5765_v19 = vshll.u32 %v11766_v27, 16  ;;  %v5805_v55 = vshrl.u32 %v11771_v48, 16  ;;  %v5808_v39 = vshll.u32 %v11771_v48, 16 }
 0x366   : > { %v5788_v51 = vshrl.u32 %v11769_v3, 16  ;;  %v5791_v47 = vshll.u32 %v11769_v3, 16  ;;  %v5781_v26 = vrot.slane %v5779_v35, 7  ;;  %v11770_v0 = vpack.c.bf16 %v5600_v9, %v5600_v9 }
 0x367   : > { %v5764_v50 = vrot.slane %v5762_v43, 7  ;;  %v5807_v22 = vrot.slane %v5805_v55, 7  ;;  %v5573_v18 = vadd.f32 %v14969_v21, %v5534_v59  ;;  %v5571_v36 = vadd.f32 %v14969_v21, %v5532_v53 }
 0x368   : > { %v5790_v8 = vrot.slane %v5788_v51, 7  ;;  %v5784_v7 = vor.u32 %v5782_v13, %v5781_v26  ;;  %v5786_v10 = vrot.slane %v5781_v26, 4  ;;  %v5813_v44 = vshrl.u32 %v11772_v32, 16  ;;  %v6070_v13 = vld [vmem:[#allocation2 + $0x44] sm:$0x1] }
 0x369   : > { %v5767_v60 = vor.u32 %v5765_v19, %v5764_v50  ;;  %v5769_v20 = vrot.slane %v5764_v50, 4  ;;  %v5810_v23 = vor.u32 %v5808_v39, %v5807_v22  ;;  %v5811_v17 = vrot.slane %v5807_v22, 4  ;;  %v12391_v16 = vpop.f32.mrb[16].mxu0 }
 0x36a   : > { %v5793_v11 = vor.u32 %v5791_v47, %v5790_v8  ;;  %v5794_v4 = vrot.slane %v5790_v8, 4  ;;  %v5785_v25 = vsel %vm13501_vm13, %v5777_v62, %v5784_v7  ;;  %v6064_v29 = vsel %vm13437_vm5, %v5786_v10, %v6063_v2  ;;  %v5418_v57 = vpop.f32.mrb[17].mxu0  ;;  %v6087_v8 = vld [vmem:[#allocation2 + $0x60] sm:$0xf] }
 0x36b   : > { %v5768_v31 = vsel %vm13501_vm13, %v5760_v56, %v5767_v60  ;;  %v6057_v15 = vsel %vm13437_vm5, %v5769_v20, %v6056_v30  ;;  %6062 = vst.msk [vmem:[#allocation2 + $0x34] sm:$0xf] %vm280_vm1, %v5785_v25  ;;  %6065 = vst [vmem:[#allocation2 + $0x38] sm:$0x1] %v6064_v29  ;;  %v6074_v1 = vsel %vm13489_vm11, %v5810_v23, %v6073_v5  ;;  %v5816_v52 = vshll.u32 %v11772_v32, 16  ;;  %v12392_v63 = vpop.f32.mrb[18].mxu0 }
 0x36c   : > { %6055 = vst.msk [vmem:[#allocation2 + $0x28] sm:$0xf] %vm280_vm1, %v5768_v31  ;;  %6058 = vst [vmem:[#allocation2 + $0x2c] sm:$0x1] %v6057_v15  ;;  %v6067_v62 = vsel %vm13489_vm11, %v5793_v11, %v6066_v45  ;;  %v5796_v56 = vshrl.u32 %v11770_v0, 16  ;;  %v5799_v33 = vshll.u32 %v11770_v0, 16  ;;  %v5535_v27 = vmul.f32 %v12388_v28, %v14964_v34 }
 0x36d   : > { %6075 = vst [vmem:[#allocation2 + $0x48] sm:$0xf] %v6074_v1  ;;  %6068 = vst [vmem:[#allocation2 + $0x3c] sm:$0xf] %v6067_v62  ;;  %v5605_v42 = vmax.f32 %v5573_v18, 0.0  ;;  %v5603_v41 = vmax.f32 %v5571_v36, 0.0  ;;  %v5533_v12 = vmul.f32 %v14964_v34, %v5405_v6  ;;  %v5538_v59 = vmul.f32 %v12391_v16, %v14964_v34 }
 0x36e   : > { %v15039_v61 = vpop.f32.mrb[19].mxu0  ;;  %v5815_v40 = vrot.slane %v5813_v44, 7  ;;  %v5798_v14 = vrot.slane %v5796_v56, 7  ;;  %v5536_v9 = vmul.f32 %v14964_v34, %v5418_v57  ;;  %v5574_v43 = vadd.f32 %v14969_v21, %v5535_v27  ;;  %v6080_v23 = vld [vmem:[#allocation2 + $0x54] sm:$0xf] }
 0x36f   : > { %v11775_v48 = vpack.c.bf16 %v5605_v42, %v5605_v42  ;;  %v11773_v3 = vpack.c.bf16 %v5603_v41, %v5603_v41  ;;  %v5572_v19 = vadd.f32 %v14969_v21, %v5533_v12  ;;  %v5577_v7 = vadd.f32 %v14969_v21, %v5538_v59  ;;  %v15068_v15 = vld [vmem:[#allocation2 + $0xc] sm:$0xf]  ;;  %v6091_v41 = vld [vmem:[#allocation2 + $0x68] sm:$0x1] }
 0x370   : > { %v5818_v53 = vor.u32 %v5816_v52, %v5815_v40  ;;  %v5820_v35 = vrot.slane %v5815_v40, 4  ;;  %v5801_v2 = vor.u32 %v5799_v33, %v5798_v14  ;;  %v5803_v30 = vrot.slane %v5798_v14, 4 }
 0x371   : > { %v5839_v55 = vshrl.u32 %v11775_v48, 16  ;;  %v5842_v28 = vshll.u32 %v11775_v48, 16  ;;  %v5822_v51 = vshrl.u32 %v11773_v3, 16  ;;  %v5825_v47 = vshll.u32 %v11773_v3, 16  ;;  %v15051_v26 = vpop.f32.mrb[20].mxu0 }
 0x372   : > { %v5819_v6 = vsel %vm13501_vm13, %v5811_v17, %v5818_v53  ;;  %v6078_v39 = vsel %vm13437_vm5, %v5820_v35, %v6077_v37  ;;  %v5802_v50 = vsel %vm13501_vm13, %v5794_v4, %v5801_v2  ;;  %v6071_v5 = vsel %vm13437_vm5, %v5803_v30, %v6070_v13  ;;  %v15058_v22 = vpop.f32.mrb[21].mxu0  ;;  %v6084_v35 = vld [vmem:[#allocation2 + $0x5c] sm:$0x1] }
 0x373   : > { %6076 = vst.msk [vmem:[#allocation2 + $0x4c] sm:$0xf] %vm280_vm1, %v5819_v6  ;;  %6079 = vst [vmem:[#allocation2 + $0x50] sm:$0x1] %v6078_v39  ;;  %v5841_v32 = vrot.slane %v5839_v55, 7  ;;  %v5606_v0 = vmax.f32 %v5574_v43, 0.0  ;;  %v5575_v10 = vadd.f32 %v14969_v21, %v5536_v9  ;;  %v5539_v11 = vmul.f32 %v12392_v63, %v14964_v34 }
 0x374   : > { %6069 = vst.msk [vmem:[#allocation2 + $0x40] sm:$0xf] %vm280_vm1, %v5802_v50  ;;  %6072 = vst [vmem:[#allocation2 + $0x44] sm:$0x1] %v6071_v5  ;;  %v5824_v18 = vrot.slane %v5822_v51, 7  ;;  %v5604_v36 = vmax.f32 %v5572_v19, 0.0  ;;  %v5537_v27 = vmul.f32 %v14964_v34, %v15039_v61 }
 0x375   : > { %v15063_v60 = vpop.f32.mrb[22].mxu0  ;;  %v5844_v20 = vor.u32 %v5842_v28, %v5841_v32  ;;  %v5845_v45 = vrot.slane %v5841_v32, 4  ;;  %v11776_v17 = vpack.c.bf16 %v5606_v0, %v5606_v0  ;;  %v5609_v31 = vmax.f32 %v5577_v7, 0.0  ;;  %v6101_v51 = vld [vmem:[#allocation2 + $0x78] sm:$0xf] }
 0x376   : > { %v15066_v4 = vpop.f32.mrb[23].mxu0  ;;  %v5827_v16 = vor.u32 %v5825_v47, %v5824_v18  ;;  %v5828_v25 = vrot.slane %v5824_v18, 4  ;;  %v11774_v29 = vpack.c.bf16 %v5604_v36, %v5604_v36  ;;  %v5607_v44 = vmax.f32 %v5575_v10, 0.0  ;;  %v6153_v5 = vld [vmem:[#allocation2 + $0x10] sm:$0xf] }
 0x377   : > { %v6088_v57 = vsel %vm13489_vm11, %v5844_v20, %v6087_v8  ;;  %v5847_v1 = vshrl.u32 %v11776_v17, 16  ;;  %v5850_v62 = vshll.u32 %v11776_v17, 16  ;;  %v11779_v33 = vpack.c.bf16 %v5609_v31, %v5609_v31  ;;  %v6094_v36 = vld [vmem:[#allocation2 + $0x6c] sm:$0xf] }
 0x378   : > { %6089 = vst [vmem:[#allocation2 + $0x60] sm:$0xf] %v6088_v57  ;;  %v6081_v52 = vsel %vm13489_vm11, %v5827_v16, %v6080_v23  ;;  %v5830_v56 = vshrl.u32 %v11774_v29, 16  ;;  %v5833_v63 = vshll.u32 %v11774_v29, 16  ;;  %v11777_v40 = vpack.c.bf16 %v5607_v44, %v5607_v44  ;;  %v6155_v44 = vld [vmem:[#allocation2 + $0x1c] sm:$0xf] }
 0x379   : > { %6082 = vst [vmem:[#allocation2 + $0x54] sm:$0xf] %v6081_v52  ;;  %v5849_v42 = vrot.slane %v5847_v1, 7  ;;  %v5578_v37 = vadd.f32 %v14969_v21, %v5539_v11  ;;  %v5873_v59 = vshrl.u32 %v11779_v33, 16  ;;  %v5876_v14 = vshll.u32 %v11779_v33, 16  ;;  %v15078_v3 = vpop.f32.mrb[24].mxu0 }
 0x37a   : > { %v5832_v12 = vrot.slane %v5830_v56, 7  ;;  %v6224_v48 = vshrl.u32 %v15068_v15, 16  ;;  %v5856_v13 = vshrl.u32 %v11777_v40, 16  ;;  %v5859_v43 = vshll.u32 %v11777_v40, 16  ;;  %v15080_v19 = vpop.f32.mrb[25].mxu0 }
 0x37b   : > { %v5852_v9 = vor.u32 %v5850_v62, %v5849_v42  ;;  %v5854_v53 = vrot.slane %v5849_v42, 4  ;;  %v15082_v55 = vrot.slane %v5873_v59, 7  ;;  %v5610_v28 = vmax.f32 %v5578_v37, 0.0  ;;  %v15084_v61 = vpop.f32.mrb[26].mxu0  ;;  %v6154_v62 = vld [vmem:[#allocation2 + $0x18] sm:$0xf] }
 0x37c   : > { %v5835_v2 = vor.u32 %v5833_v63, %v5832_v12  ;;  %v5837_v30 = vrot.slane %v5832_v12, 4  ;;  %v15090_v47 = vrot.slane %v5856_v13, 7  ;;  %v5576_v50 = vadd.f32 %v14969_v21, %v5537_v27  ;;  %v15093_v32 = vpop.f32.mrb[27].mxu0 }
 0x37d   : > { %v5853_v6 = vsel %vm13501_vm13, %v5845_v45, %v5852_v9  ;;  %v6092_v39 = vsel %vm13437_vm5, %v5854_v53, %v6091_v41  ;;  %v5878_v18 = vor.u32 %v5876_v14, %v15082_v55  ;;  %v11780_v10 = vpack.c.bf16 %v5610_v28, %v5610_v28  ;;  %v6184_v45 = vld [vmem:[#allocation2 + $0x14] sm:$0x1] }
 0x37e   : > { %6090 = vst.msk [vmem:[#allocation2 + $0x64] sm:$0xf] %vm280_vm1, %v5853_v6  ;;  %6093 = vst [vmem:[#allocation2 + $0x68] sm:$0x1] %v6092_v39  ;;  %v5836_v0 = vsel %vm13501_vm13, %v5828_v25, %v5835_v2  ;;  %v6085_v8 = vsel %vm13437_vm5, %v5837_v30, %v6084_v35  ;;  %v5861_v7 = vor.u32 %v5859_v43, %v15090_v47  ;;  %v5608_v20 = vmax.f32 %v5576_v50, 0.0 }
 0x37f   : > { %6083 = vst.msk [vmem:[#allocation2 + $0x58] sm:$0xf] %vm280_vm1, %v5836_v0  ;;  %6086 = vst [vmem:[#allocation2 + $0x5c] sm:$0x1] %v6085_v8  ;;  %v15105_v23 = vsel %vm1490_vm0, %v14957_v38, 0  ;;  %v6102_v17 = vsel %vm13489_vm11, %v5878_v18, %v6101_v51  ;;  %v6226_v11 = vrot.slane %v6224_v48, 4 }
 0x380   : > { %v6227_v16 = vshll.u32 %v15068_v15, 16  ;;  %v6233_v25 = vshll.u32 %v6153_v5, 16  ;;  %v5879_v29 = vrot.slane %v15082_v55, 4  ;;  %6103 = vst [vmem:[#allocation2 + $0x78] sm:$0xf] %v6102_v17  ;;  %v6095_v31 = vsel %vm13489_vm11, %v5861_v7, %v6094_v36 }
 0x381   : > { %v5881_v57 = vshrl.u32 %v11780_v10, 16  ;;  %v11778_v1 = vpack.c.bf16 %v5608_v20, %v5608_v20  ;;  %6096 = vst [vmem:[#allocation2 + $0x6c] sm:$0xf] %v6095_v31  ;;  %v6105_v38 = vld [vmem:[#allocation2 + $0x80] sm:$0x1]  ;;  %v6237_v63 = vshrl.u32 %v6153_v5, 16  ;;  %v5542_v31 = vmul.f32 %v15051_v26, %v14964_v34 }
 0x382   : > { %v6229_v52 = vrot.slane %v6227_v16, 5  ;;  %v6235_v56 = vrot.slane %v6233_v25, 5  ;;  %v6243_v33 = vshll.u32 %v6184_v45, 16  ;;  %v15113_v42 = vpop.f32.mrb[28].mxu0  ;;  %v5862_v15 = vrot.slane %v15090_v47, 4 }
 0x383   : > { %v5883_v41 = vrot.slane %v5881_v57, 7  ;;  %v5884_v40 = vshll.u32 %v11780_v10, 16  ;;  %v5864_v37 = vshrl.u32 %v11778_v1, 16  ;;  %v15116_v27 = vpop.f32.mrb[29].mxu0  ;;  %v5867_v12 = vshll.u32 %v11778_v1, 16 }
 0x384   : > { %v6230_v59 = vor.u32 %v6229_v52, %v6226_v11  ;;  %v6239_v14 = vrot.slane %v6237_v63, 4  ;;  %v6245_v48 = vrot.slane %v6243_v33, 5  ;;  %v15118_v9 = vpop.f32.mrb[30].mxu0  ;;  %v6248_v43 = vshrl.u32 %v6154_v62, 16  ;;  %v6098_v30 = vld [vmem:[#allocation2 + $0x74] sm:$0x1] }
 0x385   : > { %v5886_v53 = vor.u32 %v5884_v40, %v5883_v41  ;;  %v5888_v35 = vrot.slane %v5883_v41, 4  ;;  %v5866_v13 = vrot.slane %v5864_v37, 7  ;;  %v15120_v2 = vpop.f32.mrb[31].mxu0  ;;  %v6251_v6 = vshll.u32 %v6154_v62, 16  ;;  %v6185_v0 = vld [vmem:[#allocation2 + $0x20] sm:$0x1] }
 0x386   : > { %v6231_v55 = vrot.slane %v6230_v59, 4  ;;  %v6240_v28 = vor.u32 %v6239_v14, %v6235_v56  ;;  %v6257_v39 = vshll.u32 %v6155_v44, 16  ;;  %v6250_v36 = vrot.slane %v6248_v43, 4  ;;  %v6156_v11 = vld [vmem:[#allocation2 + $0x24] sm:$0xf] }
 0x387   : > { %v5887_v51 = vsel %vm13501_vm13, %v5879_v29, %v5886_v53  ;;  %v6106_v47 = vsel %vm13437_vm5, %v5888_v35, %v6105_v38  ;;  %v5869_v50 = vor.u32 %v5867_v12, %v5866_v13  ;;  %v5871_v5 = vrot.slane %v5866_v13, 4  ;;  %v15141_v57 = vld [vmem:[%s16992_s4 + $0x4] sm:$0x3]  ;;  %v15153_v40 = vld [vmem:[#allocation2 + $0x28] sm:$0xf] }
 0x388   : > { %6104 = vst.msk [vmem:[#allocation2 + $0x7c] sm:$0xf] %vm280_vm1, %v5887_v51  ;;  %6107 = vst [vmem:[#allocation2 + $0x80] sm:$0x1] %v6106_v47  ;;  %v6236_v8 = vsel %vm13495_vm12, %v6231_v55, %v6235_v56  ;;  %v6241_v18 = vrot.slane %v6240_v28, 4  ;;  %v6253_v7 = vrot.slane %v6251_v6, 5  ;;  %v5543_v38 = vmul.f32 %v15063_v60, %v14964_v34 }
 0x389   : > { %v5870_v10 = vsel %vm13501_vm13, %v5862_v15, %v5869_v50  ;;  %v6099_v20 = vsel %vm13437_vm5, %v5871_v5, %v6098_v30  ;;  %v6259_v45 = vrot.slane %v6257_v39, 5  ;;  %v6261_v17 = vshrl.u32 %v6155_v44, 16  ;;  %v6115_v5 = vld [vmem:[#allocation2 + $0x90] sm:$0xf] }
 0x38a   : > { %6097 = vst.msk [vmem:[#allocation2 + $0x70] sm:$0xf] %vm280_vm1, %v5870_v10  ;;  %6100 = vst [vmem:[#allocation2 + $0x74] sm:$0x1] %v6099_v20  ;;  %v6246_v16 = vsel %vm13495_vm12, %v6241_v18, %v6245_v48  ;;  %v6254_v25 = vor.u32 %v6253_v7, %v6250_v36  ;;  %v6267_v29 = vshll.u32 %v6185_v0, 16  ;;  %v5540_v44 = vmul.f32 %v14964_v34, %v15058_v22 }
 0x38b   : > { %v11381_v1 = vcombine.low %v6236_v8, %v6246_v16  ;;  %v6263_v62 = vrot.slane %v6261_v17, 4  ;;  %v5581_v63 = vadd.f32 %v14969_v21, %v5542_v31  ;;  %v5541_v26 = vmul.f32 %v14964_v34, %v15066_v4  ;;  %v6108_v10 = vld [vmem:[#allocation2 + $0x84] sm:$0xf] }
 0x38c   : > { %v6255_v52 = vrot.slane %v6254_v25, 4  ;;  %v6269_v56 = vrot.slane %v6267_v29, 5  ;;  %v5579_v15 = vadd.f32 %v14969_v21, %v5540_v44  ;;  %v5582_v41 = vadd.f32 %v14969_v21, %v5543_v38  ;;  %v6119_v25 = vld [vmem:[#allocation2 + $0x98] sm:$0x1]  ;;  %v6112_v38 = vld [vmem:[#allocation2 + $0x8c] sm:$0x1] }
 0x38d   : > { %12408 = vmatmul.mubr.msk.bf16.vlgmr.msra.gmra.mrb[0].mxu1 %vm1441_vm9, %v11381_v1  ;;  %v6264_v33 = vor.u32 %v6263_v62, %v6259_v45  ;;  %v6272_v22 = vshrl.u32 %v6156_v11, 16  ;;  %v5613_v37 = vmax.f32 %v5581_v63, 0.0  ;;  %v5580_v12 = vadd.f32 %v14969_v21, %v5541_v26 }
 0x38e   : > { %12440 = vmatpush3.bf16.msra.mxu1 %v15105_v23  ;;  %v6260_v60 = vsel %vm13495_vm12, %v6255_v52, %v6259_v45  ;;  %v6275_v59 = vshll.u32 %v6156_v11, 16  ;;  %v5611_v14 = vmax.f32 %v5579_v15, 0.0  ;;  %v5614_v48 = vmax.f32 %v5582_v41, 0.0  ;;  %v6186_v15 = vld [vmem:[#allocation2 + $0x2c] sm:$0x1] }
 0x38f   : > { %v6265_v4 = vrot.slane %v6264_v33, 4  ;;  %v6274_v53 = vrot.slane %v6272_v22, 4  ;;  %13234 = vmatprep.subr.msk.bf16.mxu1 %vm1490_vm0, %v15141_v57  ;;  %v11783_v35 = vpack.c.bf16 %v5613_v37, %v5613_v37  ;;  %v5612_v13 = vmax.f32 %v5580_v12, 0.0  ;;  %v15166_v41 = vld [vmem:[#allocation2 + $0x30] sm:$0xf] }
 0x390   : > { %v6277_v43 = vrot.slane %v6275_v59, 5  ;;  %v6281_v30 = vshll.u32 %v15153_v40, 16  ;;  %v11781_v55 = vpack.c.bf16 %v5611_v14, %v5611_v14  ;;  %v11784_v28 = vpack.c.bf16 %v5614_v48, %v5614_v48  ;;  %v15172_v59 = vld [vmem:[#allocation2 + $0x34] sm:$0xf] }
 0x391   : > { %v6270_v23 = vsel %vm13495_vm12, %v6265_v4, %v6269_v56  ;;  %v6285_v6 = vshrl.u32 %v15153_v40, 16  ;;  %v5907_v51 = vshrl.u32 %v11783_v35, 16  ;;  %v5910_v47 = vshll.u32 %v11783_v35, 16  ;;  %v6187_v35 = vld [vmem:[#allocation2 + $0x38] sm:$0x1] }
 0x392   : > { %v11382_v39 = vcombine.low %v6260_v60, %v6270_v23  ;;  %v11782_v50 = vpack.c.bf16 %v5612_v13, %v5612_v13  ;;  %v5890_v0 = vshrl.u32 %v11781_v55, 16  ;;  %v5893_v8 = vshll.u32 %v11781_v55, 16 }
 0x393   : > { %v5915_v18 = vshrl.u32 %v11784_v28, 16  ;;  %v5918_v36 = vshll.u32 %v11784_v28, 16  ;;  %v5909_v7 = vrot.slane %v5907_v51, 7  ;;  %v6278_v17 = vor.u32 %v6277_v43, %v6274_v53  ;;  %v15190_v51 = vld [vmem:[#allocation2 + $0x3c] sm:$0xf] }
 0x394   : > { %12411 = vmatprep.mubr.msk.bf16.mxu1 %vm1441_vm9, %v11382_v39  ;;  %v5898_v20 = vshrl.u32 %v11782_v50, 16  ;;  %v5901_v45 = vshll.u32 %v11782_v50, 16  ;;  %v5892_v11 = vrot.slane %v5890_v0, 7  ;;  %v6283_v29 = vrot.slane %v6281_v30, 5 }
 0x395   : > { %v5917_v16 = vrot.slane %v5915_v18, 7  ;;  %v6287_v31 = vrot.slane %v6285_v6, 4  ;;  %v5912_v1 = vor.u32 %v5910_v47, %v5909_v7  ;;  %v5913_v62 = vrot.slane %v5909_v7, 4 }
 0x396   : > { %v5900_v44 = vrot.slane %v5898_v20, 7  ;;  %v6279_v52 = vrot.slane %v6278_v17, 4  ;;  %v5895_v56 = vor.u32 %v5893_v8, %v5892_v11  ;;  %v5896_v63 = vrot.slane %v5892_v11, 4 }
 0x397   : > { %v5920_v26 = vor.u32 %v5918_v36, %v5917_v16  ;;  %v5922_v33 = vrot.slane %v5917_v16, 4  ;;  %v6116_v22 = vsel %vm13489_vm11, %v5912_v1, %v6115_v5  ;;  %v6288_v53 = vor.u32 %v6287_v31, %v6283_v29 }
 0x398   : > { %v5903_v60 = vor.u32 %v5901_v45, %v5900_v44  ;;  %v5905_v37 = vrot.slane %v5900_v44, 4  ;;  %v6284_v12 = vsel %vm13495_vm12, %v6279_v52, %v6283_v29  ;;  %6117 = vst [vmem:[#allocation2 + $0x90] sm:$0xf] %v6116_v22  ;;  %v6109_v4 = vsel %vm13489_vm11, %v5895_v56, %v6108_v10 }
 0x399   : > { %v5921_v14 = vsel %vm13501_vm13, %v5913_v62, %v5920_v26  ;;  %v6120_v48 = vsel %vm13437_vm5, %v5922_v33, %v6119_v25  ;;  %6110 = vst [vmem:[#allocation2 + $0x84] sm:$0xf] %v6109_v4  ;;  %v6291_v30 = vshll.u32 %v6186_v15, 16  ;;  %v6296_v23 = vshrl.u32 %v15166_v41, 16  ;;  %v15213_v15 = vld [vmem:[#allocation2 + $0x40] sm:$0xf] }
 0x39a   : > { %6118 = vst.msk [vmem:[#allocation2 + $0x94] sm:$0xf] %vm280_vm1, %v5921_v14  ;;  %6121 = vst [vmem:[#allocation2 + $0x98] sm:$0x1] %v6120_v48  ;;  %v5904_v13 = vsel %vm13501_vm13, %v5896_v63, %v5903_v60  ;;  %v6113_v43 = vsel %vm13437_vm5, %v5905_v37, %v6112_v38  ;;  %v6289_v55 = vrot.slane %v6288_v53, 4  ;;  %v6299_v28 = vshll.u32 %v15166_v41, 16 }
 0x39b   : > { %6111 = vst.msk [vmem:[#allocation2 + $0x88] sm:$0xf] %vm280_vm1, %v5904_v13  ;;  %6114 = vst [vmem:[#allocation2 + $0x8c] sm:$0x1] %v6113_v43  ;;  %v6305_v6 = vshll.u32 %v15172_v59, 16  ;;  %v6309_v39 = vshrl.u32 %v15172_v59, 16  ;;  %v5546_v0 = vmul.f32 %v15078_v3, %v14964_v34  ;;  %v5544_v7 = vmul.f32 %v14964_v34, %v15080_v19 }
 0x39c   : > { %v6293_v47 = vrot.slane %v6291_v30, 5  ;;  %v6298_v50 = vrot.slane %v6296_v23, 4  ;;  %v6315_v5 = vshll.u32 %v6187_v35, 16  ;;  %v6301_v8 = vrot.slane %v6299_v28, 5  ;;  %v6129_v14 = vld [vmem:[#allocation2 + $0xa8] sm:$0xf] }
 0x39d   : > { %v6307_v18 = vrot.slane %v6305_v6, 5  ;;  %v6311_v36 = vrot.slane %v6309_v39, 4  ;;  %v5585_v45 = vadd.f32 %v14969_v21, %v5546_v0  ;;  %v5547_v17 = vmul.f32 %v15084_v61, %v14964_v34  ;;  %v6122_v43 = vld [vmem:[#allocation2 + $0x9c] sm:$0xf]  ;;  %v6133_v6 = vld [vmem:[#allocation2 + $0xb0] sm:$0x1] }
 0x39e   : > { %v6294_v10 = vsel %vm13495_vm12, %v6289_v55, %v6293_v47  ;;  %v6317_v20 = vrot.slane %v6315_v5, 5  ;;  %v6302_v16 = vor.u32 %v6301_v8, %v6298_v50  ;;  %v5583_v3 = vadd.f32 %v14969_v21, %v5544_v7 }
 0x39f   : > { %v11383_v11 = vcombine.low %v6284_v12, %v6294_v10  ;;  %v6312_v25 = vor.u32 %v6311_v36, %v6307_v18  ;;  %v5617_v29 = vmax.f32 %v5585_v45, 0.0  ;;  %v5586_v31 = vadd.f32 %v14969_v21, %v5547_v17  ;;  %v15220_v17 = vld [vmem:[#allocation2 + $0x48] sm:$0xf] }
 0x3a0   : > { %v5545_v19 = vmul.f32 %v14964_v34, %v15093_v32  ;;  %v6320_v1 = vshrl.u32 %v15190_v51, 16  ;;  %v6303_v62 = vrot.slane %v6302_v16, 4  ;;  %v5615_v38 = vmax.f32 %v5583_v3, 0.0 }
 0x3a1   : > { %12412 = vmatmul.mubr.msk.bf16.gmra.mrb[4].mxu1 %vm1441_vm9, %v11383_v11  ;;  %v6313_v44 = vrot.slane %v6312_v25, 4  ;;  %v6323_v61 = vshll.u32 %v15190_v51, 16  ;;  %v11787_v52 = vpack.c.bf16 %v5617_v29, %v5617_v29  ;;  %v5618_v56 = vmax.f32 %v5586_v31, 0.0 }
 0x3a2   : > { %v5584_v63 = vadd.f32 %v14969_v21, %v5545_v19  ;;  %v6322_v26 = vrot.slane %v6320_v1, 4  ;;  %v6308_v33 = vsel %vm13495_vm12, %v6303_v62, %v6307_v18  ;;  %v11785_v32 = vpack.c.bf16 %v5615_v38, %v5615_v38  ;;  %v15218_v18 = vld [vmem:[#allocation2 + $0x44] sm:$0x1]  ;;  %v15229_v62 = vld [vmem:[#allocation2 + $0x4c] sm:$0xf] }
 0x3a3   : > { %v6318_v34 = vsel %vm13495_vm12, %v6313_v44, %v6317_v20  ;;  %v6325_v22 = vrot.slane %v6323_v61, 5  ;;  %v5941_v37 = vshrl.u32 %v11787_v52, 16  ;;  %v5944_v12 = vshll.u32 %v11787_v52, 16  ;;  %v6126_v61 = vld [vmem:[#allocation2 + $0xa4] sm:$0x1] }
 0x3a4   : > { %v11384_v60 = vcombine.low %v6308_v33, %v6318_v34  ;;  %v11788_v4 = vpack.c.bf16 %v5618_v56, %v5618_v56  ;;  %v5924_v48 = vshrl.u32 %v11785_v32, 16  ;;  %v5927_v53 = vshll.u32 %v11785_v32, 16  ;;  %v15235_v52 = vld [vmem:[#allocation2 + $0x50] sm:$0x1] }
 0x3a5   : > { %v5616_v35 = vmax.f32 %v5584_v63, 0.0  ;;  %v6326_v21 = vor.u32 %v6325_v22, %v6322_v26  ;;  %v5943_v13 = vrot.slane %v5941_v37, 7  ;;  %v6329_v55 = vshll.u32 %v15213_v15, 16 }
 0x3a6   : > { %12415 = vmatprep.mubr.msk.bf16.mxu1 %vm1441_vm9, %v11384_v60  ;;  %v5949_v30 = vshrl.u32 %v11788_v4, 16  ;;  %v5952_v23 = vshll.u32 %v11788_v4, 16  ;;  %v5926_v28 = vrot.slane %v5924_v48, 7  ;;  %v6333_v50 = vshrl.u32 %v15213_v15, 16 }
 0x3a7   : > { %v11786_v39 = vpack.c.bf16 %v5616_v35, %v5616_v35  ;;  %v6327_v47 = vrot.slane %v6326_v21, 4  ;;  %v5946_v5 = vor.u32 %v5944_v12, %v5943_v13  ;;  %v5947_v0 = vrot.slane %v5943_v13, 4 }
 0x3a8   : > { %v5951_v8 = vrot.slane %v5949_v30, 7  ;;  %v6331_v36 = vrot.slane %v6329_v55, 5  ;;  %v5929_v7 = vor.u32 %v5927_v53, %v5926_v28  ;;  %v5930_v10 = vrot.slane %v5926_v28, 4 }
 0x3a9   : > { %v5932_v20 = vshrl.u32 %v11786_v39, 16  ;;  %v5935_v45 = vshll.u32 %v11786_v39, 16  ;;  %v6130_v11 = vsel %vm13489_vm11, %v5946_v5, %v6129_v14  ;;  %v6335_v19 = vrot.slane %v6333_v50, 4 }
 0x3aa   : > { %v5954_v16 = vor.u32 %v5952_v23, %v5951_v8  ;;  %v5956_v25 = vrot.slane %v5951_v8, 4  ;;  %v6332_v3 = vsel %vm13495_vm12, %v6327_v47, %v6331_v36  ;;  %6131 = vst [vmem:[#allocation2 + $0xa8] sm:$0xf] %v6130_v11  ;;  %v6123_v29 = vsel %vm13489_vm11, %v5929_v7, %v6122_v43  ;;  %v13348_v43 = vld [vmem:[%s16990_s2] ss:$0 sm:$0xff] }
 0x3ab   : > { %v5934_v31 = vrot.slane %v5932_v20, 7  ;;  %v6339_v1 = vshll.u32 %v15218_v18, 16  ;;  %6124 = vst [vmem:[#allocation2 + $0x9c] sm:$0xf] %v6123_v29  ;;  %v6344_v56 = vshrl.u32 %v15220_v17, 16  ;;  %v6347_v63 = vshll.u32 %v15220_v17, 16 }
 0x3ac   : > { %v5955_v44 = vsel %vm13501_vm13, %v5947_v0, %v5954_v16  ;;  %v6134_v38 = vsel %vm13437_vm5, %v5956_v25, %v6133_v6  ;;  %v6336_v34 = vor.u32 %v6335_v19, %v6331_v36  ;;  %v6353_v37 = vshll.u32 %v15229_v62, 16  ;;  %v15252_v23 = vld [vmem:[#allocation2 + $0x54] sm:$0xf]  ;;  %v13349_v0 = vld [vmem:[%s16991_s3] ss:$0 sm:$0xff] }
 0x3ad   : > { %6132 = vst.msk [vmem:[#allocation2 + $0xac] sm:$0xf] %vm280_vm1, %v5955_v44  ;;  %6135 = vst [vmem:[#allocation2 + $0xb0] sm:$0x1] %v6134_v38  ;;  %v5937_v26 = vor.u32 %v5935_v45, %v5934_v31  ;;  %v5939_v33 = vrot.slane %v5934_v31, 4  ;;  %v6341_v32 = vrot.slane %v6339_v1, 5  ;;  %v5550_v30 = vmul.f32 %v13348_v43, %v15113_v42 }
 0x3ae   : > { %v6346_v22 = vrot.slane %v6344_v56, 4  ;;  %v6349_v60 = vrot.slane %v6347_v63, 5  ;;  %v6357_v12 = vshrl.u32 %v15229_v62, 16  ;;  %v6337_v48 = vrot.slane %v6336_v34, 4  ;;  %v15272_v63 = vld [vmem:[#allocation2 + $0x5c] sm:$0x1] }
 0x3af   : > { %v5938_v4 = vsel %vm13501_vm13, %v5930_v10, %v5937_v26  ;;  %v6127_v14 = vsel %vm13437_vm5, %v5939_v33, %v6126_v61  ;;  %v6363_v53 = vshll.u32 %v15235_v52, 16  ;;  %v6355_v21 = vrot.slane %v6353_v37, 5  ;;  %v15262_v10 = vld [vmem:[#allocation2 + $0x58] sm:$0xf]  ;;  %v15274_v26 = vld [vmem:[#allocation2 + $0x60] sm:$0xf] }
 0x3b0   : > { %6125 = vst.msk [vmem:[#allocation2 + $0xa0] sm:$0xf] %vm280_vm1, %v5938_v4  ;;  %6128 = vst [vmem:[#allocation2 + $0xa4] sm:$0x1] %v6127_v14  ;;  %v6350_v35 = vor.u32 %v6349_v60, %v6346_v22  ;;  %v6359_v13 = vrot.slane %v6357_v12, 4  ;;  %v6342_v55 = vsel %vm13495_vm12, %v6337_v48, %v6341_v32  ;;  %v5548_v6 = vmul.f32 %v13348_v43, %v15116_v27 }
 0x3b1   : > { %v6365_v28 = vrot.slane %v6363_v53, 5  ;;  %v5551_v39 = vmul.f32 %v13348_v43, %v15118_v9  ;;  %v11385_v47 = vcombine.low %v6332_v3, %v6342_v55  ;;  %v5589_v8 = vadd.f32 %v13349_v0, %v5550_v30  ;;  %v6143_v48 = vld [vmem:[#allocation2 + $0xc0] sm:$0xf] }
 0x3b2   : > { %v6351_v50 = vrot.slane %v6350_v35, 4  ;;  %v6360_v5 = vor.u32 %v6359_v13, %v6355_v21  ;;  %v5587_v36 = vadd.f32 %v13349_v0, %v5548_v6  ;;  %v5549_v7 = vmul.f32 %v13348_v43, %v15120_v2  ;;  %v6136_v43 = vld [vmem:[#allocation2 + $0xb4] sm:$0xf] }
 0x3b3   : > { %v5590_v42 = vadd.f32 %v13349_v0, %v5551_v39  ;;  %v6368_v20 = vshrl.u32 %v15252_v23, 16  ;;  %12416 = vmatmul.mubr.msk.bf16.gmra.mrb[8].mxu1 %vm1441_vm9, %v11385_v47  ;;  %v5621_v45 = vmax.f32 %v5589_v8, 0.0  ;;  %v6371_v11 = vshll.u32 %v15252_v23, 16  ;;  %v6147_v47 = vld [vmem:[#allocation2 + $0xc8] sm:$0x1] }
 0x3b4   : > { %v6356_v27 = vsel %vm13495_vm12, %v6351_v50, %v6355_v21  ;;  %v6361_v9 = vrot.slane %v6360_v5, 4  ;;  %v5619_v16 = vmax.f32 %v5587_v36, 0.0  ;;  %v5588_v3 = vadd.f32 %v13349_v0, %v5549_v7  ;;  %v6140_v7 = vld [vmem:[#allocation2 + $0xbc] sm:$0x1] }
 0x3b5   : > { %v5622_v25 = vmax.f32 %v5590_v42, 0.0  ;;  %v6370_v29 = vrot.slane %v6368_v20, 4  ;;  %v11791_v31 = vpack.c.bf16 %v5621_v45, %v5621_v45  ;;  %v6373_v19 = vrot.slane %v6371_v11, 5  ;;  %v15287_v11 = vld [vmem:[#allocation2 + $0x64] sm:$0xf] }
 0x3b6   : > { %v6366_v2 = vsel %vm13495_vm12, %v6361_v9, %v6365_v28  ;;  %v6377_v1 = vshll.u32 %v15262_v10, 16  ;;  %v11789_v38 = vpack.c.bf16 %v5619_v16, %v5619_v16  ;;  %v5620_v56 = vmax.f32 %v5588_v3, 0.0  ;;  %v15289_v16 = vld [vmem:[#allocation2 + $0x68] sm:$0x1] }
 0x3b7   : > { %v11386_v44 = vcombine.low %v6356_v27, %v6366_v2  ;;  %v11792_v61 = vpack.c.bf16 %v5622_v25, %v5622_v25  ;;  %v5975_v33 = vshrl.u32 %v11791_v31, 16  ;;  %v5978_v34 = vshll.u32 %v11791_v31, 16  ;;  %v15297_v31 = vld [vmem:[#allocation2 + $0x6c] sm:$0xf] }
 0x3b8   : > { %v6374_v32 = vor.u32 %v6373_v19, %v6370_v29  ;;  %v15276_v22 = vrot.slane %v6377_v1, 5  ;;  %v5958_v60 = vshrl.u32 %v11789_v38, 16  ;;  %v5961_v37 = vshll.u32 %v11789_v38, 16  ;;  %v15299_v19 = vld [vmem:[#allocation2 + $0x70] sm:$0xf] }
 0x3b9   : > { %12419 = vmatprep.mubr.msk.bf16.mxu1 %vm1441_vm9, %v11386_v44  ;;  %v5983_v12 = vshrl.u32 %v11792_v61, 16  ;;  %v5986_v4 = vshll.u32 %v11792_v61, 16  ;;  %v5977_v14 = vrot.slane %v5975_v33, 7  ;;  %v11790_v53 = vpack.c.bf16 %v5620_v56, %v5620_v56 }
 0x3ba   : > { %v6375_v35 = vrot.slane %v6374_v32, 4  ;;  %v6381_v21 = vshrl.u32 %v15262_v10, 16  ;;  %v5960_v13 = vrot.slane %v5958_v60, 7  ;;  %v6387_v55 = vshll.u32 %v15272_v63, 16  ;;  %v15307_v32 = vld [vmem:[#allocation2 + $0x78] sm:$0xf] }
 0x3bb   : > { %v5985_v30 = vrot.slane %v5983_v12, 7  ;;  %v6392_v28 = vshrl.u32 %v15274_v26, 16  ;;  %v5980_v6 = vor.u32 %v5978_v34, %v5977_v14  ;;  %v5981_v39 = vrot.slane %v5977_v14, 4 }
 0x3bc   : > { %v5966_v50 = vshrl.u32 %v11790_v53, 16  ;;  %v5969_v5 = vshll.u32 %v11790_v53, 16  ;;  %v5963_v0 = vor.u32 %v5961_v37, %v5960_v13  ;;  %v5964_v8 = vrot.slane %v5960_v13, 4 }
 0x3bd   : > { %v5988_v36 = vor.u32 %v5986_v4, %v5985_v30  ;;  %v5990_v42 = vrot.slane %v5985_v30, 4  ;;  %v6144_v20 = vsel %vm13489_vm11, %v5980_v6, %v6143_v48  ;;  %v6380_v9 = vsel %vm13495_vm12, %v6375_v35, %v15276_v22  ;;  %v15315_v35 = vld [vmem:[#allocation2 + $0x74] sm:$0x1] }
 0x3be   : > { %v5968_v27 = vrot.slane %v5966_v50, 7  ;;  %v6383_v45 = vrot.slane %v6381_v21, 4  ;;  %6145 = vst [vmem:[#allocation2 + $0xc0] sm:$0xf] %v6144_v20  ;;  %v6137_v25 = vsel %vm13489_vm11, %v5963_v0, %v6136_v43  ;;  %v6389_v2 = vrot.slane %v6387_v55, 5 }
 0x3bf   : > { %v5989_v3 = vsel %vm13501_vm13, %v5981_v39, %v5988_v36  ;;  %v6148_v29 = vsel %vm13437_vm5, %v5990_v42, %v6147_v47  ;;  %6138 = vst [vmem:[#allocation2 + $0xb4] sm:$0xf] %v6137_v25  ;;  %v6394_v38 = vrot.slane %v6392_v28, 4  ;;  %v6395_v61 = vshll.u32 %v15274_v26, 16  ;;  %v15317_v21 = vld [vmem:[#allocation2 + $0x7c] sm:$0xf] }
 0x3c0   : > { %6146 = vst.msk [vmem:[#allocation2 + $0xc4] sm:$0xf] %vm280_vm1, %v5989_v3  ;;  %6149 = vst [vmem:[#allocation2 + $0xc8] sm:$0x1] %v6148_v29  ;;  %v5971_v1 = vor.u32 %v5969_v5, %v5968_v27  ;;  %v5973_v44 = vrot.slane %v5968_v27, 4  ;;  %v6384_v24 = vor.u32 %v6383_v45, %v15276_v22  ;;  %v6401_v56 = vshll.u32 %v15287_v11, 16 }
 0x3c1   : > { %v6405_v33 = vshrl.u32 %v15287_v11, 16  ;;  %v6411_v34 = vshll.u32 %v15289_v16, 16  ;;  %v6416_v22 = vshrl.u32 %v15297_v31, 16  ;;  %v6397_v4 = vrot.slane %v6395_v61, 5  ;;  %v15325_v5 = vld [vmem:[#allocation2 + $0x80] sm:$0x1] }
 0x3c2   : > { %v5972_v60 = vsel %vm13501_vm13, %v5964_v8, %v5971_v1  ;;  %v6141_v37 = vsel %vm13437_vm5, %v5973_v44, %v6140_v7  ;;  %v6385_v12 = vrot.slane %v6384_v24, 4  ;;  %v6403_v14 = vrot.slane %v6401_v56, 5  ;;  %v15330_v20 = vld [vmem:[#allocation2 + $0x84] sm:$0xf]  ;;  %v15333_v3 = vld [vmem:[#allocation2 + $0x88] sm:$0xf] }
 0x3c3   : > { %6139 = vst.msk [vmem:[#allocation2 + $0xb8] sm:$0xf] %vm280_vm1, %v5972_v60  ;;  %6142 = vst [vmem:[#allocation2 + $0xbc] sm:$0x1] %v6141_v37  ;;  %v6407_v48 = vrot.slane %v6405_v33, 4  ;;  %v6413_v53 = vrot.slane %v6411_v34, 5  ;;  %v6398_v55 = vor.u32 %v6397_v4, %v6394_v38 }
 0x3c4   : > { %v6390_v46 = vsel %vm13495_vm12, %v6385_v12, %v6389_v2  ;;  %v6418_v13 = vrot.slane %v6416_v22, 4  ;;  %v6419_v54 = vshll.u32 %v15297_v31, 16  ;;  %v6425_v43 = vshll.u32 %v15299_v19, 16  ;;  %v15340_v33 = vld [vmem:[#allocation2 + $0x90] sm:$0xf] }
 0x3c5   : > { %v11387_v30 = vcombine.low %v6380_v9, %v6390_v46  ;;  %v6408_v28 = vor.u32 %v6407_v48, %v6403_v14  ;;  %v6429_v6 = vshrl.u32 %v15299_v19, 16  ;;  %v6435_v50 = vshll.u32 %v15315_v35, 16  ;;  %v15343_v12 = vld [vmem:[#allocation2 + $0x8c] sm:$0x1] }
 0x3c6   : > { %v6421_v39 = vrot.slane %v6419_v54, 5  ;;  %v6427_v47 = vrot.slane %v6425_v43, 5  ;;  %v6440_v0 = vshrl.u32 %v15307_v32, 16  ;;  %v6399_v8 = vrot.slane %v6398_v55, 4 }
 0x3c7   : > { %12420 = vmatmul.mubr.msk.bf16.gmra.mrb[12].mxu1 %vm1441_vm9, %v11387_v30  ;;  %v6409_v36 = vrot.slane %v6408_v28, 4  ;;  %v6431_v42 = vrot.slane %v6429_v6, 4  ;;  %v6443_v7 = vshll.u32 %v15307_v32, 16  ;;  %v6437_v9 = vrot.slane %v6435_v50, 5  ;;  %v15353_v30 = vld [vmem:[#allocation2 + $0x94] sm:$0xf] }
 0x3c8   : > { %v6422_v27 = vor.u32 %v6421_v39, %v6418_v13  ;;  %v6442_v45 = vrot.slane %v6440_v0, 4  ;;  %v6449_v25 = vshll.u32 %v15317_v21, 16  ;;  %v6404_v29 = vsel %vm13495_vm12, %v6399_v8, %v6403_v14 }
 0x3c9   : > { %v6414_v2 = vsel %vm13495_vm12, %v6409_v36, %v6413_v53  ;;  %v6432_v1 = vor.u32 %v6431_v42, %v6427_v47  ;;  %v6445_v44 = vrot.slane %v6443_v7, 5  ;;  %v6453_v56 = vshrl.u32 %v15317_v21, 16  ;;  %v15361_v7 = vld [vmem:[#allocation2 + $0x98] sm:$0x1] }
 0x3ca   : > { %v11388_v24 = vcombine.low %v6404_v29, %v6414_v2  ;;  %v6423_v38 = vrot.slane %v6422_v27, 4  ;;  %v6451_v61 = vrot.slane %v6449_v25, 5  ;;  %v6459_v37 = vshll.u32 %v15325_v5, 16 }
 0x3cb   : > { %v6433_v34 = vrot.slane %v6432_v1, 4  ;;  %v6446_v60 = vor.u32 %v6445_v44, %v6442_v45  ;;  %v6464_v22 = vshrl.u32 %v15330_v20, 16  ;;  %v6455_v14 = vrot.slane %v6453_v56, 4  ;;  %v15366_v1 = vld [vmem:[#allocation2 + $0x9c] sm:$0xf] }
 0x3cc   : > { %12423 = vmatprep.mubr.msk.bf16.mxu1 %vm1441_vm9, %v11388_v24  ;;  %v6428_v4 = vsel %vm13495_vm12, %v6423_v38, %v6427_v47  ;;  %v6467_v48 = vshll.u32 %v15330_v20, 16  ;;  %v6473_v53 = vshll.u32 %v15333_v3, 16  ;;  %v6461_v54 = vrot.slane %v6459_v37, 5  ;;  %v15370_v56 = vld [vmem:[#allocation2 + $0xa0] sm:$0xf] }
 0x3cd   : > { %v6438_v46 = vsel %vm13495_vm12, %v6433_v34, %v6437_v9  ;;  %v6447_v13 = vrot.slane %v6446_v60, 4  ;;  %v6466_v43 = vrot.slane %v6464_v22, 4  ;;  %v6456_v28 = vor.u32 %v6455_v14, %v6451_v61 }
 0x3ce   : > { %v11389_v55 = vcombine.low %v6428_v4, %v6438_v46  ;;  %v6469_v6 = vrot.slane %v6467_v48, 5  ;;  %v6475_v39 = vrot.slane %v6473_v53, 5  ;;  %v6477_v50 = vshrl.u32 %v15333_v3, 16  ;;  %v15373_v4 = vld [vmem:[#allocation2 + $0xa4] sm:$0x1] }
 0x3cf   : > { %v6452_v47 = vsel %vm13495_vm12, %v6447_v13, %v6451_v61  ;;  %v6483_v0 = vshll.u32 %v15343_v12, 16  ;;  %v6488_v8 = vshrl.u32 %v15340_v33, 16  ;;  %v6457_v36 = vrot.slane %v6456_v28, 4  ;;  %v15379_v13 = vld [vmem:[#allocation2 + $0xa8] sm:$0xf] }
 0x3d0   : > { %12424 = vmatmul.mubr.msk.bf16.gmra.mrb[16].mxu1 %vm1441_vm9, %v11389_v55  ;;  %v6470_v42 = vor.u32 %v6469_v6, %v6466_v43  ;;  %v6491_v27 = vshll.u32 %v15340_v33, 16  ;;  %v6497_v9 = vshll.u32 %v15353_v30, 16  ;;  %v6479_v45 = vrot.slane %v6477_v50, 4 }
 0x3d1   : > { %v6485_v25 = vrot.slane %v6483_v0, 5  ;;  %v6490_v29 = vrot.slane %v6488_v8, 4  ;;  %v6501_v2 = vshrl.u32 %v15353_v30, 16  ;;  %v6462_v44 = vsel %vm13495_vm12, %v6457_v36, %v6461_v54 }
 0x3d2   : > { %v6471_v24 = vrot.slane %v6470_v42, 4  ;;  %v6493_v38 = vrot.slane %v6491_v27, 5  ;;  %v6499_v61 = vrot.slane %v6497_v9, 5  ;;  %v11390_v34 = vcombine.low %v6452_v47, %v6462_v44  ;;  %v15389_v9 = vld [vmem:[#allocation2 + $0xb0] sm:$0x1] }
 0x3d3   : > { %v6480_v60 = vor.u32 %v6479_v45, %v6475_v39  ;;  %v6503_v37 = vrot.slane %v6501_v2, 4  ;;  %v6507_v22 = vshll.u32 %v15361_v7, 16  ;;  %v6512_v53 = vshrl.u32 %v15366_v1, 16  ;;  %v15391_v45 = vld [vmem:[#allocation2 + $0xb4] sm:$0xf] }
 0x3d4   : > { %v6476_v14 = vsel %vm13495_vm12, %v6471_v24, %v6475_v39  ;;  %v6494_v48 = vor.u32 %v6493_v38, %v6490_v29  ;;  %v6515_v46 = vshll.u32 %v15366_v1, 16  ;;  %12427 = vmatprep.mubr.msk.bf16.mxu1 %vm1441_vm9, %v11390_v34  ;;  %v6521_v28 = vshll.u32 %v15370_v56, 16  ;;  %v15384_v39 = vld [vmem:[#allocation2 + $0xac] sm:$0xf] }
 0x3d5   : > { %v6481_v54 = vrot.slane %v6480_v60, 4  ;;  %v6504_v43 = vor.u32 %v6503_v37, %v6499_v61  ;;  %v6509_v55 = vrot.slane %v6507_v22, 5  ;;  %v6514_v47 = vrot.slane %v6512_v53, 4  ;;  %v15399_v60 = vld [vmem:[#allocation2 + $0xb8] sm:$0xf] }
 0x3d6   : > { %v6495_v6 = vrot.slane %v6494_v48, 4  ;;  %v6517_v50 = vrot.slane %v6515_v46, 5  ;;  %v6525_v0 = vshrl.u32 %v15370_v56, 16  ;;  %v6523_v42 = vrot.slane %v6521_v28, 5 }
 0x3d7   : > { %v6486_v8 = vsel %vm13495_vm12, %v6481_v54, %v6485_v25  ;;  %v6505_v36 = vrot.slane %v6504_v43, 4  ;;  %v6531_v27 = vshll.u32 %v15373_v4, 16  ;;  %v6536_v34 = vshrl.u32 %v15379_v13, 16 }
 0x3d8   : > { %v11391_v29 = vcombine.low %v6476_v14, %v6486_v8  ;;  %v6518_v2 = vor.u32 %v6517_v50, %v6514_v47  ;;  %v6527_v44 = vrot.slane %v6525_v0, 4  ;;  %v6500_v24 = vsel %vm13495_vm12, %v6495_v6, %v6499_v61  ;;  %v15409_v8 = vld [vmem:[#allocation2 + $0xbc] sm:$0x1] }
 0x3d9   : > { %v6510_v38 = vsel %vm13495_vm12, %v6505_v36, %v6509_v55  ;;  %v6539_v25 = vshll.u32 %v15379_v13, 16  ;;  %v6545_v14 = vshll.u32 %v15384_v39, 16  ;;  %v6533_v53 = vrot.slane %v6531_v27, 5 }
 0x3da   : > { %12428 = vmatmul.mubr.msk.bf16.gmra.mrb[20].mxu1 %vm1441_vm9, %v11391_v29  ;;  %v11392_v37 = vcombine.low %v6500_v24, %v6510_v38  ;;  %v6519_v22 = vrot.slane %v6518_v2, 4  ;;  %v6528_v48 = vor.u32 %v6527_v44, %v6523_v42  ;;  %v6538_v46 = vrot.slane %v6536_v34, 4 }
 0x3db   : > { %v6541_v54 = vrot.slane %v6539_v25, 5  ;;  %v6549_v61 = vshrl.u32 %v15384_v39, 16  ;;  %v6547_v55 = vrot.slane %v6545_v14, 5  ;;  %v6555_v28 = vshll.u32 %v15389_v9, 16 }
 0x3dc   : > { %12431 = vmatprep.mubr.msk.bf16.mxu1 %vm1441_vm9, %v11392_v37  ;;  %v6529_v43 = vrot.slane %v6528_v48, 4  ;;  %v6560_v6 = vshrl.u32 %v15391_v45, 16  ;;  %v6524_v47 = vsel %vm13495_vm12, %v6519_v22, %v6523_v42  ;;  %v6563_v36 = vshll.u32 %v15391_v45, 16 }
 0x3dd   : > { %v6542_v50 = vor.u32 %v6541_v54, %v6538_v46  ;;  %v6551_v0 = vrot.slane %v6549_v61, 4  ;;  %v6569_v2 = vshll.u32 %v15399_v60, 16  ;;  %v6573_v44 = vshrl.u32 %v15399_v60, 16 }
 0x3de   : > { %v6534_v27 = vsel %vm13495_vm12, %v6529_v43, %v6533_v53  ;;  %v6562_v29 = vrot.slane %v6560_v6, 4  ;;  %v6565_v25 = vrot.slane %v6563_v36, 5  ;;  %v6579_v22 = vshll.u32 %v15409_v8, 16  ;;  %v15422_v36 = vld [vmem:[#allocation2 + $0x4] sm:$0xf] }
 0x3df   : > { %v11393_v24 = vcombine.low %v6524_v47, %v6534_v27  ;;  %v6543_v38 = vrot.slane %v6542_v50, 4  ;;  %v6552_v34 = vor.u32 %v6551_v0, %v6547_v55  ;;  %v6571_v37 = vrot.slane %v6569_v2, 5  ;;  %v13350_v0 = vld [vmem:[#allocation2] sm:$0xf] }
 0x3e0   : > { %v6575_v42 = vrot.slane %v6573_v44, 4  ;;  %v6557_v14 = vrot.slane %v6555_v28, 5  ;;  %v6566_v46 = vor.u32 %v6565_v25, %v6562_v29  ;;  %v6581_v50 = vrot.slane %v6579_v22, 5  ;;  %v7147_v22 = vld [vmem:[#allocation2 + $0x78] sm:$0xe] }
 0x3e1   : > { %v6553_v48 = vrot.slane %v6552_v34, 4  ;;  %v6548_v53 = vsel %vm13495_vm12, %v6543_v38, %v6547_v55  ;;  %v11412_v27 = vcombine.low %v13350_v0, %v15422_v36  ;;  %v11419_v29 = vcombine.low %v15252_v23, %v15262_v10 }
 0x3e2   : > { %12432 = vmatmul.mubr.msk.bf16.gmra.mrb[24].mxu1 %vm1441_vm9, %v11393_v24  ;;  %v6576_v54 = vor.u32 %v6575_v42, %v6571_v37  ;;  %v6567_v43 = vrot.slane %v6566_v46, 4  ;;  %v11420_v55 = vcombine.low %v15274_v26, %v15287_v11  ;;  %v11421_v2 = vcombine.low %v15297_v31, %v15299_v19  ;;  %v13357_v31 = vld [vmem:[#allocation2 + $0x8] sm:$0x1] }
 0x3e3   : > { %v6558_v61 = vsel %vm13495_vm12, %v6553_v48, %v6557_v14  ;;  %v11422_v24 = vcombine.low %v15307_v32, %v15317_v21  ;;  %v13352_v48 = vld [vmem:[#allocation2 + $0xc] sm:$0xf]  ;;  %v15450_v14 = vld [vmem:[#allocation2 + $0x10] sm:$0xf]  ;;  %v7236_v0 = vrot.slane %v15262_v10, 5  ;;  %v7281_v34 = vrot.slane %v15373_v4, 5 }
 0x3e4   : > { %v11394_v6 = vcombine.low %v6548_v53, %v6558_v61  ;;  %v6577_v47 = vrot.slane %v6576_v54, 4  ;;  %v6572_v28 = vsel %vm13495_vm12, %v6567_v43, %v6571_v37  ;;  %v11413_v46 = vcombine.low %v13352_v48, %v15450_v14  ;;  %v13354_v53 = vld [vmem:[#allocation2 + $0x18] sm:$0xf]  ;;  %v15455_v61 = vld [vmem:[#allocation2 + $0x1c] sm:$0xf] }
 0x3e5   : > { %v7396_v54 = vsel %vm1490_vm0, %v15141_v57, 0  ;;  %v11414_v43 = vcombine.low %v13354_v53, %v15455_v61  ;;  %v7146_v57 = vld [vmem:[#allocation2 + $0x6c] sm:$0xe]  ;;  %v7243_v48 = vrot.slane %v15287_v11, 5  ;;  %v7148_v37 = vld [vmem:[#allocation2 + $0x84] sm:$0xe]  ;;  %v17127_v23 = vcombine.low %v15330_v20, %v15333_v3 }
 0x3e6   : > { %12435 = vmatprep.mubr.msk.bf16.mxu1 %vm1441_vm9, %v11394_v6  ;;  %v6582_v44 = vsel %vm13495_vm12, %v6577_v47, %v6581_v50  ;;  %v15461_v6 = vld [vmem:[%s16992_s4 + $0x6] sm:$0x3]  ;;  %v7144_v47 = vld [vmem:[#allocation2 + $0x54] sm:$0xe]  ;;  %v7145_v50 = vld [vmem:[#allocation2 + $0x60] sm:$0xe]  ;;  %v17128_v10 = vcombine.low %v15340_v33, %v15353_v30  ;;  %v17129_v32 = vcombine.low %v15366_v1, %v15370_v56  ;;  %v17131_v1 = vcombine.low %v15391_v45, %v15399_v60 }
 0x3e7   : > { %v11395_v25 = vcombine.low %v6572_v28, %v6582_v44  ;;  %v11416_v44 = vcombine.low %v15166_v41, %v15172_v59  ;;  %v11452_v53 = vrot.slane %v7145_v50, 9  ;;  %v7250_v41 = vrot.slane %v15299_v19, 5  ;;  %v7137_v11 = vld [vmem:[#allocation2] sm:$0xe] }
 0x3e8   : > { %v7292_v4 = vrot.slane %v15399_v60, 5  ;;  %v7187_v26 = vrot.slane %v15422_v36, 5  ;;  %v7190_v19 = vrot.slane %v13357_v31, 5  ;;  %v7194_v33 = vrot.slane %v15450_v14, 5  ;;  %v13361_v60 = vld [vmem:[#allocation2 + $0x34] sm:$0xf] }
 0x3e9   : > { %v7140_v31 = vld [vmem:[#allocation2 + $0x24] sm:$0xe] }
 0x3ea   : > { %12436 = vmatmul.mubr.msk.bf16.gmra.mrb[28].mxu1 %vm1441_vm9, %v11395_v25  ;;  %v11451_v25 = vrot.slane %v7144_v47, 9  ;;  %v15485_v47 = vsel %vm14004_vm2, %v11452_v53, %v7243_v48  ;;  %v7149_v53 = vld [vmem:[#allocation2 + $0x90] sm:$0xe] }
 0x3eb   : > { %12441 = vmatprep.mubr.msk.bf16.mxu1 %vm1441_vm9, %v11412_v27  ;;  %v13356_v27 = vld [vmem:[#allocation2 + $0x24] sm:$0xf] }
 0x3ec   : > { %v11415_v28 = vcombine.low %v13356_v27, %v15153_v40  ;;  %v15476_v42 = vsel %vm14004_vm2, %v11451_v25, %v7236_v0  ;;  %v7245_v40 = vrot.slane %v7243_v48, 4  ;;  %v11453_v27 = vrot.slane %v7146_v57, 9 }
 0x3ed   : > { %v7252_v57 = vrot.slane %v7250_v41, 4  ;;  %v11454_v25 = vrot.slane %v7147_v22, 9  ;;  %v7274_v48 = vrot.slane %v15361_v7, 5 }
 0x3ee   : > { %v15503_v50 = vsel %vm14004_vm2, %v11453_v27, %v7250_v41  ;;  %v7271_v27 = vrot.slane %v15353_v30, 5  ;;  %v7150_v41 = vld [vmem:[#allocation2 + $0x9c] sm:$0xe]  ;;  %v7201_v30 = vrot.slane %v15455_v61, 5  ;;  %v13360_v61 = vld [vmem:[#allocation2 + $0x28] sm:$0xf] }
 0x3f2   : > { %12442 = vmatmul.mubr.msk.bf16.vlgmr.msra.gmra.mrb[0].mxu1 %vm1441_vm9, %v11413_v46  ;;  %v7238_v46 = vrot.slane %v7236_v0, 4 }
 0x3f3   : > { %12474 = vmatpush3.bf16.msra.mxu1 %v7396_v54  ;;  %12445 = vmatprep.mubr.msk.bf16.mxu1 %vm1441_vm9, %v11414_v43  ;;  %v7239_v54 = vrot.slane %v15272_v63, 5  ;;  %v7246_v43 = vrot.slane %v15289_v16, 5  ;;  %v7253_v63 = vrot.slane %v15315_v35, 5  ;;  %v7257_v16 = vrot.slane %v15317_v21, 5 }
 0x3f4   : > { %13235 = vmatprep.subr.msk.bf16.mxu1 %vm1490_vm0, %v15461_v6  ;;  %v7260_v35 = vrot.slane %v15325_v5, 5  ;;  %v7273_v5 = vrot.slane %v7271_v27, 4  ;;  %v17130_v21 = vcombine.low %v15379_v13, %v15384_v39  ;;  %v7203_v13 = vrot.slane %v7201_v30, 4 }
 0x3f5   : > { %v15481_v59 = vsel %vm14004_vm2, %v7238_v46, %v7239_v54  ;;  %v15493_v0 = vsel %vm14004_vm2, %v7245_v40, %v7246_v43  ;;  %v11417_v46 = vcombine.low %v15190_v51, %v15213_v15  ;;  %v7259_v54 = vrot.slane %v7257_v16, 4 }
 0x3f6   : > { %v15507_v22 = vsel %vm14004_vm2, %v7252_v57, %v7253_v63  ;;  %v15511_v51 = vsel %vm14004_vm2, %v11454_v25, %v7257_v16  ;;  %v7264_v43 = vrot.slane %v15333_v3, 5  ;;  %v11455_v40 = vrot.slane %v7148_v37, 9  ;;  %v7151_v37 = vld [vmem:[#allocation2 + $0xa8] sm:$0xe] }
 0x3f7   : > { %v7267_v57 = vrot.slane %v15343_v12, 5  ;;  %v11456_v25 = vrot.slane %v7149_v53, 9  ;;  %v11457_v12 = vrot.slane %v7150_v41, 9  ;;  %v7285_v53 = vrot.slane %v15384_v39, 5  ;;  %v7152_v41 = vld [vmem:[#allocation2 + $0xb4] sm:$0xe] }
 0x3f8   : > { %v7266_v16 = vrot.slane %v7264_v43, 4  ;;  %v15544_v7 = vsel %vm14004_vm2, %v7273_v5, %v7274_v48  ;;  %v13358_v39 = vld [vmem:[#allocation2 + $0x14] sm:$0x1] }
 0x3f9   : > { %v15537_v63 = vsel %vm14004_vm2, %v11456_v25, %v7271_v27  ;;  %v7287_v38 = vrot.slane %v7285_v53, 4  ;;  %v7288_v27 = vrot.slane %v15389_v9, 5  ;;  %v11418_v25 = vcombine.low %v15220_v17, %v15229_v62 }
 0x3fa   : > { %12446 = vmatmul.mubr.msk.bf16.gmra.mrb[4].mxu1 %vm1441_vm9, %v11415_v28  ;;  %v15519_v28 = vsel %vm14004_vm2, %v7259_v54, %v7260_v35  ;;  %v7278_v54 = vrot.slane %v15370_v56, 5  ;;  %v15533_v35 = vsel %vm14004_vm2, %v7266_v16, %v7267_v57  ;;  %v11458_v57 = vrot.slane %v7151_v37, 9  ;;  %v7138_v56 = vld [vmem:[#allocation2 + $0xc] sm:$0xe] }
 0x3fb   : > { %12449 = vmatprep.mubr.msk.bf16.mxu1 %vm1441_vm9, %v11416_v44  ;;  %v15527_v44 = vsel %vm14004_vm2, %v11455_v40, %v7264_v43  ;;  %v15570_v17 = vsel %vm14004_vm2, %v7287_v38, %v7288_v27  ;;  %v7294_v37 = vrot.slane %v7292_v4, 4  ;;  %v11445_v27 = vrot.slane %v7138_v56, 9 }
 0x3fc   : > { %v7280_v40 = vrot.slane %v7278_v54, 4  ;;  %v15554_v43 = vsel %vm14004_vm2, %v11457_v12, %v7278_v54  ;;  %v15566_v9 = vsel %vm14004_vm2, %v11458_v57, %v7285_v53  ;;  %v11459_v54 = vrot.slane %v7152_v41, 9 }
 0x3fd   : > { %v7208_v41 = vrot.slane %v13360_v61, 5  ;;  %v17150_v5 = vcombine.low %v15527_v44, %v15533_v35 }
 0x3fe   : > { %v15558_v48 = vsel %vm14004_vm2, %v7280_v40, %v7281_v34  ;;  %v15578_v12 = vsel %vm14004_vm2, %v11459_v54, %v7292_v4  ;;  %v13359_v40 = vld [vmem:[#allocation2 + $0x20] sm:$0x1]  ;;  %v7215_v4 = vrot.slane %v13361_v60, 5  ;;  %v7195_v54 = vsel %vm14004_vm2, %v11445_v27, %v7194_v33  ;;  %v8687_v34 = vld [vmem:[#allocation2 + $0x9c] sm:$0xe] }
 0x3ff   : > { %v7204_v57 = vrot.slane %v13359_v40, 5 }
 0x401   : > { %v7205_v45 = vsel %vm14004_vm2, %v7203_v13, %v7204_v57  ;;  %v7143_v57 = vld [vmem:[#allocation2 + $0x48] sm:$0xe] }
 0x402   : > { %12450 = vmatmul.mubr.msk.bf16.gmra.mrb[8].mxu1 %vm1441_vm9, %v11417_v46  ;;  %v7295_v46 = vrot.slane %v15409_v8, 5  ;;  %v11444_v8 = vrot.slane %v7137_v11, 9  ;;  %v15643_v11 = vld [vmem:[%s16992_s4 + $0x8] sm:$0x3]  ;;  %v11450_v61 = vrot.slane %v7143_v57, 9 }
 0x403   : > { %12453 = vmatprep.mubr.msk.bf16.mxu1 %vm1441_vm9, %v11418_v25  ;;  %v15721_v57 = vld [vmem:[#allocation2 + $0x64] sm:$0xf] }
 0x404   : > { %v15582_v53 = vsel %vm14004_vm2, %v7294_v37, %v7295_v46  ;;  %v7188_v20 = vsel %vm14004_vm2, %v11444_v8, %v7187_v26  ;;  %v7754_v46 = vsel %vm1490_vm0, %v15461_v6, 0  ;;  %v13362_v8 = vld [vmem:[#allocation2 + $0x2c] sm:$0x1]  ;;  %v7141_v6 = vld [vmem:[#allocation2 + $0x30] sm:$0xe] }
 0x40a   : > { %12454 = vmatmul.mubr.msk.bf16.gmra.mrb[12].mxu1 %vm1441_vm9, %v11419_v29  ;;  %v7189_v29 = vrot.slane %v7187_v26, 4  ;;  %v7210_v26 = vrot.slane %v7208_v41, 4 }
 0x40b   : > { %12457 = vmatprep.mubr.msk.bf16.mxu1 %vm1441_vm9, %v11420_v55  ;;  %v7196_v55 = vrot.slane %v7194_v33, 4  ;;  %v7222_v33 = vrot.slane %v15213_v15, 5  ;;  %v7225_v15 = vrot.slane %v15218_v18, 5  ;;  %v15673_v18 = vld [vmem:[#allocation2 + $0x28] sm:$0xf] }
 0x40c   : > { %v7191_v3 = vsel %vm14004_vm2, %v7189_v29, %v7190_v19  ;;  %v7217_v19 = vrot.slane %v7215_v4, 4  ;;  %v7211_v29 = vrot.slane %v13362_v8, 5 }
 0x40d   : > { %v11461_v36 = vcombine.low %v7188_v20, %v7191_v3  ;;  %v11447_v20 = vrot.slane %v7140_v31, 9  ;;  %v17133_v31 = vcombine.low %v15485_v47, %v15493_v0 }
 0x40e   : > { %v7212_v3 = vsel %vm14004_vm2, %v7210_v26, %v7211_v29  ;;  %v8678_v26 = vld [vmem:[#allocation2 + $0x30] sm:$0xe] }
 0x40f   : > { %v11562_v0 = vrot.slane %v8678_v26, 9  ;;  %v8686_v26 = vld [vmem:[#allocation2 + $0x90] sm:$0xe] }
 0x410   : > { %v11570_v16 = vrot.slane %v8686_v26, 9 }
 0x412   : > { %12458 = vmatmul.mubr.msk.bf16.gmra.mrb[16].mxu1 %vm1441_vm9, %v11421_v2  ;;  %v7197_v2 = vrot.slane %v13358_v39, 5 }
 0x413   : > { %12461 = vmatprep.mubr.msk.bf16.mxu1 %vm1441_vm9, %v11422_v24  ;;  %v7139_v24 = vld [vmem:[#allocation2 + $0x18] sm:$0xe] }
 0x414   : > { %v7198_v14 = vsel %vm14004_vm2, %v7196_v55, %v7197_v2  ;;  %v11446_v25 = vrot.slane %v7139_v24, 9  ;;  %v7229_v55 = vrot.slane %v15229_v62, 5  ;;  %v7224_v2 = vrot.slane %v7222_v33, 4  ;;  %v7142_v24 = vld [vmem:[#allocation2 + $0x3c] sm:$0xe] }
 0x415   : > { %v11462_v37 = vcombine.low %v7195_v54, %v7198_v14  ;;  %v7232_v62 = vrot.slane %v15235_v52, 5  ;;  %v11449_v27 = vrot.slane %v7142_v24, 9  ;;  %v8677_v52 = vld [vmem:[#allocation2 + $0x24] sm:$0xe]  ;;  %v15675_v54 = vld [vmem:[#allocation2 + $0x2c] sm:$0x1] }
 0x416   : > { %v7231_v40 = vrot.slane %v7229_v55, 4  ;;  %v7226_v14 = vsel %vm14004_vm2, %v7224_v2, %v7225_v15  ;;  %v7230_v60 = vsel %vm14004_vm2, %v11450_v61, %v7229_v55  ;;  %v11561_v8 = vrot.slane %v8677_v52, 9  ;;  %v8681_v15 = vld [vmem:[#allocation2 + $0x54] sm:$0xe] }
 0x41a   : > { %12462 = vmatmul.mubr.msk.bf16.gmra.mrb[20].mxu1 %vm1441_vm9, %v17127_v23  ;;  %v7202_v23 = vsel %vm14004_vm2, %v11446_v25, %v7201_v30  ;;  %v11448_v30 = vrot.slane %v7141_v6, 9  ;;  %v7223_v25 = vsel %vm14004_vm2, %v11449_v27, %v7222_v33  ;;  %v8679_v6 = vld [vmem:[#allocation2 + $0x3c] sm:$0xe]  ;;  %v8680_v33 = vld [vmem:[#allocation2 + $0x48] sm:$0xe] }
 0x41b   : > { %12465 = vmatprep.mubr.msk.bf16.mxu1 %vm1441_vm9, %v17128_v10  ;;  %v11463_v10 = vcombine.low %v7202_v23, %v7205_v45  ;;  %v11466_v45 = vcombine.low %v7223_v25, %v7226_v14  ;;  %v17132_v23 = vcombine.low %v15476_v42, %v15481_v59  ;;  %v8758_v42 = vrot.slane %v15675_v54, 5  ;;  %v15732_v25 = vld [vmem:[#allocation2 + $0x68] sm:$0x1] }
 0x41c   : > { %v7216_v13 = vsel %vm14004_vm2, %v11448_v30, %v7215_v4  ;;  %v15705_v30 = vld [vmem:[#allocation2 + $0x58] sm:$0xf]  ;;  %v11564_v14 = vrot.slane %v8680_v33, 9  ;;  %v15762_v33 = vld [vmem:[#allocation2 + $0x7c] sm:$0xf] }
 0x422   : > { %12466 = vmatmul.mubr.msk.bf16.gmra.mrb[24].mxu1 %vm1441_vm9, %v17129_v32  ;;  %v13363_v32 = vld [vmem:[#allocation2 + $0x38] sm:$0x1] }
 0x423   : > { %12469 = vmatprep.mubr.msk.bf16.mxu1 %vm1441_vm9, %v17130_v21  ;;  %v7218_v21 = vrot.slane %v13363_v32, 5  ;;  %v15692_v32 = vld [vmem:[#allocation2 + $0x44] sm:$0x1] }
 0x42a   : > { %12470 = vmatmul.mubr.msk.bf16.gmra.mrb[28].mxu1 %vm1441_vm9, %v17131_v1  ;;  %v7209_v1 = vsel %vm14004_vm2, %v11447_v20, %v7208_v41  ;;  %v7233_v41 = vsel %vm14004_vm2, %v7231_v40, %v7232_v62  ;;  %v15698_v20 = vld [vmem:[#allocation2 + $0x50] sm:$0x1]  ;;  %v8772_v40 = vrot.slane %v15692_v32, 5 }
 0x42b   : > { %12475 = vmatprep.mubr.msk.bf16.mxu1 %vm1441_vm9, %v11461_v36  ;;  %v7219_v36 = vsel %vm14004_vm2, %v7217_v19, %v7218_v21  ;;  %v11464_v56 = vcombine.low %v7209_v1, %v7212_v3  ;;  %v11467_v4 = vcombine.low %v7230_v60, %v7233_v41  ;;  %v15690_v19 = vld [vmem:[#allocation2 + $0x38] sm:$0x1]  ;;  %v15694_v21 = vld [vmem:[#allocation2 + $0x4c] sm:$0xf]  ;;  %v8682_v41 = vld [vmem:[#allocation2 + $0x60] sm:$0xe] }
 0x42c   : > { %v11465_v39 = vcombine.low %v7216_v13, %v7219_v36  ;;  %v8765_v1 = vrot.slane %v15690_v19, 5  ;;  %v15712_v13 = vld [vmem:[#allocation2 + $0x5c] sm:$0x1]  ;;  %v8776_v61 = vrot.slane %v15694_v21, 5  ;;  %v8779_v52 = vrot.slane %v15698_v20, 5 }
 0x42d   : > { %v15823_v60 = vld [vmem:[#allocation2 + $0xa4] sm:$0x1] }
 0x432   : > { %12476 = vmatmul.mubr.msk.bf16.vlgmr.msra.gmra.mrb[0].mxu1 %vm1441_vm9, %v11462_v37  ;;  %v15677_v37 = vld [vmem:[#allocation2 + $0x34] sm:$0xf] }
 0x433   : > { %12508 = vmatpush3.bf16.msra.mxu1 %v7754_v46  ;;  %12479 = vmatprep.mubr.msk.bf16.mxu1 %vm1441_vm9, %v11463_v10  ;;  %v8755_v46 = vrot.slane %v15673_v18, 5  ;;  %v15684_v10 = vld [vmem:[#allocation2 + $0x40] sm:$0xf]  ;;  %v8762_v59 = vrot.slane %v15677_v37, 5 }
 0x434   : > { %13236 = vmatprep.subr.msk.bf16.mxu1 %vm1490_vm0, %v15643_v11  ;;  %v8769_v3 = vrot.slane %v15684_v10, 5 }
 0x435   : > { %v8757_v29 = vrot.slane %v8755_v46, 4  ;;  %v15702_v47 = vsel %vm14004_vm2, %v11561_v8, %v8755_v46  ;;  %v8764_v55 = vrot.slane %v8762_v59, 4  ;;  %v15718_v2 = vsel %vm14004_vm2, %v11562_v0, %v8762_v59  ;;  %v15755_v59 = vld [vmem:[#allocation2 + $0x74] sm:$0x1] }
 0x436   : > { %17134 = vst [vmem:[#allocation8_spill] sm:$0xff] %v15702_v47  ;;  %17136 = vst [vmem:[#allocation10_spill] sm:$0xff] %v15718_v2  ;;  %v8771_v24 = vrot.slane %v8769_v3, 4  ;;  %v8783_v46 = vrot.slane %v15705_v30, 5  ;;  %v11565_v8 = vrot.slane %v8681_v15, 9  ;;  %v11566_v0 = vrot.slane %v8682_v41, 9 }
 0x437   : > { %v15709_v36 = vsel %vm14004_vm2, %v8757_v29, %v8758_v42  ;;  %v15725_v62 = vsel %vm14004_vm2, %v8764_v55, %v8765_v1  ;;  %v8786_v29 = vrot.slane %v15712_v13, 5  ;;  %v17141_v42 = vcombine.low %v15511_v51, %v15519_v28  ;;  %v15793_v15 = vld [vmem:[#allocation2 + $0x94] sm:$0xf]  ;;  %v13301_v47 = vld [vmem:[#allocation2 + $0x78] sm:$0xff]  }
 0x438   : > { %17135 = vst [vmem:[#allocation9_spill] sm:$0xff] %v15709_v36  ;;  %17137 = vst [vmem:[#allocation6_spill] sm:$0xff] %v15725_v62  ;;  %v15770_v51 = vsel %vm14004_vm2, %v11565_v8, %v8783_v46  ;;  %v8793_v28 = vrot.slane %v15732_v25, 5  ;;  %v8800_v8 = vrot.slane %v15755_v59, 5 }
 0x439   : > { %17144 = vst [vmem:[#allocation11_spill] sm:$0xff] %v15770_v51  ;;  %v8055_v51 = vshll.u32 %v15673_v18, 16 }
 0x43a   : > { %12480 = vmatmul.mubr.msk.bf16.gmra.mrb[4].mxu1 %vm1441_vm9, %v11464_v56  ;;  %v11563_v56 = vrot.slane %v8679_v6, 9  ;;  %v8683_v6 = vld [vmem:[#allocation2 + $0x6c] sm:$0xe] }
 0x43b   : > { %12483 = vmatprep.mubr.msk.bf16.mxu1 %vm1441_vm9, %v11465_v39  ;;  %v11567_v41 = vrot.slane %v8683_v6, 9 }
 0x43c   : > { %v15729_v27 = vsel %vm14004_vm2, %v11563_v56, %v8769_v3  ;;  %v8790_v3 = vrot.slane %v15721_v57, 5  ;;  %v8684_v56 = vld [vmem:[#allocation2 + $0x78] sm:$0xe] }
 0x43d   : > { %17138 = vst [vmem:[#allocation7_spill] sm:$0xff] %v15729_v27 }
 0x442   : > { %12484 = vmatmul.mubr.msk.bf16.gmra.mrb[8].mxu1 %vm1441_vm9, %v11466_v45  ;;  %v15734_v45 = vld [vmem:[#allocation2 + $0x70] sm:$0xf] }
 0x443   : > { %12487 = vmatprep.mubr.msk.bf16.mxu1 %vm1441_vm9, %v11467_v4  ;;  %v15740_v4 = vsel %vm14004_vm2, %v8771_v24, %v8772_v40  ;;  %v8797_v1 = vrot.slane %v15734_v45, 5  ;;  %v15774_v24 = vld [vmem:[#allocation2 + $0x80] sm:$0x1]  ;;  %v15776_v40 = vld [vmem:[#allocation2 + $0x88] sm:$0xf] }
 0x444   : > { %17139 = vst [vmem:[#allocation4_spill] sm:$0xff] %v15740_v4  ;;  %v15968_v4 = vrot.slane %v8055_v51, 5 }
 0x445   : > { %v15801_v6 = vsel %vm14004_vm2, %v11567_v41, %v8797_v1 }
 0x446   : > { %17148 = vst [vmem:[#allocation15_spill] sm:$0xff] %v15801_v6  ;;  %v8828_v6 = vrot.slane %v15823_v60, 5 }
 0x44a   : > { %12488 = vmatmul.mubr.msk.bf16.gmra.mrb[12].mxu1 %vm1441_vm9, %v17132_v23  ;;  %v17140_v23 = vcombine.low %v15503_v50, %v15507_v22  ;;  %v15759_v50 = vsel %vm14004_vm2, %v11564_v14, %v8776_v61  ;;  %v8785_v22 = vrot.slane %v8783_v46, 4  ;;  %v8804_v46 = vrot.slane %v15762_v33, 5 }
 0x44b   : > { %12491 = vmatprep.mubr.msk.bf16.mxu1 %vm1441_vm9, %v17133_v31  ;;  %v8778_v31 = vrot.slane %v8776_v61, 4  ;;  %17142 = vst [vmem:[#allocation5_spill] sm:$0xff] %v15759_v50  ;;  %v8792_v61 = vrot.slane %v8790_v3, 4 }
 0x44c   : > { %v15782_v14 = vsel %vm14004_vm2, %v8785_v22, %v8786_v29  ;;  %v11568_v22 = vrot.slane %v8684_v56, 9  ;;  %v8818_v56 = vrot.slane %v15793_v15, 5 }
 0x44d   : > { %v15766_v55 = vsel %vm14004_vm2, %v8778_v31, %v8779_v52  ;;  %17145 = vst [vmem:[#allocation12_spill] sm:$0xff] %v15782_v14  ;;  %v15784_v52 = vld [vmem:[#allocation2 + $0x8c] sm:$0x1]  ;;  %v8799_v31 = vrot.slane %v8797_v1, 4  ;;  %v15797_v29 = vsel %vm14004_vm2, %v8792_v61, %v8793_v28  ;;  %v8807_v28 = vrot.slane %v15774_v24, 5 }
 0x44e   : > { %17143 = vst [vmem:[#allocation3_spill] sm:$0xff] %v15766_v55  ;;  %17147 = vst [vmem:[#allocation14_spill] sm:$0xff] %v15797_v29  ;;  %v8811_v1 = vrot.slane %v15776_v40, 5  ;;  %v8806_v61 = vrot.slane %v8804_v46, 4  ;;  %v8814_v38 = vrot.slane %v15784_v52, 5 }
 0x44f   : > { %v15812_v39 = vsel %vm14004_vm2, %v8799_v31, %v8800_v8  ;;  %v15827_v31 = vsel %vm14004_vm2, %v11568_v22, %v8804_v46  ;;  %v15846_v46 = vld [vmem:[#allocation2 + $0xb8] sm:$0xf]  ;;  %v8820_v22 = vrot.slane %v8818_v56, 4  ;;  %v8689_v29 = vld [vmem:[#allocation2 + $0xb4] sm:$0xe] }
 0x450   : > { %17149 = vst [vmem:[#allocation16_spill] sm:$0xff] %v15812_v39  ;;  %17151 = vst [vmem:[#allocation17_spill] sm:$0xff] %v15827_v31  ;;  %v8813_v8 = vrot.slane %v8811_v1, 4  ;;  %v15834_v39 = vld [vmem:[#allocation2 + $0xac] sm:$0xf]  ;;  %v15838_v44 = vsel %vm14004_vm2, %v8806_v61, %v8807_v28  ;;  %v11571_v28 = vrot.slane %v8687_v34, 9 }
 0x451   : > { %17153 = vst [vmem:[#allocation18_spill] sm:$0xff] %v15838_v44  ;;  %v8688_v61 = vld [vmem:[#allocation2 + $0xa8] sm:$0xe]  ;;  %v15861_v14 = vld [vmem:[#allocation2 + $0xc4] sm:$0xf] }
 0x452   : > { %12492 = vmatmul.mubr.msk.bf16.gmra.mrb[16].mxu1 %vm1441_vm9, %v17140_v23  ;;  %v15790_v23 = vsel %vm14004_vm2, %v11566_v0, %v8790_v3  ;;  %v15804_v0 = vld [vmem:[#allocation2 + $0x98] sm:$0x1]  ;;  %v15806_v3 = vld [vmem:[#allocation2 + $0xa0] sm:$0xf]  ;;  %v15883_v44 = vld [vmem:[#allocation2 + $0xc8] sm:$0x1] }
 0x453   : > { %12495 = vmatprep.mubr.msk.bf16.mxu1 %vm1441_vm9, %v17141_v42  ;;  %17146 = vst [vmem:[#allocation13_spill] sm:$0xff] %v15790_v23  ;;  %v8685_v42 = vld [vmem:[#allocation2 + $0x84] sm:$0xe]  ;;  %v8825_v26 = vrot.slane %v15806_v3, 5  ;;  %v15859_v23 = vld [vmem:[#allocation2 + $0xbc] sm:$0x1] }
 0x454   : > { %v11569_v41 = vrot.slane %v8685_v42, 9  ;;  %v17152_v42 = vcombine.low %v15537_v63, %v15544_v7  ;;  %v15852_v7 = vsel %vm14004_vm2, %v8813_v8, %v8814_v38  ;;  %v15865_v38 = vsel %vm14004_vm2, %v11570_v16, %v8818_v56  ;;  %v8690_v56 = vld [vmem:[#allocation2 + $0xc0] sm:$0xe]  ;;  %17160 = vst [vmem:[#allocation25_spill] sm:$0xff] %v15883_v44 }
 0x455   : > { %17155 = vst [vmem:[#allocation20_spill] sm:$0xff] %v15852_v7  ;;  %17156 = vst [vmem:[#allocation21_spill] sm:$0xff] %v15865_v38  ;;  %v15873_v8 = vsel %vm14004_vm2, %v11571_v28, %v8825_v26  ;;  %v8839_v16 = vrot.slane %v15846_v46, 5  ;;  %v11573_v28 = vrot.slane %v8689_v29, 9  ;;  %v8842_v63 = vrot.slane %v15859_v23, 5 }
 0x456   : > { %v15842_v35 = vsel %vm14004_vm2, %v11569_v41, %v8811_v1  ;;  %v8827_v41 = vrot.slane %v8825_v26, 4  ;;  %17158 = vst [vmem:[#allocation23_spill] sm:$0xff] %v15873_v8  ;;  %v8832_v1 = vrot.slane %v15834_v39, 5  ;;  %v13298_v8 = vld [vmem:[#allocation2 + $0x54] sm:$0xff]  }
 0x457   : > { %17154 = vst [vmem:[#allocation19_spill] sm:$0xff] %v15842_v35  ;;  %v11572_v35 = vrot.slane %v8688_v61, 9  ;;  %v8841_v31 = vrot.slane %v8839_v16, 4  ;;  %v15904_v29 = vsel %vm14004_vm2, %v11573_v28, %v8839_v16  ;;  %v13295_v28 = vld [vmem:[#allocation2 + $0x30] sm:$0xff]  }
 0x458   : > { %v15880_v7 = vsel %vm14004_vm2, %v8827_v41, %v8828_v6  ;;  %v8834_v26 = vrot.slane %v8832_v1, 4  ;;  %v17161_v6 = vcombine.low %v15554_v43, %v15558_v48  ;;  %17164 = vst [vmem:[#allocation28_spill] sm:$0xff] %v15904_v29 }
 0x459   : > { %17159 = vst [vmem:[#allocation24_spill] sm:$0xff] %v15880_v7  ;;  %v15896_v61 = vsel %vm14004_vm2, %v11572_v35, %v8832_v1  ;;  %v17165_v7 = vcombine.low %v15566_v9, %v15570_v17  ;;  %v15914_v48 = vsel %vm14004_vm2, %v8841_v31, %v8842_v63  ;;  %v8849_v1 = vrot.slane %v15883_v44, 5  ;;  %v13293_v63 = vld [vmem:[#allocation2 + $0x18] sm:$0xff]   ;;  %v10234_v44 = vld [vmem:[#allocation2 + $0x54] sm:$0xe] }
 0x45a   : > { %12496 = vmatmul.mubr.msk.bf16.gmra.mrb[20].mxu1 %vm1441_vm9, %v17150_v5  ;;  %v8821_v5 = vrot.slane %v15804_v0, 5  ;;  %17162 = vst [vmem:[#allocation26_spill] sm:$0xff] %v15896_v61  ;;  %17166 = vst [vmem:[#allocation29_spill] sm:$0xff] %v15914_v48  ;;  %v17169_v31 = vcombine.low %v15578_v12, %v15582_v53  ;;  %v15943_v12 = vld [vmem:[#allocation2 + $0x10] sm:$0xf]  ;;  %v13297_v61 = vld [vmem:[#allocation2 + $0x48] sm:$0xff]  }
 0x45b   : > { %12499 = vmatprep.mubr.msk.bf16.mxu1 %vm1441_vm9, %v17152_v42  ;;  %v15854_v42 = vld [vmem:[#allocation2 + $0xb0] sm:$0x1]  ;;  %v7949_v53 = vld [vmem:[#allocation2 + $0xc] sm:$0xf]  ;;  %v7955_v48 = vld [vmem:[#allocation2 + $0x24] sm:$0xf] }
 0x45c   : > { %v15869_v34 = vsel %vm14004_vm2, %v8820_v22, %v8821_v5  ;;  %v8835_v22 = vrot.slane %v15854_v42, 5  ;;  %v11574_v5 = vrot.slane %v8690_v56, 9 }
 0x45d   : > { %17157 = vst [vmem:[#allocation22_spill] sm:$0xff] %v15869_v34  ;;  %v8846_v34 = vrot.slane %v15861_v14, 5 }
 0x45e   : > { %v15900_v41 = vsel %vm14004_vm2, %v8834_v26, %v8835_v22  ;;  %v15939_v26 = vld [vmem:[%s16992_s4 + $0xa] sm:$0x3]  ;;  %v8007_v22 = vshll.u32 %v15943_v12, 16 }
 0x45f   : > { %17163 = vst [vmem:[#allocation27_spill] sm:$0xff] %v15900_v41  ;;  %v8848_v35 = vrot.slane %v8846_v34, 4  ;;  %v15921_v56 = vsel %vm14004_vm2, %v11574_v5, %v8846_v34  ;;  %v8480_v34 = vsel %vm1490_vm0, %v15643_v11, 0  ;;  %v13294_v5 = vld [vmem:[#allocation2 + $0x24] sm:$0xff]   ;;  %v8011_v11 = vshrl.u32 %v15943_v12, 16 }
 0x460   : > { %17167 = vst [vmem:[#allocation30_spill] sm:$0xff] %v15921_v56 }
 0x461   : > { %v15925_v9 = vsel %vm14004_vm2, %v8848_v35, %v8849_v1  ;;  %v8001_v35 = vshll.u32 %v7949_v53, 16  ;;  %v7952_v1 = vld [vmem:[#allocation2 + $0x18] sm:$0xf] }
 0x462   : > { %12500 = vmatmul.mubr.msk.bf16.gmra.mrb[24].mxu1 %vm1441_vm9, %v17161_v6  ;;  %17168 = vst [vmem:[#allocation31_spill] sm:$0xff] %v15925_v9  ;;  %v7998_v6 = vshrl.u32 %v7949_v53, 16  ;;  %v8025_v17 = vshll.u32 %v7952_v1, 16  ;;  %v15953_v9 = vld [vmem:[#allocation2 + $0x14] sm:$0x1] }
 0x463   : > { %12503 = vmatprep.mubr.msk.bf16.mxu1 %vm1441_vm9, %v17165_v7  ;;  %v13292_v7 = vld [vmem:[#allocation2 + $0xc] sm:$0xff]   ;;  %v8003_v43 = vrot.slane %v8001_v35, 5  ;;  %17171 = vst [vmem:[#allocation33_spill] sm:$0xff] %v15953_v9  ;;  %v8046_v35 = vshrl.u32 %v7955_v48, 16 }
 0x464   : > { %v8000_v16 = vrot.slane %v7998_v6, 4 }
 0x465   : > { %v8048_v50 = vrot.slane %v8046_v35, 4 }
 0x466   : > { %v8004_v38 = vor.u32 %v8003_v43, %v8000_v16 }
 0x468   : > { %v8005_v43 = vrot.slane %v8004_v38, 4  ;;  %v7961_v38 = vld [vmem:[#allocation2 + $0x3c] sm:$0xf] }
 0x46a   : > { %12504 = vmatmul.mubr.msk.bf16.gmra.mrb[28].mxu1 %vm1441_vm9, %v17169_v31  ;;  %v15950_v31 = vld [vmem:[#allocation2 + $0x1c] sm:$0xf] }
 0x46b   : > { %12509 = vmatprep.mubr.msk.bf16.mxu1 %vm1441_vm9, %v13292_v7  ;;  %v13296_v7 = vld [vmem:[#allocation2 + $0x3c] sm:$0xff]   ;;  %17170 = vst [vmem:[#allocation32_spill] sm:$0xff] %v15950_v31  ;;  %v8031_v56 = vshll.u32 %v15950_v31, 16  ;;  %v8035_v53 = vshrl.u32 %v15950_v31, 16 }
 0x46d   : > { %v8037_v6 = vrot.slane %v8035_v53, 4 }
 0x472   : > { %12510 = vmatmul.mubr.msk.bf16.vlgmr.msra.gmra.mrb[0].mxu1 %vm1441_vm9, %v13293_v63  ;;  %v8009_v63 = vrot.slane %v8007_v22, 5  ;;  %v8017_v22 = vshll.u32 %v15953_v9, 16 }
 0x473   : > { %12542 = vmatpush3.bf16.msra.mxu1 %v8480_v34  ;;  %12513 = vmatprep.mubr.msk.bf16.mxu1 %vm1441_vm9, %v13294_v5  ;;  %v8013_v34 = vrot.slane %v8011_v11, 4  ;;  %v8022_v5 = vshrl.u32 %v7952_v1, 16  ;;  %v15958_v11 = vld [vmem:[#allocation2 + $0x20] sm:$0x1]  ;;  %v15960_v1 = vrot.slane %v8031_v56, 5 }
 0x474   : > { %13237 = vmatprep.subr.msk.bf16.mxu1 %vm1490_vm0, %v15939_v26  ;;  %17172 = vst [vmem:[#allocation34_spill] sm:$0xff] %v15958_v11  ;;  %v8041_v16 = vshll.u32 %v15958_v11, 16  ;;  %v8019_v55 = vrot.slane %v8017_v22, 5 }
 0x475   : > { %v8014_v29 = vor.u32 %v8013_v34, %v8009_v63  ;;  %v8024_v41 = vrot.slane %v8022_v5, 4  ;;  %v8059_v34 = vshrl.u32 %v15673_v18, 16  ;;  %v8038_v56 = vor.u32 %v8037_v6, %v15960_v1  ;;  %v13300_v6 = vld [vmem:[#allocation2 + $0x6c] sm:$0xff]  }
 0x476   : > { %v8043_v22 = vrot.slane %v8041_v16, 5  ;;  %v8097_v16 = vshll.u32 %v7961_v38, 16 }
 0x477   : > { %v8039_v35 = vrot.slane %v8038_v56, 4  ;;  %v8107_v56 = vshrl.u32 %v15684_v10, 16 }
 0x47a   : > { %12514 = vmatmul.mubr.msk.bf16.gmra.mrb[4].mxu1 %vm1441_vm9, %v13295_v28  ;;  %v8027_v28 = vrot.slane %v8025_v17, 5  ;;  %v8015_v17 = vrot.slane %v8014_v29, 4  ;;  %v13299_v29 = vld [vmem:[#allocation2 + $0x60] sm:$0xff]  }
 0x47b   : > { %12517 = vmatprep.mubr.msk.bf16.mxu1 %vm1441_vm9, %v13296_v7  ;;  %v8049_v7 = vshll.u32 %v7955_v48, 16  ;;  %v8061_v48 = vrot.slane %v8059_v34, 4 }
 0x47c   : > { %v8028_v5 = vor.u32 %v8027_v28, %v8024_v41  ;;  %v8020_v27 = vsel %vm13495_vm12, %v8015_v17, %v8019_v55  ;;  %v8083_v41 = vshrl.u32 %v15677_v37, 16  ;;  %v8010_v28 = vsel %vm13495_vm12, %v8005_v43, %v8009_v63 }
 0x47d   : > { %v8051_v53 = vrot.slane %v8049_v7, 5  ;;  %v8065_v7 = vshll.u32 %v15675_v54, 16  ;;  %v15978_v55 = vcombine.low %v8010_v28, %v8020_v27  ;;  %v8062_v17 = vor.u32 %v8061_v48, %v15968_v4  ;;  %v7964_v27 = vld [vmem:[#allocation2 + $0x48] sm:$0xf] }
 0x47e   : > { %v8029_v18 = vrot.slane %v8028_v5, 4  ;;  %v8103_v54 = vshll.u32 %v15684_v10, 16  ;;  %v8131_v48 = vshrl.u32 %v15694_v21, 16  ;;  %v8099_v10 = vrot.slane %v8097_v16, 5  ;;  %v7970_v16 = vld [vmem:[#allocation2 + $0x60] sm:$0xf] }
 0x47f   : > { %v8052_v51 = vor.u32 %v8051_v53, %v8048_v50  ;;  %v8085_v50 = vrot.slane %v8083_v41, 4  ;;  %v8127_v53 = vshll.u32 %v15694_v21, 16  ;;  %v8067_v28 = vrot.slane %v8065_v7, 5 }
 0x480   : > { %v8034_v63 = vsel %vm13495_vm12, %v8029_v18, %v15960_v1  ;;  %v8063_v1 = vrot.slane %v8062_v17, 4  ;;  %v8118_v2 = vshrl.u32 %v7964_v27, 16  ;;  %v8121_v36 = vshll.u32 %v7964_v27, 16 }
 0x481   : > { %v15995_v11 = vrot.slane %v8103_v54, 5  ;;  %v8109_v21 = vrot.slane %v8107_v56, 4  ;;  %v15997_v31 = vrot.slane %v8127_v53, 5  ;;  %v8113_v54 = vshll.u32 %v15692_v32, 16 }
 0x482   : > { %12518 = vmatmul.mubr.msk.bf16.gmra.mrb[8].mxu1 %vm1441_vm9, %v13297_v61  ;;  %v7958_v61 = vld [vmem:[#allocation2 + $0x30] sm:$0xf]  ;;  %v8120_v56 = vrot.slane %v8118_v2, 4 }
 0x483   : > { %12521 = vmatprep.mubr.msk.bf16.mxu1 %vm1441_vm9, %v13298_v8  ;;  %v8079_v8 = vshll.u32 %v15677_v37, 16  ;;  %v8070_v34 = vshrl.u32 %v7958_v61, 16  ;;  %v8073_v5 = vshll.u32 %v7958_v61, 16  ;;  %v8094_v37 = vshrl.u32 %v7961_v38, 16  ;;  %v7967_v38 = vld [vmem:[#allocation2 + $0x54] sm:$0xf] }
 0x484   : > { %v8044_v61 = vsel %vm13495_vm12, %v8039_v35, %v8043_v22  ;;  %v8133_v22 = vrot.slane %v8131_v48, 4  ;;  %v13302_v35 = vld [vmem:[#allocation2 + $0x84] sm:$0xff]   ;;  %v8142_v7 = vshrl.u32 %v7967_v38, 16 }
 0x485   : > { %v15985_v43 = vrot.slane %v8079_v8, 5  ;;  %v8075_v18 = vrot.slane %v8073_v5, 5  ;;  %v8089_v8 = vshll.u32 %v15690_v19, 16  ;;  %v8096_v41 = vrot.slane %v8094_v37, 4 }
 0x486   : > { %v8151_v37 = vshll.u32 %v15705_v30, 16  ;;  %v8134_v48 = vor.u32 %v8133_v22, %v15997_v31 }
 0x487   : > { %v8086_v62 = vor.u32 %v8085_v50, %v15985_v43  ;;  %v8091_v5 = vrot.slane %v8089_v8, 5  ;;  %v8155_v50 = vshrl.u32 %v15705_v30, 16  ;;  %v8100_v53 = vor.u32 %v8099_v10, %v8096_v41  ;;  %v13303_v41 = vld [vmem:[#allocation2 + $0x90] sm:$0xff]  }
 0x488   : > { %v8169_v30 = vshll.u32 %v7970_v16, 16  ;;  %v8137_v8 = vshll.u32 %v15698_v20, 16 }
 0x489   : > { %v8087_v27 = vrot.slane %v8086_v62, 4  ;;  %v8179_v62 = vshrl.u32 %v15721_v57, 16 }
 0x48a   : > { %12522 = vmatmul.mubr.msk.bf16.gmra.mrb[12].mxu1 %vm1441_vm9, %v13299_v29  ;;  %v8053_v29 = vrot.slane %v8052_v51, 4  ;;  %v15999_v51 = vcombine.low %v8034_v63, %v8044_v61  ;;  %v8068_v63 = vsel %vm13495_vm12, %v8063_v1, %v8067_v28  ;;  %v8144_v61 = vrot.slane %v8142_v7, 4  ;;  %v7973_v1 = vld [vmem:[#allocation2 + $0x6c] sm:$0xf] }
 0x48b   : > { %12525 = vmatprep.mubr.msk.bf16.mxu1 %vm1441_vm9, %v13300_v6  ;;  %v8072_v6 = vrot.slane %v8070_v34, 4  ;;  %v8145_v34 = vshll.u32 %v7967_v38, 16  ;;  %v16016_v38 = vrot.slane %v8151_v37, 5  ;;  %v8157_v28 = vrot.slane %v8155_v50, 4 }
 0x48c   : > { %v8058_v19 = vsel %vm13495_vm12, %v8053_v29, %v15968_v4  ;;  %v8123_v4 = vrot.slane %v8121_v36, 5  ;;  %v8175_v36 = vshll.u32 %v15721_v57, 16  ;;  %v8092_v10 = vsel %vm13495_vm12, %v8087_v27, %v8091_v5 }
 0x48d   : > { %v8076_v17 = vor.u32 %v8075_v18, %v8072_v6  ;;  %v8147_v29 = vrot.slane %v8145_v34, 5  ;;  %v8166_v6 = vshrl.u32 %v7970_v16, 16  ;;  %v16013_v18 = vcombine.low %v8058_v19, %v8068_v63  ;;  %v13304_v19 = vld [vmem:[#allocation2 + $0x9c] sm:$0xff]  }
 0x48e   : > { %v8124_v2 = vor.u32 %v8123_v4, %v8120_v56  ;;  %v8135_v7 = vrot.slane %v8134_v48, 4  ;;  %v8171_v37 = vrot.slane %v8169_v30, 5  ;;  %v8158_v50 = vor.u32 %v8157_v28, %v16016_v38 }
 0x48f   : > { %v8077_v32 = vrot.slane %v8076_v17, 4  ;;  %v8148_v20 = vor.u32 %v8147_v29, %v8144_v61  ;;  %v8168_v34 = vrot.slane %v8166_v6, 4  ;;  %v8139_v17 = vrot.slane %v8137_v8, 5  ;;  %v7976_v6 = vld [vmem:[#allocation2 + $0x78] sm:$0xf] }
 0x490   : > { %v8190_v16 = vshrl.u32 %v7973_v1, 16  ;;  %v8193_v57 = vshll.u32 %v7973_v1, 16  ;;  %v8125_v63 = vrot.slane %v8124_v2, 4  ;;  %v8161_v5 = vshll.u32 %v15712_v13, 16  ;;  %v16060_v1 = vld [vmem:[#allocation2 + $0x20] sm:$0x1] }
 0x491   : > { %v16026_v56 = vrot.slane %v8175_v36, 5  ;;  %v8082_v4 = vsel %vm13495_vm12, %v8077_v32, %v15985_v43  ;;  %v8140_v61 = vsel %vm13495_vm12, %v8135_v7, %v8139_v17  ;;  %v16039_v13 = vrot.slane %v8148_v20, 4  ;;  %17174 = vst [vmem:[#allocation36_spill] sm:$0xff] %v16060_v1  ;;  %v13306_v7 = vld [vmem:[#allocation2 + $0xb4] sm:$0xff]  }
 0x492   : > { %12526 = vmatmul.mubr.msk.bf16.gmra.mrb[16].mxu1 %vm1441_vm9, %v13301_v47  ;;  %v8110_v47 = vor.u32 %v8109_v21, %v15995_v11  ;;  %v8101_v21 = vrot.slane %v8100_v53, 4  ;;  %v8199_v53 = vshll.u32 %v15734_v45, 16  ;;  %v16035_v48 = vcombine.low %v8082_v4, %v8092_v10 }
 0x493   : > { %12529 = vmatprep.mubr.msk.bf16.mxu1 %vm1441_vm9, %v13302_v35  ;;  %v8115_v35 = vrot.slane %v8113_v54, 5  ;;  %v8181_v54 = vrot.slane %v8179_v62, 4  ;;  %v8172_v29 = vor.u32 %v8171_v37, %v8168_v34  ;;  %v16044_v30 = vrot.slane %v8158_v50, 4  ;;  %v16077_v37 = vld [vmem:[#allocation2 + $0x28] sm:$0xf] }
 0x494   : > { %v8111_v22 = vrot.slane %v8110_v47, 4  ;;  %v8203_v47 = vshrl.u32 %v15734_v45, 16  ;;  %v8106_v43 = vsel %vm13495_vm12, %v8101_v21, %v15995_v11  ;;  %v16046_v8 = vrot.slane %v8190_v16, 4  ;;  %v16050_v45 = vld [vmem:[#allocation2 + $0x1c] sm:$0xf]  ;;  %17176 = vst [vmem:[#allocation38_spill] sm:$0xff] %v16077_v37 }
 0x495   : > { %v16048_v28 = vrot.slane %v8193_v57, 5  ;;  %17173 = vst [vmem:[#allocation35_spill] sm:$0xff] %v16050_v45  ;;  %v8130_v2 = vsel %vm13495_vm12, %v8125_v63, %v15997_v31  ;;  %v16057_v36 = vrot.slane %v8161_v5, 5  ;;  %v8182_v62 = vor.u32 %v8181_v54, %v16026_v56  ;;  %v10229_v11 = vld [vmem:[#allocation2 + $0x18] sm:$0xe] }
 0x496   : > { %v8116_v27 = vsel %vm13495_vm12, %v8111_v22, %v8115_v35  ;;  %v16062_v10 = vcombine.low %v8130_v2, %v8140_v61  ;;  %v16065_v22 = vrot.slane %v8199_v53, 5  ;;  %v16067_v35 = vrot.slane %v8203_v47, 4  ;;  %v16088_v5 = vld [vmem:[#allocation2 + $0x2c] sm:$0x1]  ;;  %v10231_v54 = vld [vmem:[#allocation2 + $0x30] sm:$0xe] }
 0x497   : > { %v16052_v32 = vcombine.low %v8106_v43, %v8116_v27  ;;  %v16075_v20 = vrot.slane %v8172_v29, 4  ;;  %v8214_v34 = vshrl.u32 %v7976_v6, 16  ;;  %v10295_v17 = vrot.slane %v16050_v45, 5  ;;  %17177 = vst [vmem:[#allocation39_spill] sm:$0xff] %v16088_v5  ;;  %v16093_v27 = vld [vmem:[#allocation2 + $0x38] sm:$0x1] }
 0x498   : > { %v8217_v63 = vshll.u32 %v7976_v6, 16  ;;  %v16091_v4 = vrot.slane %v8182_v62, 4  ;;  %17178 = vst [vmem:[#allocation40_spill] sm:$0xff] %v16093_v27  ;;  %v11674_v53 = vrot.slane %v10229_v11, 9  ;;  %v10298_v61 = vrot.slane %v16060_v1, 5  ;;  %v13307_v43 = vld [vmem:[#allocation2 + $0xc0] sm:$0xff]  }
 0x499   : > { %v10297_v47 = vrot.slane %v10295_v17, 4  ;;  %v10230_v29 = vld [vmem:[#allocation2 + $0x24] sm:$0xe]  ;;  %v16103_v62 = vrot.slane %v8214_v34, 4  ;;  %v16105_v57 = vld [vmem:[#allocation2 + $0x40] sm:$0xf] }
 0x49a   : > { %12530 = vmatmul.mubr.msk.bf16.gmra.mrb[20].mxu1 %vm1441_vm9, %v13303_v41  ;;  %v13305_v41 = vld [vmem:[#allocation2 + $0xa8] sm:$0xff]   ;;  %v16107_v11 = vld [vmem:[#allocation2 + $0x44] sm:$0x1]  ;;  %v16111_v21 = vsel %vm14004_vm2, %v11674_v53, %v10295_v17  ;;  %v16118_v16 = vrot.slane %v8217_v63, 5  ;;  %v16120_v6 = vld [vmem:[#allocation2 + $0x50] sm:$0x1] }
 0x49b   : > { %12533 = vmatprep.mubr.msk.bf16.mxu1 %vm1441_vm9, %v13304_v19  ;;  %v16069_v19 = vld [vmem:[#allocation2 + $0x34] sm:$0xf]  ;;  %17180 = vst [vmem:[#allocation42_spill] sm:$0xff] %v16107_v11  ;;  %17181 = vst [vmem:[#allocation43_spill] sm:$0xff] %v16111_v21  ;;  %v16115_v31 = vsel %vm14004_vm2, %v10297_v47, %v10298_v61  ;;  %v11675_v2 = vrot.slane %v10230_v29, 9  ;;  %v11676_v1 = vrot.slane %v10231_v54, 9 }
 0x49c   : > { %17175 = vst [vmem:[#allocation37_spill] sm:$0xff] %v16069_v19  ;;  %17182 = vst [vmem:[#allocation44_spill] sm:$0xff] %v16115_v31  ;;  %v10309_v50 = vrot.slane %v16069_v19, 5  ;;  %v16126_v17 = vsel %vm1490_vm0, %v15939_v26, 0  ;;  %v10305_v47 = vrot.slane %v16088_v5, 5  ;;  %v10312_v26 = vrot.slane %v16093_v27, 5 }
 0x49d   : > { %17183 = vst [vmem:[#allocation45_spill] sm:$0xff] %v16120_v6  ;;  %v10233_v19 = vld [vmem:[#allocation2 + $0x48] sm:$0xe]  ;;  %v16129_v45 = vld [vmem:[#allocation2 + $0x58] sm:$0xf]  ;;  %v10316_v29 = vrot.slane %v16105_v57, 5 }
 0x49e   : > { %v10311_v61 = vrot.slane %v10309_v50, 4  ;;  %17184 = vst [vmem:[#allocation46_spill] sm:$0xff] %v16129_v45  ;;  %v16131_v63 = vld [vmem:[#allocation2 + $0x64] sm:$0xf]  ;;  %v16139_v54 = vsel %vm14004_vm2, %v11676_v1, %v10309_v50  ;;  %v10319_v21 = vrot.slane %v16107_v11, 5  ;;  %v10326_v50 = vrot.slane %v16120_v6, 5 }
 0x49f   : > { %17186 = vst [vmem:[#allocation48_spill] sm:$0xff] %v16139_v54  ;;  %v16152_v1 = vld [vmem:[#allocation2 + $0x68] sm:$0x1]  ;;  %v16197_v27 = vld [vmem:[#allocation2 + $0x94] sm:$0xf] }
 0x4a0   : > { %17189 = vst [vmem:[#allocation51_spill] sm:$0xff] %v16152_v1  ;;  %v10340_v6 = vrot.slane %v16152_v1, 5  ;;  %17199 = vst [vmem:[#allocation61_spill] sm:$0xff] %v16197_v27 }
 0x4a2   : > { %12534 = vmatmul.mubr.msk.bf16.gmra.mrb[24].mxu1 %vm1441_vm9, %v13305_v41  ;;  %v16100_v41 = vld [vmem:[#allocation2 + $0x4c] sm:$0xf] }
 0x4a3   : > { %12537 = vmatprep.mubr.msk.bf16.mxu1 %vm1441_vm9, %v13306_v7  ;;  %17179 = vst [vmem:[#allocation41_spill] sm:$0xff] %v16100_v41  ;;  %v10302_v7 = vrot.slane %v16077_v37, 5  ;;  %v10232_v37 = vld [vmem:[#allocation2 + $0x3c] sm:$0xe]  ;;  %v10323_v5 = vrot.slane %v16100_v41, 5 }
 0x4a4   : > { %v11677_v31 = vrot.slane %v10232_v37, 9  ;;  %v11678_v37 = vrot.slane %v10233_v19, 9 }
 0x4a5   : > { %v10304_v53 = vrot.slane %v10302_v7, 4  ;;  %v16135_v9 = vsel %vm14004_vm2, %v11675_v2, %v10302_v7  ;;  %v16150_v2 = vld [vmem:[#allocation2 + $0x5c] sm:$0x1]  ;;  %v16158_v7 = vsel %vm14004_vm2, %v10311_v61, %v10312_v26  ;;  %v10325_v41 = vrot.slane %v10323_v5, 4  ;;  %v16171_v61 = vld [vmem:[#allocation2 + $0x70] sm:$0xf] }
 0x4a6   : > { %17185 = vst [vmem:[#allocation47_spill] sm:$0xff] %v16135_v9  ;;  %17188 = vst [vmem:[#allocation50_spill] sm:$0xff] %v16150_v2  ;;  %v16168_v11 = vsel %vm14004_vm2, %v11677_v31, %v10316_v29  ;;  %v11679_v26 = vrot.slane %v10234_v44, 9  ;;  %v16182_v31 = vld [vmem:[#allocation2 + $0x74] sm:$0x1] }
 0x4a7   : > { %v16145_v34 = vsel %vm14004_vm2, %v10304_v53, %v10305_v47  ;;  %17190 = vst [vmem:[#allocation52_spill] sm:$0xff] %v16158_v7  ;;  %v10318_v53 = vrot.slane %v10316_v29, 4  ;;  %v16162_v47 = vld [vmem:[#allocation2 + $0x7c] sm:$0xf]  ;;  %17192 = vst [vmem:[#allocation54_spill] sm:$0xff] %v16168_v11  ;;  %v16190_v9 = vsel %vm14004_vm2, %v10325_v41, %v10326_v50 }
 0x4a8   : > { %17187 = vst [vmem:[#allocation49_spill] sm:$0xff] %v16145_v34  ;;  %17191 = vst [vmem:[#allocation53_spill] sm:$0xff] %v16162_v47  ;;  %v10235_v34 = vld [vmem:[#allocation2 + $0x60] sm:$0xe]  ;;  %v10236_v7 = vld [vmem:[#allocation2 + $0x6c] sm:$0xe] }
 0x4a9   : > { %17193 = vst [vmem:[#allocation55_spill] sm:$0xff] %v16171_v61  ;;  %v16175_v19 = vsel %vm14004_vm2, %v10318_v53, %v10319_v21  ;;  %17196 = vst [vmem:[#allocation58_spill] sm:$0xff] %v16182_v31  ;;  %v16184_v29 = vld [vmem:[#allocation2 + $0x80] sm:$0x1]  ;;  %v10333_v21 = vrot.slane %v16150_v2, 5  ;;  %v11681_v50 = vrot.slane %v10236_v7, 9 }
 0x4aa   : > { %12538 = vmatmul.mubr.msk.bf16.gmra.mrb[28].mxu1 %vm1441_vm9, %v13307_v43  ;;  %17194 = vst [vmem:[#allocation56_spill] sm:$0xff] %v16175_v19  ;;  %v10330_v43 = vrot.slane %v16129_v45, 5  ;;  %17197 = vst [vmem:[#allocation59_spill] sm:$0xff] %v16184_v29  ;;  %v10237_v45 = vld [vmem:[#allocation2 + $0x78] sm:$0xe]  ;;  %v10344_v19 = vrot.slane %v16171_v61, 5 }
 0x4ab   : > { %12543 = vmatprep.mubr.msk.bf16.mxu1 %vm1441_vm9, %v15978_v55  ;;  %v16179_v55 = vsel %vm14004_vm2, %v11678_v37, %v10323_v5  ;;  %17198 = vst [vmem:[#allocation60_spill] sm:$0xff] %v16190_v9  ;;  %v10337_v5 = vrot.slane %v16131_v63, 5  ;;  %v11680_v37 = vrot.slane %v10235_v34, 9  ;;  %v16204_v11 = vld [vmem:[#allocation2 + $0x88] sm:$0xf]  ;;  %v10347_v9 = vrot.slane %v16182_v31, 5 }
 0x4ac   : > { %17195 = vst [vmem:[#allocation57_spill] sm:$0xff] %v16179_v55  ;;  %v10332_v53 = vrot.slane %v10330_v43, 4  ;;  %v16201_v54 = vsel %vm14004_vm2, %v11679_v26, %v10330_v43  ;;  %v16206_v2 = vld [vmem:[#allocation2 + $0x8c] sm:$0x1]  ;;  %v10351_v43 = vrot.slane %v16162_v47, 5  ;;  %v17206_v31 = vshll.u32 %v15762_v33, 16 }
 0x4ad   : > { %17200 = vst [vmem:[#allocation62_spill] sm:$0xff] %v16201_v54  ;;  %v10339_v41 = vrot.slane %v10337_v5, 4  ;;  %17201 = vst [vmem:[#allocation63_spill] sm:$0xff] %v16206_v2  ;;  %v16214_v44 = vsel %vm14004_vm2, %v11680_v37, %v10337_v5  ;;  %v16221_v7 = vld [vmem:[%s16992_s4 + $0xc] sm:$0x3]  ;;  %v10346_v5 = vrot.slane %v10344_v19, 4 }
 0x4ae   : > { %v16210_v34 = vsel %vm14004_vm2, %v10332_v53, %v10333_v21  ;;  %17203 = vst [vmem:[#allocation65_spill] sm:$0xff] %v16214_v44  ;;  %v16223_v26 = vld [vmem:[#allocation2 + $0x98] sm:$0x1]  ;;  %v11682_v53 = vrot.slane %v10237_v45, 9  ;;  %v10238_v37 = vld [vmem:[#allocation2 + $0x84] sm:$0xe] }
 0x4af   : > { %17202 = vst [vmem:[#allocation64_spill] sm:$0xff] %v16210_v34  ;;  %17204 = vst [vmem:[#allocation66_spill] sm:$0xff] %v16223_v26  ;;  %v16229_v21 = vsel %vm14004_vm2, %v10339_v41, %v10340_v6  ;;  %v16235_v1 = vrot.slane %v17206_v31, 5  ;;  %v10353_v61 = vrot.slane %v10351_v43, 4  ;;  %v10354_v55 = vrot.slane %v16184_v29, 5  ;;  %v17300_v49 = vld [vmem:[#allocation54_spill] sm:$0xff] }
 0x4b0   : > { %17205 = vst [vmem:[#allocation67_spill] sm:$0xff] %v16229_v21  ;;  %v10239_v34 = vld [vmem:[#allocation2 + $0x90] sm:$0xe]  ;;  %v16243_v45 = vld [vmem:[#allocation2 + $0xa0] sm:$0xf]  ;;  %v16253_v31 = vsel %vm14004_vm2, %v10346_v5, %v10347_v9  ;;  %v16257_v41 = vsel %vm14004_vm2, %v11682_v53, %v10351_v43  ;;  %v11683_v9 = vrot.slane %v10238_v37, 9 }
 0x4b1   : > { %17207 = vst [vmem:[#allocation68_spill] sm:$0xff] %v16243_v45  ;;  %v16245_v6 = vld [vmem:[#allocation2 + $0xac] sm:$0xf]  ;;  %17210 = vst [vmem:[#allocation71_spill] sm:$0xff] %v16253_v31  ;;  %v10240_v5 = vld [vmem:[#allocation2 + $0x9c] sm:$0xe] }
 0x4b2   : > { %12544 = vmatmul.mubr.msk.bf16.vlgmr.msra.gmra.mrb[0].mxu1 %vm1441_vm9, %v15999_v51  ;;  %17208 = vst [vmem:[#allocation69_spill] sm:$0xff] %v16245_v6  ;;  %v16249_v51 = vsel %vm14004_vm2, %v11681_v50, %v10344_v19  ;;  %17211 = vst [vmem:[#allocation72_spill] sm:$0xff] %v16257_v41  ;;  %v16268_v19 = vsel %vm14004_vm2, %v10353_v61, %v10354_v55  ;;  %v10365_v50 = vrot.slane %v16197_v27, 5  ;;  %v9541_v43 = vld [vmem:[#allocation2 + $0xb0] sm:$0x1]  ;;  %v10361_v44 = vrot.slane %v16206_v2, 5 }
 0x4b3   : > { %12576 = vmatpush3.bf16.msra.mxu1 %v16126_v17  ;;  %12547 = vmatprep.mubr.msk.bf16.mxu1 %vm1441_vm9, %v16013_v18  ;;  %17209 = vst [vmem:[#allocation70_spill] sm:$0xff] %v16249_v51  ;;  %v10358_v17 = vrot.slane %v16204_v11, 5  ;;  %v16262_v18 = vld [vmem:[#allocation2 + $0xa4] sm:$0x1]  ;;  %17212 = vst [vmem:[#allocation73_spill] sm:$0xff] %v16268_v19  ;;  %v11684_v54 = vrot.slane %v10239_v34, 9 }
 0x4b4   : > { %13238 = vmatprep.subr.msk.bf16.mxu1 %vm1490_vm0, %v16221_v7  ;;  %v10367_v47 = vrot.slane %v10365_v50, 4  ;;  %v10368_v61 = vrot.slane %v16223_v26, 5  ;;  %v10372_v55 = vrot.slane %v16243_v45, 5  ;;  %v10241_v37 = vld [vmem:[#allocation2 + $0xa8] sm:$0xe]  ;;  %v11685_v34 = vrot.slane %v10240_v5, 9 }
 0x4b5   : > { %v10360_v21 = vrot.slane %v10358_v17, 4  ;;  %v16276_v29 = vsel %vm14004_vm2, %v11683_v9, %v10358_v17  ;;  %v16280_v31 = vld [vmem:[#allocation2 + $0xb8] sm:$0xf]  ;;  %v16288_v53 = vsel %vm14004_vm2, %v11684_v54, %v10365_v50  ;;  %v10379_v17 = vrot.slane %v16245_v6, 5  ;;  %v7979_v9 = vld [vmem:[#allocation2 + $0x84] sm:$0xf] }
 0x4b6   : > { %17214 = vst [vmem:[#allocation75_spill] sm:$0xff] %v16288_v53  ;;  %v9544_v19 = vld [vmem:[#allocation2 + $0xbc] sm:$0x1]  ;;  %v16291_v41 = vld [vmem:[#allocation2 + $0xc4] sm:$0xf]  ;;  %v16297_v45 = vsel %vm14004_vm2, %v10367_v47, %v10368_v61  ;;  %v11686_v50 = vrot.slane %v10241_v37, 9  ;;  %v16308_v47 = vsel %vm14004_vm2, %v11685_v34, %v10372_v55 }
 0x4b7   : > { %v16284_v51 = vsel %vm14004_vm2, %v10360_v21, %v10361_v44  ;;  %17215 = vst [vmem:[#allocation76_spill] sm:$0xff] %v16297_v45  ;;  %v10374_v44 = vrot.slane %v10372_v55, 4  ;;  %v10375_v21 = vrot.slane %v16262_v18, 5  ;;  %v10381_v5 = vrot.slane %v10379_v17, 4  ;;  %v10242_v2 = vld [vmem:[#allocation2 + $0xb4] sm:$0xe] }
 0x4b8   : > { %17213 = vst [vmem:[#allocation74_spill] sm:$0xff] %v16284_v51  ;;  %v10382_v6 = vrot.slane %v9541_v43, 5  ;;  %v17216_v27 = vshrl.u32 %v15762_v33, 16  ;;  %v9547_v51 = vld [vmem:[#allocation2 + $0xc8] sm:$0x1]  ;;  %v10386_v37 = vrot.slane %v16280_v31, 5  ;;  %v16321_v33 = vsel %vm14004_vm2, %v11686_v50, %v10379_v17 }
 0x4b9   : > { %v16312_v61 = vsel %vm14004_vm2, %v10374_v44, %v10375_v21  ;;  %v10243_v54 = vld [vmem:[#allocation2 + $0xc0] sm:$0xe]  ;;  %v10393_v43 = vrot.slane %v16291_v41, 5  ;;  %v11687_v34 = vrot.slane %v10242_v2, 9  ;;  %v10389_v21 = vrot.slane %v9544_v19, 5 }
 0x4ba   : > { %12548 = vmatmul.mubr.msk.bf16.gmra.mrb[4].mxu1 %vm1441_vm9, %v16035_v48  ;;  %v8229_v26 = vrot.slane %v17216_v27, 4  ;;  %17217 = vst [vmem:[#allocation77_spill] sm:$0xff] %v16312_v61  ;;  %v16325_v27 = vsel %vm14004_vm2, %v10381_v5, %v10382_v6  ;;  %v10388_v44 = vrot.slane %v10386_v37, 4  ;;  %v11688_v45 = vrot.slane %v10243_v54, 9 }
 0x4bb   : > { %12551 = vmatprep.mubr.msk.bf16.mxu1 %vm1441_vm9, %v16052_v32  ;;  %v11703_v55 = vcombine.low %v16321_v33, %v16325_v27  ;;  %v8238_v32 = vshrl.u32 %v7979_v9, 16  ;;  %v10395_v53 = vrot.slane %v10393_v43, 4  ;;  %v10396_v48 = vrot.slane %v9547_v51, 5  ;;  %v16816_v33 = vld [vmem:[%s16994_s6] ss:$0 sm:$0xff] }
 0x4bc   : > { %v8247_v61 = vshll.u32 %v15776_v40, 16  ;;  %v8251_v17 = vshrl.u32 %v15776_v40, 16  ;;  %v16334_v6 = vsel %vm14004_vm2, %v11687_v34, %v10386_v37  ;;  %v16338_v50 = vsel %vm14004_vm2, %v10388_v44, %v10389_v21 }
 0x4bd   : > { %v8241_v5 = vshll.u32 %v7979_v9, 16  ;;  %v11704_v2 = vcombine.low %v16334_v6, %v16338_v50  ;;  %v16344_v19 = vsel %vm14004_vm2, %v11688_v45, %v10393_v43  ;;  %v16348_v51 = vsel %vm14004_vm2, %v10395_v53, %v10396_v48  ;;  %v10779_v6 = vld [vmem:[%s13480_s10 + $0x10] sm:$0xff] }
 0x4be   : > { %v17218_v40 = vor.u32 %v16048_v28, %v16046_v8  ;;  %v17219_v37 = vor.u32 %v16067_v35, %v16065_v22  ;;  %v8230_v9 = vor.u32 %v8229_v26, %v16235_v1  ;;  %v11705_v44 = vcombine.low %v16344_v19, %v16348_v51  ;;  %v10777_v51 = vld [vmem:[%s13480_s10] sm:$0xff] }
 0x4bf   : > { %v17220_v45 = vsel %vm13495_vm12, %v16044_v30, %v16057_v36  ;;  %v17221_v8 = vsel %vm13495_vm12, %v16039_v13, %v16016_v38  ;;  %v17222_v53 = vshll.u32 %v15732_v25, 16  ;;  %v17223_v26 = vshll.u32 %v15755_v59, 16  ;;  %v7982_v36 = vld [vmem:[#allocation2 + $0x90] sm:$0xf] }
 0x4c0   : > { %v8197_v54 = vrot.slane %v17218_v40, 4  ;;  %v8207_v34 = vrot.slane %v17219_v37, 4  ;;  %v11533_v28 = vcombine.low %v17221_v8, %v17220_v45  ;;  %v8233_v43 = vshll.u32 %v15774_v24, 16 }
 0x4c1   : > { %v8187_v35 = vrot.slane %v17222_v53, 5  ;;  %v8211_v48 = vrot.slane %v17223_v26, 5  ;;  %v16376_v21 = vrot.slane %v8247_v61, 5  ;;  %v8253_v30 = vrot.slane %v8251_v17, 4 }
 0x4c2   : > { %12552 = vmatmul.mubr.msk.bf16.gmra.mrb[8].mxu1 %vm1441_vm9, %v16062_v10  ;;  %v8178_v25 = vsel %vm13495_vm12, %v16075_v20, %v16026_v56  ;;  %v8220_v38 = vor.u32 %v16118_v16, %v16103_v62  ;;  %v8240_v13 = vrot.slane %v8238_v32, 4  ;;  %v8243_v10 = vrot.slane %v8241_v5, 5  ;;  %v7985_v16 = vld [vmem:[#allocation2 + $0x9c] sm:$0xf] }
 0x4c3   : > { %12555 = vmatprep.mubr.msk.bf16.mxu1 %vm1441_vm9, %v11533_v28  ;;  %v8188_v59 = vsel %vm13495_vm12, %v16091_v4, %v8187_v35  ;;  %v8202_v24 = vsel %vm13495_vm12, %v8197_v54, %v16065_v22  ;;  %v8212_v61 = vsel %vm13495_vm12, %v8207_v34, %v8211_v48  ;;  %v8231_v17 = vrot.slane %v8230_v9, 4 }
 0x4c4   : > { %v8262_v40 = vshrl.u32 %v7982_v36, 16  ;;  %v8265_v37 = vshll.u32 %v7982_v36, 16  ;;  %v8271_v56 = vshll.u32 %v15793_v15, 16  ;;  %v8275_v20 = vshrl.u32 %v15793_v15, 16 }
 0x4c5   : > { %v8235_v62 = vrot.slane %v8233_v43, 5  ;;  %v8254_v32 = vor.u32 %v8253_v30, %v16376_v21  ;;  %v8295_v4 = vshll.u32 %v15806_v3, 16  ;;  %v8299_v5 = vshrl.u32 %v15806_v3, 16 }
 0x4c6   : > { %v11534_v45 = vcombine.low %v8178_v25, %v8188_v59  ;;  %v11535_v22 = vcombine.low %v8202_v24, %v8212_v61  ;;  %v8221_v54 = vrot.slane %v8220_v38, 4  ;;  %v8244_v8 = vor.u32 %v8243_v10, %v8240_v13  ;;  %v7988_v59 = vld [vmem:[#allocation2 + $0xa8] sm:$0xf] }
 0x4c7   : > { %v8236_v34 = vsel %vm13495_vm12, %v8231_v17, %v8235_v62  ;;  %v8257_v9 = vshll.u32 %v15784_v52, 16  ;;  %v8286_v28 = vshrl.u32 %v7985_v16, 16  ;;  %v8289_v53 = vshll.u32 %v7985_v16, 16 }
 0x4c8   : > { %v8264_v15 = vrot.slane %v8262_v40, 4  ;;  %v8267_v35 = vrot.slane %v8265_v37, 5  ;;  %v8273_v26 = vrot.slane %v8271_v56, 5  ;;  %v8277_v48 = vrot.slane %v8275_v20, 4  ;;  %v7991_v37 = vld [vmem:[#allocation2 + $0xb4] sm:$0xf] }
 0x4c9   : > { %v8255_v43 = vrot.slane %v8254_v32, 4  ;;  %v8297_v30 = vrot.slane %v8295_v4, 5  ;;  %v8301_v3 = vrot.slane %v8299_v5, 4  ;;  %v8226_v36 = vsel %vm13495_vm12, %v8221_v54, %v16235_v1 }
 0x4ca   : > { %12556 = vmatmul.mubr.msk.bf16.gmra.mrb[12].mxu1 %vm1441_vm9, %v11534_v45  ;;  %v8245_v25 = vrot.slane %v8244_v8, 4  ;;  %v11536_v38 = vcombine.low %v8226_v36, %v8236_v34  ;;  %v8259_v52 = vrot.slane %v8257_v9, 5  ;;  %v8288_v13 = vrot.slane %v8286_v28, 4 }
 0x4cb   : > { %12559 = vmatprep.mubr.msk.bf16.mxu1 %vm1441_vm9, %v11535_v22  ;;  %v8291_v10 = vrot.slane %v8289_v53, 5  ;;  %v8268_v24 = vor.u32 %v8267_v35, %v8264_v15  ;;  %v8278_v61 = vor.u32 %v8277_v48, %v8273_v26  ;;  %v8319_v17 = vshll.u32 %v15834_v39, 16 }
 0x4cc   : > { %v8323_v40 = vshrl.u32 %v15834_v39, 16  ;;  %v8260_v56 = vsel %vm13495_vm12, %v8255_v43, %v8259_v52  ;;  %v8302_v20 = vor.u32 %v8301_v3, %v8297_v30  ;;  %v8343_v16 = vshll.u32 %v15846_v46, 16 }
 0x4cd   : > { %v8347_v1 = vshrl.u32 %v15846_v46, 16  ;;  %v8250_v62 = vsel %vm13495_vm12, %v8245_v25, %v16376_v21  ;;  %v8281_v32 = vshll.u32 %v15804_v0, 16  ;;  %v8310_v4 = vshrl.u32 %v7988_v59, 16  ;;  %v7994_v25 = vld [vmem:[#allocation2 + $0xc0] sm:$0xf] }
 0x4ce   : > { %v8313_v5 = vshll.u32 %v7988_v59, 16  ;;  %v8292_v45 = vor.u32 %v8291_v10, %v8288_v13  ;;  %v8305_v39 = vshll.u32 %v15823_v60, 16  ;;  %v8334_v22 = vshrl.u32 %v7991_v37, 16 }
 0x4cf   : > { %v8337_v54 = vshll.u32 %v7991_v37, 16  ;;  %v11537_v8 = vcombine.low %v8250_v62, %v8260_v56  ;;  %v8279_v34 = vrot.slane %v8278_v61, 4  ;;  %v8321_v9 = vrot.slane %v8319_v17, 5 }
 0x4d0   : > { %v8325_v28 = vrot.slane %v8323_v40, 4  ;;  %v8269_v46 = vrot.slane %v8268_v24, 4  ;;  %v8303_v53 = vrot.slane %v8302_v20, 4  ;;  %v8345_v15 = vrot.slane %v8343_v16, 5 }
 0x4d1   : > { %v8349_v35 = vrot.slane %v8347_v1, 4  ;;  %v8283_v0 = vrot.slane %v8281_v32, 5  ;;  %v8312_v21 = vrot.slane %v8310_v4, 4  ;;  %v8315_v48 = vrot.slane %v8313_v5, 5 }
 0x4d2   : > { %12560 = vmatmul.mubr.msk.bf16.gmra.mrb[16].mxu1 %vm1441_vm9, %v11536_v38  ;;  %v8293_v43 = vrot.slane %v8292_v45, 4  ;;  %v8307_v3 = vrot.slane %v8305_v39, 5  ;;  %v8336_v60 = vrot.slane %v8334_v22, 4  ;;  %v8339_v36 = vrot.slane %v8337_v54, 5 }
 0x4d3   : > { %12563 = vmatprep.mubr.msk.bf16.mxu1 %vm1441_vm9, %v11537_v8  ;;  %v8284_v52 = vsel %vm13495_vm12, %v8279_v34, %v8283_v0  ;;  %v8326_v13 = vor.u32 %v8325_v28, %v8321_v9  ;;  %v8367_v38 = vshll.u32 %v15861_v14, 16  ;;  %v8371_v10 = vshrl.u32 %v15861_v14, 16 }
 0x4d4   : > { %v8274_v59 = vsel %vm13495_vm12, %v8269_v46, %v8273_v26  ;;  %v8308_v24 = vsel %vm13495_vm12, %v8303_v53, %v8307_v3  ;;  %v8350_v61 = vor.u32 %v8349_v35, %v8345_v15  ;;  %v8316_v17 = vor.u32 %v8315_v48, %v8312_v21  ;;  %v17224_v35 = vld [vmem:[#allocation25_spill] sm:$0xff] }
 0x4d5   : > { %v8329_v40 = vshll.u32 %v15854_v42, 16  ;;  %v8358_v37 = vshrl.u32 %v7994_v25, 16  ;;  %v8361_v56 = vshll.u32 %v7994_v25, 16  ;;  %v11538_v20 = vcombine.low %v8274_v59, %v8284_v52  ;;  %v17225_v52 = vld [vmem:[#allocation33_spill] sm:$0xff] }
 0x4d6   : > { %v8298_v16 = vsel %vm13495_vm12, %v8293_v43, %v8297_v30  ;;  %v8340_v1 = vor.u32 %v8339_v36, %v8336_v60  ;;  %v8353_v62 = vshll.u32 %v15859_v23, 16  ;;  %v8327_v32 = vrot.slane %v8326_v13, 4 }
 0x4d7   : > { %v11539_v14 = vcombine.low %v8298_v16, %v8308_v24  ;;  %v8369_v4 = vrot.slane %v8367_v38, 5  ;;  %v8373_v26 = vrot.slane %v8371_v10, 4  ;;  %v8351_v5 = vrot.slane %v8350_v61, 4  ;;  %v17226_v38 = vld [vmem:[#allocation32_spill] sm:$0xff] }
 0x4d8   : > { %v8317_v45 = vrot.slane %v8316_v17, 4  ;;  %v8331_v42 = vrot.slane %v8329_v40, 5  ;;  %v8360_v39 = vrot.slane %v8358_v37, 4  ;;  %v8363_v22 = vrot.slane %v8361_v56, 5  ;;  %v8676_v56 = vld [vmem:[#allocation2 + $0x18] sm:$0xe] }
 0x4d9   : > { %v8341_v54 = vrot.slane %v8340_v1, 4  ;;  %v8355_v8 = vrot.slane %v8353_v62, 5  ;;  %v8374_v34 = vor.u32 %v8373_v26, %v8369_v4  ;;  %v8741_v28 = vrot.slane %v15943_v12, 5  ;;  %v8675_v12 = vld [vmem:[#allocation2 + $0xc] sm:$0xe] }
 0x4da   : > { %12564 = vmatmul.mubr.msk.bf16.gmra.mrb[20].mxu1 %vm1441_vm9, %v11538_v20  ;;  %v8332_v30 = vsel %vm13495_vm12, %v8327_v32, %v8331_v42  ;;  %v8322_v46 = vsel %vm13495_vm12, %v8317_v45, %v8321_v9  ;;  %v8364_v53 = vor.u32 %v8363_v22, %v8360_v39  ;;  %v8377_v0 = vshll.u32 %v17224_v35, 16  ;;  %v17227_v20 = vld [vmem:[#allocation34_spill] sm:$0xff]  ;;  %v11641_v26 = vld [vmem:[%s16992_s4 + $0xe] sm:$0x3] }
 0x4db   : > { %12567 = vmatprep.mubr.msk.bf16.mxu1 %vm1441_vm9, %v11539_v14  ;;  %v8356_v23 = vsel %vm13495_vm12, %v8351_v5, %v8355_v8  ;;  %v11540_v21 = vcombine.low %v8322_v46, %v8332_v30  ;;  %v8346_v48 = vsel %vm13495_vm12, %v8341_v54, %v8345_v15  ;;  %v8375_v3 = vrot.slane %v8374_v34, 4  ;;  %v17228_v5 = vld [vmem:[#allocation8_spill] sm:$0xff]  ;;  %v17229_v45 = vld [vmem:[#allocation9_spill] sm:$0xff]  ;;  %v17231_v39 = vld [vmem:[#allocation10_spill] sm:$0xff] }
 0x4dc   : > { %v11541_v43 = vcombine.low %v8346_v48, %v8356_v23  ;;  %v8743_v60 = vrot.slane %v8741_v28, 4  ;;  %v8365_v36 = vrot.slane %v8364_v53, 4  ;;  %v8379_v25 = vrot.slane %v8377_v0, 5  ;;  %v17232_v22 = vld [vmem:[#allocation6_spill] sm:$0xff]  ;;  %v17235_v8 = vld [vmem:[#allocation4_spill] sm:$0xff]  ;;  %v17237_v34 = vld [vmem:[#allocation5_spill] sm:$0xff] }
 0x4dd   : > { %v8744_v13 = vrot.slane %v17225_v52, 5  ;;  %v8748_v10 = vrot.slane %v17226_v38, 5  ;;  %v11559_v59 = vrot.slane %v8675_v12, 9  ;;  %v8751_v16 = vrot.slane %v17227_v20, 5  ;;  %v17238_v23 = vld [vmem:[#allocation3_spill] sm:$0xff]  ;;  %v17241_v53 = vld [vmem:[#allocation12_spill] sm:$0xff] }
 0x4de   : > { %v8380_v9 = vsel %vm13495_vm12, %v8375_v3, %v8379_v25  ;;  %v8370_v24 = vsel %vm13495_vm12, %v8365_v36, %v8369_v4  ;;  %v11560_v1 = vrot.slane %v8676_v56, 9  ;;  %v9308_v4 = vsel %vm1490_vm0, %v16221_v7, 0  ;;  %v17234_v7 = vld [vmem:[#allocation7_spill] sm:$0xff]  ;;  %v17243_v0 = vld [vmem:[#allocation13_spill] sm:$0xff]  ;;  %v17247_v3 = vld [vmem:[#allocation16_spill] sm:$0xff] }
 0x4df   : > { %v8745_v15 = vsel %vm14004_vm2, %v8743_v60, %v8744_v13  ;;  %v11542_v61 = vcombine.low %v8370_v24, %v8380_v9  ;;  %v8742_v17 = vsel %vm14004_vm2, %v11559_v59, %v8741_v28  ;;  %v8750_v37 = vrot.slane %v8748_v10, 4  ;;  %v17240_v46 = vld [vmem:[#allocation11_spill] sm:$0xff]  ;;  %v17249_v36 = vld [vmem:[#allocation17_spill] sm:$0xff]  ;;  %v17250_v25 = vld [vmem:[#allocation18_spill] sm:$0xff] }
 0x4e0   : > { %v11576_v40 = vcombine.low %v8742_v17, %v8745_v15  ;;  %v8749_v14 = vsel %vm14004_vm2, %v11560_v1, %v8748_v10  ;;  %v17230_v42 = vcombine.low %v17228_v5, %v17229_v45  ;;  %v17233_v54 = vcombine.low %v17231_v39, %v17232_v22  ;;  %v17252_v52 = vld [vmem:[#allocation19_spill] sm:$0xff]  ;;  %v17253_v13 = vld [vmem:[#allocation20_spill] sm:$0xff]  ;;  %v17255_v38 = vld [vmem:[#allocation21_spill] sm:$0xff] }
 0x4e1   : > { %v8752_v62 = vsel %vm14004_vm2, %v8750_v37, %v8751_v16  ;;  %v17236_v30 = vcombine.low %v17234_v7, %v17235_v8  ;;  %v17239_v28 = vcombine.low %v17237_v34, %v17238_v23  ;;  %v17242_v35 = vcombine.low %v17240_v46, %v17241_v53  ;;  %v17256_v10 = vld [vmem:[#allocation22_spill] sm:$0xff]  ;;  %v17258_v15 = vld [vmem:[#allocation23_spill] sm:$0xff]  ;;  %v17259_v24 = vld [vmem:[#allocation24_spill] sm:$0xff] }
 0x4e2   : > { %12568 = vmatmul.mubr.msk.bf16.gmra.mrb[24].mxu1 %vm1441_vm9, %v11540_v21  ;;  %v11577_v32 = vcombine.low %v8749_v14, %v8752_v62  ;;  %v17244_v21 = vld [vmem:[#allocation14_spill] sm:$0xff]  ;;  %v17251_v12 = vcombine.low %v17249_v36, %v17250_v25  ;;  %v17254_v9 = vcombine.low %v17252_v52, %v17253_v13  ;;  %v17257_v59 = vcombine.low %v17255_v38, %v17256_v10  ;;  %v17264_v56 = vld [vmem:[#allocation28_spill] sm:$0xff]  ;;  %v17265_v20 = vld [vmem:[#allocation29_spill] sm:$0xff] }
 0x4e3   : > { %12571 = vmatprep.mubr.msk.bf16.mxu1 %vm1441_vm9, %v11541_v43  ;;  %v17245_v48 = vcombine.low %v17243_v0, %v17244_v21  ;;  %v17246_v43 = vld [vmem:[#allocation15_spill] sm:$0xff]  ;;  %v17261_v17 = vld [vmem:[#allocation26_spill] sm:$0xff]  ;;  %v17266_v16 = vcombine.low %v17264_v56, %v17265_v20  ;;  %v10034_v5 = vsel %vm1490_vm0, %v11641_v26, 0  ;;  %v13312_v22 = vld [vmem:[#allocation2 + $0x48] sm:$0xff]  }
 0x4e4   : > { %v17248_v60 = vcombine.low %v17246_v43, %v17247_v3  ;;  %v13308_v1 = vld [vmem:[#allocation2 + $0x18] sm:$0xff]   ;;  %v17267_v62 = vld [vmem:[#allocation30_spill] sm:$0xff]  ;;  %v9506_v21 = vld [vmem:[#allocation2 + $0x24] sm:$0xf] }
 0x4e5   : > { %v17268_v14 = vld [vmem:[#allocation31_spill] sm:$0xff]  ;;  %v13310_v45 = vld [vmem:[#allocation2 + $0x30] sm:$0xff]   ;;  %v9576_v36 = vshrl.u32 %v9506_v21, 16  ;;  %v9579_v25 = vshll.u32 %v9506_v21, 16  ;;  %v9633_v21 = vshll.u32 %v16105_v57, 16 }
 0x4e6   : > { %v13311_v39 = vld [vmem:[#allocation2 + $0x3c] sm:$0xff]   ;;  %v13315_v7 = vld [vmem:[#allocation2 + $0x6c] sm:$0xff]  }
 0x4e7   : > { %v13316_v8 = vld [vmem:[#allocation2 + $0x78] sm:$0xff]   ;;  %v13318_v46 = vld [vmem:[#allocation2 + $0x90] sm:$0xff]  }
 0x4e8   : > { %v17270_v53 = vld [vmem:[#allocation35_spill] sm:$0xff]  ;;  %v9509_v38 = vld [vmem:[#allocation2 + $0x30] sm:$0xf] }
 0x4e9   : > { %v9565_v0 = vshrl.u32 %v17270_v53, 16  ;;  %v13319_v10 = vld [vmem:[#allocation2 + $0x9c] sm:$0xff]  }
 0x4ea   : > { %12572 = vmatmul.mubr.msk.bf16.gmra.mrb[28].mxu1 %vm1441_vm9, %v11542_v61  ;;  %v17260_v61 = vcombine.low %v17258_v15, %v17259_v24 }
 0x4eb   : > { %12577 = vmatprep.mubr.msk.bf16.mxu1 %vm1441_vm9, %v11576_v40  ;;  %v17262_v40 = vld [vmem:[#allocation27_spill] sm:$0xff] }
 0x4ec   : > { %v17263_v37 = vcombine.low %v17261_v17, %v17262_v40  ;;  %v9578_v40 = vrot.slane %v9576_v36, 4 }
 0x4f2   : > { %12578 = vmatmul.mubr.msk.bf16.vlgmr.msra.gmra.mrb[0].mxu1 %vm1441_vm9, %v11577_v32  ;;  %v17269_v32 = vcombine.low %v17267_v62, %v17268_v14  ;;  %v17273_v14 = vld [vmem:[#allocation36_spill] sm:$0xff] }
 0x4f3   : > { %12610 = vmatpush3.bf16.msra.mxu1 %v9308_v4  ;;  %12581 = vmatprep.mubr.msk.bf16.mxu1 %vm1441_vm9, %v17230_v42  ;;  %v13309_v4 = vld [vmem:[#allocation2 + $0x24] sm:$0xff]   ;;  %v16530_v42 = vld [vmem:[%s16992_s4 + $0x10] sm:$0x3] }
 0x4f4   : > { %13239 = vmatprep.subr.msk.bf16.mxu1 %vm1490_vm0, %v11641_v26  ;;  %v13313_v26 = vld [vmem:[#allocation2 + $0x54] sm:$0xff]  }
 0x4fa   : > { %12582 = vmatmul.mubr.msk.bf16.gmra.mrb[4].mxu1 %vm1441_vm9, %v17233_v54  ;;  %v13314_v54 = vld [vmem:[#allocation2 + $0x60] sm:$0xff]  }
 0x4fb   : > { %12585 = vmatprep.mubr.msk.bf16.mxu1 %vm1441_vm9, %v17236_v30  ;;  %v9503_v30 = vld [vmem:[#allocation2 + $0x18] sm:$0xf] }
 0x4fc   : > { %v9552_v34 = vshrl.u32 %v9503_v30, 16  ;;  %v9555_v23 = vshll.u32 %v9503_v30, 16 }
 0x4fe   : > { %v9557_v43 = vrot.slane %v9555_v23, 5 }
 0x502   : > { %12586 = vmatmul.mubr.msk.bf16.gmra.mrb[8].mxu1 %vm1441_vm9, %v17239_v28  ;;  %v13317_v28 = vld [vmem:[#allocation2 + $0x84] sm:$0xff]  }
 0x503   : > { %12589 = vmatprep.mubr.msk.bf16.mxu1 %vm1441_vm9, %v17242_v35  ;;  %v9561_v35 = vshll.u32 %v17270_v53, 16  ;;  %v13321_v53 = vld [vmem:[#allocation2 + $0xb4] sm:$0xff]  }
 0x505   : > { %v16546_v3 = vrot.slane %v9561_v35, 5 }
 0x50a   : > { %12590 = vmatmul.mubr.msk.bf16.gmra.mrb[12].mxu1 %vm1441_vm9, %v17245_v48  ;;  %v9554_v48 = vrot.slane %v9552_v34, 4 }
 0x50b   : > { %12593 = vmatprep.mubr.msk.bf16.mxu1 %vm1441_vm9, %v17248_v60  ;;  %v9567_v60 = vrot.slane %v9565_v0, 4 }
 0x50d   : > { %v9568_v17 = vor.u32 %v9567_v60, %v16546_v3  ;;  %v13322_v60 = vld [vmem:[#allocation2 + $0xc0] sm:$0xff]  }
 0x512   : > { %12594 = vmatmul.mubr.msk.bf16.gmra.mrb[16].mxu1 %vm1441_vm9, %v17251_v12  ;;  %v17271_v12 = vld [vmem:[#allocation38_spill] sm:$0xff] }
 0x513   : > { %12597 = vmatprep.mubr.msk.bf16.mxu1 %vm1441_vm9, %v17254_v9  ;;  %v9585_v52 = vshll.u32 %v17271_v12, 16  ;;  %v9589_v13 = vshrl.u32 %v17271_v12, 16  ;;  %v9558_v9 = vor.u32 %v9557_v43, %v9554_v48  ;;  %v9637_v48 = vshrl.u32 %v16105_v57, 16  ;;  %v9515_v43 = vld [vmem:[#allocation2 + $0x48] sm:$0xf] }
 0x514   : > { %v16576_v57 = vld [vmem:[#allocation2 + $0xd4] sm:$0x1] }
 0x515   : > { %v16554_v56 = vrot.slane %v9585_v52, 5  ;;  %v9591_v20 = vrot.slane %v9589_v13, 4  ;;  %v9559_v62 = vrot.slane %v9558_v9, 4  ;;  %v17276_v52 = vld [vmem:[#allocation41_spill] sm:$0xff] }
 0x516   : > { %v9657_v13 = vshll.u32 %v17276_v52, 16  ;;  %v9661_v9 = vshrl.u32 %v17276_v52, 16 }
 0x517   : > { %v9564_v23 = vsel %vm13495_vm12, %v9559_v62, %v16546_v3 }
 0x51a   : > { %12598 = vmatmul.mubr.msk.bf16.gmra.mrb[20].mxu1 %vm1441_vm9, %v17257_v59  ;;  %v17272_v59 = vld [vmem:[#allocation37_spill] sm:$0xff] }
 0x51b   : > { %12601 = vmatprep.mubr.msk.bf16.mxu1 %vm1441_vm9, %v17260_v61  ;;  %v9609_v15 = vshll.u32 %v17272_v59, 16  ;;  %v9613_v24 = vshrl.u32 %v17272_v59, 16  ;;  %v13320_v61 = vld [vmem:[#allocation2 + $0xa8] sm:$0xff]  }
 0x522   : > { %12602 = vmatmul.mubr.msk.bf16.gmra.mrb[24].mxu1 %vm1441_vm9, %v17263_v37  ;;  %v9581_v37 = vrot.slane %v9579_v25, 5  ;;  %v17275_v25 = vld [vmem:[#allocation40_spill] sm:$0xff] }
 0x523   : > { %12605 = vmatprep.mubr.msk.bf16.mxu1 %vm1441_vm9, %v17266_v16  ;;  %v9600_v16 = vshrl.u32 %v9509_v38, 16  ;;  %v9619_v12 = vshll.u32 %v17275_v25, 16 }
 0x52a   : > { %12606 = vmatmul.mubr.msk.bf16.gmra.mrb[28].mxu1 %vm1441_vm9, %v17269_v32  ;;  %v9571_v32 = vshll.u32 %v17273_v14, 16  ;;  %v9651_v14 = vshll.u32 %v9515_v43, 16 }
 0x52b   : > { %12611 = vmatprep.mubr.msk.bf16.mxu1 %vm1441_vm9, %v13308_v1  ;;  %v9603_v1 = vshll.u32 %v9509_v38, 16 }
 0x52d   : > { %v9605_v30 = vrot.slane %v9603_v1, 5  ;;  %v9639_v1 = vrot.slane %v9637_v48, 4 }
 0x532   : > { %12612 = vmatmul.mubr.msk.bf16.vlgmr.msra.gmra.mrb[0].mxu1 %vm1441_vm9, %v13309_v4  ;;  %v9512_v4 = vld [vmem:[#allocation2 + $0x3c] sm:$0xf] }
 0x533   : > { %12644 = vmatpush3.bf16.msra.mxu1 %v10034_v5  ;;  %12615 = vmatprep.mubr.msk.bf16.mxu1 %vm1441_vm9, %v13310_v45  ;;  %v17274_v5 = vld [vmem:[#allocation39_spill] sm:$0xff]  ;;  %v9624_v34 = vshrl.u32 %v9512_v4, 16 }
 0x534   : > { %13240 = vmatprep.subr.msk.bf16.mxu1 %vm1490_vm0, %v16530_v42  ;;  %v9595_v45 = vshll.u32 %v17274_v5, 16  ;;  %v9518_v5 = vld [vmem:[#allocation2 + $0x54] sm:$0xf] }
 0x535   : > { %v9626_v59 = vrot.slane %v9624_v34, 4  ;;  %v9675_v48 = vshll.u32 %v9518_v5, 16 }
 0x536   : > { %v9597_v35 = vrot.slane %v9595_v45, 5 }
 0x53a   : > { %12616 = vmatmul.mubr.msk.bf16.gmra.mrb[4].mxu1 %vm1441_vm9, %v13311_v39  ;;  %v16559_v39 = vrot.slane %v9609_v15, 5  ;;  %v16574_v15 = vld [vmem:[#allocation2 + $0xd0] sm:$0xf] }
 0x53b   : > { %12619 = vmatprep.mubr.msk.bf16.mxu1 %vm1441_vm9, %v13312_v22  ;;  %v9615_v22 = vrot.slane %v9613_v24, 4 }
 0x53d   : > { %v9616_v0 = vor.u32 %v9615_v22, %v16559_v39  ;;  %v13323_v22 = vld [vmem:[#allocation2 + $0xcc] sm:$0xff]  }
 0x542   : > { %12620 = vmatmul.mubr.msk.bf16.gmra.mrb[8].mxu1 %vm1441_vm9, %v13313_v26  ;;  %v9569_v26 = vrot.slane %v9568_v17, 4  ;;  %v10244_v17 = vld [vmem:[#allocation2 + $0xcc] sm:$0xe] }
 0x543   : > { %12623 = vmatprep.mubr.msk.bf16.mxu1 %vm1441_vm9, %v13314_v54  ;;  %v9582_v54 = vor.u32 %v9581_v37, %v9578_v40  ;;  %v10400_v40 = vrot.slane %v16574_v15, 5  ;;  %v10403_v37 = vrot.slane %v16576_v57, 5  ;;  %v11689_v62 = vrot.slane %v10244_v17, 9 }
 0x544   : > { %v9677_v17 = vrot.slane %v9675_v48, 5  ;;  %v17281_v48 = vld [vmem:[#allocation50_spill] sm:$0xff] }
 0x545   : > { %v9583_v36 = vrot.slane %v9582_v54, 4  ;;  %v10402_v45 = vrot.slane %v10400_v40, 4 }
 0x547   : > { %v9588_v58 = vsel %vm13495_vm12, %v9583_v36, %v16554_v56 }
 0x54a   : > { %12624 = vmatmul.mubr.msk.bf16.gmra.mrb[12].mxu1 %vm1441_vm9, %v13315_v7  ;;  %v9592_v7 = vor.u32 %v9591_v20, %v16554_v56  ;;  %v9617_v20 = vrot.slane %v9616_v0, 4 }
 0x54b   : > { %12627 = vmatprep.mubr.msk.bf16.mxu1 %vm1441_vm9, %v13316_v8  ;;  %v9602_v8 = vrot.slane %v9600_v16, 4  ;;  %v16581_v16 = vrot.slane %v9633_v21, 5  ;;  %v9672_v21 = vshrl.u32 %v9518_v5, 16 }
 0x54c   : > { %v9593_v38 = vrot.slane %v9592_v7, 4  ;;  %v9621_v7 = vrot.slane %v9619_v12, 5  ;;  %v17278_v12 = vld [vmem:[#allocation46_spill] sm:$0xff] }
 0x54d   : > { %v9681_v52 = vshll.u32 %v17278_v12, 16 }
 0x54e   : > { %v9598_v54 = vsel %vm13495_vm12, %v9593_v38, %v9597_v35  ;;  %v9622_v35 = vsel %vm13495_vm12, %v9617_v20, %v9621_v7  ;;  %v9685_v38 = vshrl.u32 %v17278_v12, 16  ;;  %v17279_v20 = vld [vmem:[#allocation45_spill] sm:$0xff] }
 0x550   : > { %v9687_v5 = vrot.slane %v9685_v38, 4 }
 0x552   : > { %12628 = vmatmul.mubr.msk.bf16.gmra.mrb[16].mxu1 %vm1441_vm9, %v13317_v28  ;;  %v9573_v28 = vrot.slane %v9571_v32, 5  ;;  %v16583_v32 = vrot.slane %v9657_v13, 5  ;;  %v11643_v13 = vcombine.low %v9588_v58, %v9598_v54  ;;  %v10504_v54 = vsel %vm1490_vm0, %v16530_v42, 0 }
 0x553   : > { %12631 = vmatprep.mubr.msk.bf16.mxu1 %vm1441_vm9, %v13318_v46  ;;  %v9627_v46 = vshll.u32 %v9512_v4, 16  ;;  %v9663_v4 = vrot.slane %v9661_v9, 4 }
 0x554   : > { %v9574_v3 = vsel %vm13495_vm12, %v9569_v26, %v9573_v28  ;;  %v17277_v28 = vld [vmem:[#allocation42_spill] sm:$0xff] }
 0x555   : > { %v9629_v24 = vrot.slane %v9627_v46, 5  ;;  %v11642_v26 = vcombine.low %v9564_v23, %v9574_v3  ;;  %v9643_v46 = vshll.u32 %v17277_v28, 16  ;;  %v9664_v25 = vor.u32 %v9663_v4, %v16583_v32 }
 0x556   : > { %v9705_v4 = vshll.u32 %v16131_v63, 16 }
 0x557   : > { %v9630_v34 = vor.u32 %v9629_v24, %v9626_v59  ;;  %v9645_v3 = vrot.slane %v9643_v46, 5  ;;  %v9665_v36 = vrot.slane %v9664_v25, 4 }
 0x558   : > { %v16628_v42 = vrot.slane %v9705_v4, 5 }
 0x559   : > { %v9631_v24 = vrot.slane %v9630_v34, 4 }
 0x55a   : > { %12632 = vmatmul.mubr.msk.bf16.gmra.mrb[20].mxu1 %vm1441_vm9, %v13319_v10  ;;  %v9606_v10 = vor.u32 %v9605_v30, %v9602_v8  ;;  %v16589_v8 = vsel %vm14004_vm2, %v11689_v62, %v10400_v40  ;;  %v9524_v40 = vld [vmem:[#allocation2 + $0x6c] sm:$0xf]  ;;  %v16613_v62 = vrot.slane %v9681_v52, 5 }
 0x55b   : > { %12635 = vmatprep.mubr.msk.bf16.mxu1 %vm1441_vm9, %v13320_v61  ;;  %v9648_v61 = vshrl.u32 %v9515_v43, 16  ;;  %v9640_v43 = vor.u32 %v9639_v1, %v16581_v16  ;;  %v9667_v1 = vshll.u32 %v17279_v20, 16  ;;  %v9636_v46 = vsel %vm13495_vm12, %v9631_v24, %v16581_v16  ;;  %v17282_v24 = vld [vmem:[#allocation53_spill] sm:$0xff] }
 0x55c   : > { %v9607_v30 = vrot.slane %v9606_v10, 4  ;;  %v9521_v10 = vld [vmem:[#allocation2 + $0x60] sm:$0xf]  ;;  %v9688_v25 = vor.u32 %v9687_v5, %v16613_v62 }
 0x55d   : > { %v9650_v0 = vrot.slane %v9648_v61, 4  ;;  %v9674_v61 = vrot.slane %v9672_v21, 4  ;;  %v9669_v21 = vrot.slane %v9667_v1, 5 }
 0x55e   : > { %v9612_v9 = vsel %vm13495_vm12, %v9607_v30, %v16559_v39  ;;  %v9709_v39 = vshrl.u32 %v16131_v63, 16  ;;  %v17280_v30 = vld [vmem:[#allocation55_spill] sm:$0xff]  ;;  %v9689_v1 = vrot.slane %v9688_v25, 4  ;;  %v9533_v25 = vld [vmem:[#allocation2 + $0x90] sm:$0xf] }
 0x55f   : > { %v11644_v59 = vcombine.low %v9612_v9, %v9622_v35  ;;  %v9678_v7 = vor.u32 %v9677_v17, %v9674_v61  ;;  %v9729_v34 = vshll.u32 %v17280_v30, 16  ;;  %v9733_v28 = vshrl.u32 %v17280_v30, 16 }
 0x560   : > { %v9691_v35 = vshll.u32 %v17281_v48, 16  ;;  %v9670_v52 = vsel %vm13495_vm12, %v9665_v36, %v9669_v21  ;;  %v9753_v61 = vshll.u32 %v17282_v24, 16  ;;  %v9757_v17 = vshrl.u32 %v17282_v24, 16  ;;  %v17284_v48 = vld [vmem:[#allocation58_spill] sm:$0xff] }
 0x561   : > { %v9679_v9 = vrot.slane %v9678_v7, 4  ;;  %v9777_v7 = vshll.u32 %v16204_v11, 16  ;;  %v9781_v30 = vshrl.u32 %v16204_v11, 16 }
 0x562   : > { %12636 = vmatmul.mubr.msk.bf16.gmra.mrb[24].mxu1 %vm1441_vm9, %v13321_v53  ;;  %v16594_v53 = vsel %vm14004_vm2, %v10402_v45, %v10403_v37  ;;  %v9641_v37 = vrot.slane %v9640_v43, 4  ;;  %v9699_v45 = vshll.u32 %v9521_v10, 16 }
 0x563   : > { %12639 = vmatprep.mubr.msk.bf16.mxu1 %vm1441_vm9, %v13322_v60  ;;  %v11706_v23 = vcombine.low %v16589_v8, %v16594_v53  ;;  %v9653_v60 = vrot.slane %v9651_v14, 5  ;;  %v9696_v14 = vshrl.u32 %v9521_v10, 16  ;;  %v9527_v10 = vld [vmem:[#allocation2 + $0x78] sm:$0xf]  ;;  %v9684_v5 = vsel %vm13495_vm12, %v9679_v9, %v16613_v62 }
 0x564   : > { %v9701_v58 = vrot.slane %v9699_v45, 5  ;;  %v16659_v9 = vrot.slane %v9777_v7, 5  ;;  %v17287_v7 = vld [vmem:[#allocation63_spill] sm:$0xff] }
 0x565   : > { %v9654_v56 = vor.u32 %v9653_v60, %v9650_v0  ;;  %v9646_v0 = vsel %vm13495_vm12, %v9641_v37, %v9645_v3  ;;  %v9698_v43 = vrot.slane %v9696_v14, 4  ;;  %v9711_v60 = vrot.slane %v9709_v39, 4  ;;  %v9530_v39 = vld [vmem:[#allocation2 + $0x84] sm:$0xf] }
 0x566   : > { %v16634_v3 = vrot.slane %v9729_v34, 5  ;;  %v11645_v38 = vcombine.low %v9636_v46, %v9646_v0  ;;  %v9768_v46 = vshrl.u32 %v9530_v39, 16  ;;  %v9771_v0 = vshll.u32 %v9530_v39, 16 }
 0x567   : > { %v9655_v63 = vrot.slane %v9654_v56, 4  ;;  %v9712_v37 = vor.u32 %v9711_v60, %v16628_v42  ;;  %v17283_v56 = vld [vmem:[#allocation51_spill] sm:$0xff]  ;;  %v9702_v14 = vor.u32 %v9701_v58, %v9698_v43  ;;  %v17285_v58 = vld [vmem:[#allocation61_spill] sm:$0xff] }
 0x568   : > { %v9715_v20 = vshll.u32 %v17283_v56, 16  ;;  %v9801_v11 = vshll.u32 %v17285_v58, 16  ;;  %v9795_v56 = vshll.u32 %v9533_v25, 16 }
 0x569   : > { %v9713_v34 = vrot.slane %v9712_v37, 4  ;;  %v9792_v37 = vshrl.u32 %v9533_v25, 16  ;;  %v9539_v25 = vld [vmem:[#allocation2 + $0xa8] sm:$0xf] }
 0x56a   : > { %12640 = vmatmul.mubr.msk.bf16.gmra.mrb[28].mxu1 %vm1441_vm9, %v13323_v22  ;;  %v9720_v22 = vshrl.u32 %v9524_v40, 16 }
 0x56b   : > { %12645 = vmatprep.mubr.msk.bf16.mxu1 %vm1441_vm9, %v11642_v26  ;;  %v9723_v26 = vshll.u32 %v9524_v40, 16  ;;  %v9693_v40 = vrot.slane %v9691_v35, 5  ;;  %v9739_v35 = vshll.u32 %v17284_v48, 16 }
 0x56c   : > { %v9722_v16 = vrot.slane %v9720_v22, 4  ;;  %v9744_v22 = vshrl.u32 %v9527_v10, 16 }
 0x56d   : > { %v9725_v12 = vrot.slane %v9723_v26, 5  ;;  %v9747_v26 = vshll.u32 %v9527_v10, 16  ;;  %v9694_v62 = vsel %vm13495_vm12, %v9689_v1, %v9693_v40  ;;  %v17286_v10 = vld [vmem:[#allocation59_spill] sm:$0xff]  ;;  %v9741_v40 = vrot.slane %v9739_v35, 5 }
 0x56e   : > { %v9746_v43 = vrot.slane %v9744_v22, 4  ;;  %v9763_v24 = vshll.u32 %v17286_v10, 16  ;;  %v16667_v1 = vrot.slane %v9801_v11, 5  ;;  %v17289_v11 = vld [vmem:[#allocation66_spill] sm:$0xff] }
 0x56f   : > { %v9726_v4 = vor.u32 %v9725_v12, %v9722_v16  ;;  %v9749_v60 = vrot.slane %v9747_v26, 5  ;;  %v9805_v16 = vshrl.u32 %v17285_v58, 16 }
 0x571   : > { %v9727_v21 = vrot.slane %v9726_v4, 4  ;;  %v9536_v4 = vld [vmem:[#allocation2 + $0x9c] sm:$0xf] }
 0x572   : > { %12646 = vmatmul.mubr.msk.bf16.vlgmr.msra.gmra.mrb[0].mxu1 %vm1441_vm9, %v11643_v13  ;;  %v9735_v13 = vrot.slane %v9733_v28, 4  ;;  %v9717_v28 = vrot.slane %v9715_v20, 5 }
 0x573   : > { %12678 = vmatpush3.bf16.msra.mxu1 %v10504_v54  ;;  %12649 = vmatprep.mubr.msk.bf16.mxu1 %vm1441_vm9, %v11644_v59  ;;  %v9660_v59 = vsel %vm13495_vm12, %v9655_v63, %v16583_v32  ;;  %v16647_v54 = vrot.slane %v9753_v61, 5  ;;  %v9759_v32 = vrot.slane %v9757_v17, 4  ;;  %v9703_v63 = vrot.slane %v9702_v14, 4 }
 0x574   : > { %v11646_v36 = vcombine.low %v9660_v59, %v9670_v52  ;;  %v9736_v45 = vor.u32 %v9735_v13, %v16634_v3  ;;  %v9783_v13 = vrot.slane %v9781_v30, 4  ;;  %v9770_v61 = vrot.slane %v9768_v46, 4 }
 0x575   : > { %v9760_v52 = vor.u32 %v9759_v32, %v16647_v54  ;;  %v9773_v17 = vrot.slane %v9771_v0, 5  ;;  %v11647_v59 = vcombine.low %v9684_v5, %v9694_v62  ;;  %v9708_v20 = vsel %vm13495_vm12, %v9703_v63, %v16628_v42 }
 0x576   : > { %v9737_v12 = vrot.slane %v9736_v45, 4  ;;  %v9807_v14 = vrot.slane %v9805_v16, 4  ;;  %v9784_v26 = vor.u32 %v9783_v13, %v16659_v9  ;;  %v9732_v5 = vsel %vm13495_vm12, %v9727_v21, %v16634_v3 }
 0x577   : > { %v9761_v22 = vrot.slane %v9760_v52, 4  ;;  %v9765_v32 = vrot.slane %v9763_v24, 5  ;;  %v9774_v42 = vor.u32 %v9773_v17, %v9770_v61  ;;  %v9787_v30 = vshll.u32 %v17287_v7, 16 }
 0x578   : > { %v9742_v45 = vsel %vm13495_vm12, %v9737_v12, %v9741_v40  ;;  %v9816_v46 = vshrl.u32 %v9536_v4, 16  ;;  %v9819_v0 = vshll.u32 %v9536_v4, 16  ;;  %v9808_v48 = vor.u32 %v9807_v14, %v16667_v1  ;;  %v17290_v12 = vld [vmem:[#allocation69_spill] sm:$0xff] }
 0x579   : > { %v11649_v62 = vcombine.low %v9732_v5, %v9742_v45  ;;  %v9766_v35 = vsel %vm13495_vm12, %v9761_v22, %v9765_v32  ;;  %v9789_v58 = vrot.slane %v9787_v30, 5  ;;  %v9811_v16 = vshll.u32 %v17289_v11, 16  ;;  %v9542_v22 = vld [vmem:[#allocation2 + $0xb4] sm:$0xf] }
 0x57a   : > { %12650 = vmatmul.mubr.msk.bf16.gmra.mrb[4].mxu1 %vm1441_vm9, %v11645_v38  ;;  %v9718_v38 = vsel %vm13495_vm12, %v9713_v34, %v9717_v28  ;;  %v9794_v34 = vrot.slane %v9792_v37, 4  ;;  %v9797_v28 = vrot.slane %v9795_v56, 5  ;;  %v9849_v52 = vshll.u32 %v17290_v12, 16 }
 0x57b   : > { %12653 = vmatprep.mubr.msk.bf16.mxu1 %vm1441_vm9, %v11646_v36  ;;  %v9750_v36 = vor.u32 %v9749_v60, %v9746_v43  ;;  %v11648_v39 = vcombine.low %v9708_v20, %v9718_v38  ;;  %v9785_v43 = vrot.slane %v9784_v26, 4  ;;  %v17288_v60 = vld [vmem:[#allocation68_spill] sm:$0xff]  ;;  %v9853_v13 = vshrl.u32 %v17290_v12, 16  ;;  %v9548_v12 = vld [vmem:[#allocation2 + $0xcc] sm:$0xf] }
 0x57c   : > { %v9825_v3 = vshll.u32 %v17288_v60, 16  ;;  %v9829_v21 = vshrl.u32 %v17288_v60, 16  ;;  %v9775_v38 = vrot.slane %v9774_v42, 4  ;;  %v9798_v10 = vor.u32 %v9797_v28, %v9794_v34 }
 0x57d   : > { %v9751_v63 = vrot.slane %v9750_v36, 4  ;;  %v9818_v24 = vrot.slane %v9816_v46, 4  ;;  %v9821_v61 = vrot.slane %v9819_v0, 5  ;;  %v9840_v40 = vshrl.u32 %v9539_v25, 16 }
 0x57e   : > { %v9843_v37 = vshll.u32 %v9539_v25, 16  ;;  %v9790_v20 = vsel %vm13495_vm12, %v9785_v43, %v9789_v58  ;;  %v16691_v36 = vrot.slane %v9825_v3, 5  ;;  %v9831_v14 = vrot.slane %v9829_v21, 4  ;;  %v13364_v21 = vld [vmem:[#allocation2 + $0xb0] sm:$0x1] }
 0x57f   : > { %v9756_v17 = vsel %vm13495_vm12, %v9751_v63, %v16647_v54  ;;  %v9813_v4 = vrot.slane %v9811_v16, 5  ;;  %v9855_v45 = vrot.slane %v9853_v13, 4  ;;  %v9780_v54 = vsel %vm13495_vm12, %v9775_v38, %v16659_v9  ;;  %v9545_v63 = vld [vmem:[#allocation2 + $0xc0] sm:$0xf] }
 0x580   : > { %v11650_v56 = vcombine.low %v9756_v17, %v9766_v35  ;;  %v9799_v26 = vrot.slane %v9798_v10, 4  ;;  %v9822_v5 = vor.u32 %v9821_v61, %v9818_v24  ;;  %v9835_v32 = vshll.u32 %v16262_v18, 16 }
 0x581   : > { %v11651_v42 = vcombine.low %v9780_v54, %v9790_v20  ;;  %v9842_v30 = vrot.slane %v9840_v40, 4  ;;  %v9845_v34 = vrot.slane %v9843_v37, 5  ;;  %v9832_v28 = vor.u32 %v9831_v14, %v16691_v36 }
 0x582   : > { %12654 = vmatmul.mubr.msk.bf16.gmra.mrb[8].mxu1 %vm1441_vm9, %v11647_v59  ;;  %v9809_v59 = vrot.slane %v9808_v48, 4  ;;  %v9864_v46 = vshrl.u32 %v9542_v22, 16  ;;  %v9873_v0 = vshll.u32 %v16280_v31, 16  ;;  %v9867_v48 = vshll.u32 %v9542_v22, 16 }
 0x583   : > { %12657 = vmatprep.mubr.msk.bf16.mxu1 %vm1441_vm9, %v11648_v39  ;;  %v16694_v39 = vrot.slane %v9849_v52, 5  ;;  %v9897_v35 = vshll.u32 %v16291_v41, 16  ;;  %v9901_v18 = vshrl.u32 %v16291_v41, 16  ;;  %v9804_v43 = vsel %vm13495_vm12, %v9799_v26, %v16667_v1 }
 0x584   : > { %v9814_v7 = vsel %vm13495_vm12, %v9809_v59, %v9813_v4  ;;  %v9823_v60 = vrot.slane %v9822_v5, 4  ;;  %v9837_v3 = vrot.slane %v9835_v32, 5  ;;  %v9859_v25 = vshll.u32 %v13364_v21, 16  ;;  %v13365_v32 = vld [vmem:[#allocation2 + $0xbc] sm:$0x1] }
 0x585   : > { %v9856_v9 = vor.u32 %v9855_v45, %v16694_v39  ;;  %v11652_v58 = vcombine.low %v9804_v43, %v9814_v7  ;;  %v9846_v11 = vor.u32 %v9845_v34, %v9842_v30  ;;  %v9888_v16 = vshrl.u32 %v9545_v63, 16 }
 0x586   : > { %v9833_v52 = vrot.slane %v9832_v28, 4  ;;  %v9866_v13 = vrot.slane %v9864_v46, 4  ;;  %v9875_v38 = vrot.slane %v9873_v0, 5  ;;  %v9869_v24 = vrot.slane %v9867_v48, 5 }
 0x587   : > { %v9857_v41 = vrot.slane %v9856_v9, 4  ;;  %v9899_v61 = vrot.slane %v9897_v35, 5  ;;  %v9903_v17 = vrot.slane %v9901_v18, 4  ;;  %v9912_v1 = vshrl.u32 %v9548_v12, 16 }
 0x588   : > { %v9915_v59 = vshll.u32 %v9548_v12, 16  ;;  %v9921_v40 = vshll.u32 %v16574_v15, 16  ;;  %v9925_v37 = vshrl.u32 %v16574_v15, 16  ;;  %v9861_v20 = vrot.slane %v9859_v25, 5 }
 0x589   : > { %v9890_v14 = vrot.slane %v9888_v16, 4  ;;  %v9828_v45 = vsel %vm13495_vm12, %v9823_v60, %v16691_v36  ;;  %v9838_v22 = vsel %vm13495_vm12, %v9833_v52, %v9837_v3  ;;  %v9870_v5 = vor.u32 %v9869_v24, %v9866_v13 }
 0x58a   : > { %12658 = vmatmul.mubr.msk.bf16.gmra.mrb[12].mxu1 %vm1441_vm9, %v11649_v62  ;;  %v9877_v62 = vshrl.u32 %v16280_v31, 16  ;;  %v9891_v31 = vshll.u32 %v9545_v63, 16  ;;  %v9862_v26 = vsel %vm13495_vm12, %v9857_v41, %v9861_v20  ;;  %v9904_v7 = vor.u32 %v9903_v17, %v9899_v61  ;;  %v17298_v20 = vld [vmem:[#allocation52_spill] sm:$0xff] }
 0x58b   : > { %12661 = vmatprep.mubr.msk.bf16.mxu1 %vm1441_vm9, %v11650_v56  ;;  %v9847_v56 = vrot.slane %v9846_v11, 4  ;;  %v9914_v15 = vrot.slane %v9912_v1, 4  ;;  %v9917_v30 = vrot.slane %v9915_v59, 5  ;;  %v9923_v34 = vrot.slane %v9921_v40, 5  ;;  %v17292_v1 = vld [vmem:[#allocation44_spill] sm:$0xff]  ;;  %v17295_v40 = vld [vmem:[#allocation49_spill] sm:$0xff] }
 0x58c   : > { %v9879_v10 = vrot.slane %v9877_v62, 4  ;;  %v9893_v4 = vrot.slane %v9891_v31, 5  ;;  %v9927_v28 = vrot.slane %v9925_v37, 4  ;;  %v11653_v46 = vcombine.low %v9828_v45, %v9838_v22  ;;  %v13366_v62 = vld [vmem:[#allocation2 + $0xc8] sm:$0x1] }
 0x58d   : > { %v9852_v36 = vsel %vm13495_vm12, %v9847_v56, %v16694_v39  ;;  %v9907_v63 = vshll.u32 %v13366_v62, 16  ;;  %v9905_v18 = vrot.slane %v9904_v7, 4  ;;  %v9871_v43 = vrot.slane %v9870_v5, 4  ;;  %v17297_v56 = vld [vmem:[#allocation48_spill] sm:$0xff]  ;;  %v17303_v22 = vld [vmem:[#allocation57_spill] sm:$0xff]  ;;  %v17306_v5 = vld [vmem:[#allocation62_spill] sm:$0xff] }
 0x58e   : > { %v9880_v54 = vor.u32 %v9879_v10, %v9875_v38  ;;  %v9894_v0 = vor.u32 %v9893_v4, %v9890_v14  ;;  %v11654_v9 = vcombine.low %v9852_v36, %v9862_v26  ;;  %v9918_v60 = vor.u32 %v9917_v30, %v9914_v15  ;;  %v17301_v4 = vld [vmem:[#allocation56_spill] sm:$0xff]  ;;  %v17309_v7 = vld [vmem:[#allocation65_spill] sm:$0xff]  ;;  %v17310_v15 = vld [vmem:[#allocation67_spill] sm:$0xff] }
 0x58f   : > { %v9928_v3 = vor.u32 %v9927_v28, %v9923_v34  ;;  %v9931_v21 = vshll.u32 %v16576_v57, 16  ;;  %v9876_v16 = vsel %vm13495_vm12, %v9871_v43, %v9875_v38  ;;  %v17291_v38 = vld [vmem:[#allocation43_spill] sm:$0xff]  ;;  %v17299_v14 = vcombine.low %v17297_v56, %v17298_v20  ;;  %v17315_v36 = vld [vmem:[#allocation72_spill] sm:$0xff]  ;;  %v17323_v43 = vld [vmem:[#allocation77_spill] sm:$0xff] }
 0x590   : > { %v9881_v48 = vrot.slane %v9880_v54, 4  ;;  %v9895_v25 = vrot.slane %v9894_v0, 4  ;;  %v9919_v31 = vrot.slane %v9918_v60, 4  ;;  %v17293_v59 = vcombine.low %v17291_v38, %v17292_v1  ;;  %v17304_v54 = vld [vmem:[#allocation60_spill] sm:$0xff]  ;;  %v17313_v28 = vld [vmem:[#allocation71_spill] sm:$0xff]  ;;  %v17316_v0 = vld [vmem:[#allocation73_spill] sm:$0xff] }
 0x591   : > { %v9929_v12 = vrot.slane %v9928_v3, 4  ;;  %v9933_v52 = vrot.slane %v9931_v21, 5  ;;  %v17302_v45 = vcombine.low %v17300_v49, %v17301_v4  ;;  %v17305_v26 = vcombine.low %v17303_v22, %v17304_v54  ;;  %v10784_v20 = vld [vmem:[%s13480_s10 + $0x38] sm:$0xff] }
 0x592   : > { %12662 = vmatmul.mubr.msk.bf16.gmra.mrb[16].mxu1 %vm1441_vm9, %v11651_v42  ;;  %v9883_v42 = vshll.u32 %v13365_v32, 16  ;;  %v9900_v10 = vsel %vm13495_vm12, %v9895_v25, %v9899_v61  ;;  %v9924_v57 = vsel %vm13495_vm12, %v9919_v31, %v9923_v34  ;;  %v17294_v61 = vld [vmem:[#allocation47_spill] sm:$0xff]  ;;  %v17307_v32 = vld [vmem:[#allocation64_spill] sm:$0xff]  ;;  %v17311_v30 = vcombine.low %v17309_v7, %v17310_v15  ;;  %v17312_v34 = vld [vmem:[#allocation70_spill] sm:$0xff] }
 0x593   : > { %12665 = vmatprep.mubr.msk.bf16.mxu1 %vm1441_vm9, %v11652_v58  ;;  %v9909_v58 = vrot.slane %v9907_v63, 5  ;;  %v9934_v24 = vsel %vm13495_vm12, %v9929_v12, %v9933_v52  ;;  %v17296_v37 = vcombine.low %v17294_v61, %v17295_v40  ;;  %v17317_v62 = vcombine.low %v17315_v36, %v17316_v0  ;;  %v17318_v63 = vld [vmem:[#allocation74_spill] sm:$0xff]  ;;  %v10781_v61 = vld [vmem:[%s13480_s10 + $0x20] sm:$0xff] }
 0x594   : > { %v9885_v35 = vrot.slane %v9883_v42, 5  ;;  %v11657_v17 = vcombine.low %v9924_v57, %v9934_v24  ;;  %v17308_v42 = vcombine.low %v17306_v5, %v17307_v32  ;;  %v17324_v60 = vcombine.low %v16308_v47, %v17323_v43 }
 0x595   : > { %v9910_v11 = vsel %vm13495_vm12, %v9905_v18, %v9909_v58  ;;  %v10778_v58 = vld [vmem:[%s13480_s10 + $0x8] sm:$0xff] }
 0x596   : > { %v9886_v39 = vsel %vm13495_vm12, %v9881_v48, %v9885_v35  ;;  %v11656_v41 = vcombine.low %v9900_v10, %v9910_v11  ;;  %v17320_v48 = vld [vmem:[#allocation75_spill] sm:$0xff]  ;;  %v17321_v35 = vld [vmem:[#allocation76_spill] sm:$0xff] }
 0x597   : > { %v11655_v13 = vcombine.low %v9876_v16, %v9886_v39  ;;  %v17322_v18 = vcombine.low %v17320_v48, %v17321_v35 }
 0x59a   : > { %12666 = vmatmul.mubr.msk.bf16.gmra.mrb[20].mxu1 %vm1441_vm9, %v11653_v46  ;;  %v17314_v46 = vcombine.low %v17312_v34, %v17313_v28 }
 0x59b   : > { %12669 = vmatprep.mubr.msk.bf16.mxu1 %vm1441_vm9, %v11654_v9  ;;  %v17319_v9 = vcombine.low %v16276_v29, %v17318_v63  ;;  %v16811_v29 = vld [vmem:[%s16993_s5] ss:$0 sm:$0xff] }
 0x59c   : > { %v10785_v63 = vld [vmem:[%s13480_s10 + $0x40] sm:$0xff] }
 0x5a2   : > { %12670 = vmatmul.mubr.msk.bf16.gmra.mrb[24].mxu1 %vm1441_vm9, %v11655_v13 }
 0x5a3   : > { %12673 = vmatprep.mubr.msk.bf16.mxu1 %vm1441_vm9, %v11656_v41 }
 0x5aa   : > { %12674 = vmatmul.mubr.msk.bf16.gmra.mrb[28].mxu1 %vm1441_vm9, %v11657_v17  ;;  %v10783_v17 = vld [vmem:[%s13480_s10 + $0x30] sm:$0xff] }
 0x5ab   : > { %12679 = vmatprep.mubr.msk.bf16.mxu1 %vm1441_vm9, %v17293_v59 }
 0x5b2   : > { %12680 = vmatmul.mubr.msk.bf16.vlgmr.msra.gmra.mrb[0].mxu1 %vm1441_vm9, %v17296_v37 }
 0x5b3   : > { %12683 = vmatprep.mubr.msk.bf16.mxu1 %vm1441_vm9, %v17299_v14 }
 0x5ba   : > { %12684 = vmatmul.mubr.msk.bf16.gmra.mrb[4].mxu1 %vm1441_vm9, %v17302_v45  ;;  %v10782_v45 = vld [vmem:[%s13480_s10 + $0x28] sm:$0xff] }
 0x5bb   : > { %12687 = vmatprep.mubr.msk.bf16.mxu1 %vm1441_vm9, %v17305_v26 }
 0x5c2   : > { %12688 = vmatmul.mubr.msk.bf16.gmra.mrb[8].mxu1 %vm1441_vm9, %v17308_v42 }
 0x5c3   : > { %12691 = vmatprep.mubr.msk.bf16.mxu1 %vm1441_vm9, %v17311_v30 }
 0x5ca   : > { %12692 = vmatmul.mubr.msk.bf16.gmra.mrb[12].mxu1 %vm1441_vm9, %v17314_v46  ;;  %v10787_v46 = vld [vmem:[%s13480_s10 + $0x50] sm:$0xff] }
 0x5cb   : > { %12695 = vmatprep.mubr.msk.bf16.mxu1 %vm1441_vm9, %v17317_v62 }
 0x5d2   : > { %12696 = vmatmul.mubr.msk.bf16.gmra.mrb[16].mxu1 %vm1441_vm9, %v17319_v9 }
 0x5d3   : > { %12699 = vmatprep.mubr.msk.bf16.mxu1 %vm1441_vm9, %v17322_v18  ;;  %v10788_v18 = vld [vmem:[%s13480_s10 + $0x58] sm:$0xff] }
 0x5da   : > { %12700 = vmatmul.mubr.msk.bf16.gmra.mrb[20].mxu1 %vm1441_vm9, %v17324_v60 }
 0x5db   : > { %12703 = vmatprep.mubr.msk.bf16.mxu1 %vm1441_vm9, %v11703_v55 }
 0x5e2   : > { %12704 = vmatmul.mubr.msk.bf16.gmra.mrb[24].mxu1 %vm1441_vm9, %v11704_v2 }
 0x5e3   : > { %12707 = vmatprep.mubr.msk.bf16.mxu1 %vm1441_vm9, %v11705_v44 }
 0x5ea   : > { %12708 = vmatmul.mubr.msk.bf16.gmra.mrb[28].mxu1 %vm1441_vm9, %v11706_v23  ;;  %v10780_v23 = vld [vmem:[%s13480_s10 + $0x18] sm:$0xff] }
 0x685   : > { %v12681_v47 = vpop.f32.mrb[0].mxu1 }
 0x686   : > { %v10708_v27 = vmul.f32 %v12681_v47, %v16811_v29  ;;  %v10540_v55 = vpop.f32.mrb[1].mxu1 }
 0x687   : > { %v10706_v50 = vmul.f32 %v16811_v29, %v10540_v55  ;;  %v12682_v2 = vpop.f32.mrb[2].mxu1 }
 0x688   : > { %v10747_v19 = vadd.f32 %v16816_v33, %v10708_v27  ;;  %v10709_v44 = vmul.f32 %v12682_v2, %v16811_v29  ;;  %v10543_v8 = vpop.f32.mrb[3].mxu1  ;;  %v10786_v27 = vld [vmem:[%s13480_s10 + $0x48] sm:$0xff] }
 0x689   : > { %v10745_v53 = vadd.f32 %v16816_v33, %v10706_v50  ;;  %v10707_v3 = vmul.f32 %v16811_v29, %v10543_v8 }
 0x68a   : > { %v10811_v21 = vadd.f32 %v10779_v6, %v10747_v19  ;;  %v10748_v25 = vadd.f32 %v16816_v33, %v10709_v44 }
 0x68b   : > { %v10809_v39 = vadd.f32 %v10777_v51, %v10745_v53  ;;  %v10746_v11 = vadd.f32 %v16816_v33, %v10707_v3 }
 0x68c   : > { %v10843_v16 = vmax.f32 %v10811_v21, 0.0  ;;  %v10812_v31 = vadd.f32 %v10780_v23, %v10748_v25  ;;  %v10791_v21 = vld [vmem:[%s13480_s10 + $0x70] sm:$0xff] }
 0x68d   : > { %v10841_v12 = vmax.f32 %v10809_v39, 0.0  ;;  %v10810_v52 = vadd.f32 %v10778_v58, %v10746_v11  ;;  %v12685_v13 = vpop.f32.mrb[4].mxu1  ;;  %v10789_v11 = vld [vmem:[%s13480_s10 + $0x60] sm:$0xff] }
 0x68e   : > { %10875 = vst.msk [vmem:[%s16834_s21 + $0x10] sm:$0xff] %vm1441_vm9, %v10843_v16  ;;  %v10844_v10 = vmax.f32 %v10812_v31, 0.0  ;;  %v10712_v41 = vmul.f32 %v12685_v13, %v16811_v29  ;;  %v10556_v57 = vpop.f32.mrb[5].mxu1 }
 0x68f   : > { %10873 = vst.msk [vmem:[%s16834_s21] sm:$0xff] %vm1441_vm9, %v10841_v12  ;;  %v10842_v24 = vmax.f32 %v10810_v52, 0.0  ;;  %v10710_v38 = vmul.f32 %v16811_v29, %v10556_v57  ;;  %v12686_v1 = vpop.f32.mrb[6].mxu1  ;;  %v10792_v52 = vld [vmem:[%s13480_s10 + $0x78] sm:$0xff]  ;;  %v10790_v57 = vld [vmem:[%s13480_s10 + $0x68] sm:$0xff] }
 0x690   : > { %10876 = vst.msk [vmem:[%s16834_s21 + $0x18] sm:$0xff] %vm1441_vm9, %v10844_v10  ;;  %v10751_v59 = vadd.f32 %v16816_v33, %v10712_v41  ;;  %v10713_v40 = vmul.f32 %v12686_v1, %v16811_v29  ;;  %v10559_v37 = vpop.f32.mrb[7].mxu1 }
 0x691   : > { %10874 = vst.msk [vmem:[%s16834_s21 + $0x8] sm:$0xff] %vm1441_vm9, %v10842_v24  ;;  %v10749_v56 = vadd.f32 %v16816_v33, %v10710_v38  ;;  %v10711_v14 = vmul.f32 %v16811_v29, %v10559_v37 }
 0x692   : > { %v10815_v49 = vadd.f32 %v10783_v17, %v10751_v59  ;;  %v10752_v4 = vadd.f32 %v16816_v33, %v10713_v40 }
 0x693   : > { %v10813_v22 = vadd.f32 %v10781_v61, %v10749_v56  ;;  %v10750_v54 = vadd.f32 %v16816_v33, %v10711_v14 }
 0x694   : > { %v10847_v26 = vmax.f32 %v10815_v49, 0.0  ;;  %v10816_v5 = vadd.f32 %v10784_v20, %v10752_v4  ;;  %v10795_v49 = vld [vmem:[%s13480_s10 + $0x90] sm:$0xff] }
 0x695   : > { %v10845_v32 = vmax.f32 %v10813_v22, 0.0  ;;  %v10814_v42 = vadd.f32 %v10782_v45, %v10750_v54  ;;  %v12689_v7 = vpop.f32.mrb[8].mxu1  ;;  %v10793_v54 = vld [vmem:[%s13480_s10 + $0x80] sm:$0xff] }
 0x696   : > { %10879 = vst.msk [vmem:[%s16834_s21 + $0x30] sm:$0xff] %vm1441_vm9, %v10847_v26  ;;  %v10848_v15 = vmax.f32 %v10816_v5, 0.0  ;;  %v10716_v30 = vmul.f32 %v12689_v7, %v16811_v29  ;;  %v10572_v34 = vpop.f32.mrb[9].mxu1 }
 0x697   : > { %10877 = vst.msk [vmem:[%s16834_s21 + $0x20] sm:$0xff] %vm1441_vm9, %v10845_v32  ;;  %v10846_v28 = vmax.f32 %v10814_v42, 0.0  ;;  %v10714_v36 = vmul.f32 %v16811_v29, %v10572_v34  ;;  %v12690_v0 = vpop.f32.mrb[10].mxu1  ;;  %v10796_v42 = vld [vmem:[%s13480_s10 + $0x98] sm:$0xff]  ;;  %v10794_v34 = vld [vmem:[%s13480_s10 + $0x88] sm:$0xff] }
 0x698   : > { %10880 = vst.msk [vmem:[%s16834_s21 + $0x38] sm:$0xff] %vm1441_vm9, %v10848_v15  ;;  %v10755_v62 = vadd.f32 %v16816_v33, %v10716_v30  ;;  %v10717_v9 = vmul.f32 %v12690_v0, %v16811_v29  ;;  %v10575_v48 = vpop.f32.mrb[11].mxu1 }
 0x699   : > { %10878 = vst.msk [vmem:[%s16834_s21 + $0x28] sm:$0xff] %vm1441_vm9, %v10846_v28  ;;  %v10753_v35 = vadd.f32 %v16816_v33, %v10714_v36  ;;  %v10715_v43 = vmul.f32 %v16811_v29, %v10575_v48 }
 0x69a   : > { %v10819_v60 = vadd.f32 %v10787_v46, %v10755_v62  ;;  %v10756_v47 = vadd.f32 %v16816_v33, %v10717_v9 }
 0x69b   : > { %v10817_v55 = vadd.f32 %v10785_v63, %v10753_v35  ;;  %v10754_v6 = vadd.f32 %v16816_v33, %v10715_v43 }
 0x69c   : > { %v10851_v50 = vmax.f32 %v10819_v60, 0.0  ;;  %v10820_v2 = vadd.f32 %v10788_v18, %v10756_v47  ;;  %v10799_v60 = vld [vmem:[%s13480_s10 + $0xb0] sm:$0xff] }
 0x69d   : > { %v10849_v19 = vmax.f32 %v10817_v55, 0.0  ;;  %v10818_v51 = vadd.f32 %v10786_v27, %v10754_v6  ;;  %v12693_v44 = vpop.f32.mrb[12].mxu1  ;;  %v10797_v6 = vld [vmem:[%s13480_s10 + $0xa0] sm:$0xff] }
 0x69e   : > { %10883 = vst.msk [vmem:[%s16834_s21 + $0x50] sm:$0xff] %vm1441_vm9, %v10851_v50  ;;  %v10852_v8 = vmax.f32 %v10820_v2, 0.0  ;;  %v10720_v53 = vmul.f32 %v12693_v44, %v16811_v29  ;;  %v10588_v23 = vpop.f32.mrb[13].mxu1 }
 0x69f   : > { %10881 = vst.msk [vmem:[%s16834_s21 + $0x40] sm:$0xff] %vm1441_vm9, %v10849_v19  ;;  %v10850_v3 = vmax.f32 %v10818_v51, 0.0  ;;  %v10718_v25 = vmul.f32 %v16811_v29, %v10588_v23  ;;  %v12694_v58 = vpop.f32.mrb[14].mxu1  ;;  %v10800_v51 = vld [vmem:[%s13480_s10 + $0xb8] sm:$0xff]  ;;  %v10798_v23 = vld [vmem:[%s13480_s10 + $0xa8] sm:$0xff] }
 0x6a0   : > { %10884 = vst.msk [vmem:[%s16834_s21 + $0x58] sm:$0xff] %vm1441_vm9, %v10852_v8  ;;  %v10759_v39 = vadd.f32 %v16816_v33, %v10720_v53  ;;  %v10721_v16 = vmul.f32 %v12694_v58, %v16811_v29  ;;  %v10591_v31 = vpop.f32.mrb[15].mxu1 }
 0x6a1   : > { %10882 = vst.msk [vmem:[%s16834_s21 + $0x48] sm:$0xff] %vm1441_vm9, %v10850_v3  ;;  %v10757_v12 = vadd.f32 %v16816_v33, %v10718_v25  ;;  %v10719_v13 = vmul.f32 %v16811_v29, %v10591_v31 }
 0x6a2   : > { %v10823_v10 = vadd.f32 %v10791_v21, %v10759_v39  ;;  %v10760_v41 = vadd.f32 %v16816_v33, %v10721_v16 }
 0x6a3   : > { %v10821_v24 = vadd.f32 %v10789_v11, %v10757_v12  ;;  %v10758_v17 = vadd.f32 %v16816_v33, %v10719_v13 }
 0x6a4   : > { %v10855_v38 = vmax.f32 %v10823_v10, 0.0  ;;  %v10824_v1 = vadd.f32 %v10792_v52, %v10760_v41  ;;  %v10803_v10 = vld [vmem:[%s13480_s10 + $0xd0] sm:$0xff] }
 0x6a5   : > { %v10853_v59 = vmax.f32 %v10821_v24, 0.0  ;;  %v10822_v61 = vadd.f32 %v10790_v57, %v10758_v17  ;;  %v12697_v40 = vpop.f32.mrb[16].mxu1  ;;  %v10801_v17 = vld [vmem:[%s13480_s10 + $0xc0] sm:$0xff] }
 0x6a6   : > { %10887 = vst.msk [vmem:[%s16834_s21 + $0x70] sm:$0xff] %vm1441_vm9, %v10855_v38  ;;  %v10856_v37 = vmax.f32 %v10824_v1, 0.0  ;;  %v10724_v56 = vmul.f32 %v12697_v40, %v16811_v29  ;;  %v10604_v20 = vpop.f32.mrb[17].mxu1 }
 0x6a7   : > { %10885 = vst.msk [vmem:[%s16834_s21 + $0x60] sm:$0xff] %vm1441_vm9, %v10853_v59  ;;  %v10854_v14 = vmax.f32 %v10822_v61, 0.0  ;;  %v10722_v4 = vmul.f32 %v16811_v29, %v10604_v20  ;;  %v12698_v45 = vpop.f32.mrb[18].mxu1  ;;  %v10804_v61 = vld [vmem:[%s13480_s10 + $0xd8] sm:$0xff]  ;;  %v10802_v20 = vld [vmem:[%s13480_s10 + $0xc8] sm:$0xff] }
 0x6a8   : > { %10888 = vst.msk [vmem:[%s16834_s21 + $0x78] sm:$0xff] %vm1441_vm9, %v10856_v37  ;;  %v10763_v22 = vadd.f32 %v16816_v33, %v10724_v56  ;;  %v10725_v26 = vmul.f32 %v12698_v45, %v16811_v29  ;;  %v10607_v5 = vpop.f32.mrb[19].mxu1 }
 0x6a9   : > { %10886 = vst.msk [vmem:[%s16834_s21 + $0x68] sm:$0xff] %vm1441_vm9, %v10854_v14  ;;  %v10761_v32 = vadd.f32 %v16816_v33, %v10722_v4  ;;  %v10723_v7 = vmul.f32 %v16811_v29, %v10607_v5 }
 0x6aa   : > { %v10827_v15 = vadd.f32 %v10795_v49, %v10763_v22  ;;  %v10764_v30 = vadd.f32 %v16816_v33, %v10725_v26 }
 0x6ab   : > { %v10825_v28 = vadd.f32 %v10793_v54, %v10761_v32  ;;  %v10762_v46 = vadd.f32 %v16816_v33, %v10723_v7 }
 0x6ac   : > { %v10859_v36 = vmax.f32 %v10827_v15, 0.0  ;;  %v10828_v0 = vadd.f32 %v10796_v42, %v10764_v30  ;;  %v10807_v15 = vld [vmem:[%s13480_s10 + $0xf0] sm:$0xff] }
 0x6ad   : > { %v10857_v62 = vmax.f32 %v10825_v28, 0.0  ;;  %v10826_v63 = vadd.f32 %v10794_v34, %v10762_v46  ;;  %v12701_v9 = vpop.f32.mrb[20].mxu1  ;;  %v10805_v46 = vld [vmem:[%s13480_s10 + $0xe0] sm:$0xff] }
 0x6ae   : > { %10891 = vst.msk [vmem:[%s16834_s21 + $0x90] sm:$0xff] %vm1441_vm9, %v10859_v36  ;;  %v10860_v48 = vmax.f32 %v10828_v0, 0.0  ;;  %v10728_v35 = vmul.f32 %v12701_v9, %v16811_v29  ;;  %v10620_v18 = vpop.f32.mrb[21].mxu1 }
 0x6af   : > { %10889 = vst.msk [vmem:[%s16834_s21 + $0x80] sm:$0xff] %vm1441_vm9, %v10857_v62  ;;  %v10858_v43 = vmax.f32 %v10826_v63, 0.0  ;;  %v10726_v47 = vmul.f32 %v16811_v29, %v10620_v18  ;;  %v12702_v27 = vpop.f32.mrb[22].mxu1  ;;  %v10808_v63 = vld [vmem:[%s13480_s10 + $0xf8] sm:$0xff]  ;;  %v10806_v18 = vld [vmem:[%s13480_s10 + $0xe8] sm:$0xff] }
 0x6b0   : > { %10892 = vst.msk [vmem:[%s16834_s21 + $0x98] sm:$0xff] %vm1441_vm9, %v10860_v48  ;;  %v10767_v55 = vadd.f32 %v16816_v33, %v10728_v35  ;;  %v10729_v50 = vmul.f32 %v12702_v27, %v16811_v29  ;;  %v10623_v2 = vpop.f32.mrb[23].mxu1 }
 0x6b1   : > { %10890 = vst.msk [vmem:[%s16834_s21 + $0x88] sm:$0xff] %vm1441_vm9, %v10858_v43  ;;  %v10765_v19 = vadd.f32 %v16816_v33, %v10726_v47  ;;  %v10727_v44 = vmul.f32 %v16811_v29, %v10623_v2 }
 0x6b2   : > { %v10831_v8 = vadd.f32 %v10799_v60, %v10767_v55  ;;  %v10768_v53 = vadd.f32 %v16816_v33, %v10729_v50 }
 0x6b3   : > { %v10829_v3 = vadd.f32 %v10797_v6, %v10765_v19  ;;  %v10766_v21 = vadd.f32 %v16816_v33, %v10727_v44 }
 0x6b4   : > { %v10863_v25 = vmax.f32 %v10831_v8, 0.0  ;;  %v10832_v58 = vadd.f32 %v10800_v51, %v10768_v53 }
 0x6b5   : > { %v10861_v39 = vmax.f32 %v10829_v3, 0.0  ;;  %v10830_v11 = vadd.f32 %v10798_v23, %v10766_v21  ;;  %v12705_v16 = vpop.f32.mrb[24].mxu1 }
 0x6b6   : > { %10895 = vst.msk [vmem:[%s16834_s21 + $0xb0] sm:$0xff] %vm1441_vm9, %v10863_v25  ;;  %v10864_v31 = vmax.f32 %v10832_v58, 0.0  ;;  %v10732_v12 = vmul.f32 %v12705_v16, %v16811_v29  ;;  %v10636_v52 = vpop.f32.mrb[25].mxu1 }
 0x6b7   : > { %10893 = vst.msk [vmem:[%s16834_s21 + $0xa0] sm:$0xff] %vm1441_vm9, %v10861_v39  ;;  %v10862_v13 = vmax.f32 %v10830_v11, 0.0  ;;  %v10730_v41 = vmul.f32 %v16811_v29, %v10636_v52  ;;  %v12706_v57 = vpop.f32.mrb[26].mxu1 }
 0x6b8   : > { %10896 = vst.msk [vmem:[%s16834_s21 + $0xb8] sm:$0xff] %vm1441_vm9, %v10864_v31  ;;  %v10771_v24 = vadd.f32 %v16816_v33, %v10732_v12  ;;  %v10733_v38 = vmul.f32 %v12706_v57, %v16811_v29  ;;  %v10639_v1 = vpop.f32.mrb[27].mxu1 }
 0x6b9   : > { %10894 = vst.msk [vmem:[%s16834_s21 + $0xa8] sm:$0xff] %vm1441_vm9, %v10862_v13  ;;  %v10769_v59 = vadd.f32 %v16816_v33, %v10730_v41  ;;  %v10731_v40 = vmul.f32 %v16811_v29, %v10639_v1 }
 0x6ba   : > { %v10835_v37 = vadd.f32 %v10803_v10, %v10771_v24  ;;  %v10772_v56 = vadd.f32 %v16816_v33, %v10733_v38 }
 0x6bb   : > { %v10833_v14 = vadd.f32 %v10801_v17, %v10769_v59  ;;  %v10770_v49 = vadd.f32 %v16816_v33, %v10731_v40 }
 0x6bc   : > { %v10867_v4 = vmax.f32 %v10835_v37, 0.0  ;;  %v10836_v45 = vadd.f32 %v10804_v61, %v10772_v56 }
 0x6bd   : > { %v10865_v22 = vmax.f32 %v10833_v14, 0.0  ;;  %v10834_v54 = vadd.f32 %v10802_v20, %v10770_v49  ;;  %v12709_v26 = vpop.f32.mrb[28].mxu1 }
 0x6be   : > { %10899 = vst.msk [vmem:[%s16834_s21 + $0xd0] sm:$0xff] %vm1441_vm9, %v10867_v4  ;;  %v10868_v5 = vmax.f32 %v10836_v45, 0.0  ;;  %v10736_v32 = vmul.f32 %v12709_v26, %v16811_v29  ;;  %v10652_v42 = vpop.f32.mrb[29].mxu1 }
 0x6bf   : > { %10897 = vst.msk [vmem:[%s16834_s21 + $0xc0] sm:$0xff] %vm1441_vm9, %v10865_v22  ;;  %v10866_v7 = vmax.f32 %v10834_v54, 0.0  ;;  %v10734_v30 = vmul.f32 %v16811_v29, %v10652_v42  ;;  %v12710_v34 = vpop.f32.mrb[30].mxu1 }
 0x6c0   : > { %10900 = vst.msk [vmem:[%s16834_s21 + $0xd8] sm:$0xff] %vm1441_vm9, %v10868_v5  ;;  %v10775_v28 = vadd.f32 %v16816_v33, %v10736_v32  ;;  %v10737_v36 = vmul.f32 %v12710_v34, %v16811_v29  ;;  %v10655_v0 = vpop.f32.mrb[31].mxu1 }
 0x6c1   : > { %10898 = vst.msk [vmem:[%s16834_s21 + $0xc8] sm:$0xff] %vm1441_vm9, %v10866_v7  ;;  %v10773_v62 = vadd.f32 %v16816_v33, %v10734_v30  ;;  %v10735_v9 = vmul.f32 %v16811_v29, %v10655_v0 }
 0x6c2   : > { %v10839_v48 = vadd.f32 %v10807_v15, %v10775_v28  ;;  %v10776_v35 = vadd.f32 %v16816_v33, %v10737_v36 }
 0x6c3   : > { %v10837_v43 = vadd.f32 %v10805_v46, %v10773_v62  ;;  %v10774_v60 = vadd.f32 %v16816_v33, %v10735_v9 }
 0x6c4   : > { %v10871_v47 = vmax.f32 %v10839_v48, 0.0  ;;  %v10840_v27 = vadd.f32 %v10808_v63, %v10776_v35 }
 0x6c5   : > { %v10869_v55 = vmax.f32 %v10837_v43, 0.0  ;;  %v10838_v6 = vadd.f32 %v10806_v18, %v10774_v60 }
 0x6c6   : > { %10903 = vst.msk [vmem:[%s16834_s21 + $0xf0] sm:$0xff] %vm1441_vm9, %v10871_v47  ;;  %v10872_v50 = vmax.f32 %v10840_v27, 0.0 }
 0x6c7   : > { %10901 = vst.msk [vmem:[%s16834_s21 + $0xe0] sm:$0xff] %vm1441_vm9, %v10869_v55  ;;  %v10870_v2 = vmax.f32 %v10838_v6, 0.0 }
 0x6c8   : > { %10904 = vst.msk [vmem:[%s16834_s21 + $0xf8] sm:$0xff] %vm1441_vm9, %v10872_v50 }
 0x6c9   : > { %10902 = vst.msk [vmem:[%s16834_s21 + $0xe8] sm:$0xff] %vm1441_vm9, %v10870_v2 }
 0x6ca PF: > { %s17_s24 = sadd.s32 1, %s13373_s24  }
 0x6cb   : > { %p14_p4 = scmp.ge.s32.totalorder %s17_s24, 4  }
 0x6cd   :  { %16 = sbr.rel (!%p14_p4) target bundleno = 1 (0x1), region = 97 }

</bundles_post_ra>
